<compile_context>
chip_gen: v6e
topology: v6e:2x2x1
jax: 0.10.0
libtpu: 0.0.40
codegen_flags: <defaults>
</compile_context>

<pallas_src>
import functools

import jax
import jax.numpy as jnp
from jax import lax
from jax.experimental import pallas as pl
from jax.experimental.pallas import tpu as pltpu

# MANO constants
V = 778            # number of vertices
VP = 896           # V padded to a multiple of 128 (lane axis inside the kernel)
NJ = 16            # number of joints (incl. root)
NPOSE = 135        # 15 joints * 9 (flattened rotmats minus identity)
NPOSE1 = NPOSE + 1 # pose map + homogeneous-1 column (folds v_shaped into matmul)
NSHAPE = 10        # shape (beta) components
NCOMPS = 6         # PCA pose components
ROT = 3            # axis-angle root rotation
TIP_IDXS = (745, 317, 444, 556, 673)  # right-hand fingertips
JTR_ORDER = (0, 13, 14, 15, 16, 1, 2, 3, 17, 4, 5, 6, 18,
             10, 11, 12, 19, 7, 8, 9, 20)

# Explicit per-matmul precision (replaces the old process-wide config flag).
PREC = lax.Precision.HIGHEST


# ----------------------------------------------------------------------------
# Pallas kernel: pose-corrective blendshapes + linear blend skinning for one
# batch tile.  Vertices live on the lane axis (padded to VP = 896).
# ----------------------------------------------------------------------------
def mano_skin_kernel(pm_ref, r2t_ref, pd_ref, wt_ref, out_ref, *, bt):
    # pm_ref:  (bt, 136)     pose_map ++ [1]     (homogeneous column)
    # r2t_ref: (12*bt, 16)   row = k*(3*bt) + i*bt + b, col = joint j
    # pd_ref:  (136, 3*VP)   rows 0..134: posedirs[p, c, v]; row 135: v_shaped
    # wt_ref:  (16, VP)      skinning weights transposed (joint, vertex)
    # out_ref: (3*bt, VP)    row i*bt + b -> coordinate i of batch element b
    #
    # v_posed (with v_shaped folded in): one lane-dense MXU matmul.
    vposed = jnp.dot(pm_ref[...], pd_ref[...],
                     preferred_element_type=jnp.float32,
                     precision=PREC)                              # (bt, 3*VP)
    # T[k*3bt + i*bt + b, v] = sum_j results2[b, j, i, k] * weights[v, j]
    T = jnp.dot(r2t_ref[...], wt_ref[...],
                preferred_element_type=jnp.float32,
                precision=PREC)                                   # (12*bt, VP)

    vx = vposed[:, 0 * VP:1 * VP]      # (bt, VP) lane-aligned static slices
    vy = vposed[:, 1 * VP:2 * VP]
    vz = vposed[:, 2 * VP:3 * VP]

    n3 = 3 * bt
    # Static 3-way unroll: each iteration is a full-tile (bt, VP) fused
    # multiply-add and one unmasked, sublane-aligned 2-D store.
    for i in range(3):
        s = i * bt
        out_ref[s:s + bt, :] = (T[0 * n3 + s:0 * n3 + s + bt] * vx
                                + T[1 * n3 + s:1 * n3 + s + bt] * vy
                                + T[2 * n3 + s:2 * n3 + s + bt] * vz
                                + T[3 * n3 + s:3 * n3 + s + bt])


def _round_up(x, m):
    return ((x + m - 1) // m) * m


def _choose_batch_tile(b):
    """Batch tile: multiple of 8, capped at 128 (fills the MXU M dimension),
    and >= 2 grid steps when the batch allows so the 'parallel' axis can shard
    across v7x's two TensorCores."""
    b8 = _round_up(b, 8)
    if b8 <= 8:
        return 8
    if b8 > 128:
        return 128
    return _round_up(b8 // 2, 8)


def skin_vertices(pose_map, results2, pd_aug, wt):
    """pose_map: (B,135), results2: (B,16,4,4), pd_aug: (136,3*VP), wt: (16,VP)
    -> verts (B, V, 3)."""
    f32 = jnp.float32
    B = pose_map.shape[0]
    bt = _choose_batch_tile(B)
    B_pad = _round_up(B, bt)
    G = B_pad // bt

    # pose_map augmented with homogeneous 1 column, batch padded -> (B_pad, 136)
    pm_aug = jnp.concatenate([pose_map, jnp.ones((B, 1), f32)], axis=1)
    pm_aug = jnp.pad(pm_aug, ((0, B_pad - B), (0, 0)))

    # results2 (B,16j,4i,4k) -> per-tile k-major rows: row = k*3*bt + i*bt + b
    r2 = jnp.pad(results2, ((0, B_pad - B), (0, 0), (0, 0), (0, 0)))
    r2 = jnp.transpose(r2, (3, 2, 0, 1))[:, :3]           # (4k, 3i, B_pad, 16j)
    r2 = r2.reshape(4, 3, G, bt, NJ)
    r2t = jnp.transpose(r2, (2, 0, 1, 3, 4)).reshape(G * 12 * bt, NJ)

    kernel = functools.partial(mano_skin_kernel, bt=bt)
    grid_spec = pltpu.PrefetchScalarGridSpec(
        num_scalar_prefetch=0,
        grid=(G,),
        in_specs=[
            pl.BlockSpec((bt, NPOSE1), lambda g: (g, 0)),
            pl.BlockSpec((12 * bt, NJ), lambda g: (g, 0)),
            pl.BlockSpec((NPOSE1, 3 * VP), lambda g: (0, 0)),   # batch invariant
            pl.BlockSpec((NJ, VP), lambda g: (0, 0)),           # batch invariant
        ],
        out_specs=pl.BlockSpec((3 * bt, VP), lambda g: (g, 0)),
    )
    flops = G * (2 * bt * NPOSE1 * 3 * VP + 2 * (12 * bt) * NJ * VP)
    bytes_accessed = 4 * (pm_aug.size + r2t.size + pd_aug.size + wt.size
                          + G * 3 * bt * VP)
    out2d = pl.pallas_call(
        kernel,
        out_shape=jax.ShapeDtypeStruct((G * 3 * bt, VP), f32),
        grid_spec=grid_spec,
        compiler_params=pltpu.CompilerParams(
            dimension_semantics=("parallel",)),
        cost_estimate=pl.CostEstimate(flops=flops, transcendentals=0,
                                      bytes_accessed=bytes_accessed),
    )(pm_aug, r2t, pd_aug, wt)

    # (G*3*bt, VP): row g*3*bt + i*bt + b  ->  (B, V, 3)
    verts = out2d.reshape(G, 3, bt, VP)
    verts = jnp.transpose(verts, (0, 2, 3, 1)).reshape(B_pad, VP, 3)
    return verts[:B, :V, :]


# ----------------------------------------------------------------------------
# Plain-JAX glue (tiny ops): Rodrigues, kinematic chain, reorderings.
# ----------------------------------------------------------------------------
def quat2mat(quat):
    q = quat / jnp.linalg.norm(quat, axis=1, keepdims=True)
    w, x, y, z = q[:, 0], q[:, 1], q[:, 2], q[:, 3]
    w2, x2, y2, z2 = w * w, x * x, y * y, z * z
    wx, wy, wz = w * x, w * y, w * z
    xy, xz, yz = x * y, x * z, y * z
    rot = jnp.stack([
        w2 + x2 - y2 - z2, 2 * xy - 2 * wz, 2 * wy + 2 * xz,
        2 * wz + 2 * xy, w2 - x2 + y2 - z2, 2 * yz - 2 * wx,
        2 * xz - 2 * wy, 2 * wx + 2 * yz, w2 - x2 - y2 + z2], axis=1)
    return rot  # (N, 9)


def batch_rodrigues(axisang):  # (N, 3) -> (N, 9)
    norm = jnp.linalg.norm(axisang + 1e-8, axis=1, keepdims=True)
    angle = norm * 0.5
    normalized = axisang / norm
    quat = jnp.concatenate([jnp.cos(angle), jnp.sin(angle) * normalized], axis=1)
    return quat2mat(quat)


def th_posemap_axisang(pose_vectors):  # (B, 48)
    B = pose_vectors.shape[0]
    rot_nb = pose_vectors.shape[1] // 3
    rot_mats = batch_rodrigues(pose_vectors.reshape(-1, 3)).reshape(B, rot_nb * 9)
    id_flat = jnp.tile(jnp.eye(3, dtype=rot_mats.dtype).reshape(1, 9), (B, rot_nb))
    return rot_mats - id_flat, rot_mats


def th_with_zeros(t):  # (N, 3, 4) -> (N, 4, 4)
    row = jnp.tile(jnp.array([[[0., 0., 0., 1.]]], dtype=t.dtype),
                   (t.shape[0], 1, 1))
    return jnp.concatenate([t, row], axis=1)


def make_mano_params(key):
    ks = jax.random.split(key, 8)
    params = {
        "betas": jax.random.normal(ks[0], (1, NSHAPE), jnp.float32) * 0.1,
        "shapedirs": jax.random.normal(ks[1], (V, 3, NSHAPE), jnp.float32) * 0.01,
        "posedirs": jax.random.normal(ks[2], (V, 3, NPOSE), jnp.float32) * 0.01,
        "v_template": jax.random.normal(ks[3], (1, V, 3), jnp.float32) * 0.1,
        "J_regressor": jax.nn.softmax(
            jax.random.normal(ks[4], (NJ, V), jnp.float32), axis=1),
        "weights": jax.nn.softmax(
            jax.random.normal(ks[5], (V, NJ), jnp.float32) * 2.0, axis=1),
        "hands_components": jax.random.normal(ks[6], (45, 45), jnp.float32) * 0.1,
        "hands_mean": jnp.zeros((1, 45), jnp.float32),   # flat_hand_mean=True
    }
    return params


def mano_init(params):
    """One-time preprocessing of the fixed MANO buffers into the layouts the
    Pallas kernel consumes (hoisted out of the per-call forward)."""
    f32 = jnp.float32
    # shaped template (default-betas branch uses the buffer betas) and joints
    v_shaped = (jnp.einsum("vcs,s->vc", params["shapedirs"], params["betas"][0],
                           precision=PREC)
                + params["v_template"][0])                          # (V, 3)
    j_base = jnp.matmul(params["J_regressor"], v_shaped,
                        precision=PREC)                             # (16, 3)

    # posedirs (V,3,135) -> (135,3,V) -> pad V->VP -> (135, 3*VP); append
    # v_shaped as row 135 so the blendshape matmul also adds the shaped template.
    pd = jnp.transpose(params["posedirs"], (2, 1, 0))               # (135, 3, V)
    pd = jnp.pad(pd, ((0, 0), (0, 0), (0, VP - V))).reshape(NPOSE, 3 * VP)
    vs = jnp.pad(v_shaped.T, ((0, 0), (0, VP - V))).reshape(1, 3 * VP)
    pd_aug = jnp.concatenate([pd, vs], axis=0).astype(f32)          # (136, 3*VP)
    wt = jnp.pad(params["weights"].T, ((0, 0), (0, VP - V))).astype(f32)  # (16,VP)

    return {
        "sel_comps": params["hands_components"][:NCOMPS],           # (6, 45)
        "hands_mean": params["hands_mean"],                         # (1, 45)
        "v_shaped": v_shaped,
        "j_base": j_base,
        "pd_aug": pd_aug,
        "wt": wt,
        # raw buffers kept only for the pure-JAX reference path
        "posedirs": params["posedirs"],
        "weights": params["weights"],
    }


def mano_forward(consts, th_pose_coeffs, use_pallas=True):
    """Replicates ManoLayer.forward with default th_betas/th_trans/root_palm."""
    f32 = jnp.float32
    B = th_pose_coeffs.shape[0]

    # PCA pose -> full 45-dim hand pose
    th_hand_pose_coeffs = th_pose_coeffs[:, ROT:ROT + NCOMPS]
    th_full_hand_pose = jnp.matmul(th_hand_pose_coeffs, consts["sel_comps"],
                                   precision=PREC)                   # (B, 45)
    th_full_pose = jnp.concatenate(
        [th_pose_coeffs[:, :ROT], consts["hands_mean"] + th_full_hand_pose], axis=1)

    # axis-angle -> rotation matrices and pose map
    th_pose_map, th_rot_map = th_posemap_axisang(th_full_pose)       # (B, 144)
    root_rot = th_rot_map[:, :9].reshape(B, 3, 3)
    th_rot_map = th_rot_map[:, 9:]                                   # (B, 135)
    th_pose_map = th_pose_map[:, 9:]                                 # (B, 135)

    v_shaped = consts["v_shaped"]
    th_j = jnp.tile(consts["j_base"][None], (B, 1, 1))               # (B, 16, 3)

    # kinematic chain (tiny 4x4 matmuls, plain JAX)
    root_j = th_j[:, 0, :].reshape(B, 3, 1)
    root_trans = th_with_zeros(jnp.concatenate([root_rot, root_j], axis=2))
    all_rots = th_rot_map.reshape(B, 15, 3, 3)
    lev1_idxs = [1, 4, 7, 10, 13]
    lev2_idxs = [2, 5, 8, 11, 14]
    lev3_idxs = [3, 6, 9, 12, 15]
    lev1_rots = all_rots[:, [i - 1 for i in lev1_idxs]]
    lev2_rots = all_rots[:, [i - 1 for i in lev2_idxs]]
    lev3_rots = all_rots[:, [i - 1 for i in lev3_idxs]]
    lev1_j = th_j[:, lev1_idxs]
    lev2_j = th_j[:, lev2_idxs]
    lev3_j = th_j[:, lev3_idxs]

    all_transforms = [root_trans[:, None]]
    lev1_j_rel = lev1_j - jnp.transpose(root_j, (0, 2, 1))
    lev1_rel = th_with_zeros(jnp.concatenate(
        [lev1_rots, lev1_j_rel[..., None]], axis=3).reshape(-1, 3, 4))
    root_trans_flt = jnp.tile(root_trans[:, None], (1, 5, 1, 1)).reshape(B * 5, 4, 4)
    lev1_flt = jnp.matmul(root_trans_flt, lev1_rel, precision=PREC)
    all_transforms.append(lev1_flt.reshape(B, 5, 4, 4))

    lev2_j_rel = lev2_j - lev1_j
    lev2_rel = th_with_zeros(jnp.concatenate(
        [lev2_rots, lev2_j_rel[..., None]], axis=3).reshape(-1, 3, 4))
    lev2_flt = jnp.matmul(lev1_flt, lev2_rel, precision=PREC)
    all_transforms.append(lev2_flt.reshape(B, 5, 4, 4))

    lev3_j_rel = lev3_j - lev2_j
    lev3_rel = th_with_zeros(jnp.concatenate(
        [lev3_rots, lev3_j_rel[..., None]], axis=3).reshape(-1, 3, 4))
    lev3_flt = jnp.matmul(lev2_flt, lev3_rel, precision=PREC)
    all_transforms.append(lev3_flt.reshape(B, 5, 4, 4))

    reorder_idxs = [0, 1, 6, 11, 2, 7, 12, 3, 8, 13, 4, 9, 14, 5, 10, 15]
    th_results = jnp.concatenate(all_transforms, axis=1)[:, reorder_idxs]  # (B,16,4,4)
    th_results_global = th_results

    joint_js = jnp.concatenate([th_j, jnp.zeros((B, NJ, 1), f32)], axis=2)  # (B,16,4)
    tmp2 = jnp.matmul(th_results, joint_js[..., None], precision=PREC)      # (B,16,4,1)
    results2 = th_results - jnp.concatenate(
        [jnp.zeros((B, NJ, 4, 3), f32), tmp2], axis=3)                      # (B,16,4,4)

    # hot path: pose blendshapes + skinning
    if use_pallas:
        th_verts = skin_vertices(th_pose_map, results2,
                                 consts["pd_aug"], consts["wt"])            # (B,V,3)
    else:
        # pure-JAX reference path (debug / testing only)
        v_posed = v_shaped[None] + jnp.einsum(
            "vcp,bp->bvc", consts["posedirs"], th_pose_map, precision=PREC)
        rest_h = jnp.concatenate([v_posed, jnp.ones((B, V, 1), f32)], axis=-1)
        T_full = jnp.einsum("vj,bjik->bvik", consts["weights"], results2,
                            precision=PREC)
        th_verts = jnp.einsum("bvik,bvk->bvi", T_full, rest_h,
                              precision=PREC)[..., :3]

    # joints, fingertips, reorder (right hand tip indices)
    th_jtr = th_results_global[:, :, :3, 3]                                 # (B,16,3)
    tips = th_verts[:, jnp.array(TIP_IDXS)]                                 # (B,5,3)
    th_jtr = jnp.concatenate([th_jtr, tips], axis=1)                        # (B,21,3)
    th_jtr = th_jtr[:, jnp.array(JTR_ORDER)]

    # default th_trans == 0 and center_idx is None -> no translation / centering
    return th_verts * 1000.0, th_jtr * 1000.0


if __name__ == "__main__":
    key = jax.random.PRNGKey(0)
    kp, kx = jax.random.split(key)
    params = make_mano_params(kp)
    consts = mano_init(params)   # one-time buffer preprocessing (outside hot path)

    batch = 2
    # th_pose_coeffs: (batch, rot + ncomps) = (2, 9)
    th_pose_coeffs = jax.random.normal(kx, (batch, ROT + NCOMPS), jnp.float32) * 0.3

    fwd = jax.jit(functools.partial(mano_forward, consts, use_pallas=True))
    verts, jtr = fwd(th_pose_coeffs)
    jax.block_until_ready((verts, jtr))

    assert verts.shape == (batch, V, 3), verts.shape
    assert jtr.shape == (batch, 21, 3), jtr.shape
    assert bool(jnp.all(jnp.isfinite(verts))) and bool(jnp.all(jnp.isfinite(jtr)))

    # pure-JAX reference of the full forward (kept OUT of the production path)
    verts_ref, jtr_ref = jax.jit(
        functools.partial(mano_forward, consts, use_pallas=False))(th_pose_coeffs)
    max_err_v = float(jnp.max(jnp.abs(verts - verts_ref)))
    max_err_j = float(jnp.max(jnp.abs(jtr - jtr_ref)))
    # outputs are in millimetres; 5e-2 mm == 5e-5 m tolerance
    assert max_err_v < 5e-2, f"vertex mismatch: {max_err_v}"
    assert max_err_j < 5e-2, f"joint mismatch: {max_err_j}"

    print("KERNEL_OK")
</pallas_src>

<mosaic_0001>
module attributes {stable_mosaic.version = 11 : i64} {
  func.func @mano_skin_kernel(%arg0: i32, %arg1: memref<8x136xf32, #tpu.memory_space<vmem>>, %arg2: memref<96x16xf32, #tpu.memory_space<vmem>>, %arg3: memref<136x2688xf32, #tpu.memory_space<vmem>>, %arg4: memref<16x896xf32, #tpu.memory_space<vmem>>, %arg5: memref<24x896xf32, #tpu.memory_space<vmem>>) attributes {dimension_semantics = [#tpu.dimension_semantics<parallel>], iteration_bounds = array<i64: 1>, scalar_prefetch = 0 : i64, scratch_operands = 0 : i64, tpu.core_type = #tpu.core_type<tc>, window_params = [{transform_indices = @transform_0, window_bounds = array<i64: 8, 136>}, {transform_indices = @transform_1, window_bounds = array<i64: 96, 16>}, {pipeline_mode = #tpu.pipeline_mode<synchronous>, transform_indices = @transform_2, window_bounds = array<i64: 136, 2688>}, {pipeline_mode = #tpu.pipeline_mode<synchronous>, transform_indices = @transform_3, window_bounds = array<i64: 16, 896>}, {transform_indices = @transform_4, window_bounds = array<i64: 24, 896>}]} {
    %c0 = arith.constant 0 : index
    %c0_0 = arith.constant 0 : index
    %0 = vector.load %arg1[%c0, %c0_0] : memref<8x136xf32, #tpu.memory_space<vmem>>, vector<8x136xf32>
    %c0_1 = arith.constant 0 : index
    %c0_2 = arith.constant 0 : index
    %1 = vector.load %arg3[%c0_1, %c0_2] : memref<136x2688xf32, #tpu.memory_space<vmem>>, vector<136x2688xf32>
    %cst = arith.constant dense<0.000000e+00> : vector<8x2688xf32>
    %2 = tpu.matmul %0, %1, %cst {dimension_numbers = #tpu.dot_dimension_numbers<[1], [0], [0], [1], [0, 0, 1, 1], [], []>, precision = #tpu.contract_precision<fp32>} : vector<8x136xf32>, vector<136x2688xf32>, vector<8x2688xf32> -> vector<8x2688xf32>
    %c0_3 = arith.constant 0 : index
    %c0_4 = arith.constant 0 : index
    %3 = vector.load %arg2[%c0_3, %c0_4] : memref<96x16xf32, #tpu.memory_space<vmem>>, vector<96x16xf32>
    %c0_5 = arith.constant 0 : index
    %c0_6 = arith.constant 0 : index
    %4 = vector.load %arg4[%c0_5, %c0_6] : memref<16x896xf32, #tpu.memory_space<vmem>>, vector<16x896xf32>
    %cst_7 = arith.constant dense<0.000000e+00> : vector<96x896xf32>
    %5 = tpu.matmul %3, %4, %cst_7 {dimension_numbers = #tpu.dot_dimension_numbers<[1], [0], [0], [1], [0, 0, 1, 1], [], []>, precision = #tpu.contract_precision<fp32>} : vector<96x16xf32>, vector<16x896xf32>, vector<96x896xf32> -> vector<96x896xf32>
    %6 = vector.extract_strided_slice %2 {offsets = [0, 0], sizes = [8, 896], strides = [1, 1]} : vector<8x2688xf32> to vector<8x896xf32>
    %7 = vector.extract_strided_slice %2 {offsets = [0, 896], sizes = [8, 896], strides = [1, 1]} : vector<8x2688xf32> to vector<8x896xf32>
    %8 = vector.extract_strided_slice %2 {offsets = [0, 1792], sizes = [8, 896], strides = [1, 1]} : vector<8x2688xf32> to vector<8x896xf32>
    %9 = vector.extract_strided_slice %5 {offsets = [0, 0], sizes = [8, 896], strides = [1, 1]} : vector<96x896xf32> to vector<8x896xf32>
    %10 = arith.mulf %9, %6 : vector<8x896xf32>
    %11 = vector.extract_strided_slice %5 {offsets = [24, 0], sizes = [8, 896], strides = [1, 1]} : vector<96x896xf32> to vector<8x896xf32>
    %12 = arith.mulf %11, %7 : vector<8x896xf32>
    %13 = arith.addf %10, %12 : vector<8x896xf32>
    %14 = vector.extract_strided_slice %5 {offsets = [48, 0], sizes = [8, 896], strides = [1, 1]} : vector<96x896xf32> to vector<8x896xf32>
    %15 = arith.mulf %14, %8 : vector<8x896xf32>
    %16 = arith.addf %13, %15 : vector<8x896xf32>
    %17 = vector.extract_strided_slice %5 {offsets = [72, 0], sizes = [8, 896], strides = [1, 1]} : vector<96x896xf32> to vector<8x896xf32>
    %18 = arith.addf %16, %17 : vector<8x896xf32>
    %c0_8 = arith.constant 0 : index
    %c0_9 = arith.constant 0 : index
    %19 = vector.load %arg5[%c0_8, %c0_9] : memref<24x896xf32, #tpu.memory_space<vmem>>, vector<8x896xf32>
    tpu.vector_store %arg5[%c0_8, %c0_9], %18 {strides = array<i32>} : memref<24x896xf32, #tpu.memory_space<vmem>>, vector<8x896xf32>,
    %20 = vector.extract_strided_slice %5 {offsets = [8, 0], sizes = [8, 896], strides = [1, 1]} : vector<96x896xf32> to vector<8x896xf32>
    %21 = arith.mulf %20, %6 : vector<8x896xf32>
    %22 = vector.extract_strided_slice %5 {offsets = [32, 0], sizes = [8, 896], strides = [1, 1]} : vector<96x896xf32> to vector<8x896xf32>
    %23 = arith.mulf %22, %7 : vector<8x896xf32>
    %24 = arith.addf %21, %23 : vector<8x896xf32>
    %25 = vector.extract_strided_slice %5 {offsets = [56, 0], sizes = [8, 896], strides = [1, 1]} : vector<96x896xf32> to vector<8x896xf32>
    %26 = arith.mulf %25, %8 : vector<8x896xf32>
    %27 = arith.addf %24, %26 : vector<8x896xf32>
    %28 = vector.extract_strided_slice %5 {offsets = [80, 0], sizes = [8, 896], strides = [1, 1]} : vector<96x896xf32> to vector<8x896xf32>
    %29 = arith.addf %27, %28 : vector<8x896xf32>
    %c8 = arith.constant 8 : index
    %c0_10 = arith.constant 0 : index
    %30 = vector.load %arg5[%c8, %c0_10] : memref<24x896xf32, #tpu.memory_space<vmem>>, vector<8x896xf32>
    tpu.vector_store %arg5[%c8, %c0_10], %29 {strides = array<i32>} : memref<24x896xf32, #tpu.memory_space<vmem>>, vector<8x896xf32>,
    %31 = vector.extract_strided_slice %5 {offsets = [16, 0], sizes = [8, 896], strides = [1, 1]} : vector<96x896xf32> to vector<8x896xf32>
    %32 = arith.mulf %31, %6 : vector<8x896xf32>
    %33 = vector.extract_strided_slice %5 {offsets = [40, 0], sizes = [8, 896], strides = [1, 1]} : vector<96x896xf32> to vector<8x896xf32>
    %34 = arith.mulf %33, %7 : vector<8x896xf32>
    %35 = arith.addf %32, %34 : vector<8x896xf32>
    %36 = vector.extract_strided_slice %5 {offsets = [64, 0], sizes = [8, 896], strides = [1, 1]} : vector<96x896xf32> to vector<8x896xf32>
    %37 = arith.mulf %36, %8 : vector<8x896xf32>
    %38 = arith.addf %35, %37 : vector<8x896xf32>
    %39 = vector.extract_strided_slice %5 {offsets = [88, 0], sizes = [8, 896], strides = [1, 1]} : vector<96x896xf32> to vector<8x896xf32>
    %40 = arith.addf %38, %39 : vector<8x896xf32>
    %c16 = arith.constant 16 : index
    %c0_11 = arith.constant 0 : index
    %41 = vector.load %arg5[%c16, %c0_11] : memref<24x896xf32, #tpu.memory_space<vmem>>, vector<8x896xf32>
    tpu.vector_store %arg5[%c16, %c0_11], %40 {strides = array<i32>} : memref<24x896xf32, #tpu.memory_space<vmem>>, vector<8x896xf32>,
    return
  }
  func.func @transform_0(%arg0: i32) -> (i32, i32) {
    %c0_i32 = arith.constant 0 : i32
    %c0_i32_0 = arith.constant 0 : i32
    return %arg0, %c0_i32 : i32, i32
  }
  func.func @transform_1(%arg0: i32) -> (i32, i32) {
    %c0_i32 = arith.constant 0 : i32
    %c0_i32_0 = arith.constant 0 : i32
    return %arg0, %c0_i32 : i32, i32
  }
  func.func @transform_2(%arg0: i32) -> (i32, i32) {
    %c0_i32 = arith.constant 0 : i32
    %c0_i32_0 = arith.constant 0 : i32
    %c0_i32_1 = arith.constant 0 : i32
    return %c0_i32, %c0_i32_0 : i32, i32
  }
  func.func @transform_3(%arg0: i32) -> (i32, i32) {
    %c0_i32 = arith.constant 0 : i32
    %c0_i32_0 = arith.constant 0 : i32
    %c0_i32_1 = arith.constant 0 : i32
    return %c0_i32, %c0_i32_0 : i32, i32
  }
  func.func @transform_4(%arg0: i32) -> (i32, i32) {
    %c0_i32 = arith.constant 0 : i32
    %c0_i32_0 = arith.constant 0 : i32
    return %arg0, %c0_i32 : i32, i32
  }
}

</mosaic_0001>

<bundles_post_ra>
// kernel: mano_forward.1
= control target key start
LH: loop header
LB: loop body
LE: loop exit
PB: predicated region body
PF: predicated region fallthrough
CT: control target
= control target key end

     0   :  { %9 = vsyncpa [#allocation3], 0  ;;  %s14480_s15 = smov [#allocation2]   ;;  %s23843_s0 = inlined_call_operand.vmem [shape: f32[8,136], index: 0, kind: input, shape index: {}]   ;;  %s23844_s1 = inlined_call_operand.vmem [shape: f32[96,16], index: 1, kind: input, shape index: {}]   ;;  %s23845_s2 = inlined_call_operand.vmem [shape: f32[136,2688], index: 2, kind: input, shape index: {}]   ;;  %s23846_s3 = inlined_call_operand.hbm [shape: f32[16,896], index: 3, kind: input, shape index: {}]   ;;  %s23847_s4 = inlined_call_operand.vmem [shape: f32[24,896], index: 4, kind: output, shape index: {}]  }
   0x1   :  { %s21_s16 = sshll.u32 %s14480_s15, 4  ;;  %s22_s16 = int_to_ptr.vmem [resolvable:$true] %s21_s16 }
   0x2   :  { %s14466_s17 = scalar_lea.vmem %s22_s16, 1792  ;;  %p14471_p1 = scmp.lt.s32.totalorder %s22_s16, %s22_s16 }
   0x3   :  { %p14467_p0 = scmp.ne.s32.totalorder %s22_s16, %s14466_s17  ;;  %p14472_p2 = scmp.lt.s32.totalorder %s14466_s17, %s14466_s17 }
   0x5   :  { %p14473_p3 = por %p14472_p2, %p14471_p1 }
   0x7   :  { %p14474_p4 = pnand %p14473_p3, %p14467_p0 }
   0x9   :  { %14477 = shalt.err (!%p14474_p4)
}
   0xa   :  { %s14481_s18 = smov 896   ;;  %s14482_s19 = smov 56  }
   0xb   :  { %27 = dma.hbm_to_vmem [thread:$0]  %s23846_s3, 1792, %s22_s16, [#allocation3], %s14481_s18, %s14481_s18, %s14482_s19  }
   0xc   :  { %14478 = dma.done.wait [#allocation3], 1792  }
   0xd   :  { %14479 = vsyncadd [#allocation3], 4294965504  ;;  %v349_v0 = vld [vmem:[%s23845_s2 + $0x9e0] sm:$0xff]  ;;  %v348_v1 = vld [vmem:[%s23845_s2 + $0x9d8] sm:$0xff]  ;;  %vm390_vm0 = vcmask 64512   ;;  %vm10027_vm1 = vcmask 130048  }
   0xe   :  { %v328_v2 = vld [vmem:[%s23845_s2 + $0x938] sm:$0xff]  ;;  %v14521_v3 = vand.u32 4294901760, %v349_v0  ;;  %v14523_v4 = vand.u32 4294901760, %v348_v1  ;;  %v327_v6 = vld [vmem:[%s23845_s2 + $0x930] sm:$0xff]  ;;  %v306_v8 = vld [vmem:[%s23845_s2 + $0x888] sm:$0xff] }
   0xf   :  { %v14525_v5 = vand.u32 4294901760, %v328_v2  ;;  %v307_v7 = vld [vmem:[%s23845_s2 + $0x890] sm:$0xff]  ;;  %v14536_v9 = vand.u32 4294901760, %v327_v6  ;;  %v14540_v11 = vand.u32 4294901760, %v306_v8  ;;  %v286_v12 = vld [vmem:[%s23845_s2 + $0x7e8] sm:$0xff]  ;;  %v285_v13 = vld [vmem:[%s23845_s2 + $0x7e0] sm:$0xff] }
  0x10   :  { %v14538_v10 = vand.u32 4294901760, %v307_v7  ;;  %v265_v14 = vld [vmem:[%s23845_s2 + $0x740] sm:$0xff]  ;;  %395 = vmatprep.subr.mxu0 %v14521_v3  ;;  %v14552_v15 = vand.u32 4294901760, %v286_v12  ;;  %v14554_v16 = vand.u32 4294901760, %v285_v13  ;;  %v14559_v18 = vsub.f32 %v349_v0, %v14521_v3  ;;  %v14564_v19 = vld [vmem:[%s23845_s2 + $0x738] sm:$0xff]  ;;  %v14574_v21 = vld [vmem:[%s23845_s2 + $0x690] sm:$0xff] }
  0x11   :  { %v14556_v17 = vand.u32 4294901760, %v265_v14  ;;  %v14569_v20 = vld [vmem:[%s23845_s2 + $0x698] sm:$0xff]  ;;  %397 = vmatpush1.msra.mxu0 %v14523_v4  ;;  %v14578_v22 = vand.u32 4294901760, %v14564_v19  ;;  %v14581_v23 = vsub.f32 %v348_v1, %v14523_v4  ;;  %v14587_v25 = vsub.f32 %v328_v2, %v14525_v5  ;;  %v14592_v26 = vld [vmem:[%s23845_s2 + $0x5f0] sm:$0xff]  ;;  %v14597_v27 = vld [vmem:[%s23845_s2 + $0x5e8] sm:$0xff] }
  0x12   :  { %v14584_v24 = vand.u32 4294901760, %v14569_v20  ;;  %v14602_v28 = vld [vmem:[%s23845_s2 + $0x548] sm:$0xff]  ;;  %399 = vmatprep.subr.mxu0 %v14525_v5  ;;  %v23861_v29 = vand.u32 4294901760, %v14559_v18  ;;  %v14607_v30 = vand.u32 4294901760, %v14574_v21  ;;  %v14610_v31 = vsub.f32 %v327_v6, %v14536_v9  ;;  %v14627_v37 = vld [vmem:[%s23845_s2 + $0x540] sm:$0xff]  ;;  %v14667_v51 = vld [vmem:[%s23845_s2 + $0x498] sm:$0xff] }
  0x13   :  { %v14613_v32 = vand.u32 4294901760, %v14592_v26  ;;  %401 = vmatpush1.msra.mxu0 %v14536_v9  ;;  %v23860_v33 = vand.u32 4294901760, %v14581_v23  ;;  %v23858_v34 = vand.u32 4294901760, %v14587_v25  ;;  %v14619_v35 = vsub.f32 %v307_v7, %v14538_v10  ;;  %v14654_v46 = vld [vmem:[%s23845_s2 + $0x4a0] sm:$0xff]  ;;  %v14677_v56 = vld [vmem:[%s23845_s2 + $0x3f8] sm:$0xff]  ;;  %v14692_v61 = vld [vmem:[%s23845_s2 + $0x3f0] sm:$0xff] }
  0x14   :  { %24652 = vst [vmem:[#allocation5_spill] sm:$0xff] %v14607_v30  ;;  %v14622_v36 = vand.u32 4294901760, %v14597_v27  ;;  %403 = vmatprep.subr.mxu0 %v14538_v10  ;;  %v512_v38 = vsub.f32 %v14559_v18, %v23861_v29  ;;  %v23857_v39 = vand.u32 4294901760, %v14610_v31  ;;  %v14635_v40 = vsub.f32 %v306_v8, %v14540_v11  ;;  %v14707_v2 = vld [vmem:[%s23845_s2 + $0x350] sm:$0xff] }
  0x15   :  { %24653 = vst [vmem:[#allocation6_spill] sm:$0xff] %v14613_v32  ;;  %v14638_v41 = vand.u32 4294901760, %v14602_v28  ;;  %405 = vmatpush1.msra.mxu0 %v14540_v11  ;;  %v518_v42 = vsub.f32 %v14581_v23, %v23860_v33  ;;  %v524_v43 = vsub.f32 %v14587_v25, %v23858_v34  ;;  %v23855_v44 = vand.u32 4294901760, %v14619_v35  ;;  %v14843_v33 = vld [vmem:[%s23845_s2 + $0xb0] sm:$0xff] }
  0x16   :  { %24654 = vst [vmem:[#allocation7_spill] sm:$0xff] %v14622_v36  ;;  %v14649_v45 = vsub.f32 %v286_v12, %v14552_v15  ;;  %407 = vmatprep.subr.mxu0 %v14552_v15  ;;  %v513_v47 = vand.u32 4294901760, %v512_v38  ;;  %v530_v48 = vsub.f32 %v14610_v31, %v23857_v39  ;;  %v23853_v49 = vand.u32 4294901760, %v14635_v40 }
  0x17   :  { %24655 = vst [vmem:[#allocation8_spill] sm:$0xff] %v14638_v41  ;;  %v14662_v50 = vand.u32 4294901760, %v14627_v37  ;;  %409 = vmatpush1.msra.mxu0 %v14554_v16  ;;  %v519_v52 = vand.u32 4294901760, %v518_v42  ;;  %v525_v53 = vand.u32 4294901760, %v524_v43  ;;  %v536_v54 = vsub.f32 %v14619_v35, %v23855_v44  ;;  %v14816_v44 = vld [vmem:[%s23845_s2 + $0x158] sm:$0xff] }
  0x18   :  { %v23852_v55 = vand.u32 4294901760, %v14649_v45  ;;  %411 = vmatprep.subr.mxu0 %v14556_v17  ;;  %514 = vmatprep.subr.mxu1 %v513_v47  ;;  %v531_v57 = vand.u32 4294901760, %v530_v48  ;;  %v542_v58 = vsub.f32 %v14635_v40, %v23853_v49  ;;  %v14684_v59 = vsub.f32 %v285_v13, %v14554_v16  ;;  %v14721_v13 = vld [vmem:[%s23845_s2 + $0x348] sm:$0xff]  ;;  %v14800_v49 = vld [vmem:[%s23845_s2 + $0x1f8] sm:$0xff] }
  0x19   :  { %24656 = vst [vmem:[#allocation9_spill] sm:$0xff] %v14662_v50  ;;  %v14687_v60 = vand.u32 4294901760, %v14654_v46  ;;  %413 = vmatpush1.msra.mxu0 %v14578_v22  ;;  %520 = vmatpush1.msra.mxu1 %v519_v52  ;;  %v537_v62 = vand.u32 4294901760, %v536_v54  ;;  %v14699_v0 = vsub.f32 %v265_v14, %v14556_v17  ;;  %v14702_v1 = vand.u32 4294901760, %v14667_v51 }
  0x1a   :  { %v548_v63 = vsub.f32 %v14649_v45, %v23852_v55  ;;  %415 = vmatprep.subr.mxu0 %v14584_v24  ;;  %526 = vmatprep.subr.mxu1 %v525_v53  ;;  %v543_v6 = vand.u32 4294901760, %v542_v58  ;;  %v23850_v7 = vand.u32 4294901760, %v14684_v59  ;;  %v14713_v8 = vsub.f32 %v14564_v19, %v14578_v22 }
  0x1b   :  { %24657 = vst [vmem:[#allocation10_spill] sm:$0xff] %v14687_v60  ;;  %24658 = vst [vmem:[#allocation11_spill] sm:$0xff] %v14702_v1  ;;  %v14716_v12 = vand.u32 4294901760, %v14677_v56  ;;  %417 = vmatpush1.msra.mxu0 %v14607_v30  ;;  %532 = vmatpush1.msra.mxu1 %v531_v57  ;;  %v23848_v38 = vand.u32 4294901760, %v14699_v0  ;;  %v14727_v42 = vsub.f32 %v14569_v20, %v14584_v24  ;;  %v14730_v19 = vand.u32 4294901760, %v14692_v61  ;;  %v14747_v20 = vld [vmem:[%s23845_s2 + $0x2a8] sm:$0xff] }
  0x1c   :  { %v549_v14 = vand.u32 4294901760, %v548_v63  ;;  %419 = vmatprep.subr.mxu0 %v14613_v32  ;;  %538 = vmatprep.subr.mxu1 %v537_v62  ;;  %v554_v43 = vsub.f32 %v14684_v59, %v23850_v7  ;;  %v23849_v47 = vand.u32 4294901760, %v14713_v8  ;;  %v14739_v48 = vsub.f32 %v14574_v21, %v14607_v30 }
  0x1d   :  { %24659 = vst [vmem:[#allocation12_spill] sm:$0xff] %v14716_v12  ;;  %24660 = vst [vmem:[#allocation13_spill] sm:$0xff] %v14730_v19  ;;  %v14742_v52 = vand.u32 4294901760, %v14707_v2  ;;  %421 = vmatpush1.msra.mxu0 %v14622_v36  ;;  %544 = vmatpush1.msra.mxu1 %v543_v6  ;;  %v560_v53 = vsub.f32 %v14699_v0, %v23848_v38  ;;  %v23851_v54 = vand.u32 4294901760, %v14727_v42  ;;  %v14759_v57 = vand.u32 4294901760, %v14721_v13 }
  0x1e   :  { %v14756_v21 = vsub.f32 %v14592_v26, %v14613_v32  ;;  %423 = vmatprep.subr.mxu0 %v14638_v41  ;;  %550 = vmatprep.subr.mxu1 %v549_v14  ;;  %v555_v58 = vand.u32 4294901760, %v554_v43  ;;  %v566_v62 = vsub.f32 %v14713_v8, %v23849_v47  ;;  %v23854_v63 = vand.u32 4294901760, %v14739_v48  ;;  %v14773_v26 = vld [vmem:[%s23845_s2 + $0x2a0] sm:$0xff] }
  0x1f   :  { %24661 = vst [vmem:[#allocation14_spill] sm:$0xff] %v14742_v52  ;;  %24662 = vst [vmem:[#allocation15_spill] sm:$0xff] %v14759_v57  ;;  %v14768_v6 = vsub.f32 %v14597_v27, %v14622_v36  ;;  %425 = vmatpush1.msra.mxu0 %v14662_v50  ;;  %v561_v38 = vand.u32 4294901760, %v560_v53  ;;  %v572_v14 = vsub.f32 %v14727_v42, %v23851_v54  ;;  %v14781_v47 = vand.u32 4294901760, %v14747_v20  ;;  %v14786_v27 = vld [vmem:[%s23845_s2 + $0x200] sm:$0xff]  ;;  %v32_v36 = vld [vmem:[%s23843_s0 + $0x8] sm:$0xff] }
  0x20   :  { %v23856_v43 = vand.u32 4294901760, %v14756_v21  ;;  %556 = vmatpush1.msra.mxu1 %v555_v58  ;;  %427 = vmatprep.subr.mxu0 %v14687_v60  ;;  %v567_v7 = vand.u32 4294901760, %v566_v62  ;;  %v578_v53 = vsub.f32 %v14739_v48, %v23854_v63  ;;  %v14795_v55 = vsub.f32 %v14602_v28, %v14638_v41  ;;  %v14938_v41 = vld [vmem:[%s23845_s2 + $0xa80] sm:$0xff] }
  0x21   :  { %24663 = vst [vmem:[#allocation16_spill] sm:$0xff] %v14781_v47  ;;  %v23859_v54 = vand.u32 4294901760, %v14768_v6  ;;  %562 = vmatprep.subr.mxu1 %v561_v38  ;;  %429 = vmatpush1.msra.mxu0 %v14702_v1  ;;  %v573_v58 = vand.u32 4294901760, %v572_v14  ;;  %v14807_v63 = vand.u32 4294901760, %v14773_v26  ;;  %v14811_v28 = vsub.f32 %v14627_v37, %v14662_v50  ;;  %v14829_v37 = vld [vmem:[%s23845_s2 + $0x150] sm:$0xff] }
  0x22   :  { %v584_v62 = vsub.f32 %v14756_v21, %v23856_v43  ;;  %568 = vmatpush1.msra.mxu1 %v567_v7  ;;  %431 = vmatprep.subr.mxu0 %v14716_v12  ;;  %v579_v38 = vand.u32 4294901760, %v578_v53  ;;  %v23864_v43 = vand.u32 4294901760, %v14795_v55  ;;  %v14824_v39 = vand.u32 4294901760, %v14786_v27 }
  0x23   :  { %24664 = vst [vmem:[#allocation17_spill] sm:$0xff] %v14807_v63  ;;  %v590_v14 = vsub.f32 %v14768_v6, %v23859_v54  ;;  %574 = vmatprep.subr.mxu1 %v573_v58  ;;  %433 = vmatpush1.msra.mxu0 %v14730_v19  ;;  %v23865_v53 = vand.u32 4294901760, %v14811_v28  ;;  %v14835_v34 = vsub.f32 %v14654_v46, %v14687_v60  ;;  %v14838_v54 = vand.u32 4294901760, %v14800_v49 }
  0x24   :  { %24665 = vst [vmem:[#allocation18_spill] sm:$0xff] %v14824_v39  ;;  %v585_v7 = vand.u32 4294901760, %v584_v62  ;;  %580 = vmatpush1.msra.mxu1 %v579_v38  ;;  %435 = vmatprep.subr.mxu0 %v14742_v52  ;;  %v596_v62 = vsub.f32 %v14795_v55, %v23864_v43  ;;  %v14851_v46 = vsub.f32 %v14667_v51, %v14702_v1  ;;  %v14854_v29 = vand.u32 4294901760, %v14816_v44  ;;  %v14871_v51 = vld [vmem:[%s23845_s2 + $0xa8] sm:$0xff] }
  0x25   :  { %24666 = vst [vmem:[#allocation19_spill] sm:$0xff] %v14838_v54  ;;  %v591_v58 = vand.u32 4294901760, %v590_v14  ;;  %437 = vmatpush1.msra.mxu0 %v14759_v57  ;;  %v602_v38 = vsub.f32 %v14811_v28, %v23865_v53  ;;  %v14863_v60 = vsub.f32 %v14677_v56, %v14716_v12  ;;  %v14866_v43 = vand.u32 4294901760, %v14829_v37  ;;  %v14885_v12 = vld [vmem:[%s23845_s2 + $0x8] sm:$0xff] }
  0x26   :  { %586 = vmatprep.subr.mxu1 %v585_v7  ;;  %439 = vmatprep.subr.mxu0 %v14781_v47  ;;  %v597_v7 = vand.u32 4294901760, %v596_v62  ;;  %v14877_v14 = vsub.f32 %v14692_v61, %v14730_v19  ;;  %v14880_v56 = vand.u32 4294901760, %v14843_v33  ;;  %v24669_v1 = vand.u32 4294901760, %v14835_v34 }
  0x27   :  { %24667 = vst [vmem:[#allocation20_spill] sm:$0xff] %v14866_v43  ;;  %592 = vmatpush1.msra.mxu1 %v591_v58  ;;  %441 = vmatpush1.msra.mxu0 %v14807_v63  ;;  %v603_v58 = vand.u32 4294901760, %v602_v38  ;;  %v23882_v53 = vand.u32 4294901760, %v14863_v60  ;;  %v14894_v61 = vsub.f32 %v14707_v2, %v14742_v52  ;;  %v24671_v19 = vand.u32 4294901760, %v14851_v46  ;;  %v14911_v2 = vld [vmem:[%s23845_s2] sm:$0xff] }
  0x28   :  { %24668 = vst [vmem:[#allocation21_spill] sm:$0xff] %v14880_v56  ;;  %v608_v62 = vsub.f32 %v14835_v34, %v24669_v1  ;;  %598 = vmatprep.subr.mxu1 %v597_v7  ;;  %443 = vmatprep.subr.mxu0 %v14824_v39  ;;  %v14902_v38 = vand.u32 4294901760, %v14871_v51  ;;  %v14906_v1 = vsub.f32 %v14721_v13, %v14759_v57  ;;  %v14919_v52 = vand.u32 4294901760, %v14885_v12  ;;  %v14924_v13 = vld [vmem:[%s23845_s2 + $0xa88] sm:$0xff] }
  0x29   :  { %24670 = vst [vmem:[#allocation22_spill] sm:$0xff] %v14894_v61  ;;  %v614_v50 = vsub.f32 %v14851_v46, %v24671_v19  ;;  %604 = vmatpush1.msra.mxu1 %v603_v58  ;;  %445 = vmatpush1.msra.mxu0 %v14838_v54  ;;  %v620_v19 = vsub.f32 %v14863_v60, %v23882_v53  ;;  %v24674_v58 = vand.u32 4294901760, %v14877_v14 }
  0x2a   :  { %24672 = vst [vmem:[#allocation23_spill] sm:$0xff] %v14902_v38  ;;  %24673 = vst [vmem:[#allocation24_spill] sm:$0xff] %v14906_v1  ;;  %v609_v7 = vand.u32 4294901760, %v608_v62  ;;  %447 = vmatprep.subr.mxu0 %v14854_v29  ;;  %v14933_v53 = vsub.f32 %v14747_v20, %v14781_v47  ;;  %v14949_v20 = vsub.f32 %v14773_v26, %v14807_v63 }
  0x2b   :  { %v615_v57 = vand.u32 4294901760, %v614_v50  ;;  %v626_v62 = vsub.f32 %v14877_v14, %v24674_v58  ;;  %v621_v32 = vand.u32 4294901760, %v620_v19  ;;  %449 = vmatpush1.msra.mxu0 %v14866_v43  ;;  %v24675_v50 = vand.u32 4294901760, %v14894_v61 }
  0x2c   :  { %610 = vmatprep.subr.mxu1 %v609_v7  ;;  %v14945_v58 = vand.u32 4294901760, %v14911_v2  ;;  %24676 = vst [vmem:[#allocation25_spill] sm:$0xff] %v14949_v20  ;;  %451 = vmatprep.subr.mxu0 %v14880_v56  ;;  %v24677_v19 = vand.u32 4294901760, %v14906_v1  ;;  %v14980_v63 = vsub.f32 %v14800_v49, %v14838_v54  ;;  %v15000_v54 = vsub.f32 %v14829_v37, %v14866_v43 }
  0x2d   :  { %v632_v30 = vsub.f32 %v14894_v61, %v24675_v50  ;;  %616 = vmatpush1.msra.mxu1 %v615_v57  ;;  %v627_v7 = vand.u32 4294901760, %v626_v62  ;;  %v14960_v61 = vand.u32 4294901760, %v14924_v13  ;;  %453 = vmatpush1.msra.mxu0 %v14902_v38  ;;  %v14966_v57 = vsub.f32 %v14786_v27, %v14824_v39 }
  0x2e   :  { %v638_v47 = vsub.f32 %v14906_v1, %v24677_v19  ;;  %622 = vmatprep.subr.mxu1 %v621_v32  ;;  %v14969_v62 = vand.u32 4294901760, %v14938_v41  ;;  %v31_v19 = vld [vmem:[%s23843_s0] sm:$0xff]  ;;  %455 = vmatprep.subr.mxu0 %v14919_v52  ;;  %v392_v27 = vsel %vm390_vm0, %v32_v36, 0  ;;  %v24679_v39 = vand.u32 4294901760, %v14949_v20  ;;  %24683 = vst [vmem:[#allocation29_spill] sm:$0xff] %v15000_v54 }
  0x2f   :  { %v633_v26 = vand.u32 4294901760, %v632_v30  ;;  %628 = vmatpush1.msra.mxu1 %v627_v7  ;;  %v24678_v30 = vand.u32 4294901760, %v14933_v53  ;;  %457 = vmatpush1.msra.mxu0 %v14945_v58  ;;  %v14988_v1 = vand.u32 4294901760, %v392_v27  ;;  %v23902_v36 = vand.u32 4294901760, %v14980_v63 }
  0x30   :  { %v639_v50 = vand.u32 4294901760, %v638_v47  ;;  %v650_v7 = vsub.f32 %v14949_v20, %v24679_v39  ;;  %v23901_v47 = vand.u32 4294901760, %v14966_v57  ;;  %489 = vmatprep.subr.mxu0 %v14960_v61 }
  0x31   :  { %v644_v32 = vsub.f32 %v14933_v53, %v24678_v30  ;;  %634 = vmatprep.subr.mxu1 %v633_v26  ;;  %24680 = vst [vmem:[#allocation26_spill] sm:$0xff] %v14988_v1  ;;  %v14992_v30 = vsub.f32 %v14816_v44, %v14854_v29  ;;  %v14996_v26 = vand.u32 4294901760, %v31_v19  ;;  %491 = vmatpush2.msra.mxu0 %v14969_v62 }
  0x32   :  { %640 = vmatpush1.msra.mxu1 %v639_v50  ;;  %v651_v39 = vand.u32 4294901760, %v650_v7  ;;  %v656_v20 = vsub.f32 %v14966_v57, %v23901_v47  ;;  %v15007_v44 = vsub.f32 %v392_v27, %v14988_v1  ;;  %744 = vmatprep.mubr.f32.mxu1 %v14988_v1  ;;  %v662_v37 = vsub.f32 %v14980_v63, %v23902_v36 }
  0x33   :  { %24681 = vst [vmem:[#allocation27_spill] sm:$0xff] %v14992_v30  ;;  %v645_v49 = vand.u32 4294901760, %v644_v32  ;;  %24682 = vst [vmem:[#allocation28_spill] sm:$0xff] %v14996_v26  ;;  %754 = vmatprep.subr.mxu0 %v14559_v18  ;;  %v15016_v32 = vsub.f32 %v31_v19, %v14996_v26  ;;  %v15021_v27 = vsub.f32 %v14843_v33, %v14880_v56  ;;  %v24690_v33 = vand.u32 4294901760, %v15000_v54 }
  0x34   :  { %24684 = vst [vmem:[#allocation30_spill] sm:$0xff] %v15007_v44  ;;  %v657_v47 = vand.u32 4294901760, %v656_v20  ;;  %v15024_v50 = vand.u32 4294901760, %v15007_v44  ;;  %v15031_v1 = vsub.f32 %v14871_v51, %v14902_v38  ;;  %v663_v19 = vand.u32 4294901760, %v662_v37 }
  0x35   :  { %646 = vmatprep.subr.mxu1 %v645_v49  ;;  %24685 = vst [vmem:[#allocation31_spill] sm:$0xff] %v15016_v32  ;;  %24686 = vst [vmem:[#allocation32_spill] sm:$0xff] %v15021_v27  ;;  %v24688_v49 = vand.u32 4294901760, %v14992_v30  ;;  %v15034_v7 = vand.u32 4294901760, %v15016_v32  ;;  %v23913_v20 = vand.u32 4294901760, %v15021_v27  ;;  %v15045_v51 = vsub.f32 %v14885_v12, %v14919_v52 }
  0x36   :  { %652 = vmatpush1.msra.mxu1 %v651_v39  ;;  %24687 = vst [vmem:[#allocation33_spill] sm:$0xff] %v15024_v50  ;;  %v674_v39 = vsub.f32 %v15000_v54, %v24690_v33  ;;  %v495_v56 = vsub.f32 %v15007_v44, %v15024_v50 }
  0x37   :  { %v668_v36 = vsub.f32 %v14992_v30, %v24688_v49  ;;  %24689 = vst [vmem:[#allocation34_spill] sm:$0xff] %v15034_v7  ;;  %658 = vmatprep.subr.mxu1 %v657_v47  ;;  %v23914_v49 = vand.u32 4294901760, %v15031_v1  ;;  %24691 = vst [vmem:[#allocation35_spill] sm:$0xff] %v15045_v51  ;;  %v501_v37 = vsub.f32 %v15016_v32, %v15034_v7 }
  0x38   :  { %664 = vmatpush1.msra.mxu1 %v663_v19  ;;  %v675_v38 = vand.u32 4294901760, %v674_v39  ;;  %v680_v33 = vsub.f32 %v15021_v27, %v23913_v20  ;;  %v15054_v47 = vsub.f32 %v14911_v2, %v14945_v58  ;;  %v23918_v19 = vand.u32 4294901760, %v15045_v51 }
  0x39   :  { %v669_v43 = vand.u32 4294901760, %v668_v36  ;;  %v15056_v36 = vand.u32 4294901760, %v495_v56  ;;  %v686_v12 = vsub.f32 %v15031_v1, %v23914_v49  ;;  %v15064_v39 = vsub.f32 %v14924_v13, %v14960_v61 }
  0x3a   :  { %24692 = vst [vmem:[#allocation36_spill] sm:$0xff] %v15054_v47  ;;  %v15066_v7 = vand.u32 4294901760, %v501_v37  ;;  %v681_v20 = vand.u32 4294901760, %v680_v33  ;;  %v23915_v2 = vand.u32 4294901760, %v15054_v47  ;;  %v15071_v56 = vsub.f32 %v14938_v41, %v14969_v62 }
  0x3b   :  { %24693 = vst [vmem:[#allocation37_spill] sm:$0xff] %v15056_v36  ;;  %670 = vmatprep.subr.mxu1 %v669_v43  ;;  %497 = vmatprep.mubr.f32.mxu0 %v15056_v36  ;;  %v687_v43 = vand.u32 4294901760, %v686_v12  ;;  %v692_v49 = vsub.f32 %v15045_v51, %v23918_v19  ;;  %v23917_v13 = vand.u32 4294901760, %v15064_v39  ;;  %v24706_v19 = vld [vmem:[#allocation12_spill] sm:$0xff]  ;;  %v24709_v36 = vld [vmem:[#allocation15_spill] sm:$0xff] }
  0x3c   :  { %24694 = vst [vmem:[#allocation38_spill] sm:$0xff] %v15066_v7  ;;  %676 = vmatpush1.msra.mxu1 %v675_v38  ;;  %24695 = vst [vmem:[#allocation39_spill] sm:$0xff] %v15071_v56  ;;  %503 = vmatmul.mubr.f32.vlgmr.msra.gmra.mxu0 %v15066_v7  ;;  %v698_v38 = vsub.f32 %v15054_v47, %v23915_v2  ;;  %v23916_v37 = vand.u32 4294901760, %v15071_v56  ;;  %v24708_v7 = vld [vmem:[#allocation14_spill] sm:$0xff] }
  0x3d   :  { %682 = vmatprep.subr.mxu1 %v681_v20  ;;  %757 = vmatpush1.msra.mxu0 %v14581_v23  ;;  %v693_v41 = vand.u32 4294901760, %v692_v49  ;;  %v734_v33 = vsub.f32 %v15064_v39, %v23917_v13  ;;  %v24705_v13 = vld [vmem:[#allocation11_spill] sm:$0xff] }
  0x3e   :  { %688 = vmatpush1.msra.mxu1 %v687_v43  ;;  %760 = vmatprep.subr.mxu0 %v14587_v25  ;;  %v699_v12 = vand.u32 4294901760, %v698_v38  ;;  %v740_v20 = vsub.f32 %v15071_v56, %v23916_v37  ;;  %v24697_v43 = vld [vmem:[#allocation22_spill] sm:$0xff] }
  0x3f   :  { %886 = vmatprep.mubr.f32.mxu0 %v15007_v44  ;;  %763 = vmatpush1.msra.mxu0 %v14610_v31  ;;  %v735_v2 = vand.u32 4294901760, %v734_v33  ;;  %v24698_v38 = vld [vmem:[#allocation6_spill] sm:$0xff]  ;;  %v24700_v33 = vld [vmem:[#allocation7_spill] sm:$0xff]  ;;  %v24707_v44 = vld [vmem:[#allocation13_spill] sm:$0xff] }
  0x40   :  { %694 = vmatprep.subr.mxu1 %v693_v41  ;;  %766 = vmatprep.subr.mxu0 %v14619_v35  ;;  %v741_v49 = vand.u32 4294901760, %v740_v20  ;;  %v24699_v41 = vld [vmem:[#allocation24_spill] sm:$0xff]  ;;  %v24702_v20 = vld [vmem:[#allocation25_spill] sm:$0xff]  ;;  %v24704_v37 = vld [vmem:[#allocation10_spill] sm:$0xff] }
  0x41   :  { %700 = vmatpush1.msra.mxu1 %v699_v12  ;;  %769 = vmatpush1.msra.mxu0 %v14635_v40  ;;  %v24701_v12 = vld [vmem:[#allocation8_spill] sm:$0xff] }
  0x42   :  { %736 = vmatprep.subr.mxu1 %v735_v2  ;;  %772 = vmatprep.subr.mxu0 %v14649_v45  ;;  %v24696_v2 = vld [vmem:[#allocation5_spill] sm:$0xff] }
  0x43   :  { %742 = vmatpush2.msra.mxu1 %v741_v49  ;;  %775 = vmatpush1.msra.mxu0 %v14684_v59  ;;  %v24703_v49 = vld [vmem:[#allocation9_spill] sm:$0xff] }
  0x44   :  { %746 = vmatmul.mubr.f32.vlgmr.msra.gmra.mxu1 %v14996_v26  ;;  %778 = vmatprep.subr.mxu0 %v14699_v0  ;;  %v24710_v26 = vld [vmem:[#allocation16_spill] sm:$0xff] }
  0x45   :  { %896 = vmatprep.subr.mxu1 %v14521_v3  ;;  %781 = vmatpush1.msra.mxu0 %v14713_v8 }
  0x46   :  { %898 = vmatpush1.msra.mxu1 %v14523_v4  ;;  %784 = vmatprep.subr.mxu0 %v14727_v42 }
  0x47   :  { %900 = vmatprep.subr.mxu1 %v14525_v5  ;;  %787 = vmatpush1.msra.mxu0 %v14739_v48 }
  0x48   :  { %902 = vmatpush1.msra.mxu1 %v14536_v9  ;;  %790 = vmatprep.subr.mxu0 %v14756_v21 }
  0x49   :  { %904 = vmatprep.subr.mxu1 %v14538_v10  ;;  %793 = vmatpush1.msra.mxu0 %v14768_v6 }
  0x4a   :  { %906 = vmatpush1.msra.mxu1 %v14540_v11  ;;  %796 = vmatprep.subr.mxu0 %v14795_v55 }
  0x4b   :  { %908 = vmatprep.subr.mxu1 %v14552_v15  ;;  %799 = vmatpush1.msra.mxu0 %v14811_v28 }
  0x4c   :  { %910 = vmatpush1.msra.mxu1 %v14554_v16  ;;  %802 = vmatprep.subr.mxu0 %v14835_v34 }
  0x4d   :  { %912 = vmatprep.subr.mxu1 %v14556_v17  ;;  %805 = vmatpush1.msra.mxu0 %v14851_v46 }
  0x4e   :  { %914 = vmatpush1.msra.mxu1 %v14578_v22  ;;  %808 = vmatprep.subr.mxu0 %v14863_v60 }
  0x4f   :  { %916 = vmatprep.subr.mxu1 %v14584_v24  ;;  %811 = vmatpush1.msra.mxu0 %v14877_v14 }
  0x50   :  { %918 = vmatpush1.msra.mxu1 %v24696_v2  ;;  %814 = vmatprep.subr.mxu0 %v24697_v43 }
  0x51   :  { %920 = vmatprep.subr.mxu1 %v24698_v38  ;;  %817 = vmatpush1.msra.mxu0 %v24699_v41 }
  0x52   :  { %922 = vmatpush1.msra.mxu1 %v24700_v33  ;;  %820 = vmatprep.subr.mxu0 %v14933_v53 }
  0x53   :  { %924 = vmatprep.subr.mxu1 %v24701_v12  ;;  %823 = vmatpush1.msra.mxu0 %v24702_v20 }
  0x54   :  { %926 = vmatpush1.msra.mxu1 %v24703_v49  ;;  %826 = vmatprep.subr.mxu0 %v14966_v57 }
  0x55   :  { %928 = vmatprep.subr.mxu1 %v24704_v37  ;;  %829 = vmatpush1.msra.mxu0 %v14980_v63 }
  0x56   :  { %930 = vmatpush1.msra.mxu1 %v24705_v13  ;;  %832 = vmatprep.subr.mxu0 %v14992_v30  ;;  %v24711_v30 = vld [vmem:[#allocation17_spill] sm:$0xff] }
  0x57   :  { %932 = vmatprep.subr.mxu1 %v24706_v19  ;;  %835 = vmatpush1.msra.mxu0 %v15000_v54  ;;  %v24712_v54 = vld [vmem:[#allocation18_spill] sm:$0xff] }
  0x58   :  { %934 = vmatpush1.msra.mxu1 %v24707_v44  ;;  %838 = vmatprep.subr.mxu0 %v15021_v27  ;;  %v24713_v27 = vld [vmem:[#allocation19_spill] sm:$0xff] }
  0x59   :  { %936 = vmatprep.subr.mxu1 %v24708_v7  ;;  %841 = vmatpush1.msra.mxu0 %v15031_v1 }
  0x5a   :  { %938 = vmatpush1.msra.mxu1 %v24709_v36  ;;  %844 = vmatprep.subr.mxu0 %v15045_v51  ;;  %v24714_v51 = vand.u32 4294901760, %v14559_v18  ;;  %v24721_v18 = vand.u32 4294901760, %v14619_v35  ;;  %v24726_v35 = vand.u32 4294901760, %v14699_v0  ;;  %v24730_v0 = vand.u32 4294901760, %v14756_v21  ;;  %v309_v21 = vld [vmem:[%s23845_s2 + $0x8a0] sm:$0xff] }
  0x5b   :  { %940 = vmatprep.subr.mxu1 %v24710_v26  ;;  %847 = vmatpush1.msra.mxu0 %v15054_v47  ;;  %v24715_v26 = vld [vmem:[#allocation20_spill] sm:$0xff]  ;;  %v24716_v47 = vand.u32 4294901760, %v14581_v23  ;;  %v24722_v23 = vand.u32 4294901760, %v14635_v40  ;;  %v24727_v40 = vand.u32 4294901760, %v14713_v8  ;;  %v24738_v8 = vand.u32 4294901760, %v24697_v43 }
  0x5c   :  { %942 = vmatpush1.msra.mxu1 %v24711_v30  ;;  %880 = vmatprep.subr.mxu0 %v15064_v39  ;;  %v24717_v30 = vld [vmem:[#allocation21_spill] sm:$0xff]  ;;  %v15268_v43 = vand.u32 4294901760, %v309_v21 }
  0x5d   :  { %944 = vmatprep.subr.mxu1 %v24712_v54  ;;  %883 = vmatpush2.msra.mxu0 %v15071_v56  ;;  %v24718_v54 = vand.u32 4294901760, %v14587_v25  ;;  %v24719_v56 = vld [vmem:[#allocation23_spill] sm:$0xff]  ;;  %v24723_v25 = vand.u32 4294901760, %v14649_v45  ;;  %v24728_v45 = vand.u32 4294901760, %v14727_v42 }
  0x5e   :  { %946 = vmatpush1.msra.mxu1 %v24713_v27  ;;  %889 = vmatmul.mubr.f32.vlgmr.msra.gmra.mxu0 %v15016_v32  ;;  %v24720_v27 = vand.u32 4294901760, %v14610_v31  ;;  %v24724_v31 = vand.u32 4294901760, %v14684_v59  ;;  %v24729_v59 = vand.u32 4294901760, %v14739_v48  ;;  %v24740_v48 = vand.u32 4294901760, %v14933_v53  ;;  %v99_v32 = vld [vmem:[%s23845_s2 + $0x210] sm:$0xff] }
  0x5f   :  { %948 = vmatprep.subr.mxu1 %v14854_v29  ;;  %1009 = vmatprep.subr.mxu0 %v24714_v51  ;;  %v24742_v53 = vand.u32 4294901760, %v14966_v57  ;;  %v287_v51 = vld [vmem:[%s23845_s2 + $0x7f0] sm:$0xff]  ;;  %v288_v57 = vld [vmem:[%s23845_s2 + $0x7f8] sm:$0xff] }
  0x60   :  { %950 = vmatpush1.msra.mxu1 %v24715_v26  ;;  %1013 = vmatpush1.msra.mxu0 %v24716_v47 }
  0x61   :  { %952 = vmatprep.subr.mxu1 %v24717_v30  ;;  %1017 = vmatprep.subr.mxu0 %v24718_v54  ;;  %v24725_v54 = vld [vmem:[#allocation34_spill] sm:$0xff] }
  0x62   :  { %954 = vmatpush1.msra.mxu1 %v24719_v56  ;;  %1021 = vmatpush1.msra.mxu0 %v24720_v27 }
  0x63   :  { %956 = vmatprep.subr.mxu1 %v14919_v52  ;;  %1025 = vmatprep.subr.mxu0 %v24721_v18 }
  0x64   :  { %958 = vmatpush1.msra.mxu1 %v14945_v58  ;;  %1029 = vmatpush1.msra.mxu0 %v24722_v23  ;;  %v245_v23 = vld [vmem:[%s23845_s2 + $0x6a0] sm:$0xff] }
  0x65   :  { %990 = vmatprep.subr.mxu1 %v14960_v61  ;;  %1033 = vmatprep.subr.mxu0 %v24723_v25 }
  0x66   :  { %992 = vmatpush2.msra.mxu1 %v14969_v62  ;;  %996 = vmatprep.mubr.f32.mxu1 %v15024_v50 }
  0x67   :  { %1037 = vmatpush1.msra.mxu0 %v24724_v31  ;;  %1000 = vmatmul.mubr.f32.vlgmr.msra.gmra.mxu1 %v24725_v54  ;;  %v15299_v31 = vand.u32 4294901760, %v288_v57 }
  0x68   :  { %1041 = vmatprep.subr.mxu0 %v24726_v35  ;;  %1182 = vmatprep.subr.mxu1 %v14521_v3  ;;  %v24731_v3 = vand.u32 4294901760, %v14768_v6  ;;  %v308_v6 = vld [vmem:[%s23845_s2 + $0x898] sm:$0xff] }
  0x69   :  { %1045 = vmatpush1.msra.mxu0 %v24727_v40  ;;  %1184 = vmatpush1.msra.mxu1 %v14523_v4  ;;  %v24732_v4 = vand.u32 4294901760, %v14795_v55  ;;  %24752 = vst [vmem:[#allocation6_spill] sm:$0xff] %v15299_v31  ;;  %v246_v40 = vld [vmem:[%s23845_s2 + $0x6a8] sm:$0xff] }
  0x6a   :  { %1049 = vmatprep.subr.mxu0 %v24728_v45  ;;  %1186 = vmatprep.subr.mxu1 %v14525_v5  ;;  %v24733_v5 = vand.u32 4294901760, %v14811_v28  ;;  %v24741_v28 = vand.u32 4294901760, %v24702_v20  ;;  %v15284_v20 = vand.u32 4294901760, %v287_v51 }
  0x6b   :  { %1053 = vmatpush1.msra.mxu0 %v24729_v59  ;;  %1188 = vmatpush1.msra.mxu1 %v14536_v9  ;;  %v24734_v9 = vand.u32 4294901760, %v14835_v34  ;;  %v24736_v34 = vand.u32 4294901760, %v14863_v60  ;;  %v24753_v59 = vand.u32 4294901760, %v15031_v1  ;;  %v24760_v1 = vld [vmem:[#allocation36_spill] sm:$0xff] }
  0x6c   :  { %1057 = vmatprep.subr.mxu0 %v24730_v0  ;;  %1190 = vmatprep.subr.mxu1 %v14538_v10  ;;  %v350_v10 = vld [vmem:[%s23845_s2 + $0x9e8] sm:$0xff]  ;;  %24749 = vst [vmem:[#allocation22_spill] sm:$0xff] %v15284_v20 }
  0x6d   :  { %1061 = vmatpush1.msra.mxu0 %v24731_v3  ;;  %1192 = vmatpush1.msra.mxu1 %v14540_v11  ;;  %v24735_v11 = vand.u32 4294901760, %v14851_v46  ;;  %v15221_v55 = vand.u32 4294901760, %v350_v10  ;;  %v15315_v3 = vsub.f32 %v309_v21, %v15268_v43 }
  0x6e   :  { %1065 = vmatprep.subr.mxu0 %v24732_v4  ;;  %1194 = vmatprep.subr.mxu1 %v14552_v15  ;;  %v351_v15 = vld [vmem:[%s23845_s2 + $0x9f0] sm:$0xff]  ;;  %v24755_v4 = vld [vmem:[#allocation35_spill] sm:$0xff] }
  0x6f   :  { %1069 = vmatpush1.msra.mxu0 %v24733_v5  ;;  %1196 = vmatpush1.msra.mxu1 %v14554_v16  ;;  %v329_v16 = vld [vmem:[%s23845_s2 + $0x940] sm:$0xff]  ;;  %v15226_v42 = vand.u32 4294901760, %v351_v15  ;;  %v15249_v46 = vsub.f32 %v350_v10, %v15221_v55  ;;  %v24756_v5 = vand.u32 4294901760, %v24755_v4  ;;  %v15322_v10 = vand.u32 4294901760, %v245_v23  ;;  %v24772_v4 = vld [vmem:[#allocation28_spill] sm:$0xff] }
  0x70   :  { %1073 = vmatprep.subr.mxu0 %v24734_v9  ;;  %1198 = vmatprep.subr.mxu1 %v14556_v17  ;;  %v24737_v17 = vand.u32 4294901760, %v14877_v14  ;;  %v15231_v60 = vand.u32 4294901760, %v329_v16 }
  0x71   :  { %1077 = vmatpush1.msra.mxu0 %v24735_v11  ;;  %1200 = vmatpush1.msra.mxu1 %v14578_v22  ;;  %v330_v22 = vld [vmem:[%s23845_s2 + $0x948] sm:$0xff]  ;;  %v15263_v47 = vsub.f32 %v351_v15, %v15226_v42  ;;  %24758 = vst [vmem:[#allocation8_spill] sm:$0xff] %v15322_v10  ;;  %v24761_v11 = vand.u32 4294901760, %v24760_v1  ;;  %v15328_v15 = vsub.f32 %v287_v51, %v15284_v20  ;;  %v183_v1 = vld [vmem:[%s23845_s2 + $0x4b0] sm:$0xff] }
  0x72   :  { %1081 = vmatprep.subr.mxu0 %v24736_v34  ;;  %1202 = vmatprep.subr.mxu1 %v14584_v24  ;;  %v24739_v24 = vand.u32 4294901760, %v24699_v41  ;;  %v15251_v14 = vand.u32 4294901760, %v330_v22  ;;  %v15257_v27 = vsub.f32 %v329_v16, %v15231_v60  ;;  %v24745_v41 = vld [vmem:[#allocation27_spill] sm:$0xff] }
  0x73   :  { %1085 = vmatpush1.msra.mxu0 %v24737_v17  ;;  %1204 = vmatpush1.msra.mxu1 %v24696_v2  ;;  %v24743_v2 = vand.u32 4294901760, %v14980_v63  ;;  %v24747_v63 = vld [vmem:[#allocation29_spill] sm:$0xff]  ;;  %v23939_v35 = vand.u32 4294901760, %v15263_v47  ;;  %v225_v17 = vld [vmem:[%s23845_s2 + $0x600] sm:$0xff] }
  0x74   :  { %1089 = vmatprep.subr.mxu0 %v24738_v8  ;;  %1206 = vmatprep.subr.mxu1 %v24698_v38  ;;  %v15270_v38 = vand.u32 4294901760, %v308_v6  ;;  %v15291_v18 = vsub.f32 %v330_v22, %v15251_v14  ;;  %v23935_v45 = vand.u32 4294901760, %v15257_v27  ;;  %v224_v8 = vld [vmem:[%s23845_s2 + $0x5f8] sm:$0xff]  ;;  %v24763_v22 = vld [vmem:[#allocation17_spill] sm:$0xff] }
  0x75   :  { %1093 = vmatpush1.msra.mxu0 %v24739_v24  ;;  %1208 = vmatpush1.msra.mxu1 %v24700_v33  ;;  %v24746_v33 = vand.u32 4294901760, %v24745_v41  ;;  %v24764_v24 = vand.u32 4294901760, %v15064_v39 }
  0x76   :  { %1097 = vmatprep.subr.mxu0 %v24740_v48  ;;  %1210 = vmatprep.subr.mxu1 %v24701_v12  ;;  %24744 = vst [vmem:[#allocation5_spill] sm:$0xff] %v15270_v38  ;;  %v24748_v12 = vand.u32 4294901760, %v24747_v63  ;;  %v23936_v34 = vand.u32 4294901760, %v15291_v18  ;;  %v15350_v48 = vsub.f32 %v15263_v47, %v23939_v35  ;;  %v15355_v21 = vsub.f32 %v15257_v27, %v23935_v45  ;;  %v24768_v63 = vld [vmem:[#allocation26_spill] sm:$0xff] }
  0x77   :  { %1101 = vmatpush1.msra.mxu0 %v24741_v28  ;;  %1212 = vmatpush1.msra.mxu1 %v24703_v49  ;;  %v267_v49 = vld [vmem:[%s23845_s2 + $0x750] sm:$0xff]  ;;  %v24765_v28 = vld [vmem:[#allocation18_spill] sm:$0xff] }
  0x78   :  { %1105 = vmatprep.subr.mxu0 %v24742_v53  ;;  %1214 = vmatprep.subr.mxu1 %v24704_v37  ;;  %v266_v37 = vld [vmem:[%s23845_s2 + $0x748] sm:$0xff]  ;;  %v15320_v9 = vand.u32 4294901760, %v267_v49  ;;  %v24766_v53 = vld [vmem:[#allocation39_spill] sm:$0xff] }
  0x79   :  { %1109 = vmatpush1.msra.mxu0 %v24743_v2  ;;  %1216 = vmatpush1.msra.mxu1 %v24705_v13  ;;  %v23938_v13 = vand.u32 4294901760, %v15249_v46  ;;  %v15312_v0 = vand.u32 4294901760, %v266_v37  ;;  %v24767_v51 = vand.u32 4294901760, %v24766_v53  ;;  %v23934_v2 = vand.u32 4294901760, %v15315_v3 }
  0x7a   :  { %1113 = vmatprep.subr.mxu0 %v24746_v33  ;;  %1218 = vmatprep.subr.mxu1 %v24706_v19  ;;  %v24750_v19 = vld [vmem:[#allocation32_spill] sm:$0xff]  ;;  %24757 = vst [vmem:[#allocation7_spill] sm:$0xff] %v15320_v9  ;;  %v204_v33 = vld [vmem:[%s23845_s2 + $0x558] sm:$0xff] }
  0x7b   :  { %1117 = vmatpush1.msra.mxu0 %v24748_v12  ;;  %1220 = vmatpush1.msra.mxu1 %v24707_v44  ;;  %v24751_v25 = vand.u32 4294901760, %v24750_v19  ;;  %v15310_v44 = vsub.f32 %v308_v6, %v15270_v38  ;;  %24754 = vst [vmem:[#allocation24_spill] sm:$0xff] %v15312_v0  ;;  %v15333_v16 = vsub.f32 %v15249_v46, %v23938_v13  ;;  %v15376_v19 = vand.u32 4294901760, %v225_v17 }
  0x7c   :  { %1222 = vmatprep.subr.mxu1 %v24708_v7  ;;  %v24759_v7 = vld [vmem:[#allocation16_spill] sm:$0xff]  ;;  %v15358_v6 = vsub.f32 %v288_v57, %v15299_v31  ;;  %v15364_v39 = vsub.f32 %v266_v37, %v15312_v0  ;;  %1173 = vmatprep.mubr.f32.mxu0 %v24768_v63  ;;  %v24769_v57 = vld [vmem:[#allocation19_spill] sm:$0xff]  ;;  %v15374_v12 = vsub.f32 %v245_v23, %v15322_v10  ;;  %v203_v37 = vld [vmem:[%s23845_s2 + $0x550] sm:$0xff] }
  0x7d   :  { %1121 = vmatprep.subr.mxu0 %v24751_v25  ;;  %1224 = vmatpush1.msra.mxu1 %v24709_v36  ;;  %v15335_v36 = vand.u32 4294901760, %v246_v40  ;;  %v23933_v41 = vand.u32 4294901760, %v15310_v44  ;;  %24770 = vst [vmem:[#allocation9_spill] sm:$0xff] %v15376_v19  ;;  %v15378_v25 = vand.u32 4294901760, %v224_v8  ;;  %v15392_v23 = vsub.f32 %v15291_v18, %v23936_v34  ;;  %v162_v34 = vld [vmem:[%s23845_s2 + $0x408] sm:$0xff] }
  0x7e   :  { %1125 = vmatpush1.msra.mxu0 %v24753_v59  ;;  %1226 = vmatprep.subr.mxu1 %v24759_v7  ;;  %v15384_v59 = vsub.f32 %v267_v49, %v15320_v9  ;;  %v23937_v7 = vand.u32 4294901760, %v15328_v15  ;;  %v23941_v53 = vand.u32 4294901760, %v15364_v39 }
  0x7f   :  { %1129 = vmatprep.subr.mxu0 %v24756_v5  ;;  %24762 = vst [vmem:[#allocation25_spill] sm:$0xff] %v15335_v36  ;;  %1228 = vmatpush1.msra.mxu1 %v24763_v22  ;;  %24771 = vst [vmem:[#allocation10_spill] sm:$0xff] %v15378_v25  ;;  %v15399_v49 = vsub.f32 %v246_v40, %v15335_v36  ;;  %v15405_v22 = vand.u32 4294901760, %v204_v33  ;;  %v15421_v40 = vsub.f32 %v15310_v44, %v23933_v41  ;;  %v120_v5 = vld [vmem:[%s23845_s2 + $0x2b8] sm:$0xff] }
  0x80   :  { %1133 = vmatpush1.msra.mxu0 %v24761_v11  ;;  %1230 = vmatprep.subr.mxu1 %v24765_v28  ;;  %v182_v28 = vld [vmem:[%s23845_s2 + $0x4a8] sm:$0xff]  ;;  %v23942_v41 = vand.u32 4294901760, %v15384_v59  ;;  %v1419_v45 = vand.u32 4294901760, %v15392_v23 }
  0x81   :  { %1167 = vmatprep.subr.mxu0 %v24764_v24  ;;  %1232 = vmatpush1.msra.mxu1 %v24769_v57  ;;  %24773 = vst [vmem:[#allocation11_spill] sm:$0xff] %v15405_v22  ;;  %v23940_v24 = vand.u32 4294901760, %v15358_v6  ;;  %v15434_v57 = vand.u32 4294901760, %v183_v1  ;;  %v15465_v13 = vsub.f32 %v204_v33, %v15405_v22  ;;  %v15486_v33 = vand.u32 4294901760, %v162_v34 }
  0x82   :  { %1171 = vmatpush2.msra.mxu0 %v24767_v51  ;;  %1234 = vmatprep.subr.mxu1 %v14854_v29  ;;  %v1407_v29 = vand.u32 4294901760, %v15350_v48  ;;  %v15423_v48 = vand.u32 4294901760, %v203_v37  ;;  %v161_v51 = vld [vmem:[%s23845_s2 + $0x400] sm:$0xff] }
  0x83   :  { %1175 = vmatmul.mubr.f32.vlgmr.msra.gmra.mxu0 %v24772_v4  ;;  %1289 = vmatprep.subr.mxu0 %v15226_v42  ;;  %24775 = vst [vmem:[#allocation13_spill] sm:$0xff] %v15434_v57  ;;  %v15461_v23 = vand.u32 4294901760, %v161_v51  ;;  %24779 = vst [vmem:[#allocation21_spill] sm:$0xff] %v15486_v33 }
  0x84   :  { %1236 = vmatpush1.msra.mxu1 %v24715_v26  ;;  %1291 = vmatpush1.msra.mxu0 %v15221_v55  ;;  %v15416_v26 = vsub.f32 %v15315_v3, %v23934_v2  ;;  %24774 = vst [vmem:[#allocation12_spill] sm:$0xff] %v15423_v48  ;;  %v15438_v2 = vsub.f32 %v225_v17, %v15376_v19  ;;  %v23943_v17 = vand.u32 4294901760, %v15399_v49 }
  0x85   :  { %1238 = vmatprep.subr.mxu1 %v24717_v30  ;;  %1293 = vmatprep.subr.mxu0 %v15251_v14  ;;  %v15432_v30 = vsub.f32 %v224_v8, %v15378_v25  ;;  %v15448_v8 = vand.u32 4294901760, %v182_v28  ;;  %24777 = vst [vmem:[#allocation15_spill] sm:$0xff] %v15461_v23  ;;  %v15472_v11 = vsub.f32 %v203_v37, %v15423_v48  ;;  %v141_v37 = vld [vmem:[%s23845_s2 + $0x360] sm:$0xff] }
  0x86   :  { %1240 = vmatpush1.msra.mxu1 %v24719_v56  ;;  %1295 = vmatpush1.msra.mxu0 %v15231_v60  ;;  %v15446_v56 = vsub.f32 %v15328_v15, %v23937_v7  ;;  %v23948_v7 = vand.u32 4294901760, %v15374_v12  ;;  %v1431_v35 = vand.u32 4294901760, %v15416_v26  ;;  %v15507_v26 = vsub.f32 %v15399_v49, %v23943_v17 }
  0x87   :  { %1242 = vmatprep.subr.mxu1 %v14919_v52  ;;  %24776 = vst [vmem:[#allocation14_spill] sm:$0xff] %v15448_v8  ;;  %1297 = vmatprep.subr.mxu0 %v15268_v43  ;;  %v15459_v52 = vsub.f32 %v15358_v6, %v23940_v24  ;;  %24778 = vst [vmem:[#allocation20_spill] sm:$0xff] %v15472_v11  ;;  %v15477_v24 = vsub.f32 %v15364_v39, %v23941_v53  ;;  %v24785_v54 = vand.u32 4294901760, %v15438_v2 }
  0x88   :  { %1244 = vmatpush1.msra.mxu1 %v14945_v58  ;;  %1299 = vmatpush1.msra.mxu0 %v15270_v38  ;;  %v1437_v58 = vand.u32 4294901760, %v15421_v40  ;;  %v140_v40 = vld [vmem:[%s23845_s2 + $0x358] sm:$0xff]  ;;  %v15496_v53 = vsub.f32 %v183_v1, %v15434_v57  ;;  %v119_v1 = vld [vmem:[%s23845_s2 + $0x2b0] sm:$0xff]  ;;  %v15522_v17 = vsub.f32 %v15374_v12, %v23948_v7  ;;  %v98_v7 = vld [vmem:[%s23845_s2 + $0x208] sm:$0xff] }
  0x89   :  { %1276 = vmatprep.subr.mxu1 %v14960_v61  ;;  %1301 = vmatprep.subr.mxu0 %v15299_v31  ;;  %v15484_v61 = vsub.f32 %v15384_v59, %v23942_v41  ;;  %v15502_v41 = vsub.f32 %v182_v28, %v15448_v8  ;;  %v15517_v28 = vsub.f32 %v161_v51, %v15461_v23  ;;  %v1461_v50 = vand.u32 4294901760, %v15477_v24  ;;  %v77_v31 = vld [vmem:[%s23845_s2 + $0x160] sm:$0xff]  ;;  %v78_v38 = vld [vmem:[%s23845_s2 + $0x168] sm:$0xff] }
  0x8a   :  { %1278 = vmatpush2.msra.mxu1 %v14969_v62  ;;  %24780 = vst [vmem:[#allocation23_spill] sm:$0xff] %v15496_v53  ;;  %1280 = vmatprep.mubr.f32.mxu1 %v24768_v63  ;;  %v1449_v62 = vand.u32 4294901760, %v15446_v56  ;;  %v1443_v56 = vand.u32 4294901760, %v15459_v52  ;;  %v15530_v52 = vand.u32 4294901760, %v141_v37  ;;  %v15532_v51 = vand.u32 4294901760, %v140_v40 }
  0x8b   :  { %1303 = vmatpush1.msra.mxu0 %v15284_v20  ;;  %24781 = vst [vmem:[#allocation27_spill] sm:$0xff] %v15502_v41  ;;  %1282 = vmatmul.mubr.f32.vlgmr.msra.gmra.mxu1 %v24772_v4  ;;  %v15545_v24 = vsub.f32 %v15438_v2, %v24785_v54  ;;  %v15560_v54 = vand.u32 4294901760, %v120_v5  ;;  %v24791_v20 = vand.u32 4294901760, %v15465_v13 }
  0x8c   :  { %1305 = vmatprep.subr.mxu0 %v15320_v9  ;;  %1408 = vmatprep.subr.mxu1 %v1407_v29  ;;  %24782 = vst [vmem:[#allocation29_spill] sm:$0xff] %v15530_v52  ;;  %24783 = vst [vmem:[#allocation32_spill] sm:$0xff] %v15532_v51  ;;  %v24784_v9 = vand.u32 4294901760, %v15333_v16  ;;  %v1455_v29 = vand.u32 4294901760, %v15484_v61  ;;  %v24787_v16 = vand.u32 4294901760, %v15432_v30 }
  0x8d   :  { %1307 = vmatpush1.msra.mxu0 %v15312_v0  ;;  %v15547_v0 = vand.u32 4294901760, %v119_v1  ;;  %24788 = vst [vmem:[#allocation16_spill] sm:$0xff] %v15560_v54  ;;  %1638 = vmatprep.mubr.f32.mxu1 %v24768_v63  ;;  %v24837_v63 = vld [vmem:[#allocation21_spill] sm:$0xff] }
  0x8e   :  { %1414 = vmatpush1.msra.mxu1 %v24784_v9  ;;  %1309 = vmatprep.subr.mxu0 %v15335_v36  ;;  %v1467_v9 = vand.u32 4294901760, %v15507_v26  ;;  %v15558_v61 = vsub.f32 %v15432_v30, %v24787_v16  ;;  %v15563_v36 = vsub.f32 %v162_v34, %v15486_v33  ;;  %v1473_v26 = vand.u32 4294901760, %v15522_v17 }
  0x8f   :  { %24786 = vst [vmem:[#allocation35_spill] sm:$0xff] %v15547_v0  ;;  %1420 = vmatprep.subr.mxu1 %v1419_v45  ;;  %1311 = vmatpush1.msra.mxu0 %v15322_v10  ;;  %v24790_v45 = vand.u32 4294901760, %v15355_v21  ;;  %v15575_v16 = vsub.f32 %v15465_v13, %v24791_v20  ;;  %v15577_v10 = vand.u32 4294901760, %v98_v7  ;;  %v15585_v21 = vsub.f32 %v140_v40, %v15532_v51 }
  0x90   :  { %24789 = vst [vmem:[#allocation36_spill] sm:$0xff] %v15563_v36  ;;  %1313 = vmatprep.subr.mxu0 %v15376_v19  ;;  %v24792_v17 = vand.u32 4294901760, %v15472_v11  ;;  %v15592_v20 = vand.u32 4294901760, %v99_v32  ;;  %v15595_v19 = vsub.f32 %v141_v37, %v15530_v52  ;;  %v15600_v34 = vsub.f32 %v119_v1, %v15547_v0  ;;  %v57_v37 = vld [vmem:[%s23845_s2 + $0xc0] sm:$0xff] }
  0x91   :  { %1426 = vmatpush1.msra.mxu1 %v24790_v45  ;;  %1315 = vmatpush1.msra.mxu0 %v15378_v25  ;;  %v24794_v40 = vand.u32 4294901760, %v15496_v53 }
  0x92   :  { %1432 = vmatprep.subr.mxu1 %v1431_v35  ;;  %v15590_v45 = vsub.f32 %v15472_v11, %v24792_v17  ;;  %1317 = vmatprep.subr.mxu0 %v15405_v22  ;;  %v1479_v35 = vand.u32 4294901760, %v15545_v24  ;;  %24793 = vst [vmem:[#allocation17_spill] sm:$0xff] %v15600_v34  ;;  %v15607_v17 = vand.u32 4294901760, %v77_v31  ;;  %v15614_v24 = vand.u32 4294901760, %v78_v38  ;;  %v36_v11 = vld [vmem:[%s23845_s2 + $0x18] sm:$0xff] }
  0x93   :  { %1438 = vmatpush1.msra.mxu1 %v1437_v58  ;;  %v15605_v25 = vsub.f32 %v15496_v53, %v24794_v40  ;;  %1319 = vmatpush1.msra.mxu0 %v15423_v48  ;;  %v1485_v58 = vand.u32 4294901760, %v15558_v61  ;;  %v56_v40 = vld [vmem:[%s23845_s2 + $0xb8] sm:$0xff]  ;;  %v15621_v22 = vsub.f32 %v120_v5, %v15560_v54  ;;  %v15626_v48 = vsub.f32 %v98_v7, %v15577_v10 }
  0x94   :  { %1444 = vmatprep.subr.mxu1 %v1443_v56  ;;  %1321 = vmatprep.subr.mxu0 %v15434_v57  ;;  %v1491_v56 = vand.u32 4294901760, %v15575_v16  ;;  %v24797_v61 = vand.u32 4294901760, %v15502_v41  ;;  %v1497_v5 = vand.u32 4294901760, %v15590_v45  ;;  %v35_v16 = vld [vmem:[%s23845_s2 + $0x10] sm:$0xff]  ;;  %v15649_v1 = vsub.f32 %v77_v31, %v15607_v17  ;;  %v372_v7 = vld [vmem:[%s23845_s2 + $0xa98] sm:$0xff] }
  0x95   :  { %24795 = vst [vmem:[#allocation18_spill] sm:$0xff] %v15621_v22  ;;  %1450 = vmatpush1.msra.mxu1 %v1449_v62  ;;  %24796 = vst [vmem:[#allocation39_spill] sm:$0xff] %v15626_v48  ;;  %1323 = vmatpush1.msra.mxu0 %v15448_v8  ;;  %v15637_v62 = vand.u32 4294901760, %v57_v37  ;;  %v15651_v45 = vand.u32 4294901760, %v56_v40  ;;  %v15668_v8 = vsub.f32 %v78_v38, %v15614_v24  ;;  %v24801_v31 = vand.u32 4294901760, %v15595_v19 }
  0x96   :  { %v1508_v53 = vsub.f32 %v15502_v41, %v24797_v61  ;;  %1456 = vmatprep.subr.mxu1 %v1455_v29  ;;  %v15644_v61 = vsub.f32 %v99_v32, %v15592_v20  ;;  %1325 = vmatprep.subr.mxu0 %v15486_v33  ;;  %v1503_v29 = vand.u32 4294901760, %v15605_v25  ;;  %v15661_v33 = vand.u32 4294901760, %v36_v11  ;;  %v371_v25 = vld [vmem:[%s23845_s2 + $0xa90] sm:$0xff] }
  0x97   :  { %1462 = vmatpush1.msra.mxu1 %v1461_v50  ;;  %1327 = vmatpush1.msra.mxu0 %v15461_v23  ;;  %v24799_v50 = vand.u32 4294901760, %v15563_v36  ;;  %v24800_v23 = vand.u32 4294901760, %v15517_v28  ;;  %v1526_v38 = vsub.f32 %v15595_v19, %v24801_v31  ;;  %v15681_v41 = vand.u32 4294901760, %v372_v7  ;;  %v24817_v31 = vld [vmem:[#allocation37_spill] sm:$0xff] }
  0x98   :  { %24798 = vst [vmem:[#allocation19_spill] sm:$0xff] %v15644_v61  ;;  %1468 = vmatprep.subr.mxu1 %v1467_v9  ;;  %1329 = vmatprep.subr.mxu0 %v15530_v52  ;;  %v1509_v9 = vand.u32 4294901760, %v1508_v53  ;;  %v15685_v53 = vsub.f32 %v57_v37, %v15637_v62  ;;  %v24805_v37 = vand.u32 4294901760, %v15621_v22 }
  0x99   :  { %v1514_v32 = vsub.f32 %v15563_v36, %v24799_v50  ;;  %1474 = vmatpush1.msra.mxu1 %v1473_v26  ;;  %v1520_v57 = vsub.f32 %v15517_v28, %v24800_v23  ;;  %v15674_v50 = vand.u32 4294901760, %v35_v16  ;;  %1331 = vmatpush1.msra.mxu0 %v15532_v51  ;;  %v15689_v23 = vsub.f32 %v56_v40, %v15651_v45 }
  0x9a   :  { %1480 = vmatprep.subr.mxu1 %v1479_v35  ;;  %24802 = vst [vmem:[#allocation40_spill] sm:$0xff] %v15685_v53  ;;  %1333 = vmatprep.subr.mxu0 %v15560_v54  ;;  %v24804_v35 = vand.u32 4294901760, %v15585_v21  ;;  %v15694_v51 = vand.u32 4294901760, %v371_v25  ;;  %v15703_v40 = vsub.f32 %v36_v11, %v15661_v33  ;;  %v24807_v11 = vand.u32 4294901760, %v15644_v61 }
  0x9b   :  { %1486 = vmatpush1.msra.mxu1 %v1485_v58  ;;  %24803 = vst [vmem:[#allocation41_spill] sm:$0xff] %v15689_v23  ;;  %1335 = vmatpush1.msra.mxu0 %v15547_v0  ;;  %v1515_v26 = vand.u32 4294901760, %v1514_v32  ;;  %v1538_v58 = vsub.f32 %v15621_v22, %v24805_v37  ;;  %v15707_v52 = vsub.f32 %v35_v16, %v15674_v50  ;;  %v1527_v37 = vand.u32 4294901760, %v1526_v38 }
  0x9c   :  { %v1532_v36 = vsub.f32 %v15585_v21, %v24804_v35  ;;  %1492 = vmatprep.subr.mxu1 %v1491_v56  ;;  %1337 = vmatprep.subr.mxu0 %v15592_v20  ;;  %v1521_v35 = vand.u32 4294901760, %v1520_v57  ;;  %v24806_v56 = vand.u32 4294901760, %v15600_v34  ;;  %v15719_v57 = vsub.f32 %v372_v7, %v15681_v41 }
  0x9d   :  { %1498 = vmatpush1.msra.mxu1 %v1497_v5  ;;  %1339 = vmatpush1.msra.mxu0 %v15577_v10  ;;  %v1550_v5 = vsub.f32 %v15644_v61, %v24807_v11  ;;  %v1539_v11 = vand.u32 4294901760, %v1538_v58  ;;  %v24810_v7 = vand.u32 4294901760, %v15668_v8  ;;  %v24812_v58 = vand.u32 4294901760, %v15685_v53 }
  0x9e   :  { %v1544_v32 = vsub.f32 %v15600_v34, %v24806_v56  ;;  %1504 = vmatprep.subr.mxu1 %v1503_v29  ;;  %1341 = vmatprep.subr.mxu0 %v15614_v24  ;;  %v1533_v16 = vand.u32 4294901760, %v1532_v36  ;;  %v15723_v56 = vsub.f32 %v371_v25, %v15694_v51  ;;  %v24809_v29 = vand.u32 4294901760, %v15626_v48 }
  0x9f   :  { %1510 = vmatpush1.msra.mxu1 %v1509_v9  ;;  %1343 = vmatpush1.msra.mxu0 %v15607_v17  ;;  %v1562_v9 = vsub.f32 %v15668_v8, %v24810_v7  ;;  %v24811_v25 = vand.u32 4294901760, %v15649_v1  ;;  %v1574_v7 = vsub.f32 %v15685_v53, %v24812_v58 }
  0xa0   :  { %24808 = vst [vmem:[#allocation42_spill] sm:$0xff] %v15723_v56  ;;  %v1556_v38 = vsub.f32 %v15626_v48, %v24809_v29  ;;  %1516 = vmatprep.subr.mxu1 %v1515_v26  ;;  %1345 = vmatprep.subr.mxu0 %v15637_v62  ;;  %v1545_v36 = vand.u32 4294901760, %v1544_v32  ;;  %v1551_v26 = vand.u32 4294901760, %v1550_v5  ;;  %v24813_v32 = vand.u32 4294901760, %v15689_v23 }
  0xa1   :  { %1522 = vmatpush1.msra.mxu1 %v1521_v35  ;;  %v1568_v29 = vsub.f32 %v15649_v1, %v24811_v25  ;;  %1347 = vmatpush1.msra.mxu0 %v15651_v45  ;;  %v24814_v5 = vand.u32 4294901760, %v15703_v40 }
  0xa2   :  { %1528 = vmatprep.subr.mxu1 %v1527_v37  ;;  %1349 = vmatprep.subr.mxu0 %v15661_v33  ;;  %v1557_v35 = vand.u32 4294901760, %v1556_v38  ;;  %v1580_v25 = vsub.f32 %v15689_v23, %v24813_v32  ;;  %v1563_v37 = vand.u32 4294901760, %v1562_v9  ;;  %v24815_v38 = vand.u32 4294901760, %v15707_v52 }
  0xa3   :  { %1534 = vmatpush1.msra.mxu1 %v1533_v16  ;;  %1351 = vmatpush1.msra.mxu0 %v15674_v50  ;;  %v1586_v58 = vsub.f32 %v15703_v40, %v24814_v5  ;;  %v1569_v16 = vand.u32 4294901760, %v1568_v29  ;;  %v1575_v32 = vand.u32 4294901760, %v1574_v7 }
  0xa4   :  { %1540 = vmatprep.subr.mxu1 %v1539_v11  ;;  %1383 = vmatprep.subr.mxu0 %v15681_v41  ;;  %v1592_v54 = vsub.f32 %v15707_v52, %v24815_v38  ;;  %v24816_v11 = vand.u32 4294901760, %v15719_v57  ;;  %v1581_v5 = vand.u32 4294901760, %v1580_v25  ;;  %v24821_v25 = vld [vmem:[#allocation6_spill] sm:$0xff] }
  0xa5   :  { %1546 = vmatpush1.msra.mxu1 %v1545_v36  ;;  %1385 = vmatpush2.msra.mxu0 %v15694_v51  ;;  %v24818_v36 = vand.u32 4294901760, %v15723_v56  ;;  %v1587_v38 = vand.u32 4294901760, %v1586_v58  ;;  %v24823_v58 = vld [vmem:[#allocation22_spill] sm:$0xff] }
  0xa6   :  { %1552 = vmatprep.subr.mxu1 %v1551_v26  ;;  %v1628_v9 = vsub.f32 %v15719_v57, %v24816_v11  ;;  %1391 = vmatprep.mubr.f32.mxu0 %v24817_v31  ;;  %v24819_v26 = vld [vmem:[#allocation38_spill] sm:$0xff]  ;;  %v1593_v7 = vand.u32 4294901760, %v1592_v54  ;;  %v24820_v54 = vld [vmem:[#allocation5_spill] sm:$0xff] }
  0xa7   :  { %1558 = vmatpush1.msra.mxu1 %v1557_v35  ;;  %v1634_v29 = vsub.f32 %v15723_v56, %v24818_v36  ;;  %1648 = vmatprep.subr.mxu0 %v15263_v47  ;;  %v24828_v36 = vld [vmem:[#allocation36_spill] sm:$0xff]  ;;  %v24835_v31 = vld [vmem:[#allocation13_spill] sm:$0xff] }
  0xa8   :  { %1564 = vmatprep.subr.mxu1 %v1563_v37  ;;  %1397 = vmatmul.mubr.f32.vlgmr.msra.gmra.mxu0 %v24819_v26  ;;  %v1629_v11 = vand.u32 4294901760, %v1628_v9  ;;  %v24822_v37 = vld [vmem:[#allocation20_spill] sm:$0xff]  ;;  %v24826_v9 = vld [vmem:[#allocation27_spill] sm:$0xff] }
  0xa9   :  { %1570 = vmatpush1.msra.mxu1 %v1569_v16  ;;  %1651 = vmatpush1.msra.mxu0 %v15249_v46  ;;  %v1635_v35 = vand.u32 4294901760, %v1634_v29  ;;  %v24824_v16 = vld [vmem:[#allocation23_spill] sm:$0xff]  ;;  %v24829_v29 = vld [vmem:[#allocation25_spill] sm:$0xff]  ;;  %v24834_v26 = vld [vmem:[#allocation12_spill] sm:$0xff] }
  0xaa   :  { %1576 = vmatprep.subr.mxu1 %v1575_v32  ;;  %1654 = vmatprep.subr.mxu0 %v15291_v18  ;;  %v24825_v32 = vld [vmem:[#allocation7_spill] sm:$0xff] }
  0xab   :  { %1582 = vmatpush1.msra.mxu1 %v1581_v5  ;;  %1657 = vmatpush1.msra.mxu0 %v15257_v27  ;;  %v24827_v5 = vld [vmem:[#allocation24_spill] sm:$0xff] }
  0xac   :  { %1588 = vmatprep.subr.mxu1 %v1587_v38  ;;  %1660 = vmatprep.subr.mxu0 %v15315_v3  ;;  %v24830_v38 = vld [vmem:[#allocation8_spill] sm:$0xff] }
  0xad   :  { %1594 = vmatpush1.msra.mxu1 %v1593_v7  ;;  %1663 = vmatpush1.msra.mxu0 %v15310_v44  ;;  %v24831_v7 = vld [vmem:[#allocation9_spill] sm:$0xff] }
  0xae   :  { %1630 = vmatprep.subr.mxu1 %v1629_v11  ;;  %1666 = vmatprep.subr.mxu0 %v15358_v6  ;;  %v24832_v11 = vld [vmem:[#allocation10_spill] sm:$0xff] }
  0xaf   :  { %1636 = vmatpush2.msra.mxu1 %v1635_v35  ;;  %1669 = vmatpush1.msra.mxu0 %v15328_v15  ;;  %v24833_v35 = vld [vmem:[#allocation11_spill] sm:$0xff] }
  0xb0   :  { %1640 = vmatmul.mubr.f32.vlgmr.msra.gmra.mxu1 %v24772_v4  ;;  %1672 = vmatprep.subr.mxu0 %v15384_v59  ;;  %v24836_v4 = vld [vmem:[#allocation14_spill] sm:$0xff] }
  0xb1   :  { %1790 = vmatprep.subr.mxu1 %v15226_v42  ;;  %1675 = vmatpush1.msra.mxu0 %v15364_v39 }
  0xb2   :  { %1792 = vmatpush1.msra.mxu1 %v15221_v55  ;;  %1678 = vmatprep.subr.mxu0 %v15399_v49 }
  0xb3   :  { %1794 = vmatprep.subr.mxu1 %v15251_v14  ;;  %1681 = vmatpush1.msra.mxu0 %v15374_v12 }
  0xb4   :  { %1796 = vmatpush1.msra.mxu1 %v15231_v60  ;;  %1684 = vmatprep.subr.mxu0 %v15438_v2 }
  0xb5   :  { %1798 = vmatprep.subr.mxu1 %v15268_v43  ;;  %1687 = vmatpush1.msra.mxu0 %v15432_v30 }
  0xb6   :  { %1800 = vmatpush1.msra.mxu1 %v24820_v54  ;;  %1690 = vmatprep.subr.mxu0 %v15465_v13 }
  0xb7   :  { %1802 = vmatprep.subr.mxu1 %v24821_v25  ;;  %1693 = vmatpush1.msra.mxu0 %v24822_v37 }
  0xb8   :  { %1804 = vmatpush1.msra.mxu1 %v24823_v58  ;;  %1696 = vmatprep.subr.mxu0 %v24824_v16 }
  0xb9   :  { %1806 = vmatprep.subr.mxu1 %v24825_v32  ;;  %1699 = vmatpush1.msra.mxu0 %v24826_v9 }
  0xba   :  { %1808 = vmatpush1.msra.mxu1 %v24827_v5  ;;  %1702 = vmatprep.subr.mxu0 %v24828_v36 }
  0xbb   :  { %1810 = vmatprep.subr.mxu1 %v24829_v29  ;;  %1705 = vmatpush1.msra.mxu0 %v15517_v28 }
  0xbc   :  { %1812 = vmatpush1.msra.mxu1 %v24830_v38  ;;  %1708 = vmatprep.subr.mxu0 %v15595_v19 }
  0xbd   :  { %1814 = vmatprep.subr.mxu1 %v24831_v7  ;;  %1711 = vmatpush1.msra.mxu0 %v15585_v21 }
  0xbe   :  { %1816 = vmatpush1.msra.mxu1 %v24832_v11  ;;  %1714 = vmatprep.subr.mxu0 %v15621_v22  ;;  %v24838_v22 = vld [vmem:[#allocation15_spill] sm:$0xff] }
  0xbf   :  { %1818 = vmatprep.subr.mxu1 %v24833_v35  ;;  %1717 = vmatpush1.msra.mxu0 %v15600_v34  ;;  %v24839_v34 = vld [vmem:[#allocation29_spill] sm:$0xff] }
  0xc0   :  { %1820 = vmatpush1.msra.mxu1 %v24834_v26  ;;  %1720 = vmatprep.subr.mxu0 %v15644_v61  ;;  %v24840_v61 = vld [vmem:[#allocation32_spill] sm:$0xff] }
  0xc1   :  { %1822 = vmatprep.subr.mxu1 %v24835_v31  ;;  %1723 = vmatpush1.msra.mxu0 %v15626_v48  ;;  %v24841_v48 = vld [vmem:[#allocation16_spill] sm:$0xff] }
  0xc2   :  { %1824 = vmatpush1.msra.mxu1 %v24836_v4  ;;  %1726 = vmatprep.subr.mxu0 %v15668_v8 }
  0xc3   :  { %1826 = vmatprep.subr.mxu1 %v24837_v63  ;;  %1729 = vmatpush1.msra.mxu0 %v15649_v1 }
  0xc4   :  { %1828 = vmatpush1.msra.mxu1 %v24838_v22  ;;  %1732 = vmatprep.subr.mxu0 %v15685_v53  ;;  %v24842_v53 = vld [vmem:[#allocation30_spill] sm:$0xff] }
  0xc5   :  { %1830 = vmatprep.subr.mxu1 %v24839_v34  ;;  %1735 = vmatpush1.msra.mxu0 %v15689_v23  ;;  %v24843_v23 = vld [vmem:[#allocation31_spill] sm:$0xff] }
  0xc6   :  { %1832 = vmatpush1.msra.mxu1 %v24840_v61  ;;  %1738 = vmatprep.subr.mxu0 %v15703_v40 }
  0xc7   :  { %1834 = vmatprep.subr.mxu1 %v24841_v48  ;;  %1741 = vmatpush1.msra.mxu0 %v15707_v52  ;;  %v24844_v48 = vand.u32 4294901760, %v15263_v47  ;;  %v24848_v47 = vand.u32 4294901760, %v15315_v3  ;;  %v24854_v3 = vand.u32 4294901760, %v15384_v59  ;;  %v24858_v59 = vand.u32 4294901760, %v15438_v2 }
  0xc8   :  { %1836 = vmatpush1.msra.mxu1 %v15547_v0  ;;  %1774 = vmatprep.subr.mxu0 %v15719_v57  ;;  %v24845_v0 = vand.u32 4294901760, %v15249_v46  ;;  %v24849_v46 = vand.u32 4294901760, %v15310_v44  ;;  %v24855_v44 = vand.u32 4294901760, %v15364_v39  ;;  %v352_v39 = vld [vmem:[%s23845_s2 + $0x9f8] sm:$0xff] }
  0xc9   :  { %1838 = vmatprep.subr.mxu1 %v15592_v20  ;;  %1777 = vmatpush2.msra.mxu0 %v15723_v56  ;;  %v24846_v56 = vand.u32 4294901760, %v15291_v18  ;;  %v24850_v18 = vand.u32 4294901760, %v15358_v6  ;;  %v24856_v6 = vand.u32 4294901760, %v15399_v49  ;;  %v24865_v49 = vand.u32 4294901760, %v15517_v28 }
  0xca   :  { %1780 = vmatprep.mubr.f32.mxu0 %v24842_v53  ;;  %1840 = vmatpush1.msra.mxu1 %v15577_v10  ;;  %v24847_v53 = vand.u32 4294901760, %v15257_v27  ;;  %v24852_v27 = vand.u32 4294901760, %v15328_v15  ;;  %v24857_v15 = vand.u32 4294901760, %v15374_v12  ;;  %v24864_v12 = vand.u32 4294901760, %v24828_v36 }
  0xcb   :  { %1783 = vmatmul.mubr.f32.vlgmr.msra.gmra.mxu0 %v24843_v23  ;;  %1842 = vmatprep.subr.mxu1 %v15614_v24  ;;  %v24867_v28 = vand.u32 4294901760, %v15585_v21  ;;  %v24870_v21 = vld [vmem:[#allocation17_spill] sm:$0xff] }
  0xcc   :  { %1903 = vmatprep.subr.mxu0 %v24844_v48  ;;  %1844 = vmatpush1.msra.mxu1 %v15607_v17  ;;  %v24853_v48 = vld [vmem:[#allocation34_spill] sm:$0xff] }
  0xcd   :  { %1907 = vmatpush1.msra.mxu0 %v24845_v0  ;;  %1846 = vmatprep.subr.mxu1 %v15637_v62  ;;  %v24851_v0 = vld [vmem:[#allocation33_spill] sm:$0xff] }
  0xce   :  { %1911 = vmatprep.subr.mxu0 %v24846_v56  ;;  %1848 = vmatpush1.msra.mxu1 %v15651_v45  ;;  %v24866_v56 = vand.u32 4294901760, %v15595_v19  ;;  %v24868_v19 = vld [vmem:[#allocation18_spill] sm:$0xff] }
  0xcf   :  { %1915 = vmatpush1.msra.mxu0 %v24847_v53  ;;  %1850 = vmatprep.subr.mxu1 %v15661_v33  ;;  %v332_v53 = vld [vmem:[%s23845_s2 + $0x958] sm:$0xff] }
  0xd0   :  { %1919 = vmatprep.subr.mxu0 %v24848_v47  ;;  %1852 = vmatpush1.msra.mxu1 %v15674_v50  ;;  %v24874_v47 = vld [vmem:[#allocation39_spill] sm:$0xff] }
  0xd1   :  { %1923 = vmatpush1.msra.mxu0 %v24849_v46  ;;  %1884 = vmatprep.subr.mxu1 %v15681_v41  ;;  %v24875_v46 = vand.u32 4294901760, %v24874_v47 }
  0xd2   :  { %1927 = vmatprep.subr.mxu0 %v24850_v18  ;;  %1886 = vmatpush2.msra.mxu1 %v15694_v51 }
  0xd3   :  { %1890 = vmatprep.mubr.f32.mxu1 %v24851_v0  ;;  %1931 = vmatpush1.msra.mxu0 %v24852_v27  ;;  %v24877_v27 = vand.u32 4294901760, %v15668_v8 }
  0xd4   :  { %1894 = vmatmul.mubr.f32.vlgmr.msra.gmra.mxu1 %v24853_v48  ;;  %1935 = vmatprep.subr.mxu0 %v24854_v3  ;;  %v269_v3 = vld [vmem:[%s23845_s2 + $0x760] sm:$0xff] }
  0xd5   :  { %2076 = vmatprep.subr.mxu1 %v15226_v42  ;;  %1939 = vmatpush1.msra.mxu0 %v24855_v44  ;;  %v24859_v42 = vand.u32 4294901760, %v15432_v30  ;;  %v15899_v30 = vand.u32 4294901760, %v352_v39 }
  0xd6   :  { %2078 = vmatpush1.msra.mxu1 %v15221_v55  ;;  %1943 = vmatprep.subr.mxu0 %v24856_v6  ;;  %v24860_v55 = vand.u32 4294901760, %v15465_v13  ;;  %v24863_v13 = vand.u32 4294901760, %v24826_v9  ;;  %v24871_v9 = vand.u32 4294901760, %v24870_v21  ;;  %v24878_v6 = vand.u32 4294901760, %v15649_v1 }
  0xd7   :  { %2080 = vmatprep.subr.mxu1 %v15251_v14  ;;  %1947 = vmatpush1.msra.mxu0 %v24857_v15  ;;  %v353_v14 = vld [vmem:[%s23845_s2 + $0xa00] sm:$0xff] }
  0xd8   :  { %2082 = vmatpush1.msra.mxu1 %v15231_v60  ;;  %1951 = vmatprep.subr.mxu0 %v24858_v59  ;;  %v24861_v60 = vand.u32 4294901760, %v24822_v37  ;;  %v15891_v2 = vand.u32 4294901760, %v353_v14 }
  0xd9   :  { %2084 = vmatprep.subr.mxu1 %v15268_v43  ;;  %1955 = vmatpush1.msra.mxu0 %v24859_v42  ;;  %v24862_v43 = vand.u32 4294901760, %v24824_v16  ;;  %v15922_v16 = vand.u32 4294901760, %v332_v53  ;;  %v247_v42 = vld [vmem:[%s23845_s2 + $0x6b0] sm:$0xff] }
  0xda   :  { %2086 = vmatpush1.msra.mxu1 %v24820_v54  ;;  %1959 = vmatprep.subr.mxu0 %v24860_v55  ;;  %v331_v54 = vld [vmem:[%s23845_s2 + $0x950] sm:$0xff]  ;;  %v15917_v37 = vsub.f32 %v353_v14, %v15891_v2  ;;  %v24881_v55 = vld [vmem:[#allocation40_spill] sm:$0xff] }
  0xdb   :  { %2088 = vmatprep.subr.mxu1 %v24821_v25  ;;  %1963 = vmatpush1.msra.mxu0 %v24861_v60  ;;  %v311_v25 = vld [vmem:[%s23845_s2 + $0x8b0] sm:$0xff]  ;;  %v15933_v36 = vand.u32 4294901760, %v331_v54  ;;  %v15962_v44 = vsub.f32 %v332_v53, %v15922_v16  ;;  %v16006_v53 = vand.u32 4294901760, %v247_v42 }
  0xdc   :  { %2090 = vmatpush1.msra.mxu1 %v24823_v58  ;;  %1967 = vmatprep.subr.mxu0 %v24862_v43  ;;  %v24869_v58 = vand.u32 4294901760, %v24868_v19  ;;  %v24883_v14 = vld [vmem:[#allocation41_spill] sm:$0xff]  ;;  %v226_v19 = vld [vmem:[%s23845_s2 + $0x608] sm:$0xff] }
  0xdd   :  { %2092 = vmatprep.subr.mxu1 %v24825_v32  ;;  %1971 = vmatpush1.msra.mxu0 %v24863_v13  ;;  %v310_v32 = vld [vmem:[%s23845_s2 + $0x8a8] sm:$0xff]  ;;  %v24884_v60 = vand.u32 4294901760, %v24883_v14  ;;  %24888 = vst [vmem:[#allocation7_spill] sm:$0xff] %v16006_v53 }
  0xde   :  { %2094 = vmatpush1.msra.mxu1 %v24827_v5  ;;  %1975 = vmatprep.subr.mxu0 %v24864_v12  ;;  %v15931_v5 = vsub.f32 %v352_v39, %v15899_v30  ;;  %v15949_v18 = vand.u32 4294901760, %v310_v32  ;;  %v15990_v39 = vand.u32 4294901760, %v269_v3  ;;  %v248_v12 = vld [vmem:[%s23845_s2 + $0x6b8] sm:$0xff]  ;;  %v24899_v14 = vld [vmem:[#allocation28_spill] sm:$0xff] }
  0xdf   :  { %2096 = vmatprep.subr.mxu1 %v24829_v29  ;;  %1979 = vmatpush1.msra.mxu0 %v24865_v49  ;;  %v24872_v29 = vld [vmem:[#allocation19_spill] sm:$0xff]  ;;  %v24006_v49 = vand.u32 4294901760, %v15962_v44  ;;  %v16032_v21 = vand.u32 4294901760, %v248_v12 }
  0xe0   :  { %2098 = vmatpush1.msra.mxu1 %v24830_v38  ;;  %1983 = vmatprep.subr.mxu0 %v24866_v56  ;;  %v24873_v38 = vand.u32 4294901760, %v24872_v29  ;;  %24876 = vst [vmem:[#allocation5_spill] sm:$0xff] %v15949_v18  ;;  %v24007_v59 = vand.u32 4294901760, %v15931_v5  ;;  %v15988_v43 = vsub.f32 %v310_v32, %v15949_v18  ;;  %24885 = vst [vmem:[#allocation22_spill] sm:$0xff] %v15990_v39  ;;  %v24889_v56 = vld [vmem:[#allocation16_spill] sm:$0xff]  ;;  %v24892_v32 = vand.u32 4294901760, %v15719_v57 }
  0xe1   :  { %2100 = vmatprep.subr.mxu1 %v24831_v7  ;;  %1987 = vmatpush1.msra.mxu0 %v24867_v28  ;;  %v15938_v7 = vand.u32 4294901760, %v311_v25  ;;  %24893 = vst [vmem:[#allocation27_spill] sm:$0xff] %v16032_v21  ;;  %v24894_v29 = vld [vmem:[#allocation42_spill] sm:$0xff]  ;;  %v206_v57 = vld [vmem:[%s23845_s2 + $0x568] sm:$0xff] }
  0xe2   :  { %2102 = vmatpush1.msra.mxu1 %v24832_v11  ;;  %1991 = vmatprep.subr.mxu0 %v24869_v58  ;;  %v290_v11 = vld [vmem:[%s23845_s2 + $0x808] sm:$0xff]  ;;  %v24891_v58 = vld [vmem:[#allocation35_spill] sm:$0xff] }
  0xe3   :  { %2104 = vmatprep.subr.mxu1 %v24833_v35  ;;  %1995 = vmatpush1.msra.mxu0 %v24871_v9  ;;  %v289_v35 = vld [vmem:[%s23845_s2 + $0x800] sm:$0xff]  ;;  %v15970_v8 = vand.u32 4294901760, %v290_v11  ;;  %v15982_v1 = vsub.f32 %v311_v25, %v15938_v7  ;;  %v16017_v25 = vsub.f32 %v15931_v5, %v24007_v59 }
  0xe4   :  { %2106 = vmatpush1.msra.mxu1 %v24834_v26  ;;  %1999 = vmatprep.subr.mxu0 %v24873_v38  ;;  %v24010_v26 = vand.u32 4294901760, %v15917_v37  ;;  %v15972_v15 = vand.u32 4294901760, %v289_v35  ;;  %v24895_v38 = vand.u32 4294901760, %v24894_v29 }
  0xe5   :  { %2108 = vmatprep.subr.mxu1 %v24835_v31  ;;  %2003 = vmatpush1.msra.mxu0 %v24875_v46  ;;  %v268_v31 = vld [vmem:[%s23845_s2 + $0x758] sm:$0xff]  ;;  %24879 = vst [vmem:[#allocation6_spill] sm:$0xff] %v15970_v8  ;;  %v24003_v9 = vand.u32 4294901760, %v15982_v1  ;;  %v205_v46 = vld [vmem:[%s23845_s2 + $0x560] sm:$0xff] }
  0xe6   :  { %2110 = vmatpush1.msra.mxu1 %v24836_v4  ;;  %2007 = vmatprep.subr.mxu0 %v24877_v27  ;;  %v15968_v4 = vsub.f32 %v331_v54, %v15933_v36  ;;  %24880 = vst [vmem:[#allocation20_spill] sm:$0xff] %v15972_v15  ;;  %v15997_v13 = vand.u32 4294901760, %v268_v31  ;;  %v24890_v54 = vand.u32 4294901760, %v15707_v52  ;;  %v16012_v28 = vsub.f32 %v289_v35, %v15972_v15  ;;  %v24896_v27 = vld [vmem:[#allocation26_spill] sm:$0xff]  ;;  %v121_v35 = vld [vmem:[%s23845_s2 + $0x2c0] sm:$0xff] }
  0xe7   :  { %2112 = vmatprep.subr.mxu1 %v24837_v63  ;;  %2011 = vmatpush1.msra.mxu0 %v24878_v6  ;;  %v24882_v63 = vand.u32 4294901760, %v24881_v55  ;;  %v16027_v52 = vsub.f32 %v290_v11, %v15970_v8  ;;  %v24005_v11 = vand.u32 4294901760, %v15988_v43  ;;  %v16060_v6 = vsub.f32 %v247_v42, %v16006_v53 }
  0xe8   :  { %2114 = vmatpush1.msra.mxu1 %v24838_v22  ;;  %v15995_v22 = vsub.f32 %v15917_v37, %v24010_v26  ;;  %24886 = vst [vmem:[#allocation23_spill] sm:$0xff] %v15997_v13  ;;  %v16040_v47 = vsub.f32 %v268_v31, %v15997_v13  ;;  %2067 = vmatprep.mubr.f32.mxu0 %v24896_v27 }
  0xe9   :  { %2015 = vmatprep.subr.mxu0 %v24882_v63  ;;  %2116 = vmatprep.subr.mxu1 %v24839_v34  ;;  %v24887_v34 = vand.u32 4294901760, %v15703_v40  ;;  %v227_v40 = vld [vmem:[%s23845_s2 + $0x610] sm:$0xff]  ;;  %v16057_v31 = vsub.f32 %v15962_v44, %v24006_v49  ;;  %v16064_v63 = vand.u32 4294901760, %v226_v19  ;;  %v24009_v42 = vand.u32 4294901760, %v16027_v52 }
  0xea   :  { %2019 = vmatpush1.msra.mxu0 %v24884_v60  ;;  %2118 = vmatpush1.msra.mxu1 %v24840_v61  ;;  %v24004_v61 = vand.u32 4294901760, %v15968_v4  ;;  %v16062_v55 = vand.u32 4294901760, %v227_v40  ;;  %v24911_v0 = vand.u32 4294901760, %v15995_v22 }
  0xeb   :  { %2023 = vmatprep.subr.mxu0 %v24887_v34  ;;  %2120 = vmatprep.subr.mxu1 %v24889_v56  ;;  %24898 = vst [vmem:[#allocation36_spill] sm:$0xff] %v16064_v63  ;;  %v24008_v34 = vand.u32 4294901760, %v16012_v28  ;;  %v184_v56 = vld [vmem:[%s23845_s2 + $0x4b8] sm:$0xff]  ;;  %v2313_v49 = vand.u32 4294901760, %v16057_v31 }
  0xec   :  { %2027 = vmatpush1.msra.mxu0 %v24890_v54  ;;  %2122 = vmatpush1.msra.mxu1 %v24891_v58  ;;  %24897 = vst [vmem:[#allocation24_spill] sm:$0xff] %v16062_v55  ;;  %v16075_v60 = vsub.f32 %v15968_v4, %v24004_v61  ;;  %v16089_v54 = vand.u32 4294901760, %v206_v57  ;;  %v16091_v58 = vand.u32 4294901760, %v205_v46  ;;  %v16112_v61 = vand.u32 4294901760, %v184_v56  ;;  %v164_v31 = vld [vmem:[%s23845_s2 + $0x418] sm:$0xff] }
  0xed   :  { %2061 = vmatprep.subr.mxu0 %v24892_v32  ;;  %2124 = vmatprep.subr.mxu1 %v15592_v20  ;;  %v16050_v20 = vsub.f32 %v269_v3, %v15990_v39  ;;  %v185_v3 = vld [vmem:[%s23845_s2 + $0x4c0] sm:$0xff]  ;;  %v16094_v32 = vsub.f32 %v248_v12, %v16032_v21  ;;  %v16110_v12 = vsub.f32 %v226_v19, %v16064_v63 }
  0xee   :  { %2065 = vmatpush2.msra.mxu0 %v24895_v38  ;;  %2126 = vmatpush1.msra.mxu1 %v15577_v10  ;;  %24900 = vst [vmem:[#allocation25_spill] sm:$0xff] %v16089_v54  ;;  %24901 = vst [vmem:[#allocation8_spill] sm:$0xff] %v16091_v58  ;;  %v16103_v29 = vand.u32 4294901760, %v185_v3  ;;  %v2319_v59 = vand.u32 4294901760, %v16075_v60  ;;  %v16130_v19 = vsub.f32 %v16012_v28, %v24008_v34  ;;  %v163_v34 = vld [vmem:[%s23845_s2 + $0x410] sm:$0xff]  ;;  %v16186_v10 = vand.u32 4294901760, %v164_v31 }
  0xef   :  { %2069 = vmatmul.mubr.f32.vlgmr.msra.gmra.mxu0 %v24899_v14  ;;  %2128 = vmatprep.subr.mxu1 %v15614_v24  ;;  %v16087_v24 = vsub.f32 %v15982_v1, %v24003_v9  ;;  %v24012_v38 = vand.u32 4294901760, %v16050_v20  ;;  %v24011_v9 = vand.u32 4294901760, %v16040_v47  ;;  %24903 = vst [vmem:[#allocation10_spill] sm:$0xff] %v16112_v61  ;;  %v24014_v60 = vand.u32 4294901760, %v16094_v32 }
  0xf0   :  { %2183 = vmatprep.subr.mxu0 %v15891_v2  ;;  %2130 = vmatpush1.msra.mxu1 %v15607_v17  ;;  %v16101_v17 = vsub.f32 %v15988_v43, %v24005_v11  ;;  %24902 = vst [vmem:[#allocation9_spill] sm:$0xff] %v16103_v29  ;;  %v16116_v11 = vsub.f32 %v227_v40, %v16062_v55  ;;  %24908 = vst [vmem:[#allocation21_spill] sm:$0xff] %v16186_v10 }
  0xf1   :  { %2185 = vmatpush1.msra.mxu0 %v15899_v30  ;;  %2132 = vmatprep.subr.mxu1 %v15637_v62  ;;  %v24013_v62 = vand.u32 4294901760, %v16060_v6  ;;  %v16136_v40 = vsub.f32 %v205_v46, %v16091_v58  ;;  %v16154_v46 = vsub.f32 %v16050_v20, %v24012_v38  ;;  %v16165_v26 = vsub.f32 %v185_v3, %v16103_v29  ;;  %v142_v38 = vld [vmem:[%s23845_s2 + $0x368] sm:$0xff] }
  0xf2   :  { %2187 = vmatprep.subr.mxu0 %v15922_v16  ;;  %2134 = vmatpush1.msra.mxu1 %v15651_v45  ;;  %v16125_v45 = vsub.f32 %v16027_v52, %v24009_v42  ;;  %v16146_v42 = vsub.f32 %v206_v57, %v16089_v54  ;;  %v143_v57 = vld [vmem:[%s23845_s2 + $0x370] sm:$0xff]  ;;  %v16195_v3 = vsub.f32 %v16094_v32, %v24014_v60  ;;  %v24914_v22 = vand.u32 4294901760, %v16116_v11 }
  0xf3   :  { %2189 = vmatpush1.msra.mxu0 %v15933_v36  ;;  %2136 = vmatprep.subr.mxu1 %v15661_v33  ;;  %v2325_v33 = vand.u32 4294901760, %v16087_v24  ;;  %24904 = vst [vmem:[#allocation11_spill] sm:$0xff] %v16136_v40  ;;  %v16159_v24 = vsub.f32 %v16040_v47, %v24011_v9  ;;  %24906 = vst [vmem:[#allocation13_spill] sm:$0xff] %v16165_v26  ;;  %v16197_v9 = vand.u32 4294901760, %v143_v57  ;;  %v2349_v60 = vand.u32 4294901760, %v16154_v46 }
  0xf4   :  { %2191 = vmatprep.subr.mxu0 %v15938_v7  ;;  %2138 = vmatpush1.msra.mxu1 %v15674_v50  ;;  %24905 = vst [vmem:[#allocation12_spill] sm:$0xff] %v16146_v42  ;;  %v2331_v50 = vand.u32 4294901760, %v16101_v17  ;;  %v16175_v17 = vsub.f32 %v16060_v6, %v24013_v62  ;;  %v16188_v62 = vand.u32 4294901760, %v163_v34  ;;  %v24915_v46 = vand.u32 4294901760, %v16110_v12 }
  0xf5   :  { %2193 = vmatpush1.msra.mxu0 %v15949_v18  ;;  %2170 = vmatprep.subr.mxu1 %v15681_v41  ;;  %v16170_v41 = vsub.f32 %v184_v56, %v16112_v61  ;;  %v2343_v56 = vand.u32 4294901760, %v16130_v19  ;;  %24910 = vst [vmem:[#allocation29_spill] sm:$0xff] %v16197_v9  ;;  %v2355_v23 = vand.u32 4294901760, %v16159_v24  ;;  %v24913_v19 = vand.u32 4294901760, %v16017_v25  ;;  %v100_v25 = vld [vmem:[%s23845_s2 + $0x218] sm:$0xff] }
  0xf6   :  { %2195 = vmatprep.subr.mxu0 %v15970_v8  ;;  %2172 = vmatpush2.msra.mxu1 %v15694_v51  ;;  %v2337_v51 = vand.u32 4294901760, %v16125_v45  ;;  %24909 = vst [vmem:[#allocation15_spill] sm:$0xff] %v16188_v62  ;;  %v122_v45 = vld [vmem:[%s23845_s2 + $0x2c8] sm:$0xff]  ;;  %v16227_v24 = vsub.f32 %v16110_v12, %v24915_v46  ;;  %v16242_v46 = vand.u32 4294901760, %v121_v35 }
  0xf7   :  { %24907 = vst [vmem:[#allocation14_spill] sm:$0xff] %v16170_v41  ;;  %2174 = vmatprep.mubr.f32.mxu1 %v24896_v27  ;;  %2197 = vmatpush1.msra.mxu0 %v15972_v15  ;;  %v101_v15 = vld [vmem:[%s23845_s2 + $0x220] sm:$0xff]  ;;  %v16240_v48 = vand.u32 4294901760, %v122_v45 }
  0xf8   :  { %2176 = vmatmul.mubr.f32.vlgmr.msra.gmra.mxu1 %v24899_v14  ;;  %2199 = vmatprep.subr.mxu0 %v15990_v39  ;;  %v16212_v39 = vand.u32 4294901760, %v142_v38  ;;  %24917 = vst [vmem:[#allocation17_spill] sm:$0xff] %v16242_v46 }
  0xf9   :  { %2302 = vmatprep.subr.mxu1 %v24911_v0  ;;  %2201 = vmatpush1.msra.mxu0 %v15997_v13  ;;  %v16222_v0 = vsub.f32 %v16116_v11, %v24914_v22  ;;  %v16238_v22 = vsub.f32 %v163_v34, %v16188_v62  ;;  %24916 = vst [vmem:[#allocation18_spill] sm:$0xff] %v16240_v48  ;;  %v79_v13 = vld [vmem:[%s23845_s2 + $0x170] sm:$0xff] }
  0xfa   :  { %24912 = vst [vmem:[#allocation32_spill] sm:$0xff] %v16212_v39  ;;  %2308 = vmatpush1.msra.mxu1 %v24913_v19  ;;  %2203 = vmatprep.subr.mxu0 %v16032_v21  ;;  %v16245_v21 = vsub.f32 %v164_v31, %v16186_v10  ;;  %v24919_v19 = vand.u32 4294901760, %v16146_v42  ;;  %v80_v31 = vld [vmem:[%s23845_s2 + $0x178] sm:$0xff] }
  0xfb   :  { %2314 = vmatprep.subr.mxu1 %v2313_v49  ;;  %2205 = vmatpush1.msra.mxu0 %v16006_v53  ;;  %v2361_v49 = vand.u32 4294901760, %v16195_v3  ;;  %v24920_v53 = vand.u32 4294901760, %v16136_v40  ;;  %v16270_v3 = vsub.f32 %v142_v38, %v16212_v39 }
  0xfc   :  { %24918 = vst [vmem:[#allocation19_spill] sm:$0xff] %v16245_v21  ;;  %2320 = vmatpush1.msra.mxu1 %v2319_v59  ;;  %2207 = vmatprep.subr.mxu0 %v16062_v55  ;;  %v16255_v34 = vsub.f32 %v16146_v42, %v24919_v19  ;;  %v16266_v59 = vsub.f32 %v143_v57, %v16197_v9  ;;  %v16272_v19 = vand.u32 4294901760, %v101_v15  ;;  %v24921_v55 = vand.u32 4294901760, %v16165_v26 }
  0xfd   :  { %v16260_v8 = vsub.f32 %v16136_v40, %v24920_v53  ;;  %2326 = vmatprep.subr.mxu1 %v2325_v33  ;;  %2209 = vmatpush1.msra.mxu0 %v16064_v63  ;;  %v16279_v40 = vand.u32 4294901760, %v100_v25  ;;  %v2373_v57 = vand.u32 4294901760, %v16222_v0  ;;  %v2379_v33 = vand.u32 4294901760, %v16227_v24  ;;  %v38_v24 = vld [vmem:[%s23845_s2 + $0x28] sm:$0xff] }
  0xfe   :  { %v16277_v53 = vsub.f32 %v16165_v26, %v24921_v55  ;;  %2332 = vmatpush1.msra.mxu1 %v2331_v50  ;;  %2211 = vmatprep.subr.mxu0 %v16089_v54  ;;  %v24922_v63 = vand.u32 4294901760, %v16170_v41  ;;  %v16289_v42 = vand.u32 4294901760, %v79_v13  ;;  %v59_v55 = vld [vmem:[%s23845_s2 + $0xd0] sm:$0xff]  ;;  %v16296_v50 = vsub.f32 %v121_v35, %v16242_v46  ;;  %v374_v35 = vld [vmem:[%s23845_s2 + $0xaa8] sm:$0xff] }
  0xff   :  { %2338 = vmatprep.subr.mxu1 %v2337_v51  ;;  %2213 = vmatpush1.msra.mxu0 %v16091_v58  ;;  %v16298_v0 = vand.u32 4294901760, %v80_v31  ;;  %v16305_v54 = vsub.f32 %v122_v45, %v16240_v48  ;;  %v2385_v51 = vand.u32 4294901760, %v16255_v34  ;;  %v2391_v58 = vand.u32 4294901760, %v16260_v8  ;;  %v37_v8 = vld [vmem:[%s23845_s2 + $0x20] sm:$0xff] }
 0x100   :  { %v16287_v38 = vsub.f32 %v16170_v41, %v24922_v63  ;;  %24923 = vst [vmem:[#allocation39_spill] sm:$0xff] %v16296_v50  ;;  %v58_v63 = vld [vmem:[%s23845_s2 + $0xc8] sm:$0xff]  ;;  %2344 = vmatpush1.msra.mxu1 %v2343_v56  ;;  %2215 = vmatprep.subr.mxu0 %v16103_v29  ;;  %v2397_v45 = vand.u32 4294901760, %v16277_v53  ;;  %v16318_v56 = vsub.f32 %v100_v25, %v16279_v40  ;;  %v16320_v29 = vand.u32 4294901760, %v59_v55 }
 0x101   :  { %2350 = vmatprep.subr.mxu1 %v2349_v60  ;;  %2217 = vmatpush1.msra.mxu0 %v16112_v61  ;;  %v16326_v34 = vsub.f32 %v101_v15, %v16272_v19  ;;  %v16331_v41 = vsub.f32 %v79_v13, %v16289_v42  ;;  %v16333_v53 = vand.u32 4294901760, %v58_v63  ;;  %v16350_v25 = vsub.f32 %v80_v31, %v16298_v0 }
 0x102   :  { %24924 = vst [vmem:[#allocation40_spill] sm:$0xff] %v16318_v56  ;;  %2356 = vmatpush1.msra.mxu1 %v2355_v23  ;;  %2219 = vmatprep.subr.mxu0 %v16186_v10  ;;  %v2403_v60 = vand.u32 4294901760, %v16287_v38  ;;  %v24926_v23 = vand.u32 4294901760, %v16245_v21  ;;  %v16343_v10 = vand.u32 4294901760, %v38_v24  ;;  %v373_v38 = vld [vmem:[%s23845_s2 + $0xaa0] sm:$0xff]  ;;  %v24927_v61 = vand.u32 4294901760, %v16175_v17 }
 0x103   :  { %24925 = vst [vmem:[#allocation41_spill] sm:$0xff] %v16326_v34  ;;  %2362 = vmatprep.subr.mxu1 %v2361_v49  ;;  %2221 = vmatpush1.msra.mxu0 %v16188_v62  ;;  %v504_v49 = vpop.f32.mrf.mxu0  ;;  %v24928_v62 = vand.u32 4294901760, %v16238_v22  ;;  %v16361_v18 = vand.u32 4294901760, %v37_v8  ;;  %v16367_v17 = vand.u32 4294901760, %v374_v35  ;;  %v24932_v31 = vand.u32 4294901760, %v16270_v3 }
 0x104   :  { %v2408_v15 = vsub.f32 %v16245_v21, %v24926_v23  ;;  %2368 = vmatpush1.msra.mxu1 %v24927_v61  ;;  %2223 = vmatprep.subr.mxu0 %v16197_v9  ;;  %v24929_v21 = vand.u32 4294901760, %v16266_v59  ;;  %v747_v26 = vpop.f32.mrf.mxu1 }
 0x105   :  { %v2414_v23 = vsub.f32 %v16238_v22, %v24928_v62  ;;  %2374 = vmatprep.subr.mxu1 %v2373_v57  ;;  %2225 = vmatpush1.msra.mxu0 %v16212_v39  ;;  %v16365_v61 = vadd.f32 %v747_v26, %v504_v49  ;;  %v16371_v62 = vsub.f32 %v59_v55, %v16320_v29  ;;  %v16380_v39 = vand.u32 4294901760, %v373_v38  ;;  %v24945_v26 = vld [vmem:[#allocation37_spill] sm:$0xff] }
 0x106   :  { %v2420_v13 = vsub.f32 %v16266_v59, %v24929_v21  ;;  %2380 = vmatpush1.msra.mxu1 %v2379_v33  ;;  %2227 = vmatprep.subr.mxu0 %v16240_v48  ;;  %v16375_v21 = vsub.f32 %v58_v63, %v16333_v53  ;;  %v2426_v57 = vsub.f32 %v16270_v3, %v24932_v31  ;;  %v2409_v49 = vand.u32 4294901760, %v2408_v15 }
 0x107   :  { %24930 = vst [vmem:[#allocation16_spill] sm:$0xff] %v16371_v62  ;;  %2386 = vmatprep.subr.mxu1 %v2385_v51  ;;  %2229 = vmatpush1.msra.mxu0 %v16242_v46  ;;  %v24933_v55 = vand.u32 4294901760, %v16305_v54  ;;  %v16389_v63 = vsub.f32 %v38_v24, %v16343_v10  ;;  %v2415_v31 = vand.u32 4294901760, %v2414_v23  ;;  %v16393_v48 = vsub.f32 %v37_v8, %v16361_v18 }
 0x108   :  { %24931 = vst [vmem:[#allocation35_spill] sm:$0xff] %v16375_v21  ;;  %2392 = vmatpush1.msra.mxu1 %v2391_v58  ;;  %2231 = vmatprep.subr.mxu0 %v16272_v19  ;;  %v24934_v51 = vand.u32 4294901760, %v16296_v50  ;;  %v24935_v24 = vand.u32 4294901760, %v16326_v34  ;;  %v16405_v23 = vsub.f32 %v374_v35, %v16367_v17  ;;  %v2427_v8 = vand.u32 4294901760, %v2426_v57 }
 0x109   :  { %v2432_v33 = vsub.f32 %v16305_v54, %v24933_v55  ;;  %2398 = vmatprep.subr.mxu1 %v2397_v45  ;;  %2233 = vmatpush1.msra.mxu0 %v16279_v40  ;;  %v2421_v55 = vand.u32 4294901760, %v2420_v13  ;;  %v24937_v45 = vand.u32 4294901760, %v16318_v56  ;;  %v24938_v35 = vand.u32 4294901760, %v16350_v25 }
 0x10a   :  { %v2438_v15 = vsub.f32 %v16296_v50, %v24934_v51  ;;  %v2444_v58 = vsub.f32 %v16326_v34, %v24935_v24  ;;  %2404 = vmatpush1.msra.mxu1 %v2403_v60  ;;  %2235 = vmatprep.subr.mxu0 %v16298_v0  ;;  %v16409_v51 = vsub.f32 %v373_v38, %v16380_v39  ;;  %v24939_v57 = vand.u32 4294901760, %v16331_v41 }
 0x10b   :  { %v2450_v13 = vsub.f32 %v16318_v56, %v24937_v45  ;;  %2410 = vmatprep.subr.mxu1 %v2409_v49  ;;  %2237 = vmatpush1.msra.mxu0 %v16289_v42  ;;  %v2433_v24 = vand.u32 4294901760, %v2432_v33  ;;  %v2456_v60 = vsub.f32 %v16350_v25, %v24938_v35  ;;  %v24940_v33 = vand.u32 4294901760, %v16371_v62 }
 0x10c   :  { %24936 = vst [vmem:[#allocation42_spill] sm:$0xff] %v16409_v51  ;;  %2416 = vmatpush1.msra.mxu1 %v2415_v31  ;;  %2239 = vmatprep.subr.mxu0 %v16320_v29  ;;  %v2439_v38 = vand.u32 4294901760, %v2438_v15  ;;  %v2462_v45 = vsub.f32 %v16331_v41, %v24939_v57  ;;  %v2445_v49 = vand.u32 4294901760, %v2444_v58  ;;  %v24941_v15 = vand.u32 4294901760, %v16375_v21 }
 0x10d   :  { %2422 = vmatprep.subr.mxu1 %v2421_v55  ;;  %2241 = vmatpush1.msra.mxu0 %v16333_v53  ;;  %v2468_v35 = vsub.f32 %v16371_v62, %v24940_v33  ;;  %v2451_v31 = vand.u32 4294901760, %v2450_v13  ;;  %v2457_v55 = vand.u32 4294901760, %v2456_v60  ;;  %v24942_v58 = vand.u32 4294901760, %v16389_v63 }
 0x10e   :  { %2428 = vmatpush1.msra.mxu1 %v2427_v8  ;;  %2243 = vmatprep.subr.mxu0 %v16343_v10  ;;  %v2474_v57 = vsub.f32 %v16375_v21, %v24941_v15  ;;  %v2463_v8 = vand.u32 4294901760, %v2462_v45  ;;  %v24943_v13 = vand.u32 4294901760, %v16393_v48 }
 0x10f   :  { %2434 = vmatprep.subr.mxu1 %v2433_v24  ;;  %2245 = vmatpush1.msra.mxu0 %v16361_v18  ;;  %v2480_v33 = vsub.f32 %v16389_v63, %v24942_v58  ;;  %v2469_v15 = vand.u32 4294901760, %v2468_v35  ;;  %v24944_v24 = vand.u32 4294901760, %v16405_v23 }
 0x110   :  { %2440 = vmatpush1.msra.mxu1 %v2439_v38  ;;  %2277 = vmatprep.subr.mxu0 %v16367_v17  ;;  %v2486_v9 = vsub.f32 %v16393_v48, %v24943_v13  ;;  %v2475_v58 = vand.u32 4294901760, %v2474_v57  ;;  %v24946_v38 = vand.u32 4294901760, %v16409_v51 }
 0x111   :  { %2446 = vmatprep.subr.mxu1 %v2445_v49  ;;  %2279 = vmatpush2.msra.mxu0 %v16380_v39  ;;  %v2522_v60 = vsub.f32 %v16405_v23, %v24944_v24  ;;  %v2481_v13 = vand.u32 4294901760, %v2480_v33  ;;  %v24947_v49 = vld [vmem:[#allocation38_spill] sm:$0xff]  ;;  %v24949_v33 = vld [vmem:[#allocation5_spill] sm:$0xff] }
 0x112   :  { %2452 = vmatpush1.msra.mxu1 %v2451_v31  ;;  %2285 = vmatprep.mubr.f32.mxu0 %v24945_v26  ;;  %v2528_v45 = vsub.f32 %v16409_v51, %v24946_v38  ;;  %v2487_v35 = vand.u32 4294901760, %v2486_v9  ;;  %v16463_v9 = vpop.f32.mrf.mxu0  ;;  %v24954_v38 = vld [vmem:[#allocation13_spill] sm:$0xff] }
 0x113   :  { %2458 = vmatprep.subr.mxu1 %v2457_v55  ;;  %2542 = vmatprep.subr.mxu0 %v15917_v37  ;;  %v2523_v24 = vand.u32 4294901760, %v2522_v60  ;;  %24948 = vst [vmem:[#allocation43_spill] sm:$0xff] %v16463_v9  ;;  %v24952_v60 = vld [vmem:[#allocation11_spill] sm:$0xff] }
 0x114   :  { %2291 = vmatmul.mubr.f32.vlgmr.msra.gmra.mxu0 %v24947_v49  ;;  %2464 = vmatpush1.msra.mxu1 %v2463_v8  ;;  %v2529_v31 = vand.u32 4294901760, %v2528_v45  ;;  %v24950_v8 = vld [vmem:[#allocation12_spill] sm:$0xff]  ;;  %v24955_v45 = vld [vmem:[#allocation22_spill] sm:$0xff] }
 0x115   :  { %2545 = vmatpush1.msra.mxu0 %v15931_v5  ;;  %2470 = vmatprep.subr.mxu1 %v2469_v15  ;;  %v24951_v15 = vld [vmem:[#allocation6_spill] sm:$0xff]  ;;  %v24962_v49 = vld [vmem:[#allocation24_spill] sm:$0xff] }
 0x116   :  { %2548 = vmatprep.subr.mxu0 %v15962_v44  ;;  %2476 = vmatpush1.msra.mxu1 %v2475_v58  ;;  %v24953_v58 = vld [vmem:[#allocation20_spill] sm:$0xff] }
 0x117   :  { %2551 = vmatpush1.msra.mxu0 %v15968_v4  ;;  %2482 = vmatprep.subr.mxu1 %v2481_v13  ;;  %v24956_v13 = vld [vmem:[#allocation14_spill] sm:$0xff] }
 0x118   :  { %2554 = vmatprep.subr.mxu0 %v15982_v1  ;;  %2488 = vmatpush1.msra.mxu1 %v2487_v35  ;;  %v24958_v35 = vld [vmem:[#allocation23_spill] sm:$0xff] }
 0x119   :  { %2557 = vmatpush1.msra.mxu0 %v15988_v43  ;;  %2524 = vmatprep.subr.mxu1 %v2523_v24  ;;  %v24959_v24 = vld [vmem:[#allocation19_spill] sm:$0xff] }
 0x11a   :  { %2560 = vmatprep.subr.mxu0 %v16027_v52  ;;  %2530 = vmatpush2.msra.mxu1 %v2529_v31  ;;  %v24960_v31 = vld [vmem:[#allocation27_spill] sm:$0xff] }
 0x11b   :  { %2532 = vmatprep.mubr.f32.mxu1 %v24896_v27  ;;  %2563 = vmatpush1.msra.mxu0 %v16012_v28  ;;  %v24965_v27 = vld [vmem:[#allocation8_spill] sm:$0xff] }
 0x11c   :  { %2534 = vmatmul.mubr.f32.vlgmr.msra.gmra.mxu1 %v24899_v14  ;;  %2566 = vmatprep.subr.mxu0 %v16050_v20  ;;  %v24963_v14 = vld [vmem:[#allocation36_spill] sm:$0xff] }
 0x11d   :  { %2684 = vmatprep.subr.mxu1 %v15891_v2  ;;  %2569 = vmatpush1.msra.mxu0 %v16040_v47 }
 0x11e   :  { %2686 = vmatpush1.msra.mxu1 %v15899_v30  ;;  %2572 = vmatprep.subr.mxu0 %v16094_v32  ;;  %v890_v57 = vpop.f32.mrf.mxu0 }
 0x11f   :  { %2688 = vmatprep.subr.mxu1 %v15922_v16  ;;  %2575 = vmatpush1.msra.mxu0 %v16060_v6  ;;  %v891_v55 = vadd.f32 %v890_v57, %v16365_v61  ;;  %v16484_v61 = vpop.f32.mrf.mxu1  ;;  %v24961_v57 = vld [vmem:[#allocation7_spill] sm:$0xff] }
 0x120   :  { %2690 = vmatpush1.msra.mxu1 %v15933_v36  ;;  %2578 = vmatprep.subr.mxu0 %v16116_v11  ;;  %24957 = vst [vmem:[#allocation5_spill] sm:$0xff] %v16484_v61  ;;  %v24964_v61 = vld [vmem:[#allocation25_spill] sm:$0xff] }
 0x121   :  { %2692 = vmatprep.subr.mxu1 %v15938_v7  ;;  %2581 = vmatpush1.msra.mxu0 %v16110_v12 }
 0x122   :  { %2694 = vmatpush1.msra.mxu1 %v24949_v33  ;;  %2584 = vmatprep.subr.mxu0 %v24950_v8 }
 0x123   :  { %2696 = vmatprep.subr.mxu1 %v24951_v15  ;;  %2587 = vmatpush1.msra.mxu0 %v24952_v60 }
 0x124   :  { %2698 = vmatpush1.msra.mxu1 %v24953_v58  ;;  %2590 = vmatprep.subr.mxu0 %v24954_v38 }
 0x125   :  { %2700 = vmatprep.subr.mxu1 %v24955_v45  ;;  %2593 = vmatpush1.msra.mxu0 %v24956_v13 }
 0x126   :  { %2702 = vmatpush1.msra.mxu1 %v24958_v35  ;;  %2596 = vmatprep.subr.mxu0 %v24959_v24 }
 0x127   :  { %2704 = vmatprep.subr.mxu1 %v24960_v31  ;;  %2599 = vmatpush1.msra.mxu0 %v16238_v22  ;;  %v1001_v9 = vpop.f32.mrf.mxu1 }
 0x128   :  { %2706 = vmatpush1.msra.mxu1 %v24961_v57  ;;  %2602 = vmatprep.subr.mxu0 %v16266_v59  ;;  %v1002_v26 = vadd.f32 %v1001_v9, %v891_v55  ;;  %v24966_v57 = vld [vmem:[#allocation9_spill] sm:$0xff]  ;;  %v24969_v55 = vld [vmem:[#allocation15_spill] sm:$0xff] }
 0x129   :  { %2708 = vmatprep.subr.mxu1 %v24962_v49  ;;  %2605 = vmatpush1.msra.mxu0 %v16270_v3  ;;  %v24967_v49 = vld [vmem:[#allocation10_spill] sm:$0xff]  ;;  %v24968_v9 = vld [vmem:[#allocation21_spill] sm:$0xff] }
 0x12a   :  { %2710 = vmatpush1.msra.mxu1 %v24963_v14  ;;  %2608 = vmatprep.subr.mxu0 %v16305_v54 }
 0x12b   :  { %2712 = vmatprep.subr.mxu1 %v24964_v61  ;;  %2611 = vmatpush1.msra.mxu0 %v16296_v50  ;;  %v24970_v50 = vld [vmem:[#allocation29_spill] sm:$0xff] }
 0x12c   :  { %2714 = vmatpush1.msra.mxu1 %v24965_v27  ;;  %2614 = vmatprep.subr.mxu0 %v16326_v34  ;;  %v24971_v34 = vld [vmem:[#allocation32_spill] sm:$0xff] }
 0x12d   :  { %2716 = vmatprep.subr.mxu1 %v24966_v57  ;;  %2617 = vmatpush1.msra.mxu0 %v16318_v56  ;;  %v24972_v56 = vld [vmem:[#allocation18_spill] sm:$0xff] }
 0x12e   :  { %2718 = vmatpush1.msra.mxu1 %v24967_v49  ;;  %2620 = vmatprep.subr.mxu0 %v16350_v25 }
 0x12f   :  { %2720 = vmatprep.subr.mxu1 %v24968_v9  ;;  %2623 = vmatpush1.msra.mxu0 %v16331_v41 }
 0x130   :  { %2722 = vmatpush1.msra.mxu1 %v24969_v55  ;;  %2626 = vmatprep.subr.mxu0 %v16371_v62  ;;  %v24973_v62 = vld [vmem:[#allocation30_spill] sm:$0xff] }
 0x131   :  { %2724 = vmatprep.subr.mxu1 %v24970_v50  ;;  %2629 = vmatpush1.msra.mxu0 %v16375_v21  ;;  %v24974_v21 = vld [vmem:[#allocation31_spill] sm:$0xff] }
 0x132   :  { %2726 = vmatpush1.msra.mxu1 %v24971_v34  ;;  %2632 = vmatprep.subr.mxu0 %v16389_v63 }
 0x133   :  { %2728 = vmatprep.subr.mxu1 %v24972_v56  ;;  %2635 = vmatpush1.msra.mxu0 %v16393_v48  ;;  %v24975_v56 = vand.u32 4294901760, %v15917_v37  ;;  %v24979_v37 = vand.u32 4294901760, %v15982_v1  ;;  %v24985_v1 = vand.u32 4294901760, %v16050_v20  ;;  %v24990_v20 = vand.u32 4294901760, %v16116_v11  ;;  %v354_v11 = vld [vmem:[%s23845_s2 + $0xa08] sm:$0xff] }
 0x134   :  { %2730 = vmatpush1.msra.mxu1 %v16242_v46  ;;  %2668 = vmatprep.subr.mxu0 %v16405_v23  ;;  %v24976_v46 = vand.u32 4294901760, %v15931_v5  ;;  %v24980_v5 = vand.u32 4294901760, %v15988_v43  ;;  %v24987_v43 = vand.u32 4294901760, %v16040_v47  ;;  %v24991_v47 = vand.u32 4294901760, %v16110_v12  ;;  %v16586_v12 = vpop.f32.mrf.mxu1 }
 0x135   :  { %2732 = vmatprep.subr.mxu1 %v16272_v19  ;;  %2671 = vmatpush2.msra.mxu0 %v16409_v51  ;;  %v24977_v51 = vand.u32 4294901760, %v15962_v44  ;;  %v24981_v44 = vand.u32 4294901760, %v16027_v52  ;;  %v24988_v52 = vand.u32 4294901760, %v16094_v32  ;;  %24996 = vst [vmem:[#allocation6_spill] sm:$0xff] %v16586_v12 }
 0x136   :  { %2674 = vmatprep.mubr.f32.mxu0 %v24973_v62  ;;  %2734 = vmatpush1.msra.mxu1 %v16279_v40  ;;  %v24978_v62 = vand.u32 4294901760, %v15968_v4  ;;  %v24983_v4 = vand.u32 4294901760, %v16012_v28  ;;  %v24989_v28 = vand.u32 4294901760, %v16060_v6  ;;  %v24995_v6 = vand.u32 4294901760, %v24956_v13  ;;  %v25001_v13 = vld [vmem:[#allocation24_spill] sm:$0xff] }
 0x137   :  { %2677 = vmatmul.mubr.f32.vlgmr.msra.gmra.mxu0 %v24974_v21  ;;  %2736 = vmatprep.subr.mxu1 %v16298_v0 }
 0x138   :  { %2797 = vmatprep.subr.mxu0 %v24975_v56  ;;  %2738 = vmatpush1.msra.mxu1 %v16289_v42  ;;  %v24984_v56 = vld [vmem:[#allocation34_spill] sm:$0xff] }
 0x139   :  { %2801 = vmatpush1.msra.mxu0 %v24976_v46  ;;  %2740 = vmatprep.subr.mxu1 %v16320_v29  ;;  %v24982_v46 = vld [vmem:[#allocation33_spill] sm:$0xff] }
 0x13a   :  { %2805 = vmatprep.subr.mxu0 %v24977_v51  ;;  %2742 = vmatpush1.msra.mxu1 %v16333_v53 }
 0x13b   :  { %2809 = vmatpush1.msra.mxu0 %v24978_v62  ;;  %2744 = vmatprep.subr.mxu1 %v16343_v10  ;;  %v16549_v62 = vpop.f32.mrf.mxu0 }
 0x13c   :  { %2813 = vmatprep.subr.mxu0 %v24979_v37  ;;  %2746 = vmatpush1.msra.mxu1 %v16361_v18  ;;  %24986 = vst [vmem:[#allocation12_spill] sm:$0xff] %v16549_v62 }
 0x13d   :  { %2817 = vmatpush1.msra.mxu0 %v24980_v5  ;;  %2778 = vmatprep.subr.mxu1 %v16367_v17  ;;  %v25005_v5 = vld [vmem:[#allocation39_spill] sm:$0xff] }
 0x13e   :  { %2821 = vmatprep.subr.mxu0 %v24981_v44  ;;  %2780 = vmatpush2.msra.mxu1 %v16380_v39  ;;  %v25006_v44 = vand.u32 4294901760, %v25005_v5  ;;  %v228_v5 = vld [vmem:[%s23845_s2 + $0x618] sm:$0xff] }
 0x13f   :  { %2784 = vmatprep.mubr.f32.mxu1 %v24982_v46  ;;  %2825 = vmatpush1.msra.mxu0 %v24983_v4 }
 0x140   :  { %2788 = vmatmul.mubr.f32.vlgmr.msra.gmra.mxu1 %v24984_v56  ;;  %2829 = vmatprep.subr.mxu0 %v24985_v1 }
 0x141   :  { %2970 = vmatprep.subr.mxu1 %v15891_v2  ;;  %2833 = vmatpush1.msra.mxu0 %v24987_v43 }
 0x142   :  { %2972 = vmatpush1.msra.mxu1 %v15899_v30  ;;  %2837 = vmatprep.subr.mxu0 %v24988_v52  ;;  %v24992_v30 = vand.u32 4294901760, %v24950_v8  ;;  %v16594_v8 = vand.u32 4294901760, %v354_v11  ;;  %v292_v52 = vld [vmem:[%s23845_s2 + $0x818] sm:$0xff] }
 0x143   :  { %2974 = vmatprep.subr.mxu1 %v15922_v16  ;;  %2841 = vmatpush1.msra.mxu0 %v24989_v28  ;;  %v1176_v51 = vpop.f32.mrf.mxu0  ;;  %v355_v16 = vld [vmem:[%s23845_s2 + $0xa10] sm:$0xff]  ;;  %v25009_v28 = vld [vmem:[#allocation40_spill] sm:$0xff] }
 0x144   :  { %2976 = vmatpush1.msra.mxu1 %v15933_v36  ;;  %2845 = vmatprep.subr.mxu0 %v24990_v20  ;;  %v1177_v2 = vadd.f32 %v1176_v51, %v1002_v26  ;;  %v24993_v36 = vand.u32 4294901760, %v24952_v60  ;;  %v16584_v32 = vand.u32 4294901760, %v355_v16  ;;  %v24997_v26 = vand.u32 4294901760, %v24959_v24  ;;  %v24999_v60 = vld [vmem:[#allocation7_spill] sm:$0xff] }
 0x145   :  { %2978 = vmatprep.subr.mxu1 %v15938_v7  ;;  %2849 = vmatpush1.msra.mxu0 %v24991_v47  ;;  %v24994_v7 = vand.u32 4294901760, %v24954_v38  ;;  %v313_v24 = vld [vmem:[%s23845_s2 + $0x8c0] sm:$0xff]  ;;  %v16628_v4 = vsub.f32 %v354_v11, %v16594_v8  ;;  %v25010_v51 = vand.u32 4294901760, %v25009_v28  ;;  %v271_v47 = vld [vmem:[%s23845_s2 + $0x770] sm:$0xff]  ;;  %v25029_v28 = vld [vmem:[#allocation42_spill] sm:$0xff] }
 0x146   :  { %2980 = vmatpush1.msra.mxu1 %v24949_v33  ;;  %2853 = vmatprep.subr.mxu0 %v24992_v30  ;;  %v24998_v33 = vand.u32 4294901760, %v16238_v22  ;;  %v25002_v22 = vand.u32 4294901760, %v16270_v3  ;;  %v312_v3 = vld [vmem:[%s23845_s2 + $0x8b8] sm:$0xff]  ;;  %v16635_v43 = vand.u32 4294901760, %v313_v24  ;;  %v249_v11 = vld [vmem:[%s23845_s2 + $0x6c0] sm:$0xff] }
 0x147   :  { %2982 = vmatprep.subr.mxu1 %v24951_v15  ;;  %2857 = vmatpush1.msra.mxu0 %v24993_v36  ;;  %v334_v15 = vld [vmem:[%s23845_s2 + $0x968] sm:$0xff]  ;;  %v16646_v20 = vand.u32 4294901760, %v312_v3 }
 0x148   :  { %2984 = vmatpush1.msra.mxu1 %v24953_v58  ;;  %2861 = vmatprep.subr.mxu0 %v24994_v7  ;;  %v25000_v58 = vand.u32 4294901760, %v16266_v59  ;;  %v25004_v59 = vand.u32 4294901760, %v16305_v54  ;;  %v16619_v37 = vand.u32 4294901760, %v334_v15  ;;  %v24073_v7 = vand.u32 4294901760, %v16628_v4 }
 0x149   :  { %2986 = vmatprep.subr.mxu1 %v24955_v45  ;;  %2865 = vmatpush1.msra.mxu0 %v24995_v6  ;;  %v333_v45 = vld [vmem:[%s23845_s2 + $0x960] sm:$0xff]  ;;  %25011 = vst [vmem:[#allocation20_spill] sm:$0xff] %v16646_v20  ;;  %v25016_v6 = vld [vmem:[#allocation16_spill] sm:$0xff] }
 0x14a   :  { %2988 = vmatpush1.msra.mxu1 %v24958_v35  ;;  %2869 = vmatprep.subr.mxu0 %v24997_v26  ;;  %v16630_v1 = vand.u32 4294901760, %v333_v45  ;;  %v16659_v30 = vsub.f32 %v334_v15, %v16619_v37  ;;  %v25018_v26 = vld [vmem:[#allocation35_spill] sm:$0xff]  ;;  %v16685_v15 = vsub.f32 %v312_v3, %v16646_v20  ;;  %v16714_v3 = vsub.f32 %v16628_v4, %v24073_v7 }
 0x14b   :  { %2990 = vmatprep.subr.mxu1 %v24960_v31  ;;  %2873 = vmatpush1.msra.mxu0 %v24998_v33  ;;  %v1283_v38 = vpop.f32.mrf.mxu1  ;;  %v16614_v31 = vsub.f32 %v355_v16, %v16584_v32  ;;  %v25013_v16 = vand.u32 4294901760, %v16331_v41  ;;  %v16679_v41 = vsub.f32 %v313_v24, %v16635_v43  ;;  %v25019_v33 = vand.u32 4294901760, %v25018_v26 }
 0x14c   :  { %2992 = vmatpush1.msra.mxu1 %v24999_v60  ;;  %2877 = vmatprep.subr.mxu0 %v25000_v58  ;;  %v16608_v35 = vadd.f32 %v1283_v38, %v1177_v2  ;;  %v25012_v2 = vand.u32 4294901760, %v16350_v25  ;;  %v16667_v25 = vand.u32 4294901760, %v292_v52  ;;  %v16687_v60 = vand.u32 4294901760, %v271_v47  ;;  %v250_v38 = vld [vmem:[%s23845_s2 + $0x6c8] sm:$0xff] }
 0x14d   :  { %2994 = vmatprep.subr.mxu1 %v25001_v13  ;;  %2881 = vmatpush1.msra.mxu0 %v25002_v22  ;;  %v16703_v13 = vand.u32 4294901760, %v249_v11  ;;  %v25024_v22 = vld [vmem:[#allocation18_spill] sm:$0xff]  ;;  %v25025_v24 = vand.u32 4294901760, %v16393_v48 }
 0x14e   :  { %25003 = vst [vmem:[#allocation11_spill] sm:$0xff] %v16608_v35  ;;  %2996 = vmatpush1.msra.mxu1 %v24963_v14  ;;  %2885 = vmatprep.subr.mxu0 %v25004_v59  ;;  %v25007_v14 = vld [vmem:[#allocation41_spill] sm:$0xff]  ;;  %25014 = vst [vmem:[#allocation13_spill] sm:$0xff] %v16667_v25  ;;  %v16724_v48 = vsub.f32 %v292_v52, %v16667_v25  ;;  %v24075_v52 = vand.u32 4294901760, %v16685_v15 }
 0x14f   :  { %2998 = vmatprep.subr.mxu1 %v24964_v61  ;;  %2889 = vmatpush1.msra.mxu0 %v25006_v44  ;;  %v25008_v54 = vand.u32 4294901760, %v25007_v14  ;;  %v291_v61 = vld [vmem:[%s23845_s2 + $0x810] sm:$0xff]  ;;  %25020 = vst [vmem:[#allocation14_spill] sm:$0xff] %v16687_v60  ;;  %25023 = vst [vmem:[#allocation19_spill] sm:$0xff] %v16703_v13  ;;  %v25027_v14 = vand.u32 4294901760, %v16405_v23  ;;  %v208_v23 = vld [vmem:[%s23845_s2 + $0x578] sm:$0xff]  ;;  %v16757_v26 = vsub.f32 %v249_v11, %v16703_v13 }
 0x150   :  { %3000 = vmatpush1.msra.mxu1 %v24965_v27  ;;  %v24074_v27 = vand.u32 4294901760, %v16614_v31  ;;  %v16669_v36 = vand.u32 4294901760, %v291_v61  ;;  %v25026_v44 = vld [vmem:[#allocation17_spill] sm:$0xff]  ;;  %v24077_v11 = vand.u32 4294901760, %v16724_v48 }
 0x151   :  { %2893 = vmatprep.subr.mxu0 %v25008_v54  ;;  %3002 = vmatprep.subr.mxu1 %v24966_v57  ;;  %v270_v57 = vld [vmem:[%s23845_s2 + $0x768] sm:$0xff]  ;;  %v16729_v54 = vand.u32 4294901760, %v250_v38  ;;  %v123_v35 = vld [vmem:[%s23845_s2 + $0x2d0] sm:$0xff] }
 0x152   :  { %2897 = vmatpush1.msra.mxu0 %v25010_v51  ;;  %3004 = vmatpush1.msra.mxu1 %v24967_v49  ;;  %v16665_v49 = vsub.f32 %v333_v45, %v16630_v1  ;;  %25015 = vst [vmem:[#allocation22_spill] sm:$0xff] %v16669_v36  ;;  %v16694_v58 = vand.u32 4294901760, %v270_v57  ;;  %v24071_v45 = vand.u32 4294901760, %v16659_v30  ;;  %v16709_v59 = vsub.f32 %v291_v61, %v16669_v36 }
 0x153   :  { %2901 = vmatprep.subr.mxu0 %v25012_v2  ;;  %3006 = vmatprep.subr.mxu1 %v24968_v9  ;;  %v25017_v9 = vand.u32 4294901760, %v25016_v6  ;;  %25028 = vst [vmem:[#allocation27_spill] sm:$0xff] %v16729_v54  ;;  %v24072_v61 = vand.u32 4294901760, %v16679_v41  ;;  %v25030_v51 = vand.u32 4294901760, %v25029_v28  ;;  %v207_v6 = vld [vmem:[%s23845_s2 + $0x570] sm:$0xff]  ;;  %v16786_v28 = vand.u32 4294901760, %v208_v23 }
 0x154   :  { %2905 = vmatpush1.msra.mxu0 %v25013_v16  ;;  %3008 = vmatpush1.msra.mxu1 %v24969_v55  ;;  %v16692_v55 = vsub.f32 %v16614_v31, %v24074_v27  ;;  %25021 = vst [vmem:[#allocation23_spill] sm:$0xff] %v16694_v58  ;;  %v16737_v16 = vsub.f32 %v270_v57, %v16694_v58 }
 0x155   :  { %2909 = vmatprep.subr.mxu0 %v25017_v9  ;;  %3010 = vmatprep.subr.mxu1 %v24970_v50  ;;  %v25022_v50 = vand.u32 4294901760, %v16389_v63  ;;  %v229_v63 = vld [vmem:[%s23845_s2 + $0x620] sm:$0xff]  ;;  %v25031_v9 = vld [vmem:[#allocation26_spill] sm:$0xff]  ;;  %v16754_v57 = vsub.f32 %v16659_v30, %v24071_v45  ;;  %25035 = vst [vmem:[#allocation8_spill] sm:$0xff] %v16786_v28 }
 0x156   :  { %2913 = vmatpush1.msra.mxu0 %v25019_v33  ;;  %3012 = vmatpush1.msra.mxu1 %v24971_v34  ;;  %v24070_v34 = vand.u32 4294901760, %v16665_v49  ;;  %v16759_v33 = vand.u32 4294901760, %v229_v63  ;;  %v24078_v7 = vand.u32 4294901760, %v16737_v16  ;;  %v25047_v46 = vand.u32 4294901760, %v16692_v55 }
 0x157   :  { %2917 = vmatprep.subr.mxu0 %v25022_v50  ;;  %3014 = vmatprep.subr.mxu1 %v25024_v22  ;;  %v16761_v50 = vand.u32 4294901760, %v228_v5  ;;  %v25034_v22 = vld [vmem:[#allocation28_spill] sm:$0xff] }
 0x158   :  { %2921 = vmatpush1.msra.mxu0 %v25025_v24  ;;  %3016 = vmatpush1.msra.mxu1 %v25026_v44  ;;  %25032 = vst [vmem:[#allocation36_spill] sm:$0xff] %v16759_v33  ;;  %v16772_v24 = vsub.f32 %v16665_v49, %v24070_v34  ;;  %v24076_v44 = vand.u32 4294901760, %v16709_v59  ;;  %v16791_v34 = vsub.f32 %v250_v38, %v16729_v54 }
 0x159   :  { %2955 = vmatprep.subr.mxu0 %v25027_v14  ;;  %3018 = vmatprep.subr.mxu1 %v16272_v19  ;;  %v16747_v19 = vsub.f32 %v271_v47, %v16687_v60  ;;  %25033 = vst [vmem:[#allocation25_spill] sm:$0xff] %v16761_v50  ;;  %v187_v47 = vld [vmem:[%s23845_s2 + $0x4d0] sm:$0xff]  ;;  %v186_v14 = vld [vmem:[%s23845_s2 + $0x4c8] sm:$0xff]  ;;  %v16807_v38 = vsub.f32 %v228_v5, %v16761_v50 }
 0x15a   :  { %2959 = vmatpush2.msra.mxu0 %v25030_v51  ;;  %2961 = vmatprep.mubr.f32.mxu0 %v25031_v9  ;;  %v16788_v51 = vand.u32 4294901760, %v207_v6  ;;  %v16800_v45 = vand.u32 4294901760, %v187_v47  ;;  %v16809_v27 = vand.u32 4294901760, %v186_v14  ;;  %v3213_v2 = vand.u32 4294901760, %v16772_v24 }
 0x15b   :  { %3020 = vmatpush1.msra.mxu1 %v16279_v40  ;;  %2963 = vmatmul.mubr.f32.vlgmr.msra.gmra.mxu0 %v25034_v22  ;;  %v3207_v40 = vand.u32 4294901760, %v16754_v57  ;;  %v16827_v5 = vsub.f32 %v16709_v59, %v24076_v44  ;;  %v166_v57 = vld [vmem:[%s23845_s2 + $0x428] sm:$0xff]  ;;  %v165_v44 = vld [vmem:[%s23845_s2 + $0x420] sm:$0xff] }
 0x15c   :  { %3022 = vmatprep.subr.mxu1 %v16298_v0  ;;  %3077 = vmatprep.subr.mxu0 %v16584_v32  ;;  %v16784_v0 = vsub.f32 %v16679_v41, %v24072_v61  ;;  %25036 = vst [vmem:[#allocation9_spill] sm:$0xff] %v16788_v51  ;;  %25037 = vst [vmem:[#allocation10_spill] sm:$0xff] %v16800_v45  ;;  %v24079_v61 = vand.u32 4294901760, %v16747_v19  ;;  %v16862_v24 = vsub.f32 %v187_v47, %v16800_v45 }
 0x15d   :  { %3024 = vmatpush1.msra.mxu1 %v16289_v42  ;;  %3079 = vmatpush1.msra.mxu0 %v16594_v8  ;;  %v16798_v42 = vsub.f32 %v16685_v15, %v24075_v52  ;;  %25038 = vst [vmem:[#allocation21_spill] sm:$0xff] %v16809_v27  ;;  %v16813_v52 = vsub.f32 %v229_v63, %v16759_v33  ;;  %v16883_v12 = vand.u32 4294901760, %v166_v57 }
 0x15e   :  { %3026 = vmatprep.subr.mxu1 %v16320_v29  ;;  %3081 = vmatprep.subr.mxu0 %v16619_v37  ;;  %v24080_v29 = vand.u32 4294901760, %v16757_v26  ;;  %v16833_v63 = vsub.f32 %v207_v6, %v16788_v51  ;;  %v16851_v6 = vsub.f32 %v16747_v19, %v24079_v61  ;;  %25041 = vst [vmem:[#allocation32_spill] sm:$0xff] %v16862_v24  ;;  %v144_v61 = vld [vmem:[%s23845_s2 + $0x378] sm:$0xff] }
 0x15f   :  { %3028 = vmatpush1.msra.mxu1 %v16333_v53  ;;  %3083 = vmatpush1.msra.mxu0 %v16630_v1  ;;  %v16822_v53 = vsub.f32 %v16724_v48, %v24077_v11  ;;  %v16843_v11 = vsub.f32 %v208_v23, %v16786_v28  ;;  %v145_v23 = vld [vmem:[%s23845_s2 + $0x380] sm:$0xff]  ;;  %25043 = vst [vmem:[#allocation24_spill] sm:$0xff] %v16883_v12  ;;  %v25050_v55 = vand.u32 4294901760, %v16813_v52 }
 0x160   :  { %3030 = vmatprep.subr.mxu1 %v16343_v10  ;;  %3085 = vmatprep.subr.mxu0 %v16635_v43  ;;  %v3219_v10 = vand.u32 4294901760, %v16784_v0  ;;  %25039 = vst [vmem:[#allocation15_spill] sm:$0xff] %v16833_v63  ;;  %v16856_v0 = vsub.f32 %v16737_v16, %v24078_v7  ;;  %v25045_v7 = vand.u32 4294901760, %v16791_v34  ;;  %v16894_v62 = vand.u32 4294901760, %v145_v23 }
 0x161   :  { %3032 = vmatpush1.msra.mxu1 %v16361_v18  ;;  %25040 = vst [vmem:[#allocation29_spill] sm:$0xff] %v16843_v11  ;;  %3087 = vmatpush1.msra.mxu0 %v16646_v20  ;;  %v3225_v18 = vand.u32 4294901760, %v16798_v42  ;;  %v16872_v42 = vsub.f32 %v16757_v26, %v24080_v29  ;;  %v16885_v29 = vand.u32 4294901760, %v165_v44 }
 0x162   :  { %3064 = vmatprep.subr.mxu1 %v16367_v17  ;;  %3089 = vmatprep.subr.mxu0 %v16667_v25  ;;  %v16867_v17 = vsub.f32 %v186_v14, %v16809_v27  ;;  %v3237_v14 = vand.u32 4294901760, %v16827_v5  ;;  %v16892_v47 = vsub.f32 %v16791_v34, %v25045_v7  ;;  %25046 = vst [vmem:[#allocation41_spill] sm:$0xff] %v16894_v62  ;;  %v3243_v7 = vand.u32 4294901760, %v16851_v6 }
 0x163   :  { %3066 = vmatpush2.msra.mxu1 %v16380_v39  ;;  %3068 = vmatprep.mubr.f32.mxu1 %v25031_v9  ;;  %v3231_v39 = vand.u32 4294901760, %v16822_v53  ;;  %25044 = vst [vmem:[#allocation39_spill] sm:$0xff] %v16885_v29  ;;  %v124_v53 = vld [vmem:[%s23845_s2 + $0x2d8] sm:$0xff]  ;;  %v3249_v21 = vand.u32 4294901760, %v16856_v0  ;;  %v25049_v5 = vand.u32 4294901760, %v16714_v3  ;;  %v25051_v6 = vand.u32 4294901760, %v16807_v38 }
 0x164   :  { %25042 = vst [vmem:[#allocation7_spill] sm:$0xff] %v16867_v17  ;;  %3091 = vmatpush1.msra.mxu0 %v16669_v36  ;;  %3070 = vmatmul.mubr.f32.vlgmr.msra.gmra.mxu1 %v25034_v22  ;;  %v103_v36 = vld [vmem:[%s23845_s2 + $0x230] sm:$0xff]  ;;  %v102_v3 = vld [vmem:[%s23845_s2 + $0x228] sm:$0xff]  ;;  %v16937_v56 = vand.u32 4294901760, %v124_v53 }
 0x165   :  { %3093 = vmatprep.subr.mxu0 %v16687_v60  ;;  %3196 = vmatprep.subr.mxu1 %v25047_v46  ;;  %v16909_v60 = vand.u32 4294901760, %v144_v61  ;;  %v16919_v46 = vsub.f32 %v16813_v52, %v25050_v55  ;;  %v16924_v0 = vsub.f32 %v16807_v38, %v25051_v6  ;;  %v16935_v55 = vsub.f32 %v165_v44, %v16885_v29 }
 0x166   :  { %3095 = vmatpush1.msra.mxu0 %v16694_v58  ;;  %3202 = vmatpush1.msra.mxu1 %v25049_v5  ;;  %25052 = vst [vmem:[#allocation16_spill] sm:$0xff] %v16937_v56  ;;  %v16939_v6 = vand.u32 4294901760, %v123_v35  ;;  %v81_v58 = vld [vmem:[%s23845_s2 + $0x180] sm:$0xff]  ;;  %v25055_v5 = vand.u32 4294901760, %v16843_v11 }
 0x167   :  { %25048 = vst [vmem:[#allocation40_spill] sm:$0xff] %v16909_v60  ;;  %3097 = vmatprep.subr.mxu0 %v16729_v54  ;;  %3208 = vmatprep.subr.mxu1 %v3207_v40  ;;  %v16942_v54 = vsub.f32 %v166_v57, %v16883_v12  ;;  %v3255_v40 = vand.u32 4294901760, %v16892_v47  ;;  %v82_v57 = vld [vmem:[%s23845_s2 + $0x188] sm:$0xff]  ;;  %v16967_v47 = vsub.f32 %v144_v61, %v16909_v60 }
 0x168   :  { %3099 = vmatpush1.msra.mxu0 %v16703_v13  ;;  %25053 = vst [vmem:[#allocation35_spill] sm:$0xff] %v16939_v6  ;;  %3214 = vmatpush1.msra.mxu1 %v3213_v2  ;;  %v16952_v44 = vsub.f32 %v16843_v11, %v25055_v5  ;;  %v25056_v13 = vand.u32 4294901760, %v16833_v63  ;;  %v16963_v2 = vsub.f32 %v145_v23, %v16894_v62  ;;  %v16969_v5 = vand.u32 4294901760, %v103_v36 }
 0x169   :  { %25054 = vst [vmem:[#allocation18_spill] sm:$0xff] %v16942_v54  ;;  %3101 = vmatprep.subr.mxu0 %v16759_v33  ;;  %3220 = vmatprep.subr.mxu1 %v3219_v10  ;;  %v25057_v33 = vand.u32 4294901760, %v16862_v24  ;;  %v3267_v23 = vand.u32 4294901760, %v16919_v46  ;;  %v3273_v10 = vand.u32 4294901760, %v16924_v0  ;;  %v16986_v11 = vand.u32 4294901760, %v81_v58  ;;  %v40_v0 = vld [vmem:[%s23845_s2 + $0x38] sm:$0xff] }
 0x16a   :  { %v16957_v25 = vsub.f32 %v16833_v63, %v25056_v13  ;;  %3103 = vmatpush1.msra.mxu0 %v16761_v50  ;;  %v16976_v63 = vand.u32 4294901760, %v102_v3  ;;  %3226 = vmatpush1.msra.mxu1 %v3225_v18  ;;  %v25058_v50 = vand.u32 4294901760, %v16867_v17  ;;  %v16993_v18 = vsub.f32 %v123_v35, %v16939_v6  ;;  %v17027_v35 = vpop.f32.mrf.mxu1 }
 0x16b   :  { %v16974_v13 = vsub.f32 %v16862_v24, %v25057_v33  ;;  %3105 = vmatprep.subr.mxu0 %v16786_v28  ;;  %v61_v33 = vld [vmem:[%s23845_s2 + $0xe0] sm:$0xff]  ;;  %3232 = vmatprep.subr.mxu1 %v3231_v39  ;;  %v16995_v46 = vand.u32 4294901760, %v82_v57  ;;  %v17002_v28 = vsub.f32 %v124_v53, %v16937_v56  ;;  %v3279_v39 = vand.u32 4294901760, %v16952_v44  ;;  %25063 = vst [vmem:[#allocation46_spill] sm:$0xff] %v17027_v35 }
 0x16c   :  { %v16984_v61 = vsub.f32 %v16867_v17, %v25058_v50  ;;  %3107 = vmatpush1.msra.mxu0 %v16788_v51  ;;  %25059 = vst [vmem:[#allocation17_spill] sm:$0xff] %v16993_v18  ;;  %v60_v50 = vld [vmem:[%s23845_s2 + $0xd8] sm:$0xff]  ;;  %3238 = vmatpush1.msra.mxu1 %v3237_v14  ;;  %v3285_v51 = vand.u32 4294901760, %v16957_v25  ;;  %v17015_v14 = vsub.f32 %v102_v3, %v16976_v63  ;;  %v39_v25 = vld [vmem:[%s23845_s2 + $0x30] sm:$0xff]  ;;  %v17025_v17 = vpop.f32.mrf.mxu0 }
 0x16d   :  { %3109 = vmatprep.subr.mxu0 %v16800_v45  ;;  %3244 = vmatprep.subr.mxu1 %v3243_v7  ;;  %v3291_v53 = vand.u32 4294901760, %v16974_v13  ;;  %v17017_v45 = vand.u32 4294901760, %v61_v33  ;;  %v17023_v44 = vsub.f32 %v103_v36, %v16969_v5  ;;  %25062 = vst [vmem:[#allocation45_spill] sm:$0xff] %v17025_v17  ;;  %v17032_v3 = vsub.f32 %v81_v58, %v16986_v11  ;;  %v376_v36 = vld [vmem:[%s23845_s2 + $0xab8] sm:$0xff] }
 0x16e   :  { %3111 = vmatpush1.msra.mxu0 %v16809_v27  ;;  %25060 = vst [vmem:[#allocation42_spill] sm:$0xff] %v17015_v14  ;;  %3250 = vmatpush1.msra.mxu1 %v3249_v21  ;;  %v3297_v7 = vand.u32 4294901760, %v16984_v61  ;;  %v17034_v13 = vand.u32 4294901760, %v60_v50  ;;  %v25064_v21 = vand.u32 4294901760, %v16942_v54  ;;  %v17044_v17 = vand.u32 4294901760, %v40_v0  ;;  %v375_v61 = vld [vmem:[%s23845_s2 + $0xab0] sm:$0xff] }
 0x16f   :  { %25061 = vst [vmem:[#allocation44_spill] sm:$0xff] %v17023_v44  ;;  %3113 = vmatprep.subr.mxu0 %v16883_v12  ;;  %3256 = vmatprep.subr.mxu1 %v3255_v40  ;;  %v17051_v27 = vsub.f32 %v82_v57, %v16995_v46  ;;  %v25065_v12 = vand.u32 4294901760, %v16872_v42  ;;  %v1398_v40 = vpop.f32.mrf.mxu0  ;;  %v17062_v20 = vand.u32 4294901760, %v39_v25  ;;  %v17068_v42 = vand.u32 4294901760, %v376_v36 }
 0x170   :  { %3115 = vmatpush1.msra.mxu0 %v16885_v29  ;;  %v3302_v35 = vsub.f32 %v16942_v54, %v25064_v21  ;;  %v25066_v29 = vand.u32 4294901760, %v16935_v55  ;;  %v25067_v54 = vand.u32 4294901760, %v16963_v2  ;;  %v1641_v24 = vpop.f32.mrf.mxu1  ;;  %v25070_v57 = vand.u32 4294901760, %v16967_v47  ;;  %3426 = vmatprep.mubr.f32.mxu1 %v25031_v9  ;;  %v25103_v9 = vld [vmem:[#allocation9_spill] sm:$0xff] }
 0x171   :  { %3262 = vmatpush1.msra.mxu1 %v25065_v12  ;;  %3117 = vmatprep.subr.mxu0 %v16894_v62  ;;  %v17066_v12 = vadd.f32 %v1641_v24, %v1398_v40  ;;  %v25083_v24 = vld [vmem:[#allocation37_spill] sm:$0xff] }
 0x172   :  { %v3308_v21 = vsub.f32 %v16935_v55, %v25066_v29  ;;  %v3314_v58 = vsub.f32 %v16963_v2, %v25067_v54  ;;  %3268 = vmatprep.subr.mxu1 %v3267_v23  ;;  %3119 = vmatpush1.msra.mxu0 %v16909_v60  ;;  %v17072_v29 = vsub.f32 %v61_v33, %v17017_v45  ;;  %v17081_v60 = vand.u32 4294901760, %v375_v61 }
 0x173   :  { %3274 = vmatpush1.msra.mxu1 %v3273_v10  ;;  %3121 = vmatprep.subr.mxu0 %v16937_v56  ;;  %v17076_v54 = vsub.f32 %v60_v50, %v17034_v13  ;;  %v3320_v23 = vsub.f32 %v16967_v47, %v25070_v57  ;;  %v3303_v40 = vand.u32 4294901760, %v3302_v35  ;;  %v25071_v33 = vand.u32 4294901760, %v17002_v28 }
 0x174   :  { %25068 = vst [vmem:[#allocation47_spill] sm:$0xff] %v17072_v29  ;;  %3280 = vmatprep.subr.mxu1 %v3279_v39  ;;  %3123 = vmatpush1.msra.mxu0 %v16939_v6  ;;  %v17090_v50 = vsub.f32 %v40_v0, %v17044_v17  ;;  %v3309_v57 = vand.u32 4294901760, %v3308_v21  ;;  %v17094_v56 = vsub.f32 %v39_v25, %v17062_v20  ;;  %v25072_v39 = vand.u32 4294901760, %v16993_v18 }
 0x175   :  { %25069 = vst [vmem:[#allocation48_spill] sm:$0xff] %v17076_v54  ;;  %v3326_v10 = vsub.f32 %v17002_v28, %v25071_v33  ;;  %3286 = vmatpush1.msra.mxu1 %v3285_v51  ;;  %3125 = vmatprep.subr.mxu0 %v16969_v5  ;;  %v3315_v33 = vand.u32 4294901760, %v3314_v58  ;;  %v25073_v0 = vand.u32 4294901760, %v17023_v44  ;;  %v17106_v21 = vsub.f32 %v376_v36, %v17068_v42 }
 0x176   :  { %v3332_v35 = vsub.f32 %v16993_v18, %v25072_v39  ;;  %3292 = vmatprep.subr.mxu1 %v3291_v53  ;;  %3127 = vmatpush1.msra.mxu0 %v16976_v63  ;;  %v3321_v25 = vand.u32 4294901760, %v3320_v23  ;;  %v17110_v39 = vsub.f32 %v375_v61, %v17081_v60  ;;  %v25075_v53 = vand.u32 4294901760, %v17015_v14 }
 0x177   :  { %v3338_v51 = vsub.f32 %v17023_v44, %v25073_v0  ;;  %3298 = vmatpush1.msra.mxu1 %v3297_v7  ;;  %3129 = vmatprep.subr.mxu0 %v16995_v46  ;;  %v3327_v0 = vand.u32 4294901760, %v3326_v10  ;;  %v25076_v36 = vand.u32 4294901760, %v17051_v27  ;;  %v25077_v23 = vand.u32 4294901760, %v17032_v3 }
 0x178   :  { %25074 = vst [vmem:[#allocation49_spill] sm:$0xff] %v17110_v39  ;;  %v3344_v58 = vsub.f32 %v17015_v14, %v25075_v53  ;;  %3304 = vmatprep.subr.mxu1 %v3303_v40  ;;  %3131 = vmatpush1.msra.mxu0 %v16986_v11  ;;  %v3333_v61 = vand.u32 4294901760, %v3332_v35  ;;  %v25078_v10 = vand.u32 4294901760, %v17072_v29  ;;  %v25079_v35 = vand.u32 4294901760, %v17076_v54 }
 0x179   :  { %v3350_v7 = vsub.f32 %v17051_v27, %v25076_v36  ;;  %3310 = vmatpush1.msra.mxu1 %v3309_v57  ;;  %3133 = vmatprep.subr.mxu0 %v17017_v45  ;;  %v3356_v53 = vsub.f32 %v17032_v3, %v25077_v23  ;;  %v3339_v40 = vand.u32 4294901760, %v3338_v51  ;;  %v25080_v51 = vand.u32 4294901760, %v17090_v50 }
 0x17a   :  { %3316 = vmatprep.subr.mxu1 %v3315_v33  ;;  %3135 = vmatpush1.msra.mxu0 %v17034_v13  ;;  %v3362_v36 = vsub.f32 %v17072_v29, %v25078_v10  ;;  %v3345_v57 = vand.u32 4294901760, %v3344_v58  ;;  %v3368_v23 = vsub.f32 %v17076_v54, %v25079_v35  ;;  %v25081_v58 = vand.u32 4294901760, %v17094_v56 }
 0x17b   :  { %3322 = vmatpush1.msra.mxu1 %v3321_v25  ;;  %3137 = vmatprep.subr.mxu0 %v17044_v17  ;;  %v3351_v33 = vand.u32 4294901760, %v3350_v7  ;;  %v3374_v10 = vsub.f32 %v17090_v50, %v25080_v51  ;;  %v3357_v25 = vand.u32 4294901760, %v3356_v53 }
 0x17c   :  { %3328 = vmatprep.subr.mxu1 %v3327_v0  ;;  %3139 = vmatpush1.msra.mxu0 %v17062_v20  ;;  %v3380_v62 = vsub.f32 %v17094_v56, %v25081_v58  ;;  %v3363_v35 = vand.u32 4294901760, %v3362_v36  ;;  %v25082_v0 = vand.u32 4294901760, %v17106_v21  ;;  %v3369_v51 = vand.u32 4294901760, %v3368_v23 }
 0x17d   :  { %3334 = vmatpush1.msra.mxu1 %v3333_v61  ;;  %3171 = vmatprep.subr.mxu0 %v17068_v42  ;;  %v25084_v61 = vand.u32 4294901760, %v17110_v39  ;;  %v3375_v58 = vand.u32 4294901760, %v3374_v10  ;;  %v25087_v10 = vld [vmem:[#allocation20_spill] sm:$0xff] }
 0x17e   :  { %3340 = vmatprep.subr.mxu1 %v3339_v40  ;;  %3173 = vmatpush2.msra.mxu0 %v17081_v60  ;;  %v3416_v7 = vsub.f32 %v17106_v21, %v25082_v0  ;;  %v25085_v40 = vld [vmem:[#allocation38_spill] sm:$0xff]  ;;  %v3381_v36 = vand.u32 4294901760, %v3380_v62  ;;  %v17164_v62 = vpop.f32.mrf.mxu0 }
 0x17f   :  { %3346 = vmatpush1.msra.mxu1 %v3345_v57  ;;  %3179 = vmatprep.mubr.f32.mxu0 %v25083_v24  ;;  %v3422_v53 = vsub.f32 %v17110_v39, %v25084_v61  ;;  %25086 = vst [vmem:[#allocation50_spill] sm:$0xff] %v17164_v62  ;;  %v25092_v61 = vld [vmem:[#allocation32_spill] sm:$0xff] }
 0x180   :  { %3352 = vmatprep.subr.mxu1 %v3351_v33  ;;  %3436 = vmatprep.subr.mxu0 %v16614_v31  ;;  %v3417_v0 = vand.u32 4294901760, %v3416_v7  ;;  %v25090_v7 = vld [vmem:[#allocation15_spill] sm:$0xff] }
 0x181   :  { %3185 = vmatmul.mubr.f32.vlgmr.msra.gmra.mxu0 %v25085_v40  ;;  %3358 = vmatpush1.msra.mxu1 %v3357_v25  ;;  %v3423_v57 = vand.u32 4294901760, %v3422_v53  ;;  %v25088_v25 = vld [vmem:[#allocation29_spill] sm:$0xff]  ;;  %v25093_v53 = vld [vmem:[#allocation14_spill] sm:$0xff]  ;;  %v25100_v40 = vld [vmem:[#allocation36_spill] sm:$0xff] }
 0x182   :  { %3439 = vmatpush1.msra.mxu0 %v16628_v4  ;;  %3364 = vmatprep.subr.mxu1 %v3363_v35  ;;  %v25089_v35 = vld [vmem:[#allocation13_spill] sm:$0xff] }
 0x183   :  { %3442 = vmatprep.subr.mxu0 %v16659_v30  ;;  %3370 = vmatpush1.msra.mxu1 %v3369_v51  ;;  %v25091_v51 = vld [vmem:[#allocation22_spill] sm:$0xff] }
 0x184   :  { %3445 = vmatpush1.msra.mxu0 %v16665_v49  ;;  %3376 = vmatprep.subr.mxu1 %v3375_v58  ;;  %v25094_v58 = vld [vmem:[#allocation7_spill] sm:$0xff] }
 0x185   :  { %3448 = vmatprep.subr.mxu0 %v16679_v41  ;;  %3382 = vmatpush1.msra.mxu1 %v3381_v36  ;;  %v25096_v36 = vld [vmem:[#allocation23_spill] sm:$0xff] }
 0x186   :  { %3451 = vmatpush1.msra.mxu0 %v16685_v15  ;;  %3418 = vmatprep.subr.mxu1 %v3417_v0  ;;  %v25097_v0 = vld [vmem:[#allocation18_spill] sm:$0xff] }
 0x187   :  { %3454 = vmatprep.subr.mxu0 %v16724_v48  ;;  %3424 = vmatpush2.msra.mxu1 %v3423_v57  ;;  %v25098_v57 = vld [vmem:[#allocation27_spill] sm:$0xff] }
 0x188   :  { %3457 = vmatpush1.msra.mxu0 %v16709_v59  ;;  %3428 = vmatmul.mubr.f32.vlgmr.msra.gmra.mxu1 %v25034_v22  ;;  %v25101_v22 = vld [vmem:[#allocation25_spill] sm:$0xff] }
 0x189   :  { %3460 = vmatprep.subr.mxu0 %v16747_v19  ;;  %3578 = vmatprep.subr.mxu1 %v16584_v32 }
 0x18a   :  { %3463 = vmatpush1.msra.mxu0 %v16737_v16  ;;  %3580 = vmatpush1.msra.mxu1 %v16594_v8 }
 0x18b   :  { %3466 = vmatprep.subr.mxu0 %v16791_v34  ;;  %3582 = vmatprep.subr.mxu1 %v16619_v37  ;;  %v1784_v23 = vpop.f32.mrf.mxu0 }
 0x18c   :  { %3469 = vmatpush1.msra.mxu0 %v16757_v26  ;;  %3584 = vmatpush1.msra.mxu1 %v16630_v1  ;;  %v1785_v33 = vadd.f32 %v1784_v23, %v17066_v12  ;;  %v17185_v12 = vpop.f32.mrf.mxu1  ;;  %v25099_v23 = vld [vmem:[#allocation19_spill] sm:$0xff] }
 0x18d   :  { %3472 = vmatprep.subr.mxu0 %v16813_v52  ;;  %3586 = vmatprep.subr.mxu1 %v16635_v43  ;;  %25095 = vst [vmem:[#allocation20_spill] sm:$0xff] %v17185_v12  ;;  %v25102_v12 = vld [vmem:[#allocation8_spill] sm:$0xff] }
 0x18e   :  { %3475 = vmatpush1.msra.mxu0 %v16807_v38  ;;  %3588 = vmatpush1.msra.mxu1 %v25087_v10 }
 0x18f   :  { %3478 = vmatprep.subr.mxu0 %v25088_v25  ;;  %3590 = vmatprep.subr.mxu1 %v25089_v35 }
 0x190   :  { %3481 = vmatpush1.msra.mxu0 %v25090_v7  ;;  %3592 = vmatpush1.msra.mxu1 %v25091_v51 }
 0x191   :  { %3484 = vmatprep.subr.mxu0 %v25092_v61  ;;  %3594 = vmatprep.subr.mxu1 %v25093_v53 }
 0x192   :  { %3487 = vmatpush1.msra.mxu0 %v25094_v58  ;;  %3596 = vmatpush1.msra.mxu1 %v25096_v36 }
 0x193   :  { %3490 = vmatprep.subr.mxu0 %v25097_v0  ;;  %3598 = vmatprep.subr.mxu1 %v25098_v57 }
 0x194   :  { %3493 = vmatpush1.msra.mxu0 %v16935_v55  ;;  %3600 = vmatpush1.msra.mxu1 %v25099_v23  ;;  %v1895_v62 = vpop.f32.mrf.mxu1  ;;  %v25104_v23 = vld [vmem:[#allocation10_spill] sm:$0xff] }
 0x195   :  { %3496 = vmatprep.subr.mxu0 %v16963_v2  ;;  %3602 = vmatprep.subr.mxu1 %v25100_v40  ;;  %v1896_v24 = vadd.f32 %v1895_v62, %v1785_v33  ;;  %v25105_v40 = vld [vmem:[#allocation21_spill] sm:$0xff]  ;;  %v25106_v62 = vld [vmem:[#allocation24_spill] sm:$0xff]  ;;  %v25107_v33 = vld [vmem:[#allocation39_spill] sm:$0xff] }
 0x196   :  { %3499 = vmatpush1.msra.mxu0 %v16967_v47  ;;  %3604 = vmatpush1.msra.mxu1 %v25101_v22 }
 0x197   :  { %3502 = vmatprep.subr.mxu0 %v17002_v28  ;;  %3606 = vmatprep.subr.mxu1 %v25102_v12 }
 0x198   :  { %3505 = vmatpush1.msra.mxu0 %v16993_v18  ;;  %3608 = vmatpush1.msra.mxu1 %v25103_v9  ;;  %v25108_v18 = vld [vmem:[#allocation41_spill] sm:$0xff] }
 0x199   :  { %3508 = vmatprep.subr.mxu0 %v17023_v44  ;;  %3610 = vmatprep.subr.mxu1 %v25104_v23  ;;  %v25109_v44 = vld [vmem:[#allocation40_spill] sm:$0xff] }
 0x19a   :  { %3511 = vmatpush1.msra.mxu0 %v17015_v14  ;;  %3612 = vmatpush1.msra.mxu1 %v25105_v40  ;;  %v25110_v14 = vld [vmem:[#allocation16_spill] sm:$0xff] }
 0x19b   :  { %3514 = vmatprep.subr.mxu0 %v17051_v27  ;;  %3614 = vmatprep.subr.mxu1 %v25106_v62 }
 0x19c   :  { %3517 = vmatpush1.msra.mxu0 %v17032_v3  ;;  %3616 = vmatpush1.msra.mxu1 %v25107_v33 }
 0x19d   :  { %3520 = vmatprep.subr.mxu0 %v17072_v29  ;;  %3618 = vmatprep.subr.mxu1 %v25108_v18  ;;  %v25111_v29 = vld [vmem:[#allocation30_spill] sm:$0xff] }
 0x19e   :  { %3523 = vmatpush1.msra.mxu0 %v17076_v54  ;;  %3620 = vmatpush1.msra.mxu1 %v25109_v44  ;;  %v25112_v54 = vld [vmem:[#allocation31_spill] sm:$0xff] }
 0x19f   :  { %3526 = vmatprep.subr.mxu0 %v17090_v50  ;;  %3622 = vmatprep.subr.mxu1 %v25110_v14  ;;  %v25113_v14 = vand.u32 4294901760, %v16614_v31  ;;  %v25117_v31 = vand.u32 4294901760, %v16679_v41  ;;  %v25123_v41 = vand.u32 4294901760, %v16747_v19  ;;  %v25128_v19 = vand.u32 4294901760, %v16813_v52  ;;  %v356_v52 = vld [vmem:[%s23845_s2 + $0xa18] sm:$0xff] }
 0x1a0   :  { %3529 = vmatpush1.msra.mxu0 %v17094_v56  ;;  %3624 = vmatpush1.msra.mxu1 %v16939_v6  ;;  %v25114_v6 = vand.u32 4294901760, %v16628_v4  ;;  %v25118_v4 = vand.u32 4294901760, %v16685_v15  ;;  %v25125_v15 = vand.u32 4294901760, %v16737_v16  ;;  %v25129_v16 = vand.u32 4294901760, %v16807_v38 }
 0x1a1   :  { %3562 = vmatprep.subr.mxu0 %v17106_v21  ;;  %3626 = vmatprep.subr.mxu1 %v16969_v5  ;;  %v25135_v38 = vand.u32 4294901760, %v25097_v0 }
 0x1a2   :  { %3565 = vmatpush2.msra.mxu0 %v17110_v39  ;;  %3568 = vmatprep.mubr.f32.mxu0 %v25111_v29  ;;  %v25115_v39 = vand.u32 4294901760, %v16659_v30  ;;  %v25116_v29 = vand.u32 4294901760, %v16665_v49  ;;  %v25119_v30 = vand.u32 4294901760, %v16724_v48  ;;  %v25121_v49 = vand.u32 4294901760, %v16709_v59 }
 0x1a3   :  { %3628 = vmatpush1.msra.mxu1 %v16976_v63  ;;  %3571 = vmatmul.mubr.f32.vlgmr.msra.gmra.mxu0 %v25112_v54  ;;  %v25126_v48 = vand.u32 4294901760, %v16791_v34  ;;  %v25127_v59 = vand.u32 4294901760, %v16757_v26  ;;  %v25133_v34 = vand.u32 4294901760, %v25094_v58  ;;  %v17285_v26 = vpop.f32.mrf.mxu1  ;;  %v25139_v58 = vld [vmem:[#allocation36_spill] sm:$0xff] }
 0x1a4   :  { %3630 = vmatprep.subr.mxu1 %v16995_v46  ;;  %3691 = vmatprep.subr.mxu0 %v25113_v14  ;;  %v25122_v14 = vld [vmem:[#allocation34_spill] sm:$0xff]  ;;  %25134 = vst [vmem:[#allocation13_spill] sm:$0xff] %v17285_v26 }
 0x1a5   :  { %3632 = vmatpush1.msra.mxu1 %v16986_v11  ;;  %3695 = vmatpush1.msra.mxu0 %v25114_v6  ;;  %v25120_v6 = vld [vmem:[#allocation33_spill] sm:$0xff] }
 0x1a6   :  { %3634 = vmatprep.subr.mxu1 %v17017_v45  ;;  %3699 = vmatprep.subr.mxu0 %v25115_v39 }
 0x1a7   :  { %3636 = vmatpush1.msra.mxu1 %v17034_v13  ;;  %3703 = vmatpush1.msra.mxu0 %v25116_v29  ;;  %v17250_v29 = vpop.f32.mrf.mxu0 }
 0x1a8   :  { %3638 = vmatprep.subr.mxu1 %v17044_v17  ;;  %3707 = vmatprep.subr.mxu0 %v25117_v31  ;;  %25124 = vst [vmem:[#allocation29_spill] sm:$0xff] %v17250_v29  ;;  %v315_v31 = vld [vmem:[%s23845_s2 + $0x8d0] sm:$0xff] }
 0x1a9   :  { %3640 = vmatpush1.msra.mxu1 %v17062_v20  ;;  %3711 = vmatpush1.msra.mxu0 %v25118_v4  ;;  %v25143_v4 = vld [vmem:[#allocation17_spill] sm:$0xff] }
 0x1aa   :  { %3672 = vmatprep.subr.mxu1 %v17068_v42  ;;  %3715 = vmatprep.subr.mxu0 %v25119_v30  ;;  %v25144_v30 = vand.u32 4294901760, %v25143_v4  ;;  %v230_v4 = vld [vmem:[%s23845_s2 + $0x628] sm:$0xff] }
 0x1ab   :  { %3674 = vmatpush2.msra.mxu1 %v17081_v60  ;;  %3678 = vmatprep.mubr.f32.mxu1 %v25120_v6 }
 0x1ac   :  { %3719 = vmatpush1.msra.mxu0 %v25121_v49  ;;  %3682 = vmatmul.mubr.f32.vlgmr.msra.gmra.mxu1 %v25122_v14  ;;  %v125_v14 = vld [vmem:[%s23845_s2 + $0x2e0] sm:$0xff] }
 0x1ad   :  { %3723 = vmatprep.subr.mxu0 %v25123_v41  ;;  %3864 = vmatprep.subr.mxu1 %v16584_v32 }
 0x1ae   :  { %3727 = vmatpush1.msra.mxu0 %v25125_v15  ;;  %3866 = vmatpush1.msra.mxu1 %v16594_v8  ;;  %v25130_v8 = vand.u32 4294901760, %v25088_v25  ;;  %v25136_v25 = vand.u32 4294901760, %v16935_v55 }
 0x1af   :  { %3731 = vmatprep.subr.mxu0 %v25126_v48  ;;  %3868 = vmatprep.subr.mxu1 %v16619_v37  ;;  %v2070_v39 = vpop.f32.mrf.mxu0  ;;  %v25131_v37 = vand.u32 4294901760, %v25090_v7  ;;  %v25138_v7 = vand.u32 4294901760, %v16963_v2  ;;  %v314_v2 = vld [vmem:[%s23845_s2 + $0x8c8] sm:$0xff] }
 0x1b0   :  { %3735 = vmatpush1.msra.mxu0 %v25127_v59  ;;  %3870 = vmatpush1.msra.mxu1 %v16630_v1  ;;  %v2071_v32 = vadd.f32 %v2070_v39, %v1896_v24  ;;  %v357_v1 = vld [vmem:[%s23845_s2 + $0xa20] sm:$0xff]  ;;  %v17336_v15 = vand.u32 4294901760, %v314_v2  ;;  %v294_v48 = vld [vmem:[%s23845_s2 + $0x828] sm:$0xff]  ;;  %v25148_v59 = vld [vmem:[#allocation42_spill] sm:$0xff]  ;;  %v17347_v39 = vand.u32 4294901760, %v315_v31 }
 0x1b1   :  { %3739 = vmatprep.subr.mxu0 %v25128_v19  ;;  %3872 = vmatprep.subr.mxu1 %v16635_v43  ;;  %v25132_v43 = vand.u32 4294901760, %v25092_v61  ;;  %v17290_v24 = vand.u32 4294901760, %v357_v1  ;;  %v17301_v61 = vand.u32 4294901760, %v356_v52  ;;  %v273_v19 = vld [vmem:[%s23845_s2 + $0x780] sm:$0xff] }
 0x1b2   :  { %3743 = vmatpush1.msra.mxu0 %v25129_v16  ;;  %3874 = vmatpush1.msra.mxu1 %v25087_v10  ;;  %v336_v10 = vld [vmem:[%s23845_s2 + $0x978] sm:$0xff]  ;;  %25147 = vst [vmem:[#allocation22_spill] sm:$0xff] %v17336_v15  ;;  %v25150_v16 = vand.u32 4294901760, %v17051_v27  ;;  %v251_v27 = vld [vmem:[%s23845_s2 + $0x6d0] sm:$0xff] }
 0x1b3   :  { %3747 = vmatprep.subr.mxu0 %v25130_v8  ;;  %3876 = vmatprep.subr.mxu1 %v25089_v35  ;;  %v25137_v35 = vld [vmem:[#allocation19_spill] sm:$0xff]  ;;  %v17311_v55 = vand.u32 4294901760, %v336_v10 }
 0x1b4   :  { %3751 = vmatpush1.msra.mxu0 %v25131_v37  ;;  %3878 = vmatpush1.msra.mxu1 %v25091_v51  ;;  %v25151_v37 = vand.u32 4294901760, %v17032_v3  ;;  %v17381_v3 = vand.u32 4294901760, %v273_v19 }
 0x1b5   :  { %3755 = vmatprep.subr.mxu0 %v25132_v43  ;;  %3880 = vmatprep.subr.mxu1 %v25093_v53  ;;  %v335_v53 = vld [vmem:[%s23845_s2 + $0x970] sm:$0xff]  ;;  %v17368_v43 = vand.u32 4294901760, %v294_v48 }
 0x1b6   :  { %3759 = vmatpush1.msra.mxu0 %v25133_v34  ;;  %3882 = vmatpush1.msra.mxu1 %v25096_v36  ;;  %v25140_v36 = vand.u32 4294901760, %v16967_v47  ;;  %v17323_v47 = vsub.f32 %v357_v1, %v17290_v24  ;;  %v17328_v49 = vand.u32 4294901760, %v335_v53  ;;  %v25154_v34 = vld [vmem:[#allocation47_spill] sm:$0xff]  ;;  %25156 = vst [vmem:[#allocation7_spill] sm:$0xff] %v17381_v3 }
 0x1b7   :  { %3763 = vmatprep.subr.mxu0 %v25135_v38  ;;  %3884 = vmatprep.subr.mxu1 %v25098_v57  ;;  %v25142_v57 = vand.u32 4294901760, %v17002_v28  ;;  %v17334_v28 = vsub.f32 %v356_v52, %v17301_v61  ;;  %25152 = vst [vmem:[#allocation32_spill] sm:$0xff] %v17368_v43  ;;  %v25155_v52 = vand.u32 4294901760, %v25154_v34  ;;  %v25169_v34 = vld [vmem:[#allocation26_spill] sm:$0xff] }
 0x1b8   :  { %3767 = vmatpush1.msra.mxu0 %v25136_v25  ;;  %3886 = vmatpush1.msra.mxu1 %v25137_v35  ;;  %v2177_v51 = vpop.f32.mrf.mxu1  ;;  %v24142_v8 = vand.u32 4294901760, %v17323_v47  ;;  %v17366_v1 = vsub.f32 %v335_v53, %v17328_v49  ;;  %v25157_v25 = vld [vmem:[#allocation48_spill] sm:$0xff]  ;;  %v25160_v53 = vand.u32 4294901760, %v17090_v50  ;;  %v231_v50 = vld [vmem:[%s23845_s2 + $0x630] sm:$0xff] }
 0x1b9   :  { %3771 = vmatprep.subr.mxu0 %v25138_v7  ;;  %3888 = vmatprep.subr.mxu1 %v25139_v58  ;;  %v17309_v0 = vadd.f32 %v2177_v51, %v2071_v32  ;;  %v17353_v32 = vsub.f32 %v336_v10, %v17311_v55  ;;  %v24140_v38 = vand.u32 4294901760, %v17334_v28  ;;  %v252_v10 = vld [vmem:[%s23845_s2 + $0x6d8] sm:$0xff]  ;;  %v25158_v35 = vand.u32 4294901760, %v25157_v25 }
 0x1ba   :  { %3775 = vmatpush1.msra.mxu0 %v25140_v36  ;;  %3890 = vmatpush1.msra.mxu1 %v25101_v22  ;;  %v25145_v22 = vld [vmem:[#allocation44_spill] sm:$0xff]  ;;  %v17394_v51 = vsub.f32 %v315_v31, %v17347_v39  ;;  %v17402_v58 = vsub.f32 %v17323_v47, %v24142_v8  ;;  %v17412_v31 = vand.u32 4294901760, %v252_v10  ;;  %v17459_v25 = vand.u32 4294901760, %v230_v4 }
 0x1bb   :  { %25141 = vst [vmem:[#allocation15_spill] sm:$0xff] %v17309_v0  ;;  %3779 = vmatprep.subr.mxu0 %v25142_v57  ;;  %3892 = vmatprep.subr.mxu1 %v25102_v12  ;;  %v25146_v41 = vand.u32 4294901760, %v25145_v22  ;;  %v293_v12 = vld [vmem:[%s23845_s2 + $0x820] sm:$0xff]  ;;  %v24139_v7 = vand.u32 4294901760, %v17353_v32  ;;  %v25162_v36 = vld [vmem:[#allocation16_spill] sm:$0xff]  ;;  %v25166_v22 = vand.u32 4294901760, %v17106_v21 }
 0x1bc   :  { %3783 = vmatpush1.msra.mxu0 %v25144_v30  ;;  %3894 = vmatpush1.msra.mxu1 %v25103_v9  ;;  %v25149_v9 = vand.u32 4294901760, %v25148_v59  ;;  %25164 = vst [vmem:[#allocation27_spill] sm:$0xff] %v17412_v31  ;;  %v17422_v30 = vsub.f32 %v294_v48, %v17368_v43  ;;  %v17434_v59 = vsub.f32 %v273_v19, %v17381_v3  ;;  %v210_v19 = vld [vmem:[%s23845_s2 + $0x588] sm:$0xff]  ;;  %25171 = vst [vmem:[#allocation8_spill] sm:$0xff] %v17459_v25 }
 0x1bd   :  { %3787 = vmatprep.subr.mxu0 %v25146_v41  ;;  %3896 = vmatprep.subr.mxu1 %v25104_v23  ;;  %v272_v23 = vld [vmem:[%s23845_s2 + $0x778] sm:$0xff]  ;;  %v17430_v41 = vsub.f32 %v17334_v28, %v24140_v38  ;;  %v17445_v21 = vsub.f32 %v17353_v32, %v24139_v7  ;;  %v25184_v6 = vand.u32 4294901760, %v17402_v58 }
 0x1be   :  { %3791 = vmatpush1.msra.mxu0 %v25149_v9  ;;  %3898 = vmatpush1.msra.mxu1 %v25105_v40  ;;  %v17370_v40 = vand.u32 4294901760, %v293_v12  ;;  %v25167_v9 = vld [vmem:[#allocation49_spill] sm:$0xff] }
 0x1bf   :  { %3795 = vmatprep.subr.mxu0 %v25150_v16  ;;  %3900 = vmatprep.subr.mxu1 %v25106_v62  ;;  %v17379_v62 = vsub.f32 %v314_v2, %v17336_v15  ;;  %v25163_v2 = vand.u32 4294901760, %v17094_v56  ;;  %v25165_v56 = vld [vmem:[#allocation35_spill] sm:$0xff]  ;;  %v25168_v48 = vand.u32 4294901760, %v25167_v9  ;;  %v17487_v9 = vand.u32 4294901760, %v210_v19 }
 0x1c0   :  { %3799 = vmatpush1.msra.mxu0 %v25151_v37  ;;  %25153 = vst [vmem:[#allocation14_spill] sm:$0xff] %v17370_v40  ;;  %3902 = vmatpush1.msra.mxu1 %v25107_v33  ;;  %v17390_v33 = vand.u32 4294901760, %v272_v23  ;;  %v17410_v57 = vsub.f32 %v293_v12, %v17370_v40  ;;  %v24141_v37 = vand.u32 4294901760, %v17394_v51 }
 0x1c1   :  { %3803 = vmatprep.subr.mxu0 %v25155_v52  ;;  %3904 = vmatprep.subr.mxu1 %v25108_v18  ;;  %v17404_v18 = vand.u32 4294901760, %v251_v27  ;;  %v24138_v12 = vand.u32 4294901760, %v17379_v62  ;;  %v17457_v52 = vand.u32 4294901760, %v231_v50  ;;  %25173 = vst [vmem:[#allocation9_spill] sm:$0xff] %v17487_v9 }
 0x1c2   :  { %3807 = vmatpush1.msra.mxu0 %v25158_v35  ;;  %25159 = vst [vmem:[#allocation23_spill] sm:$0xff] %v17390_v33  ;;  %3906 = vmatpush1.msra.mxu1 %v25109_v44  ;;  %v24137_v44 = vand.u32 4294901760, %v17366_v1  ;;  %v17440_v16 = vsub.f32 %v272_v23, %v17390_v33  ;;  %v209_v35 = vld [vmem:[%s23845_s2 + $0x580] sm:$0xff] }
 0x1c3   :  { %3811 = vmatprep.subr.mxu0 %v25160_v53  ;;  %25161 = vst [vmem:[#allocation18_spill] sm:$0xff] %v17404_v18  ;;  %3908 = vmatprep.subr.mxu1 %v25162_v36  ;;  %v17455_v23 = vsub.f32 %v251_v27, %v17404_v18  ;;  %25170 = vst [vmem:[#allocation25_spill] sm:$0xff] %v17457_v52  ;;  %v25172_v53 = vld [vmem:[#allocation28_spill] sm:$0xff]  ;;  %v24144_v27 = vand.u32 4294901760, %v17422_v30  ;;  %v24143_v36 = vand.u32 4294901760, %v17410_v57 }
 0x1c4   :  { %3815 = vmatpush1.msra.mxu0 %v25163_v2  ;;  %3910 = vmatpush1.msra.mxu1 %v25165_v56  ;;  %v188_v2 = vld [vmem:[%s23845_s2 + $0x4d8] sm:$0xff]  ;;  %v17477_v56 = vsub.f32 %v252_v10, %v17412_v31  ;;  %v24146_v7 = vand.u32 4294901760, %v17440_v16  ;;  %v17516_v10 = vsub.f32 %v231_v50, %v17457_v52 }
 0x1c5   :  { %3849 = vmatprep.subr.mxu0 %v25166_v22  ;;  %3912 = vmatprep.subr.mxu1 %v16969_v5  ;;  %v17485_v22 = vsub.f32 %v17379_v62, %v24138_v12  ;;  %v189_v12 = vld [vmem:[%s23845_s2 + $0x4e0] sm:$0xff]  ;;  %v17509_v38 = vand.u32 4294901760, %v188_v2  ;;  %v24147_v8 = vand.u32 4294901760, %v17455_v23 }
 0x1c6   :  { %3853 = vmatpush2.msra.mxu0 %v25168_v48  ;;  %3855 = vmatprep.mubr.f32.mxu0 %v25169_v34  ;;  %v24145_v48 = vand.u32 4294901760, %v17434_v59  ;;  %v17535_v50 = vand.u32 4294901760, %v189_v12  ;;  %v25188_v58 = vand.u32 4294901760, %v17516_v10 }
 0x1c7   :  { %3914 = vmatpush1.msra.mxu1 %v16976_v63  ;;  %3857 = vmatmul.mubr.f32.vlgmr.msra.gmra.mxu0 %v25172_v53  ;;  %v17469_v63 = vsub.f32 %v17366_v1, %v24137_v44  ;;  %v17498_v44 = vand.u32 4294901760, %v209_v35  ;;  %25175 = vst [vmem:[#allocation21_spill] sm:$0xff] %v17509_v38 }
 0x1c8   :  { %3916 = vmatprep.subr.mxu1 %v16995_v46  ;;  %3971 = vmatprep.subr.mxu0 %v17290_v24  ;;  %v17529_v46 = vsub.f32 %v17410_v57, %v24143_v36  ;;  %25176 = vst [vmem:[#allocation24_spill] sm:$0xff] %v17535_v50  ;;  %v168_v36 = vld [vmem:[%s23845_s2 + $0x438] sm:$0xff] }
 0x1c9   :  { %3918 = vmatpush1.msra.mxu1 %v16986_v11  ;;  %3973 = vmatpush1.msra.mxu0 %v17301_v61  ;;  %v17496_v11 = vsub.f32 %v17394_v51, %v24141_v37  ;;  %25174 = vst [vmem:[#allocation10_spill] sm:$0xff] %v17498_v44  ;;  %v167_v37 = vld [vmem:[%s23845_s2 + $0x430] sm:$0xff]  ;;  %v17583_v29 = vand.u32 4294901760, %v168_v36 }
 0x1ca   :  { %3920 = vmatprep.subr.mxu1 %v17017_v45  ;;  %3975 = vmatprep.subr.mxu0 %v17311_v55  ;;  %v17507_v45 = vsub.f32 %v230_v4, %v17459_v25  ;;  %v17524_v4 = vsub.f32 %v17422_v30, %v24144_v27  ;;  %v17546_v27 = vsub.f32 %v210_v19, %v17487_v9  ;;  %v17559_v5 = vand.u32 4294901760, %v167_v37  ;;  %v147_v19 = vld [vmem:[%s23845_s2 + $0x390] sm:$0xff] }
 0x1cb   :  { %3922 = vmatpush1.msra.mxu1 %v17034_v13  ;;  %3977 = vmatpush1.msra.mxu0 %v17328_v49  ;;  %v4107_v13 = vand.u32 4294901760, %v17469_v63  ;;  %v17540_v63 = vsub.f32 %v17434_v59, %v24145_v48  ;;  %v17557_v48 = vsub.f32 %v17440_v16, %v24146_v7  ;;  %v146_v7 = vld [vmem:[%s23845_s2 + $0x388] sm:$0xff]  ;;  %25181 = vst [vmem:[#allocation36_spill] sm:$0xff] %v17583_v29  ;;  %v17593_v0 = vand.u32 4294901760, %v147_v19 }
 0x1cc   :  { %3924 = vmatprep.subr.mxu1 %v17044_v17  ;;  %3979 = vmatprep.subr.mxu0 %v17347_v39  ;;  %25177 = vst [vmem:[#allocation39_spill] sm:$0xff] %v17546_v27  ;;  %v17552_v17 = vsub.f32 %v209_v35, %v17498_v44  ;;  %25179 = vst [vmem:[#allocation40_spill] sm:$0xff] %v17559_v5  ;;  %v17572_v35 = vsub.f32 %v17455_v23, %v24147_v8  ;;  %v25182_v8 = vand.u32 4294901760, %v17477_v56 }
 0x1cd   :  { %3926 = vmatpush1.msra.mxu1 %v17062_v20  ;;  %3981 = vmatpush1.msra.mxu0 %v17336_v15  ;;  %v4113_v20 = vand.u32 4294901760, %v17496_v11  ;;  %v4137_v26 = vand.u32 4294901760, %v17540_v63  ;;  %v4143_v63 = vand.u32 4294901760, %v17557_v48  ;;  %v17610_v54 = vsub.f32 %v167_v37, %v17559_v5 }
 0x1ce   :  { %3958 = vmatprep.subr.mxu1 %v17068_v42  ;;  %25178 = vst [vmem:[#allocation41_spill] sm:$0xff] %v17552_v17  ;;  %3983 = vmatprep.subr.mxu0 %v17368_v43  ;;  %v17567_v42 = vsub.f32 %v188_v2, %v17509_v38  ;;  %v4131_v2 = vand.u32 4294901760, %v17529_v46  ;;  %v17588_v11 = vsub.f32 %v17477_v56, %v25182_v8  ;;  %v25189_v48 = vand.u32 4294901760, %v17507_v45 }
 0x1cf   :  { %3960 = vmatpush2.msra.mxu1 %v17081_v60  ;;  %3962 = vmatprep.mubr.f32.mxu1 %v25169_v34  ;;  %v4125_v60 = vand.u32 4294901760, %v17524_v4  ;;  %v126_v4 = vld [vmem:[%s23845_s2 + $0x2e8] sm:$0xff]  ;;  %v17603_v8 = vsub.f32 %v189_v12, %v17535_v50  ;;  %25185 = vst [vmem:[#allocation44_spill] sm:$0xff] %v17610_v54  ;;  %v25187_v12 = vand.u32 4294901760, %v17430_v41  ;;  %v17625_v37 = vsub.f32 %v17516_v10, %v25188_v58 }
 0x1d0   :  { %25180 = vst [vmem:[#allocation19_spill] sm:$0xff] %v17567_v42  ;;  %3985 = vmatpush1.msra.mxu0 %v17370_v40  ;;  %3964 = vmatmul.mubr.f32.vlgmr.msra.gmra.mxu1 %v25172_v53  ;;  %v104_v40 = vld [vmem:[%s23845_s2 + $0x238] sm:$0xff]  ;;  %v17630_v46 = vsub.f32 %v17507_v45, %v25189_v48  ;;  %v4149_v58 = vand.u32 4294901760, %v17588_v11  ;;  %v17645_v48 = vand.u32 4294901760, %v125_v14  ;;  %v17648_v43 = vsub.f32 %v168_v36, %v17583_v29 }
 0x1d1   :  { %3987 = vmatprep.subr.mxu0 %v17381_v3  ;;  %25183 = vst [vmem:[#allocation17_spill] sm:$0xff] %v17603_v8  ;;  %4090 = vmatprep.subr.mxu1 %v25184_v6  ;;  %v17612_v3 = vand.u32 4294901760, %v146_v7  ;;  %v25190_v6 = vand.u32 4294901760, %v17445_v21  ;;  %v25194_v41 = vand.u32 4294901760, %v17546_v27  ;;  %v84_v11 = vld [vmem:[%s23845_s2 + $0x198] sm:$0xff] }
 0x1d2   :  { %3989 = vmatpush1.msra.mxu0 %v17390_v33  ;;  %4096 = vmatpush1.msra.mxu1 %v25187_v12  ;;  %v105_v33 = vld [vmem:[%s23845_s2 + $0x240] sm:$0xff]  ;;  %v83_v12 = vld [vmem:[%s23845_s2 + $0x190] sm:$0xff]  ;;  %25192 = vst [vmem:[#allocation48_spill] sm:$0xff] %v17645_v48  ;;  %25193 = vst [vmem:[#allocation16_spill] sm:$0xff] %v17648_v43 }
 0x1d3   :  { %25186 = vst [vmem:[#allocation42_spill] sm:$0xff] %v17612_v3  ;;  %3991 = vmatprep.subr.mxu0 %v17412_v31  ;;  %4102 = vmatprep.subr.mxu1 %v25190_v6  ;;  %v17643_v31 = vand.u32 4294901760, %v126_v4  ;;  %v17654_v15 = vsub.f32 %v17546_v27, %v25194_v41  ;;  %v17657_v6 = vand.u32 4294901760, %v104_v40  ;;  %v17667_v36 = vsub.f32 %v146_v7, %v17612_v3 }
 0x1d4   :  { %3993 = vmatpush1.msra.mxu0 %v17404_v18  ;;  %4108 = vmatpush1.msra.mxu1 %v4107_v13  ;;  %v17663_v18 = vsub.f32 %v147_v19, %v17593_v0  ;;  %v25195_v13 = vand.u32 4294901760, %v17552_v17  ;;  %v17674_v21 = vand.u32 4294901760, %v105_v33  ;;  %v25196_v27 = vand.u32 4294901760, %v17485_v22 }
 0x1d5   :  { %25191 = vst [vmem:[#allocation47_spill] sm:$0xff] %v17643_v31  ;;  %3995 = vmatprep.subr.mxu0 %v17457_v52  ;;  %4114 = vmatprep.subr.mxu1 %v4113_v20  ;;  %v17676_v52 = vand.u32 4294901760, %v83_v12  ;;  %v4161_v20 = vand.u32 4294901760, %v17625_v37  ;;  %v4167_v19 = vand.u32 4294901760, %v17630_v46  ;;  %v25197_v7 = vand.u32 4294901760, %v17567_v42  ;;  %v62_v37 = vld [vmem:[%s23845_s2 + $0xe8] sm:$0xff]  ;;  %v17730_v46 = vpop.f32.mrf.mxu0 }
 0x1d6   :  { %3997 = vmatpush1.msra.mxu0 %v17459_v25  ;;  %v17672_v41 = vsub.f32 %v17552_v17, %v25195_v13  ;;  %4120 = vmatpush1.msra.mxu1 %v25196_v27  ;;  %v63_v17 = vld [vmem:[%s23845_s2 + $0xf0] sm:$0xff]  ;;  %v17694_v27 = vsub.f32 %v125_v14, %v17645_v48  ;;  %v17696_v22 = vand.u32 4294901760, %v84_v11  ;;  %v25198_v13 = vand.u32 4294901760, %v17603_v8  ;;  %25201 = vst [vmem:[#allocation51_spill] sm:$0xff] %v17730_v46 }
 0x1d7   :  { %3999 = vmatprep.subr.mxu0 %v17487_v9  ;;  %v17686_v25 = vsub.f32 %v17567_v42, %v25197_v7  ;;  %4126 = vmatprep.subr.mxu1 %v4125_v60  ;;  %v17703_v7 = vsub.f32 %v126_v4, %v17643_v31  ;;  %v4173_v60 = vand.u32 4294901760, %v17654_v15  ;;  %v42_v9 = vld [vmem:[%s23845_s2 + $0x48] sm:$0xff]  ;;  %v17720_v15 = vsub.f32 %v83_v12, %v17676_v52 }
 0x1d8   :  { %4001 = vmatpush1.msra.mxu0 %v17498_v44  ;;  %4132 = vmatpush1.msra.mxu1 %v4131_v2  ;;  %v4184_v14 = vsub.f32 %v17603_v8, %v25198_v13  ;;  %v17711_v44 = vsub.f32 %v104_v40, %v17657_v6  ;;  %v4179_v2 = vand.u32 4294901760, %v17672_v41  ;;  %v17722_v4 = vand.u32 4294901760, %v63_v17  ;;  %v41_v40 = vld [vmem:[%s23845_s2 + $0x40] sm:$0xff] }
 0x1d9   :  { %4003 = vmatprep.subr.mxu0 %v17535_v50  ;;  %4138 = vmatprep.subr.mxu1 %v4137_v26  ;;  %v17728_v13 = vsub.f32 %v105_v33, %v17674_v21  ;;  %v17732_v50 = vpop.f32.mrf.mxu1  ;;  %v4191_v26 = vand.u32 4294901760, %v17686_v25  ;;  %v25203_v12 = vand.u32 4294901760, %v17610_v54  ;;  %v378_v33 = vld [vmem:[%s23845_s2 + $0xac8] sm:$0xff]  ;;  %v17749_v25 = vand.u32 4294901760, %v42_v9 }
 0x1da   :  { %25199 = vst [vmem:[#allocation35_spill] sm:$0xff] %v17711_v44  ;;  %4005 = vmatpush1.msra.mxu0 %v17509_v38  ;;  %25202 = vst [vmem:[#allocation52_spill] sm:$0xff] %v17732_v50  ;;  %4144 = vmatpush1.msra.mxu1 %v4143_v63  ;;  %v17739_v38 = vand.u32 4294901760, %v62_v37  ;;  %v25204_v63 = vand.u32 4294901760, %v17648_v43  ;;  %v17756_v42 = vsub.f32 %v84_v11, %v17696_v22  ;;  %v17764_v46 = vand.u32 4294901760, %v41_v40 }
 0x1db   :  { %25200 = vst [vmem:[#allocation49_spill] sm:$0xff] %v17728_v13  ;;  %4007 = vmatprep.subr.mxu0 %v17583_v29  ;;  %v4202_v41 = vsub.f32 %v17610_v54, %v25203_v12  ;;  %4150 = vmatprep.subr.mxu1 %v4149_v58  ;;  %v377_v12 = vld [vmem:[%s23845_s2 + $0xac0] sm:$0xff]  ;;  %v25205_v29 = vand.u32 4294901760, %v17572_v35  ;;  %v4185_v58 = vand.u32 4294901760, %v4184_v14  ;;  %v17770_v35 = vand.u32 4294901760, %v378_v33 }
 0x1dc   :  { %4009 = vmatpush1.msra.mxu0 %v17559_v5  ;;  %v4196_v50 = vsub.f32 %v17648_v43, %v25204_v63  ;;  %v2292_v5 = vpop.f32.mrf.mxu0  ;;  %v25206_v63 = vand.u32 4294901760, %v17663_v18  ;;  %v2535_v43 = vpop.f32.mrf.mxu1  ;;  %v17774_v14 = vsub.f32 %v63_v17, %v17722_v4  ;;  %v25209_v8 = vand.u32 4294901760, %v17667_v36  ;;  %4320 = vmatprep.mubr.f32.mxu1 %v25169_v34  ;;  %v25241_v34 = vld [vmem:[#allocation8_spill] sm:$0xff] }
 0x1dd   :  { %4156 = vmatpush1.msra.mxu1 %v25205_v29  ;;  %4011 = vmatprep.subr.mxu0 %v17593_v0  ;;  %v17768_v11 = vadd.f32 %v2535_v43, %v2292_v5  ;;  %v25210_v17 = vand.u32 4294901760, %v17703_v7  ;;  %v25222_v43 = vld [vmem:[#allocation37_spill] sm:$0xff] }
 0x1de   :  { %v4208_v54 = vsub.f32 %v17663_v18, %v25206_v63  ;;  %4162 = vmatprep.subr.mxu1 %v4161_v20  ;;  %4013 = vmatpush1.msra.mxu0 %v17612_v3  ;;  %25207 = vst [vmem:[#allocation53_spill] sm:$0xff] %v17774_v14  ;;  %v17778_v63 = vsub.f32 %v62_v37, %v17739_v38  ;;  %v17783_v3 = vand.u32 4294901760, %v377_v12  ;;  %v4197_v5 = vand.u32 4294901760, %v4196_v50 }
 0x1df   :  { %4168 = vmatpush1.msra.mxu1 %v4167_v19  ;;  %4015 = vmatprep.subr.mxu0 %v17643_v31  ;;  %v4214_v20 = vsub.f32 %v17667_v36, %v25209_v8  ;;  %v4220_v19 = vsub.f32 %v17703_v7, %v25210_v17  ;;  %v17792_v37 = vsub.f32 %v42_v9, %v17749_v25  ;;  %v4203_v8 = vand.u32 4294901760, %v4202_v41 }
 0x1e0   :  { %25208 = vst [vmem:[#allocation54_spill] sm:$0xff] %v17778_v63  ;;  %4174 = vmatprep.subr.mxu1 %v4173_v60  ;;  %4017 = vmatpush1.msra.mxu0 %v17645_v48  ;;  %v17796_v31 = vsub.f32 %v41_v40, %v17764_v46  ;;  %v25211_v60 = vand.u32 4294901760, %v17694_v27  ;;  %v4209_v17 = vand.u32 4294901760, %v4208_v54  ;;  %v25212_v9 = vand.u32 4294901760, %v17728_v13 }
 0x1e1   :  { %4180 = vmatpush1.msra.mxu1 %v4179_v2  ;;  %4019 = vmatprep.subr.mxu0 %v17674_v21  ;;  %v17808_v41 = vsub.f32 %v378_v33, %v17770_v35  ;;  %v4215_v40 = vand.u32 4294901760, %v4214_v20  ;;  %v25215_v33 = vand.u32 4294901760, %v17756_v42  ;;  %v25216_v20 = vand.u32 4294901760, %v17720_v15 }
 0x1e2   :  { %v4226_v50 = vsub.f32 %v17694_v27, %v25211_v60  ;;  %4186 = vmatprep.subr.mxu1 %v4185_v58  ;;  %4021 = vmatpush1.msra.mxu0 %v17657_v6  ;;  %v4232_v2 = vsub.f32 %v17728_v13, %v25212_v9  ;;  %v17812_v60 = vsub.f32 %v377_v12, %v17783_v3  ;;  %v25214_v58 = vand.u32 4294901760, %v17711_v44 }
 0x1e3   :  { %4192 = vmatpush1.msra.mxu1 %v4191_v26  ;;  %4023 = vmatprep.subr.mxu0 %v17696_v22  ;;  %v4221_v9 = vand.u32 4294901760, %v4220_v19  ;;  %v4244_v26 = vsub.f32 %v17756_v42, %v25215_v33  ;;  %v25217_v19 = vand.u32 4294901760, %v17774_v14 }
 0x1e4   :  { %25213 = vst [vmem:[#allocation55_spill] sm:$0xff] %v17812_v60  ;;  %v4238_v54 = vsub.f32 %v17711_v44, %v25214_v58  ;;  %4198 = vmatprep.subr.mxu1 %v4197_v5  ;;  %4025 = vmatpush1.msra.mxu0 %v17676_v52  ;;  %v4227_v12 = vand.u32 4294901760, %v4226_v50  ;;  %v4250_v58 = vsub.f32 %v17720_v15, %v25216_v20  ;;  %v4233_v5 = vand.u32 4294901760, %v4232_v2 }
 0x1e5   :  { %4204 = vmatpush1.msra.mxu1 %v4203_v8  ;;  %4027 = vmatprep.subr.mxu0 %v17722_v4  ;;  %v4256_v33 = vsub.f32 %v17774_v14, %v25217_v19  ;;  %v25218_v50 = vand.u32 4294901760, %v17778_v63  ;;  %v25219_v2 = vand.u32 4294901760, %v17792_v37 }
 0x1e6   :  { %4210 = vmatprep.subr.mxu1 %v4209_v17  ;;  %4029 = vmatpush1.msra.mxu0 %v17739_v38  ;;  %v4239_v8 = vand.u32 4294901760, %v4238_v54  ;;  %v4245_v17 = vand.u32 4294901760, %v4244_v26  ;;  %v25220_v54 = vand.u32 4294901760, %v17796_v31 }
 0x1e7   :  { %4216 = vmatpush1.msra.mxu1 %v4215_v40  ;;  %4031 = vmatprep.subr.mxu0 %v17749_v25  ;;  %v4262_v20 = vsub.f32 %v17778_v63, %v25218_v50  ;;  %v4268_v19 = vsub.f32 %v17792_v37, %v25219_v2  ;;  %v4251_v40 = vand.u32 4294901760, %v4250_v58  ;;  %v4257_v50 = vand.u32 4294901760, %v4256_v33 }
 0x1e8   :  { %4222 = vmatprep.subr.mxu1 %v4221_v9  ;;  %4033 = vmatpush1.msra.mxu0 %v17764_v46  ;;  %v4274_v29 = vsub.f32 %v17796_v31, %v25220_v54  ;;  %v25221_v9 = vand.u32 4294901760, %v17808_v41 }
 0x1e9   :  { %4228 = vmatpush1.msra.mxu1 %v4227_v12  ;;  %4065 = vmatprep.subr.mxu0 %v17770_v35  ;;  %v4263_v2 = vand.u32 4294901760, %v4262_v20  ;;  %v25223_v12 = vand.u32 4294901760, %v17812_v60  ;;  %v4269_v54 = vand.u32 4294901760, %v4268_v19  ;;  %v25226_v19 = vld [vmem:[#allocation22_spill] sm:$0xff] }
 0x1ea   :  { %4234 = vmatprep.subr.mxu1 %v4233_v5  ;;  %4067 = vmatpush2.msra.mxu0 %v17783_v3  ;;  %v4310_v26 = vsub.f32 %v17808_v41, %v25221_v9  ;;  %v25224_v5 = vld [vmem:[#allocation38_spill] sm:$0xff]  ;;  %v4275_v33 = vand.u32 4294901760, %v4274_v29  ;;  %v17866_v29 = vpop.f32.mrf.mxu0 }
 0x1eb   :  { %4240 = vmatpush1.msra.mxu1 %v4239_v8  ;;  %4073 = vmatprep.mubr.f32.mxu0 %v25222_v43  ;;  %v4316_v58 = vsub.f32 %v17812_v60, %v25223_v12  ;;  %25225 = vst [vmem:[#allocation56_spill] sm:$0xff] %v17866_v29  ;;  %v25231_v12 = vld [vmem:[#allocation17_spill] sm:$0xff]  ;;  %v25239_v29 = vld [vmem:[#allocation18_spill] sm:$0xff] }
 0x1ec   :  { %4246 = vmatprep.subr.mxu1 %v4245_v17  ;;  %4330 = vmatprep.subr.mxu0 %v17323_v47  ;;  %v4311_v9 = vand.u32 4294901760, %v4310_v26  ;;  %v25229_v26 = vld [vmem:[#allocation41_spill] sm:$0xff] }
 0x1ed   :  { %4079 = vmatmul.mubr.f32.vlgmr.msra.gmra.mxu0 %v25224_v5  ;;  %4252 = vmatpush1.msra.mxu1 %v4251_v40  ;;  %v4317_v8 = vand.u32 4294901760, %v4316_v58  ;;  %v25227_v40 = vld [vmem:[#allocation39_spill] sm:$0xff]  ;;  %v25240_v43 = vld [vmem:[#allocation25_spill] sm:$0xff] }
 0x1ee   :  { %4333 = vmatpush1.msra.mxu0 %v17334_v28  ;;  %4258 = vmatprep.subr.mxu1 %v4257_v50  ;;  %v25228_v50 = vld [vmem:[#allocation32_spill] sm:$0xff]  ;;  %v25232_v58 = vld [vmem:[#allocation7_spill] sm:$0xff] }
 0x1ef   :  { %4336 = vmatprep.subr.mxu0 %v17353_v32  ;;  %4264 = vmatpush1.msra.mxu1 %v4263_v2  ;;  %v25230_v2 = vld [vmem:[#allocation14_spill] sm:$0xff] }
 0x1f0   :  { %4339 = vmatpush1.msra.mxu0 %v17366_v1  ;;  %4270 = vmatprep.subr.mxu1 %v4269_v54  ;;  %v25233_v54 = vld [vmem:[#allocation19_spill] sm:$0xff] }
 0x1f1   :  { %4342 = vmatprep.subr.mxu0 %v17394_v51  ;;  %4276 = vmatpush1.msra.mxu1 %v4275_v33  ;;  %v25235_v33 = vld [vmem:[#allocation23_spill] sm:$0xff] }
 0x1f2   :  { %4345 = vmatpush1.msra.mxu0 %v17379_v62  ;;  %4312 = vmatprep.subr.mxu1 %v4311_v9  ;;  %v25236_v9 = vld [vmem:[#allocation16_spill] sm:$0xff] }
 0x1f3   :  { %4348 = vmatprep.subr.mxu0 %v17422_v30  ;;  %4318 = vmatpush2.msra.mxu1 %v4317_v8  ;;  %v25237_v8 = vld [vmem:[#allocation27_spill] sm:$0xff] }
 0x1f4   :  { %4351 = vmatpush1.msra.mxu0 %v17410_v57  ;;  %4322 = vmatmul.mubr.f32.vlgmr.msra.gmra.mxu1 %v25172_v53 }
 0x1f5   :  { %4354 = vmatprep.subr.mxu0 %v17434_v59  ;;  %4472 = vmatprep.subr.mxu1 %v17290_v24 }
 0x1f6   :  { %4357 = vmatpush1.msra.mxu0 %v17440_v16  ;;  %4474 = vmatpush1.msra.mxu1 %v17301_v61 }
 0x1f7   :  { %4360 = vmatprep.subr.mxu0 %v17477_v56  ;;  %4476 = vmatprep.subr.mxu1 %v17311_v55  ;;  %v2678_v20 = vpop.f32.mrf.mxu0 }
 0x1f8   :  { %4363 = vmatpush1.msra.mxu0 %v17455_v23  ;;  %4478 = vmatpush1.msra.mxu1 %v17328_v49  ;;  %v2679_v17 = vadd.f32 %v2678_v20, %v17768_v11  ;;  %v17887_v11 = vpop.f32.mrf.mxu1  ;;  %v25238_v20 = vld [vmem:[#allocation44_spill] sm:$0xff] }
 0x1f9   :  { %4366 = vmatprep.subr.mxu0 %v17516_v10  ;;  %4480 = vmatprep.subr.mxu1 %v17347_v39  ;;  %25234 = vst [vmem:[#allocation22_spill] sm:$0xff] %v17887_v11  ;;  %v25242_v11 = vld [vmem:[#allocation9_spill] sm:$0xff] }
 0x1fa   :  { %4369 = vmatpush1.msra.mxu0 %v17507_v45  ;;  %4482 = vmatpush1.msra.mxu1 %v25226_v19 }
 0x1fb   :  { %4372 = vmatprep.subr.mxu0 %v25227_v40  ;;  %4484 = vmatprep.subr.mxu1 %v25228_v50 }
 0x1fc   :  { %4375 = vmatpush1.msra.mxu0 %v25229_v26  ;;  %4486 = vmatpush1.msra.mxu1 %v25230_v2 }
 0x1fd   :  { %4378 = vmatprep.subr.mxu0 %v25231_v12  ;;  %4488 = vmatprep.subr.mxu1 %v25232_v58 }
 0x1fe   :  { %4381 = vmatpush1.msra.mxu0 %v25233_v54  ;;  %4490 = vmatpush1.msra.mxu1 %v25235_v33 }
 0x1ff   :  { %4384 = vmatprep.subr.mxu0 %v25236_v9  ;;  %4492 = vmatprep.subr.mxu1 %v25237_v8  ;;  %v25243_v8 = vld [vmem:[#allocation10_spill] sm:$0xff] }
 0x200   :  { %4387 = vmatpush1.msra.mxu0 %v25238_v20  ;;  %4494 = vmatpush1.msra.mxu1 %v25239_v29  ;;  %v2789_v5 = vpop.f32.mrf.mxu1  ;;  %v25244_v29 = vld [vmem:[#allocation24_spill] sm:$0xff] }
 0x201   :  { %4390 = vmatprep.subr.mxu0 %v17663_v18  ;;  %4496 = vmatprep.subr.mxu1 %v25240_v43  ;;  %v2790_v53 = vadd.f32 %v2789_v5, %v2679_v17  ;;  %v25245_v43 = vld [vmem:[#allocation21_spill] sm:$0xff]  ;;  %v25246_v5 = vld [vmem:[#allocation36_spill] sm:$0xff] }
 0x202   :  { %4393 = vmatpush1.msra.mxu0 %v17667_v36  ;;  %4498 = vmatpush1.msra.mxu1 %v25241_v34  ;;  %v25247_v17 = vld [vmem:[#allocation40_spill] sm:$0xff] }
 0x203   :  { %4396 = vmatprep.subr.mxu0 %v17703_v7  ;;  %4500 = vmatprep.subr.mxu1 %v25242_v11 }
 0x204   :  { %4399 = vmatpush1.msra.mxu0 %v17694_v27  ;;  %4502 = vmatpush1.msra.mxu1 %v25243_v8 }
 0x205   :  { %4402 = vmatprep.subr.mxu0 %v17728_v13  ;;  %4504 = vmatprep.subr.mxu1 %v25244_v29  ;;  %v25248_v13 = vld [vmem:[#allocation42_spill] sm:$0xff] }
 0x206   :  { %4405 = vmatpush1.msra.mxu0 %v17711_v44  ;;  %4506 = vmatpush1.msra.mxu1 %v25245_v43  ;;  %v25249_v44 = vld [vmem:[#allocation47_spill] sm:$0xff] }
 0x207   :  { %4408 = vmatprep.subr.mxu0 %v17756_v42  ;;  %4508 = vmatprep.subr.mxu1 %v25246_v5 }
 0x208   :  { %4411 = vmatpush1.msra.mxu0 %v17720_v15  ;;  %4510 = vmatpush1.msra.mxu1 %v25247_v17 }
 0x209   :  { %4414 = vmatprep.subr.mxu0 %v17774_v14  ;;  %4512 = vmatprep.subr.mxu1 %v17593_v0  ;;  %v25250_v14 = vld [vmem:[#allocation30_spill] sm:$0xff] }
 0x20a   :  { %4417 = vmatpush1.msra.mxu0 %v17778_v63  ;;  %4514 = vmatpush1.msra.mxu1 %v25248_v13  ;;  %v25251_v63 = vld [vmem:[#allocation31_spill] sm:$0xff] }
 0x20b   :  { %4420 = vmatprep.subr.mxu0 %v17792_v37  ;;  %4516 = vmatprep.subr.mxu1 %v25249_v44  ;;  %v25252_v44 = vand.u32 4294901760, %v17323_v47  ;;  %v25256_v47 = vand.u32 4294901760, %v17394_v51  ;;  %v25262_v51 = vand.u32 4294901760, %v17434_v59  ;;  %v25267_v59 = vand.u32 4294901760, %v17516_v10 }
 0x20c   :  { %4423 = vmatpush1.msra.mxu0 %v17796_v31  ;;  %4518 = vmatpush1.msra.mxu1 %v17645_v48  ;;  %v25253_v48 = vand.u32 4294901760, %v17334_v28  ;;  %v25257_v28 = vand.u32 4294901760, %v17379_v62  ;;  %v25264_v62 = vand.u32 4294901760, %v17440_v16  ;;  %v25268_v16 = vand.u32 4294901760, %v17507_v45 }
 0x20d   :  { %4456 = vmatprep.subr.mxu0 %v17808_v41  ;;  %4520 = vmatprep.subr.mxu1 %v17674_v21  ;;  %v25274_v10 = vand.u32 4294901760, %v25236_v9  ;;  %v25280_v9 = vand.u32 4294901760, %v17667_v36 }
 0x20e   :  { %4459 = vmatpush2.msra.mxu0 %v17812_v60  ;;  %4462 = vmatprep.mubr.f32.mxu0 %v25250_v14  ;;  %v25254_v60 = vand.u32 4294901760, %v17353_v32  ;;  %v25255_v14 = vand.u32 4294901760, %v17366_v1  ;;  %v25258_v32 = vand.u32 4294901760, %v17422_v30  ;;  %v25260_v1 = vand.u32 4294901760, %v17410_v57 }
 0x20f   :  { %4522 = vmatpush1.msra.mxu1 %v17657_v6  ;;  %4465 = vmatmul.mubr.f32.vlgmr.msra.gmra.mxu0 %v25251_v63  ;;  %v25265_v30 = vand.u32 4294901760, %v17477_v56  ;;  %v25266_v57 = vand.u32 4294901760, %v17455_v23  ;;  %v25272_v23 = vand.u32 4294901760, %v25233_v54  ;;  %v17987_v56 = vpop.f32.mrf.mxu1  ;;  %v337_v54 = vld [vmem:[%s23845_s2 + $0x980] sm:$0xff] }
 0x210   :  { %4524 = vmatprep.subr.mxu1 %v17696_v22  ;;  %4585 = vmatprep.subr.mxu0 %v25252_v44  ;;  %v25259_v44 = vld [vmem:[#allocation33_spill] sm:$0xff]  ;;  %25273 = vst [vmem:[#allocation32_spill] sm:$0xff] %v17987_v56 }
 0x211   :  { %4526 = vmatpush1.msra.mxu1 %v17676_v52  ;;  %4589 = vmatpush1.msra.mxu0 %v25253_v48  ;;  %v25261_v48 = vld [vmem:[#allocation34_spill] sm:$0xff] }
 0x212   :  { %4528 = vmatprep.subr.mxu1 %v17722_v4  ;;  %4593 = vmatprep.subr.mxu0 %v25254_v60 }
 0x213   :  { %4530 = vmatpush1.msra.mxu1 %v17739_v38  ;;  %4597 = vmatpush1.msra.mxu0 %v25255_v14  ;;  %v17952_v14 = vpop.f32.mrf.mxu0 }
 0x214   :  { %4532 = vmatprep.subr.mxu1 %v17749_v25  ;;  %4601 = vmatprep.subr.mxu0 %v25256_v47  ;;  %25263 = vst [vmem:[#allocation39_spill] sm:$0xff] %v17952_v14 }
 0x215   :  { %4534 = vmatpush1.msra.mxu1 %v17764_v46  ;;  %4605 = vmatpush1.msra.mxu0 %v25257_v28  ;;  %v25282_v28 = vand.u32 4294901760, %v17703_v7 }
 0x216   :  { %4566 = vmatprep.subr.mxu1 %v17770_v35  ;;  %4609 = vmatprep.subr.mxu0 %v25258_v32  ;;  %v317_v32 = vld [vmem:[%s23845_s2 + $0x8e0] sm:$0xff] }
 0x217   :  { %4568 = vmatpush2.msra.mxu1 %v17783_v3  ;;  %4572 = vmatprep.mubr.f32.mxu1 %v25259_v44 }
 0x218   :  { %4613 = vmatpush1.msra.mxu0 %v25260_v1  ;;  %4576 = vmatmul.mubr.f32.vlgmr.msra.gmra.mxu1 %v25261_v48  ;;  %v25283_v1 = vand.u32 4294901760, %v17694_v27  ;;  %v295_v27 = vld [vmem:[%s23845_s2 + $0x830] sm:$0xff] }
 0x219   :  { %4617 = vmatprep.subr.mxu0 %v25262_v51  ;;  %4758 = vmatprep.subr.mxu1 %v17290_v24  ;;  %v18030_v51 = vand.u32 4294901760, %v337_v54  ;;  %v127_v48 = vld [vmem:[%s23845_s2 + $0x2f0] sm:$0xff] }
 0x21a   :  { %4621 = vmatpush1.msra.mxu0 %v25264_v62  ;;  %4760 = vmatpush1.msra.mxu1 %v17301_v61  ;;  %v25269_v61 = vand.u32 4294901760, %v25227_v40  ;;  %v25275_v40 = vld [vmem:[#allocation27_spill] sm:$0xff] }
 0x21b   :  { %4625 = vmatprep.subr.mxu0 %v25265_v30  ;;  %4762 = vmatprep.subr.mxu1 %v17311_v55  ;;  %v2964_v60 = vpop.f32.mrf.mxu0  ;;  %v25270_v55 = vand.u32 4294901760, %v25229_v26  ;;  %v25277_v26 = vld [vmem:[#allocation18_spill] sm:$0xff] }
 0x21c   :  { %4629 = vmatpush1.msra.mxu0 %v25266_v57  ;;  %4764 = vmatpush1.msra.mxu1 %v17328_v49  ;;  %v2965_v24 = vadd.f32 %v2964_v60, %v2790_v53  ;;  %v359_v49 = vld [vmem:[%s23845_s2 + $0xa30] sm:$0xff]  ;;  %v358_v53 = vld [vmem:[%s23845_s2 + $0xa28] sm:$0xff]  ;;  %v296_v57 = vld [vmem:[%s23845_s2 + $0x838] sm:$0xff]  ;;  %v18049_v60 = vand.u32 4294901760, %v317_v32 }
 0x21d   :  { %4633 = vmatprep.subr.mxu0 %v25267_v59  ;;  %4766 = vmatprep.subr.mxu1 %v17347_v39  ;;  %v25271_v39 = vand.u32 4294901760, %v25231_v12  ;;  %v17992_v45 = vand.u32 4294901760, %v359_v49  ;;  %v275_v59 = vld [vmem:[%s23845_s2 + $0x790] sm:$0xff] }
 0x21e   :  { %4637 = vmatpush1.msra.mxu0 %v25268_v16  ;;  %4768 = vmatpush1.msra.mxu1 %v25226_v19  ;;  %v338_v19 = vld [vmem:[%s23845_s2 + $0x988] sm:$0xff]  ;;  %v25289_v16 = vand.u32 4294901760, %v17756_v42  ;;  %v253_v42 = vld [vmem:[%s23845_s2 + $0x6e0] sm:$0xff] }
 0x21f   :  { %4641 = vmatprep.subr.mxu0 %v25269_v61  ;;  %4770 = vmatprep.subr.mxu1 %v25228_v50  ;;  %v25276_v50 = vand.u32 4294901760, %v25238_v20  ;;  %v18013_v20 = vand.u32 4294901760, %v338_v19  ;;  %v18025_v36 = vsub.f32 %v359_v49, %v17992_v45  ;;  %v18068_v49 = vsub.f32 %v337_v54, %v18030_v51 }
 0x220   :  { %4645 = vmatpush1.msra.mxu0 %v25270_v55  ;;  %4772 = vmatpush1.msra.mxu1 %v25230_v2  ;;  %v25278_v2 = vand.u32 4294901760, %v17663_v18  ;;  %v316_v18 = vld [vmem:[%s23845_s2 + $0x8d8] sm:$0xff]  ;;  %v25290_v55 = vand.u32 4294901760, %v17720_v15  ;;  %v18083_v15 = vand.u32 4294901760, %v275_v59 }
 0x221   :  { %4649 = vmatprep.subr.mxu0 %v25271_v39  ;;  %4774 = vmatprep.subr.mxu1 %v25232_v58  ;;  %v18003_v58 = vand.u32 4294901760, %v358_v53  ;;  %v18038_v30 = vand.u32 4294901760, %v316_v18  ;;  %v24208_v61 = vand.u32 4294901760, %v18025_v36  ;;  %v18070_v39 = vand.u32 4294901760, %v296_v57 }
 0x222   :  { %4653 = vmatpush1.msra.mxu0 %v25272_v23  ;;  %4776 = vmatpush1.msra.mxu1 %v25235_v33  ;;  %v25279_v33 = vld [vmem:[#allocation25_spill] sm:$0xff]  ;;  %25295 = vst [vmem:[#allocation19_spill] sm:$0xff] %v18083_v15 }
 0x223   :  { %4657 = vmatprep.subr.mxu0 %v25274_v10  ;;  %4778 = vmatprep.subr.mxu1 %v25275_v40  ;;  %v18036_v7 = vsub.f32 %v358_v53, %v18003_v58  ;;  %25286 = vst [vmem:[#allocation14_spill] sm:$0xff] %v18038_v30  ;;  %25291 = vst [vmem:[#allocation17_spill] sm:$0xff] %v18070_v39  ;;  %v25293_v23 = vld [vmem:[#allocation53_spill] sm:$0xff]  ;;  %v25296_v40 = vld [vmem:[#allocation54_spill] sm:$0xff]  ;;  %v18104_v54 = vsub.f32 %v18025_v36, %v24208_v61 }
 0x224   :  { %4661 = vmatpush1.msra.mxu0 %v25276_v50  ;;  %4780 = vmatpush1.msra.mxu1 %v25277_v26  ;;  %v3071_v12 = vpop.f32.mrf.mxu1  ;;  %v25294_v53 = vand.u32 4294901760, %v25293_v23  ;;  %v25297_v50 = vand.u32 4294901760, %v25296_v40  ;;  %v25308_v23 = vld [vmem:[#allocation26_spill] sm:$0xff] }
 0x225   :  { %4665 = vmatprep.subr.mxu0 %v25278_v2  ;;  %4782 = vmatprep.subr.mxu1 %v25279_v33  ;;  %v18011_v47 = vadd.f32 %v3071_v12, %v2965_v24  ;;  %v18055_v24 = vsub.f32 %v338_v19, %v18013_v20  ;;  %v24206_v10 = vand.u32 4294901760, %v18036_v7  ;;  %v254_v19 = vld [vmem:[%s23845_s2 + $0x6e8] sm:$0xff]  ;;  %v18096_v2 = vsub.f32 %v317_v32, %v18049_v60  ;;  %v25301_v33 = vld [vmem:[#allocation47_spill] sm:$0xff]  ;;  %v232_v32 = vld [vmem:[%s23845_s2 + $0x638] sm:$0xff] }
 0x226   :  { %4669 = vmatpush1.msra.mxu0 %v25280_v9  ;;  %4784 = vmatpush1.msra.mxu1 %v25241_v34  ;;  %v25284_v34 = vld [vmem:[#allocation49_spill] sm:$0xff]  ;;  %v25299_v12 = vand.u32 4294901760, %v17792_v37  ;;  %v25302_v9 = vand.u32 4294901760, %v17796_v31  ;;  %v233_v37 = vld [vmem:[%s23845_s2 + $0x640] sm:$0xff]  ;;  %v25304_v31 = vld [vmem:[#allocation48_spill] sm:$0xff]  ;;  %v18161_v40 = vand.u32 4294901760, %v232_v32 }
 0x227   :  { %25281 = vst [vmem:[#allocation41_spill] sm:$0xff] %v18011_v47  ;;  %4673 = vmatprep.subr.mxu0 %v25282_v28  ;;  %4786 = vmatprep.subr.mxu1 %v25242_v11  ;;  %v25285_v62 = vand.u32 4294901760, %v25284_v34  ;;  %v25287_v11 = vld [vmem:[#allocation35_spill] sm:$0xff]  ;;  %v24205_v26 = vand.u32 4294901760, %v18055_v24  ;;  %v18114_v28 = vand.u32 4294901760, %v254_v19  ;;  %v25305_v34 = vand.u32 4294901760, %v17808_v41 }
 0x228   :  { %4677 = vmatpush1.msra.mxu0 %v25283_v1  ;;  %4788 = vmatpush1.msra.mxu1 %v25243_v8  ;;  %v25288_v8 = vand.u32 4294901760, %v25287_v11  ;;  %v18124_v1 = vsub.f32 %v296_v57, %v18070_v39  ;;  %v18136_v11 = vsub.f32 %v275_v59, %v18083_v15  ;;  %v212_v59 = vld [vmem:[%s23845_s2 + $0x598] sm:$0xff]  ;;  %25310 = vst [vmem:[#allocation9_spill] sm:$0xff] %v18161_v40  ;;  %v25323_v44 = vand.u32 4294901760, %v18104_v54 }
 0x229   :  { %4681 = vmatprep.subr.mxu0 %v25285_v62  ;;  %4790 = vmatprep.subr.mxu1 %v25244_v29  ;;  %v274_v29 = vld [vmem:[%s23845_s2 + $0x788] sm:$0xff]  ;;  %25303 = vst [vmem:[#allocation44_spill] sm:$0xff] %v18114_v28  ;;  %v18132_v62 = vsub.f32 %v18036_v7, %v24206_v10  ;;  %v18147_v41 = vsub.f32 %v18055_v24, %v24205_v26 }
 0x22a   :  { %4685 = vmatpush1.msra.mxu0 %v25288_v8  ;;  %4792 = vmatpush1.msra.mxu1 %v25245_v43  ;;  %v18072_v43 = vand.u32 4294901760, %v295_v27  ;;  %v25306_v8 = vld [vmem:[#allocation55_spill] sm:$0xff] }
 0x22b   :  { %4689 = vmatprep.subr.mxu0 %v25289_v16  ;;  %4794 = vmatprep.subr.mxu1 %v25246_v5  ;;  %v18081_v5 = vsub.f32 %v316_v18, %v18038_v30  ;;  %v25307_v57 = vand.u32 4294901760, %v25306_v8  ;;  %v18189_v8 = vand.u32 4294901760, %v212_v59 }
 0x22c   :  { %4693 = vmatpush1.msra.mxu0 %v25290_v55  ;;  %25292 = vst [vmem:[#allocation7_spill] sm:$0xff] %v18072_v43  ;;  %4796 = vmatpush1.msra.mxu1 %v25247_v17  ;;  %v18092_v17 = vand.u32 4294901760, %v274_v29  ;;  %v18112_v18 = vsub.f32 %v295_v27, %v18072_v43  ;;  %v24207_v55 = vand.u32 4294901760, %v18096_v2 }
 0x22d   :  { %4697 = vmatprep.subr.mxu0 %v25294_v53  ;;  %4798 = vmatprep.subr.mxu1 %v17593_v0  ;;  %v18106_v0 = vand.u32 4294901760, %v253_v42  ;;  %v24204_v27 = vand.u32 4294901760, %v18081_v5  ;;  %v18159_v53 = vand.u32 4294901760, %v233_v37  ;;  %25312 = vst [vmem:[#allocation10_spill] sm:$0xff] %v18189_v8 }
 0x22e   :  { %4701 = vmatpush1.msra.mxu0 %v25297_v50  ;;  %25298 = vst [vmem:[#allocation23_spill] sm:$0xff] %v18092_v17  ;;  %4800 = vmatpush1.msra.mxu1 %v25248_v13  ;;  %v24203_v13 = vand.u32 4294901760, %v18068_v49  ;;  %v18142_v16 = vsub.f32 %v274_v29, %v18092_v17  ;;  %v211_v50 = vld [vmem:[%s23845_s2 + $0x590] sm:$0xff] }
 0x22f   :  { %4705 = vmatprep.subr.mxu0 %v25299_v12  ;;  %25300 = vst [vmem:[#allocation16_spill] sm:$0xff] %v18106_v0  ;;  %4802 = vmatprep.subr.mxu1 %v25301_v33  ;;  %v18157_v29 = vsub.f32 %v253_v42, %v18106_v0  ;;  %25309 = vst [vmem:[#allocation8_spill] sm:$0xff] %v18159_v53  ;;  %v25311_v12 = vld [vmem:[#allocation28_spill] sm:$0xff]  ;;  %v24210_v42 = vand.u32 4294901760, %v18124_v1  ;;  %v24209_v33 = vand.u32 4294901760, %v18112_v18 }
 0x230   :  { %4709 = vmatpush1.msra.mxu0 %v25302_v9  ;;  %4804 = vmatpush1.msra.mxu1 %v25304_v31  ;;  %v190_v9 = vld [vmem:[%s23845_s2 + $0x4e8] sm:$0xff]  ;;  %v18179_v31 = vsub.f32 %v254_v19, %v18114_v28  ;;  %v24212_v26 = vand.u32 4294901760, %v18142_v16  ;;  %v18218_v19 = vsub.f32 %v233_v37, %v18159_v53 }
 0x231   :  { %4743 = vmatprep.subr.mxu0 %v25305_v34  ;;  %4806 = vmatprep.subr.mxu1 %v17674_v21  ;;  %v18187_v34 = vsub.f32 %v18081_v5, %v24204_v27  ;;  %v191_v27 = vld [vmem:[%s23845_s2 + $0x4f0] sm:$0xff]  ;;  %v18211_v10 = vand.u32 4294901760, %v190_v9  ;;  %v24213_v61 = vand.u32 4294901760, %v18157_v29 }
 0x232   :  { %4747 = vmatpush2.msra.mxu0 %v25307_v57  ;;  %4749 = vmatprep.mubr.f32.mxu0 %v25308_v23  ;;  %v24211_v57 = vand.u32 4294901760, %v18136_v11  ;;  %v18237_v37 = vand.u32 4294901760, %v191_v27  ;;  %v25327_v54 = vand.u32 4294901760, %v18218_v19 }
 0x233   :  { %4808 = vmatpush1.msra.mxu1 %v17657_v6  ;;  %4751 = vmatmul.mubr.f32.vlgmr.msra.gmra.mxu0 %v25311_v12  ;;  %v18171_v6 = vsub.f32 %v18068_v49, %v24203_v13  ;;  %v18200_v13 = vand.u32 4294901760, %v211_v50  ;;  %25314 = vst [vmem:[#allocation21_spill] sm:$0xff] %v18211_v10 }
 0x234   :  { %4810 = vmatprep.subr.mxu1 %v17696_v22  ;;  %4865 = vmatprep.subr.mxu0 %v17992_v45  ;;  %v18231_v22 = vsub.f32 %v18112_v18, %v24209_v33  ;;  %25315 = vst [vmem:[#allocation36_spill] sm:$0xff] %v18237_v37  ;;  %v170_v33 = vld [vmem:[%s23845_s2 + $0x448] sm:$0xff] }
 0x235   :  { %4812 = vmatpush1.msra.mxu1 %v17676_v52  ;;  %4867 = vmatpush1.msra.mxu0 %v18003_v58  ;;  %v18198_v52 = vsub.f32 %v18096_v2, %v24207_v55  ;;  %25313 = vst [vmem:[#allocation24_spill] sm:$0xff] %v18200_v13  ;;  %v169_v55 = vld [vmem:[%s23845_s2 + $0x440] sm:$0xff]  ;;  %v18285_v14 = vand.u32 4294901760, %v170_v33 }
 0x236   :  { %4814 = vmatprep.subr.mxu1 %v17722_v4  ;;  %4869 = vmatprep.subr.mxu0 %v18013_v20  ;;  %v18209_v4 = vsub.f32 %v232_v32, %v18161_v40  ;;  %v18226_v32 = vsub.f32 %v18124_v1, %v24210_v42  ;;  %v18248_v42 = vsub.f32 %v212_v59, %v18189_v8  ;;  %v18261_v21 = vand.u32 4294901760, %v169_v55  ;;  %v149_v59 = vld [vmem:[%s23845_s2 + $0x3a0] sm:$0xff] }
 0x237   :  { %4816 = vmatpush1.msra.mxu1 %v17739_v38  ;;  %4871 = vmatpush1.msra.mxu0 %v18030_v51  ;;  %v5001_v38 = vand.u32 4294901760, %v18171_v6  ;;  %v18242_v6 = vsub.f32 %v18136_v11, %v24211_v57  ;;  %v18259_v57 = vsub.f32 %v18142_v16, %v24212_v26  ;;  %v148_v26 = vld [vmem:[%s23845_s2 + $0x398] sm:$0xff]  ;;  %25320 = vst [vmem:[#allocation25_spill] sm:$0xff] %v18285_v14  ;;  %v18295_v47 = vand.u32 4294901760, %v149_v59 }
 0x238   :  { %4818 = vmatprep.subr.mxu1 %v17749_v25  ;;  %4873 = vmatprep.subr.mxu0 %v18049_v60  ;;  %25316 = vst [vmem:[#allocation40_spill] sm:$0xff] %v18248_v42  ;;  %v18254_v25 = vsub.f32 %v211_v50, %v18200_v13  ;;  %25318 = vst [vmem:[#allocation27_spill] sm:$0xff] %v18261_v21  ;;  %v18274_v50 = vsub.f32 %v18157_v29, %v24213_v61  ;;  %v25321_v61 = vand.u32 4294901760, %v18179_v31 }
 0x239   :  { %4820 = vmatpush1.msra.mxu1 %v17764_v46  ;;  %4875 = vmatpush1.msra.mxu0 %v18038_v30  ;;  %v5007_v46 = vand.u32 4294901760, %v18198_v52  ;;  %v5031_v56 = vand.u32 4294901760, %v18242_v6  ;;  %v5037_v6 = vand.u32 4294901760, %v18259_v57  ;;  %v18312_v63 = vsub.f32 %v169_v55, %v18261_v21 }
 0x23a   :  { %4852 = vmatprep.subr.mxu1 %v17770_v35  ;;  %25317 = vst [vmem:[#allocation42_spill] sm:$0xff] %v18254_v25  ;;  %4877 = vmatprep.subr.mxu0 %v18070_v39  ;;  %v18269_v35 = vsub.f32 %v190_v9, %v18211_v10  ;;  %v5025_v9 = vand.u32 4294901760, %v18231_v22  ;;  %v18290_v52 = vsub.f32 %v18179_v31, %v25321_v61  ;;  %v25328_v57 = vand.u32 4294901760, %v18209_v4 }
 0x23b   :  { %4854 = vmatpush2.msra.mxu1 %v17783_v3  ;;  %4856 = vmatprep.mubr.f32.mxu1 %v25308_v23  ;;  %v5019_v3 = vand.u32 4294901760, %v18226_v32  ;;  %v128_v32 = vld [vmem:[%s23845_s2 + $0x2f8] sm:$0xff]  ;;  %v18305_v61 = vsub.f32 %v191_v27, %v18237_v37  ;;  %25324 = vst [vmem:[#allocation35_spill] sm:$0xff] %v18312_v63  ;;  %v25326_v27 = vand.u32 4294901760, %v18132_v62  ;;  %v18327_v55 = vsub.f32 %v18218_v19, %v25327_v54 }
 0x23c   :  { %25319 = vst [vmem:[#allocation18_spill] sm:$0xff] %v18269_v35  ;;  %4879 = vmatpush1.msra.mxu0 %v18072_v43  ;;  %4858 = vmatmul.mubr.f32.vlgmr.msra.gmra.mxu1 %v25311_v12  ;;  %v106_v43 = vld [vmem:[%s23845_s2 + $0x248] sm:$0xff]  ;;  %v18332_v22 = vsub.f32 %v18209_v4, %v25328_v57  ;;  %v5043_v54 = vand.u32 4294901760, %v18290_v52  ;;  %v18347_v57 = vand.u32 4294901760, %v127_v48  ;;  %v18350_v39 = vsub.f32 %v170_v33, %v18285_v14 }
 0x23d   :  { %4881 = vmatprep.subr.mxu0 %v18083_v15  ;;  %25322 = vst [vmem:[#allocation49_spill] sm:$0xff] %v18305_v61  ;;  %4984 = vmatprep.subr.mxu1 %v25323_v44  ;;  %v18314_v15 = vand.u32 4294901760, %v148_v26  ;;  %v25329_v44 = vand.u32 4294901760, %v18147_v41  ;;  %v25333_v62 = vand.u32 4294901760, %v18248_v42  ;;  %v86_v52 = vld [vmem:[%s23845_s2 + $0x1a8] sm:$0xff] }
 0x23e   :  { %4883 = vmatpush1.msra.mxu0 %v18092_v17  ;;  %4990 = vmatpush1.msra.mxu1 %v25326_v27  ;;  %v107_v17 = vld [vmem:[%s23845_s2 + $0x250] sm:$0xff]  ;;  %v85_v27 = vld [vmem:[%s23845_s2 + $0x1a0] sm:$0xff]  ;;  %25331 = vst [vmem:[#allocation47_spill] sm:$0xff] %v18347_v57  ;;  %25332 = vst [vmem:[#allocation48_spill] sm:$0xff] %v18350_v39 }
 0x23f   :  { %25325 = vst [vmem:[#allocation53_spill] sm:$0xff] %v18314_v15  ;;  %4885 = vmatprep.subr.mxu0 %v18114_v28  ;;  %4996 = vmatprep.subr.mxu1 %v25329_v44  ;;  %v18345_v28 = vand.u32 4294901760, %v128_v32  ;;  %v18356_v30 = vsub.f32 %v18248_v42, %v25333_v62  ;;  %v18359_v44 = vand.u32 4294901760, %v106_v43  ;;  %v18369_v33 = vsub.f32 %v148_v26, %v18314_v15 }
 0x240   :  { %4887 = vmatpush1.msra.mxu0 %v18106_v0  ;;  %5002 = vmatpush1.msra.mxu1 %v5001_v38  ;;  %v18365_v0 = vsub.f32 %v149_v59, %v18295_v47  ;;  %v25334_v38 = vand.u32 4294901760, %v18254_v25  ;;  %v18376_v41 = vand.u32 4294901760, %v107_v17  ;;  %v25335_v42 = vand.u32 4294901760, %v18187_v34 }
 0x241   :  { %25330 = vst [vmem:[#allocation54_spill] sm:$0xff] %v18345_v28  ;;  %4889 = vmatprep.subr.mxu0 %v18159_v53  ;;  %5008 = vmatprep.subr.mxu1 %v5007_v46  ;;  %v18378_v53 = vand.u32 4294901760, %v85_v27  ;;  %v5055_v46 = vand.u32 4294901760, %v18327_v55  ;;  %v5061_v59 = vand.u32 4294901760, %v18332_v22  ;;  %v25336_v26 = vand.u32 4294901760, %v18269_v35  ;;  %v64_v55 = vld [vmem:[%s23845_s2 + $0xf8] sm:$0xff]  ;;  %v18432_v22 = vpop.f32.mrf.mxu0 }
 0x242   :  { %4891 = vmatpush1.msra.mxu0 %v18161_v40  ;;  %v18374_v62 = vsub.f32 %v18254_v25, %v25334_v38  ;;  %5014 = vmatpush1.msra.mxu1 %v25335_v42  ;;  %v65_v25 = vld [vmem:[%s23845_s2 + $0x100] sm:$0xff]  ;;  %v18396_v42 = vsub.f32 %v127_v48, %v18347_v57  ;;  %v18398_v34 = vand.u32 4294901760, %v86_v52  ;;  %v25337_v38 = vand.u32 4294901760, %v18305_v61  ;;  %25340 = vst [vmem:[#allocation58_spill] sm:$0xff] %v18432_v22 }
 0x243   :  { %4893 = vmatprep.subr.mxu0 %v18189_v8  ;;  %v18388_v40 = vsub.f32 %v18269_v35, %v25336_v26  ;;  %5020 = vmatprep.subr.mxu1 %v5019_v3  ;;  %v18405_v26 = vsub.f32 %v128_v32, %v18345_v28  ;;  %v5067_v3 = vand.u32 4294901760, %v18356_v30  ;;  %v44_v8 = vld [vmem:[%s23845_s2 + $0x58] sm:$0xff]  ;;  %v18422_v30 = vsub.f32 %v85_v27, %v18378_v53 }
 0x244   :  { %4895 = vmatpush1.msra.mxu0 %v18200_v13  ;;  %5026 = vmatpush1.msra.mxu1 %v5025_v9  ;;  %v5078_v48 = vsub.f32 %v18305_v61, %v25337_v38  ;;  %v18413_v13 = vsub.f32 %v106_v43, %v18359_v44  ;;  %v5073_v9 = vand.u32 4294901760, %v18374_v62  ;;  %v18424_v32 = vand.u32 4294901760, %v65_v25  ;;  %v43_v43 = vld [vmem:[%s23845_s2 + $0x50] sm:$0xff] }
 0x245   :  { %4897 = vmatprep.subr.mxu0 %v18237_v37  ;;  %5032 = vmatprep.subr.mxu1 %v5031_v56  ;;  %v18430_v38 = vsub.f32 %v107_v17, %v18376_v41  ;;  %v18434_v37 = vpop.f32.mrf.mxu1  ;;  %v5085_v56 = vand.u32 4294901760, %v18388_v40  ;;  %v25342_v27 = vand.u32 4294901760, %v18312_v63  ;;  %v380_v17 = vld [vmem:[%s23845_s2 + $0xad8] sm:$0xff]  ;;  %v18451_v40 = vand.u32 4294901760, %v44_v8 }
 0x246   :  { %25338 = vst [vmem:[#allocation55_spill] sm:$0xff] %v18413_v13  ;;  %4899 = vmatpush1.msra.mxu0 %v18211_v10  ;;  %25341 = vst [vmem:[#allocation59_spill] sm:$0xff] %v18434_v37  ;;  %5038 = vmatpush1.msra.mxu1 %v5037_v6  ;;  %v18441_v10 = vand.u32 4294901760, %v64_v55  ;;  %v25343_v6 = vand.u32 4294901760, %v18350_v39  ;;  %v18458_v35 = vsub.f32 %v86_v52, %v18398_v34  ;;  %v18466_v22 = vand.u32 4294901760, %v43_v43 }
 0x247   :  { %25339 = vst [vmem:[#allocation57_spill] sm:$0xff] %v18430_v38  ;;  %4901 = vmatprep.subr.mxu0 %v18285_v14  ;;  %v5096_v62 = vsub.f32 %v18312_v63, %v25342_v27  ;;  %5044 = vmatprep.subr.mxu1 %v5043_v54  ;;  %v379_v27 = vld [vmem:[%s23845_s2 + $0xad0] sm:$0xff]  ;;  %v25344_v14 = vand.u32 4294901760, %v18274_v50  ;;  %v5079_v54 = vand.u32 4294901760, %v5078_v48  ;;  %v18472_v50 = vand.u32 4294901760, %v380_v17 }
 0x248   :  { %4903 = vmatpush1.msra.mxu0 %v18261_v21  ;;  %v5090_v37 = vsub.f32 %v18350_v39, %v25343_v6  ;;  %v3186_v21 = vpop.f32.mrf.mxu0  ;;  %v25345_v6 = vand.u32 4294901760, %v18365_v0  ;;  %v3429_v39 = vpop.f32.mrf.mxu1  ;;  %v18476_v48 = vsub.f32 %v65_v25, %v18424_v32  ;;  %v25348_v61 = vand.u32 4294901760, %v18369_v33  ;;  %5214 = vmatprep.mubr.f32.mxu1 %v25308_v23  ;;  %v25380_v23 = vld [vmem:[#allocation9_spill] sm:$0xff] }
 0x249   :  { %5050 = vmatpush1.msra.mxu1 %v25344_v14  ;;  %4905 = vmatprep.subr.mxu0 %v18295_v47  ;;  %v18470_v52 = vadd.f32 %v3429_v39, %v3186_v21  ;;  %v25349_v25 = vand.u32 4294901760, %v18405_v26  ;;  %v25361_v39 = vld [vmem:[#allocation37_spill] sm:$0xff] }
 0x24a   :  { %v5102_v63 = vsub.f32 %v18365_v0, %v25345_v6  ;;  %5056 = vmatprep.subr.mxu1 %v5055_v46  ;;  %4907 = vmatpush1.msra.mxu0 %v18314_v15  ;;  %25346 = vst [vmem:[#allocation60_spill] sm:$0xff] %v18476_v48  ;;  %v18480_v6 = vsub.f32 %v64_v55, %v18441_v10  ;;  %v18485_v15 = vand.u32 4294901760, %v379_v27  ;;  %v5091_v21 = vand.u32 4294901760, %v5090_v37 }
 0x24b   :  { %5062 = vmatpush1.msra.mxu1 %v5061_v59  ;;  %4909 = vmatprep.subr.mxu0 %v18345_v28  ;;  %v5108_v46 = vsub.f32 %v18369_v33, %v25348_v61  ;;  %v5114_v59 = vsub.f32 %v18405_v26, %v25349_v25  ;;  %v18494_v55 = vsub.f32 %v44_v8, %v18451_v40  ;;  %v5097_v61 = vand.u32 4294901760, %v5096_v62 }
 0x24c   :  { %25347 = vst [vmem:[#allocation61_spill] sm:$0xff] %v18480_v6  ;;  %5068 = vmatprep.subr.mxu1 %v5067_v3  ;;  %4911 = vmatpush1.msra.mxu0 %v18347_v57  ;;  %v18498_v28 = vsub.f32 %v43_v43, %v18466_v22  ;;  %v25350_v3 = vand.u32 4294901760, %v18396_v42  ;;  %v5103_v25 = vand.u32 4294901760, %v5102_v63  ;;  %v25351_v8 = vand.u32 4294901760, %v18430_v38 }
 0x24d   :  { %5074 = vmatpush1.msra.mxu1 %v5073_v9  ;;  %4913 = vmatprep.subr.mxu0 %v18376_v41  ;;  %v18510_v62 = vsub.f32 %v380_v17, %v18472_v50  ;;  %v5109_v43 = vand.u32 4294901760, %v5108_v46  ;;  %v25354_v17 = vand.u32 4294901760, %v18458_v35  ;;  %v25355_v46 = vand.u32 4294901760, %v18422_v30 }
 0x24e   :  { %v5120_v37 = vsub.f32 %v18396_v42, %v25350_v3  ;;  %5080 = vmatprep.subr.mxu1 %v5079_v54  ;;  %4915 = vmatpush1.msra.mxu0 %v18359_v44  ;;  %v5126_v9 = vsub.f32 %v18430_v38, %v25351_v8  ;;  %v18514_v3 = vsub.f32 %v379_v27, %v18485_v15  ;;  %v25353_v54 = vand.u32 4294901760, %v18413_v13 }
 0x24f   :  { %5086 = vmatpush1.msra.mxu1 %v5085_v56  ;;  %4917 = vmatprep.subr.mxu0 %v18398_v34  ;;  %v5115_v8 = vand.u32 4294901760, %v5114_v59  ;;  %v5138_v56 = vsub.f32 %v18458_v35, %v25354_v17  ;;  %v25356_v59 = vand.u32 4294901760, %v18476_v48 }
 0x250   :  { %25352 = vst [vmem:[#allocation62_spill] sm:$0xff] %v18514_v3  ;;  %v5132_v63 = vsub.f32 %v18413_v13, %v25353_v54  ;;  %5092 = vmatprep.subr.mxu1 %v5091_v21  ;;  %4919 = vmatpush1.msra.mxu0 %v18378_v53  ;;  %v5121_v27 = vand.u32 4294901760, %v5120_v37  ;;  %v5144_v54 = vsub.f32 %v18422_v30, %v25355_v46  ;;  %v5127_v21 = vand.u32 4294901760, %v5126_v9 }
 0x251   :  { %5098 = vmatpush1.msra.mxu1 %v5097_v61  ;;  %4921 = vmatprep.subr.mxu0 %v18424_v32  ;;  %v5150_v17 = vsub.f32 %v18476_v48, %v25356_v59  ;;  %v25357_v37 = vand.u32 4294901760, %v18480_v6  ;;  %v25358_v9 = vand.u32 4294901760, %v18494_v55 }
 0x252   :  { %5104 = vmatprep.subr.mxu1 %v5103_v25  ;;  %4923 = vmatpush1.msra.mxu0 %v18441_v10  ;;  %v5133_v61 = vand.u32 4294901760, %v5132_v63  ;;  %v5139_v25 = vand.u32 4294901760, %v5138_v56  ;;  %v25359_v63 = vand.u32 4294901760, %v18498_v28 }
 0x253   :  { %5110 = vmatpush1.msra.mxu1 %v5109_v43  ;;  %4925 = vmatprep.subr.mxu0 %v18451_v40  ;;  %v5156_v46 = vsub.f32 %v18480_v6, %v25357_v37  ;;  %v5162_v59 = vsub.f32 %v18494_v55, %v25358_v9  ;;  %v5145_v43 = vand.u32 4294901760, %v5144_v54  ;;  %v5151_v37 = vand.u32 4294901760, %v5150_v17 }
 0x254   :  { %5116 = vmatprep.subr.mxu1 %v5115_v8  ;;  %4927 = vmatpush1.msra.mxu0 %v18466_v22  ;;  %v5168_v14 = vsub.f32 %v18498_v28, %v25359_v63  ;;  %v25360_v8 = vand.u32 4294901760, %v18510_v62 }
 0x255   :  { %5122 = vmatpush1.msra.mxu1 %v5121_v27  ;;  %4959 = vmatprep.subr.mxu0 %v18472_v50  ;;  %v5157_v9 = vand.u32 4294901760, %v5156_v46  ;;  %v25362_v27 = vand.u32 4294901760, %v18514_v3  ;;  %v5163_v63 = vand.u32 4294901760, %v5162_v59  ;;  %v25365_v59 = vld [vmem:[#allocation14_spill] sm:$0xff] }
 0x256   :  { %5128 = vmatprep.subr.mxu1 %v5127_v21  ;;  %4961 = vmatpush2.msra.mxu0 %v18485_v15  ;;  %v5204_v56 = vsub.f32 %v18510_v62, %v25360_v8  ;;  %v25363_v21 = vld [vmem:[#allocation38_spill] sm:$0xff]  ;;  %v5169_v17 = vand.u32 4294901760, %v5168_v14  ;;  %v18568_v14 = vpop.f32.mrf.mxu0 }
 0x257   :  { %5134 = vmatpush1.msra.mxu1 %v5133_v61  ;;  %4967 = vmatprep.mubr.f32.mxu0 %v25361_v39  ;;  %v5210_v54 = vsub.f32 %v18514_v3, %v25362_v27  ;;  %25364 = vst [vmem:[#allocation63_spill] sm:$0xff] %v18568_v14  ;;  %v25370_v27 = vld [vmem:[#allocation49_spill] sm:$0xff]  ;;  %v25378_v14 = vld [vmem:[#allocation16_spill] sm:$0xff] }
 0x258   :  { %5140 = vmatprep.subr.mxu1 %v5139_v25  ;;  %5224 = vmatprep.subr.mxu0 %v18025_v36  ;;  %v5205_v8 = vand.u32 4294901760, %v5204_v56  ;;  %v25368_v56 = vld [vmem:[#allocation42_spill] sm:$0xff]  ;;  %v25379_v39 = vld [vmem:[#allocation8_spill] sm:$0xff] }
 0x259   :  { %4973 = vmatmul.mubr.f32.vlgmr.msra.gmra.mxu0 %v25363_v21  ;;  %5146 = vmatpush1.msra.mxu1 %v5145_v43  ;;  %v5211_v61 = vand.u32 4294901760, %v5210_v54  ;;  %v25366_v43 = vld [vmem:[#allocation40_spill] sm:$0xff]  ;;  %v25371_v54 = vld [vmem:[#allocation19_spill] sm:$0xff] }
 0x25a   :  { %5227 = vmatpush1.msra.mxu0 %v18036_v7  ;;  %5152 = vmatprep.subr.mxu1 %v5151_v37  ;;  %v25367_v37 = vld [vmem:[#allocation17_spill] sm:$0xff] }
 0x25b   :  { %5230 = vmatprep.subr.mxu0 %v18055_v24  ;;  %5158 = vmatpush1.msra.mxu1 %v5157_v9  ;;  %v25369_v9 = vld [vmem:[#allocation7_spill] sm:$0xff] }
 0x25c   :  { %5233 = vmatpush1.msra.mxu0 %v18068_v49  ;;  %5164 = vmatprep.subr.mxu1 %v5163_v63  ;;  %v25372_v63 = vld [vmem:[#allocation18_spill] sm:$0xff] }
 0x25d   :  { %5236 = vmatprep.subr.mxu0 %v18096_v2  ;;  %5170 = vmatpush1.msra.mxu1 %v5169_v17  ;;  %v25374_v17 = vld [vmem:[#allocation23_spill] sm:$0xff] }
 0x25e   :  { %5239 = vmatpush1.msra.mxu0 %v18081_v5  ;;  %5206 = vmatprep.subr.mxu1 %v5205_v8  ;;  %v25375_v8 = vld [vmem:[#allocation48_spill] sm:$0xff] }
 0x25f   :  { %5242 = vmatprep.subr.mxu0 %v18124_v1  ;;  %5212 = vmatpush2.msra.mxu1 %v5211_v61  ;;  %v25376_v61 = vld [vmem:[#allocation44_spill] sm:$0xff] }
 0x260   :  { %5245 = vmatpush1.msra.mxu0 %v18112_v18  ;;  %5216 = vmatmul.mubr.f32.vlgmr.msra.gmra.mxu1 %v25311_v12 }
 0x261   :  { %5248 = vmatprep.subr.mxu0 %v18136_v11  ;;  %5366 = vmatprep.subr.mxu1 %v17992_v45 }
 0x262   :  { %5251 = vmatpush1.msra.mxu0 %v18142_v16  ;;  %5368 = vmatpush1.msra.mxu1 %v18003_v58 }
 0x263   :  { %5254 = vmatprep.subr.mxu0 %v18179_v31  ;;  %5370 = vmatprep.subr.mxu1 %v18013_v20  ;;  %v3572_v46 = vpop.f32.mrf.mxu0 }
 0x264   :  { %5257 = vmatpush1.msra.mxu0 %v18157_v29  ;;  %5372 = vmatpush1.msra.mxu1 %v18030_v51  ;;  %v3573_v25 = vadd.f32 %v3572_v46, %v18470_v52  ;;  %v18589_v52 = vpop.f32.mrf.mxu1  ;;  %v25377_v46 = vld [vmem:[#allocation35_spill] sm:$0xff] }
 0x265   :  { %5260 = vmatprep.subr.mxu0 %v18218_v19  ;;  %5374 = vmatprep.subr.mxu1 %v18049_v60  ;;  %25373 = vst [vmem:[#allocation14_spill] sm:$0xff] %v18589_v52  ;;  %v25381_v52 = vld [vmem:[#allocation10_spill] sm:$0xff] }
 0x266   :  { %5263 = vmatpush1.msra.mxu0 %v18209_v4  ;;  %5376 = vmatpush1.msra.mxu1 %v25365_v59 }
 0x267   :  { %5266 = vmatprep.subr.mxu0 %v25366_v43  ;;  %5378 = vmatprep.subr.mxu1 %v25367_v37 }
 0x268   :  { %5269 = vmatpush1.msra.mxu0 %v25368_v56  ;;  %5380 = vmatpush1.msra.mxu1 %v25369_v9 }
 0x269   :  { %5272 = vmatprep.subr.mxu0 %v25370_v27  ;;  %5382 = vmatprep.subr.mxu1 %v25371_v54 }
 0x26a   :  { %5275 = vmatpush1.msra.mxu0 %v25372_v63  ;;  %5384 = vmatpush1.msra.mxu1 %v25374_v17 }
 0x26b   :  { %5278 = vmatprep.subr.mxu0 %v25375_v8  ;;  %5386 = vmatprep.subr.mxu1 %v25376_v61  ;;  %v25382_v61 = vld [vmem:[#allocation24_spill] sm:$0xff] }
 0x26c   :  { %5281 = vmatpush1.msra.mxu0 %v25377_v46  ;;  %5388 = vmatpush1.msra.mxu1 %v25378_v14  ;;  %v3683_v21 = vpop.f32.mrf.mxu1  ;;  %v25383_v14 = vld [vmem:[#allocation36_spill] sm:$0xff] }
 0x26d   :  { %5284 = vmatprep.subr.mxu0 %v18365_v0  ;;  %5390 = vmatprep.subr.mxu1 %v25379_v39  ;;  %v3684_v12 = vadd.f32 %v3683_v21, %v3573_v25  ;;  %v25384_v39 = vld [vmem:[#allocation21_spill] sm:$0xff]  ;;  %v25386_v25 = vld [vmem:[#allocation27_spill] sm:$0xff] }
 0x26e   :  { %5287 = vmatpush1.msra.mxu0 %v18369_v33  ;;  %5392 = vmatpush1.msra.mxu1 %v25380_v23  ;;  %v25385_v21 = vld [vmem:[#allocation25_spill] sm:$0xff] }
 0x26f   :  { %5290 = vmatprep.subr.mxu0 %v18405_v26  ;;  %5394 = vmatprep.subr.mxu1 %v25381_v52 }
 0x270   :  { %5293 = vmatpush1.msra.mxu0 %v18396_v42  ;;  %5396 = vmatpush1.msra.mxu1 %v25382_v61 }
 0x271   :  { %5296 = vmatprep.subr.mxu0 %v18430_v38  ;;  %5398 = vmatprep.subr.mxu1 %v25383_v14  ;;  %v25387_v38 = vld [vmem:[#allocation53_spill] sm:$0xff] }
 0x272   :  { %5299 = vmatpush1.msra.mxu0 %v18413_v13  ;;  %5400 = vmatpush1.msra.mxu1 %v25384_v39  ;;  %v25388_v13 = vld [vmem:[#allocation54_spill] sm:$0xff] }
 0x273   :  { %5302 = vmatprep.subr.mxu0 %v18458_v35  ;;  %5402 = vmatprep.subr.mxu1 %v25385_v21 }
 0x274   :  { %5305 = vmatpush1.msra.mxu0 %v18422_v30  ;;  %5404 = vmatpush1.msra.mxu1 %v25386_v25 }
 0x275   :  { %5308 = vmatprep.subr.mxu0 %v18476_v48  ;;  %5406 = vmatprep.subr.mxu1 %v18295_v47  ;;  %v25389_v48 = vld [vmem:[#allocation30_spill] sm:$0xff] }
 0x276   :  { %5311 = vmatpush1.msra.mxu0 %v18480_v6  ;;  %5408 = vmatpush1.msra.mxu1 %v25387_v38  ;;  %v25390_v6 = vld [vmem:[#allocation31_spill] sm:$0xff] }
 0x277   :  { %5314 = vmatprep.subr.mxu0 %v18494_v55  ;;  %5410 = vmatprep.subr.mxu1 %v25388_v13  ;;  %v25391_v13 = vand.u32 4294901760, %v18025_v36  ;;  %v25395_v36 = vand.u32 4294901760, %v18096_v2  ;;  %v25401_v2 = vand.u32 4294901760, %v18136_v11  ;;  %v25406_v11 = vand.u32 4294901760, %v18218_v19 }
 0x278   :  { %5317 = vmatpush1.msra.mxu0 %v18498_v28  ;;  %5412 = vmatpush1.msra.mxu1 %v18347_v57  ;;  %v25392_v57 = vand.u32 4294901760, %v18036_v7  ;;  %v25396_v7 = vand.u32 4294901760, %v18081_v5  ;;  %v25403_v5 = vand.u32 4294901760, %v18142_v16  ;;  %v25407_v16 = vand.u32 4294901760, %v18209_v4 }
 0x279   :  { %5350 = vmatprep.subr.mxu0 %v18510_v62  ;;  %5414 = vmatprep.subr.mxu1 %v18376_v41  ;;  %v25413_v19 = vand.u32 4294901760, %v25375_v8  ;;  %v25419_v8 = vand.u32 4294901760, %v18369_v33 }
 0x27a   :  { %5353 = vmatpush2.msra.mxu0 %v18514_v3  ;;  %5356 = vmatprep.mubr.f32.mxu0 %v25389_v48  ;;  %v25393_v3 = vand.u32 4294901760, %v18055_v24  ;;  %v25394_v48 = vand.u32 4294901760, %v18068_v49  ;;  %v25397_v24 = vand.u32 4294901760, %v18124_v1  ;;  %v25399_v49 = vand.u32 4294901760, %v18112_v18 }
 0x27b   :  { %5416 = vmatpush1.msra.mxu1 %v18359_v44  ;;  %5359 = vmatmul.mubr.f32.vlgmr.msra.gmra.mxu0 %v25390_v6  ;;  %v25404_v1 = vand.u32 4294901760, %v18179_v31  ;;  %v25405_v18 = vand.u32 4294901760, %v18157_v29  ;;  %v25411_v29 = vand.u32 4294901760, %v25372_v63  ;;  %v18689_v31 = vpop.f32.mrf.mxu1  ;;  %v339_v63 = vld [vmem:[%s23845_s2 + $0x990] sm:$0xff] }
 0x27c   :  { %5418 = vmatprep.subr.mxu1 %v18398_v34  ;;  %5479 = vmatprep.subr.mxu0 %v25391_v13  ;;  %v25398_v13 = vld [vmem:[#allocation33_spill] sm:$0xff]  ;;  %25412 = vst [vmem:[#allocation17_spill] sm:$0xff] %v18689_v31 }
 0x27d   :  { %5420 = vmatpush1.msra.mxu1 %v18378_v53  ;;  %5483 = vmatpush1.msra.mxu0 %v25392_v57  ;;  %v25400_v57 = vld [vmem:[#allocation34_spill] sm:$0xff] }
 0x27e   :  { %5422 = vmatprep.subr.mxu1 %v18424_v32  ;;  %5487 = vmatprep.subr.mxu0 %v25393_v3 }
 0x27f   :  { %5424 = vmatpush1.msra.mxu1 %v18441_v10  ;;  %5491 = vmatpush1.msra.mxu0 %v25394_v48  ;;  %v18654_v48 = vpop.f32.mrf.mxu0 }
 0x280   :  { %5426 = vmatprep.subr.mxu1 %v18451_v40  ;;  %5495 = vmatprep.subr.mxu0 %v25395_v36  ;;  %25402 = vst [vmem:[#allocation40_spill] sm:$0xff] %v18654_v48 }
 0x281   :  { %5428 = vmatpush1.msra.mxu1 %v18466_v22  ;;  %5499 = vmatpush1.msra.mxu0 %v25396_v7  ;;  %v25421_v7 = vand.u32 4294901760, %v18405_v26 }
 0x282   :  { %5460 = vmatprep.subr.mxu1 %v18472_v50  ;;  %5503 = vmatprep.subr.mxu0 %v25397_v24  ;;  %v319_v24 = vld [vmem:[%s23845_s2 + $0x8f0] sm:$0xff] }
 0x283   :  { %5462 = vmatpush2.msra.mxu1 %v18485_v15  ;;  %5466 = vmatprep.mubr.f32.mxu1 %v25398_v13 }
 0x284   :  { %5507 = vmatpush1.msra.mxu0 %v25399_v49  ;;  %5470 = vmatmul.mubr.f32.vlgmr.msra.gmra.mxu1 %v25400_v57  ;;  %v25422_v49 = vand.u32 4294901760, %v18396_v42  ;;  %v297_v42 = vld [vmem:[%s23845_s2 + $0x840] sm:$0xff] }
 0x285   :  { %5511 = vmatprep.subr.mxu0 %v25401_v2  ;;  %5652 = vmatprep.subr.mxu1 %v17992_v45  ;;  %v18732_v2 = vand.u32 4294901760, %v339_v63  ;;  %v129_v57 = vld [vmem:[%s23845_s2 + $0x300] sm:$0xff] }
 0x286   :  { %5515 = vmatpush1.msra.mxu0 %v25403_v5  ;;  %5654 = vmatpush1.msra.mxu1 %v18003_v58  ;;  %v25408_v58 = vand.u32 4294901760, %v25366_v43  ;;  %v25414_v43 = vld [vmem:[#allocation44_spill] sm:$0xff] }
 0x287   :  { %5519 = vmatprep.subr.mxu0 %v25404_v1  ;;  %5656 = vmatprep.subr.mxu1 %v18013_v20  ;;  %v3858_v3 = vpop.f32.mrf.mxu0  ;;  %v25409_v20 = vand.u32 4294901760, %v25368_v56  ;;  %v25416_v56 = vld [vmem:[#allocation16_spill] sm:$0xff] }
 0x288   :  { %5523 = vmatpush1.msra.mxu0 %v25405_v18  ;;  %5658 = vmatpush1.msra.mxu1 %v18030_v51  ;;  %v3859_v45 = vadd.f32 %v3858_v3, %v3684_v12  ;;  %v361_v51 = vld [vmem:[%s23845_s2 + $0xa40] sm:$0xff]  ;;  %v360_v12 = vld [vmem:[%s23845_s2 + $0xa38] sm:$0xff]  ;;  %v298_v18 = vld [vmem:[%s23845_s2 + $0x848] sm:$0xff]  ;;  %v18751_v3 = vand.u32 4294901760, %v319_v24 }
 0x289   :  { %5527 = vmatprep.subr.mxu0 %v25406_v11  ;;  %5660 = vmatprep.subr.mxu1 %v18049_v60  ;;  %v25410_v60 = vand.u32 4294901760, %v25370_v27  ;;  %v18694_v4 = vand.u32 4294901760, %v361_v51  ;;  %v277_v11 = vld [vmem:[%s23845_s2 + $0x7a0] sm:$0xff] }
 0x28a   :  { %5531 = vmatpush1.msra.mxu0 %v25407_v16  ;;  %5662 = vmatpush1.msra.mxu1 %v25365_v59  ;;  %v340_v59 = vld [vmem:[%s23845_s2 + $0x998] sm:$0xff]  ;;  %v25428_v16 = vand.u32 4294901760, %v18458_v35  ;;  %v255_v35 = vld [vmem:[%s23845_s2 + $0x6f0] sm:$0xff] }
 0x28b   :  { %5535 = vmatprep.subr.mxu0 %v25408_v58  ;;  %5664 = vmatprep.subr.mxu1 %v25367_v37  ;;  %v25415_v37 = vand.u32 4294901760, %v25377_v46  ;;  %v18715_v46 = vand.u32 4294901760, %v340_v59  ;;  %v18727_v33 = vsub.f32 %v361_v51, %v18694_v4  ;;  %v18770_v51 = vsub.f32 %v339_v63, %v18732_v2 }
 0x28c   :  { %5539 = vmatpush1.msra.mxu0 %v25409_v20  ;;  %5666 = vmatpush1.msra.mxu1 %v25369_v9  ;;  %v25417_v9 = vand.u32 4294901760, %v18365_v0  ;;  %v318_v0 = vld [vmem:[%s23845_s2 + $0x8e8] sm:$0xff]  ;;  %v25429_v20 = vand.u32 4294901760, %v18422_v30  ;;  %v18785_v30 = vand.u32 4294901760, %v277_v11 }
 0x28d   :  { %5543 = vmatprep.subr.mxu0 %v25410_v60  ;;  %5668 = vmatprep.subr.mxu1 %v25371_v54  ;;  %v18705_v54 = vand.u32 4294901760, %v360_v12  ;;  %v18740_v1 = vand.u32 4294901760, %v318_v0  ;;  %v24274_v58 = vand.u32 4294901760, %v18727_v33  ;;  %v18772_v60 = vand.u32 4294901760, %v298_v18 }
 0x28e   :  { %5547 = vmatpush1.msra.mxu0 %v25411_v29  ;;  %5670 = vmatpush1.msra.mxu1 %v25374_v17  ;;  %v25418_v17 = vld [vmem:[#allocation8_spill] sm:$0xff]  ;;  %25434 = vst [vmem:[#allocation18_spill] sm:$0xff] %v18785_v30 }
 0x28f   :  { %5551 = vmatprep.subr.mxu0 %v25413_v19  ;;  %5672 = vmatprep.subr.mxu1 %v25414_v43  ;;  %v18738_v26 = vsub.f32 %v360_v12, %v18705_v54  ;;  %25425 = vst [vmem:[#allocation7_spill] sm:$0xff] %v18740_v1  ;;  %25430 = vst [vmem:[#allocation49_spill] sm:$0xff] %v18772_v60  ;;  %v25432_v29 = vld [vmem:[#allocation60_spill] sm:$0xff]  ;;  %v25435_v43 = vld [vmem:[#allocation61_spill] sm:$0xff]  ;;  %v18806_v63 = vsub.f32 %v18727_v33, %v24274_v58 }
 0x290   :  { %5555 = vmatpush1.msra.mxu0 %v25415_v37  ;;  %5674 = vmatpush1.msra.mxu1 %v25416_v56  ;;  %v3965_v27 = vpop.f32.mrf.mxu1  ;;  %v25433_v12 = vand.u32 4294901760, %v25432_v29  ;;  %v25436_v37 = vand.u32 4294901760, %v25435_v43  ;;  %v25447_v29 = vld [vmem:[#allocation26_spill] sm:$0xff] }
 0x291   :  { %5559 = vmatprep.subr.mxu0 %v25417_v9  ;;  %5676 = vmatprep.subr.mxu1 %v25418_v17  ;;  %v18713_v36 = vadd.f32 %v3965_v27, %v3859_v45  ;;  %v18757_v45 = vsub.f32 %v340_v59, %v18715_v46  ;;  %v24272_v19 = vand.u32 4294901760, %v18738_v26  ;;  %v256_v59 = vld [vmem:[%s23845_s2 + $0x6f8] sm:$0xff]  ;;  %v18798_v9 = vsub.f32 %v319_v24, %v18751_v3  ;;  %v234_v24 = vld [vmem:[%s23845_s2 + $0x648] sm:$0xff] }
 0x292   :  { %5563 = vmatpush1.msra.mxu0 %v25419_v8  ;;  %5678 = vmatpush1.msra.mxu1 %v25380_v23  ;;  %v25423_v23 = vld [vmem:[#allocation57_spill] sm:$0xff]  ;;  %v25438_v27 = vand.u32 4294901760, %v18494_v55  ;;  %v25440_v17 = vld [vmem:[#allocation54_spill] sm:$0xff]  ;;  %v25441_v8 = vand.u32 4294901760, %v18498_v28  ;;  %v25443_v28 = vld [vmem:[#allocation47_spill] sm:$0xff]  ;;  %v18863_v43 = vand.u32 4294901760, %v234_v24 }
 0x293   :  { %25420 = vst [vmem:[#allocation42_spill] sm:$0xff] %v18713_v36  ;;  %5567 = vmatprep.subr.mxu0 %v25421_v7  ;;  %5680 = vmatprep.subr.mxu1 %v25381_v52  ;;  %v25424_v5 = vand.u32 4294901760, %v25423_v23  ;;  %v25426_v52 = vld [vmem:[#allocation55_spill] sm:$0xff]  ;;  %v24271_v56 = vand.u32 4294901760, %v18757_v45  ;;  %v18816_v7 = vand.u32 4294901760, %v256_v59  ;;  %v235_v55 = vld [vmem:[%s23845_s2 + $0x650] sm:$0xff] }
 0x294   :  { %5571 = vmatpush1.msra.mxu0 %v25422_v49  ;;  %5682 = vmatpush1.msra.mxu1 %v25382_v61  ;;  %v25427_v61 = vand.u32 4294901760, %v25426_v52  ;;  %v18826_v49 = vsub.f32 %v298_v18, %v18772_v60  ;;  %v25444_v23 = vand.u32 4294901760, %v18510_v62  ;;  %v18838_v52 = vsub.f32 %v277_v11, %v18785_v30  ;;  %v214_v11 = vld [vmem:[%s23845_s2 + $0x5a8] sm:$0xff]  ;;  %25449 = vst [vmem:[#allocation10_spill] sm:$0xff] %v18863_v43 }
 0x295   :  { %5575 = vmatprep.subr.mxu0 %v25424_v5  ;;  %5684 = vmatprep.subr.mxu1 %v25383_v14  ;;  %v276_v14 = vld [vmem:[%s23845_s2 + $0x798] sm:$0xff]  ;;  %25442 = vst [vmem:[#allocation35_spill] sm:$0xff] %v18816_v7  ;;  %v18834_v5 = vsub.f32 %v18738_v26, %v24272_v19  ;;  %v18849_v62 = vsub.f32 %v18757_v45, %v24271_v56  ;;  %v25462_v13 = vand.u32 4294901760, %v18806_v63 }
 0x296   :  { %5579 = vmatpush1.msra.mxu0 %v25427_v61  ;;  %5686 = vmatpush1.msra.mxu1 %v25384_v39  ;;  %v18774_v39 = vand.u32 4294901760, %v297_v42  ;;  %v25445_v61 = vld [vmem:[#allocation62_spill] sm:$0xff] }
 0x297   :  { %5583 = vmatprep.subr.mxu0 %v25428_v16  ;;  %5688 = vmatprep.subr.mxu1 %v25385_v21  ;;  %v18783_v21 = vsub.f32 %v318_v0, %v18740_v1  ;;  %v25446_v18 = vand.u32 4294901760, %v25445_v61  ;;  %v18891_v61 = vand.u32 4294901760, %v214_v11 }
 0x298   :  { %5587 = vmatpush1.msra.mxu0 %v25429_v20  ;;  %25431 = vst [vmem:[#allocation19_spill] sm:$0xff] %v18774_v39  ;;  %5690 = vmatpush1.msra.mxu1 %v25386_v25  ;;  %v18794_v25 = vand.u32 4294901760, %v276_v14  ;;  %v18814_v0 = vsub.f32 %v297_v42, %v18774_v39  ;;  %v24273_v20 = vand.u32 4294901760, %v18798_v9 }
 0x299   :  { %5591 = vmatprep.subr.mxu0 %v25433_v12  ;;  %5692 = vmatprep.subr.mxu1 %v18295_v47  ;;  %v18808_v47 = vand.u32 4294901760, %v255_v35  ;;  %v24270_v42 = vand.u32 4294901760, %v18783_v21  ;;  %v18861_v12 = vand.u32 4294901760, %v235_v55  ;;  %25451 = vst [vmem:[#allocation24_spill] sm:$0xff] %v18891_v61 }
 0x29a   :  { %5595 = vmatpush1.msra.mxu0 %v25436_v37  ;;  %25437 = vst [vmem:[#allocation23_spill] sm:$0xff] %v18794_v25  ;;  %5694 = vmatpush1.msra.mxu1 %v25387_v38  ;;  %v24269_v38 = vand.u32 4294901760, %v18770_v51  ;;  %v18844_v16 = vsub.f32 %v276_v14, %v18794_v25  ;;  %v213_v37 = vld [vmem:[%s23845_s2 + $0x5a0] sm:$0xff] }
 0x29b   :  { %5599 = vmatprep.subr.mxu0 %v25438_v27  ;;  %25439 = vst [vmem:[#allocation48_spill] sm:$0xff] %v18808_v47  ;;  %5696 = vmatprep.subr.mxu1 %v25440_v17  ;;  %v18859_v14 = vsub.f32 %v255_v35, %v18808_v47  ;;  %25448 = vst [vmem:[#allocation9_spill] sm:$0xff] %v18861_v12  ;;  %v25450_v27 = vld [vmem:[#allocation28_spill] sm:$0xff]  ;;  %v24276_v35 = vand.u32 4294901760, %v18826_v49  ;;  %v24275_v17 = vand.u32 4294901760, %v18814_v0 }
 0x29c   :  { %5603 = vmatpush1.msra.mxu0 %v25441_v8  ;;  %5698 = vmatpush1.msra.mxu1 %v25443_v28  ;;  %v192_v8 = vld [vmem:[%s23845_s2 + $0x4f8] sm:$0xff]  ;;  %v18881_v28 = vsub.f32 %v256_v59, %v18816_v7  ;;  %v24278_v56 = vand.u32 4294901760, %v18844_v16  ;;  %v18920_v59 = vsub.f32 %v235_v55, %v18861_v12 }
 0x29d   :  { %5637 = vmatprep.subr.mxu0 %v25444_v23  ;;  %5700 = vmatprep.subr.mxu1 %v18376_v41  ;;  %v18889_v23 = vsub.f32 %v18783_v21, %v24270_v42  ;;  %v193_v42 = vld [vmem:[%s23845_s2 + $0x500] sm:$0xff]  ;;  %v18913_v19 = vand.u32 4294901760, %v192_v8  ;;  %v24280_v58 = vand.u32 4294901760, %v18859_v14 }
 0x29e   :  { %5641 = vmatpush2.msra.mxu0 %v25446_v18  ;;  %5643 = vmatprep.mubr.f32.mxu0 %v25447_v29  ;;  %v24277_v18 = vand.u32 4294901760, %v18838_v52  ;;  %v18939_v55 = vand.u32 4294901760, %v193_v42  ;;  %v25466_v63 = vand.u32 4294901760, %v18920_v59 }
 0x29f   :  { %5702 = vmatpush1.msra.mxu1 %v18359_v44  ;;  %5645 = vmatmul.mubr.f32.vlgmr.msra.gmra.mxu0 %v25450_v27  ;;  %v18873_v44 = vsub.f32 %v18770_v51, %v24269_v38  ;;  %v18902_v38 = vand.u32 4294901760, %v213_v37  ;;  %25453 = vst [vmem:[#allocation21_spill] sm:$0xff] %v18913_v19 }
 0x2a0   :  { %5704 = vmatprep.subr.mxu1 %v18398_v34  ;;  %5759 = vmatprep.subr.mxu0 %v18694_v4  ;;  %v18933_v34 = vsub.f32 %v18814_v0, %v24275_v17  ;;  %25454 = vst [vmem:[#allocation25_spill] sm:$0xff] %v18939_v55  ;;  %v172_v17 = vld [vmem:[%s23845_s2 + $0x458] sm:$0xff] }
 0x2a1   :  { %5706 = vmatpush1.msra.mxu1 %v18378_v53  ;;  %5761 = vmatpush1.msra.mxu0 %v18705_v54  ;;  %v18900_v53 = vsub.f32 %v18798_v9, %v24273_v20  ;;  %25452 = vst [vmem:[#allocation36_spill] sm:$0xff] %v18902_v38  ;;  %v171_v20 = vld [vmem:[%s23845_s2 + $0x450] sm:$0xff]  ;;  %v18987_v31 = vand.u32 4294901760, %v172_v17 }
 0x2a2   :  { %5708 = vmatprep.subr.mxu1 %v18424_v32  ;;  %5763 = vmatprep.subr.mxu0 %v18715_v46  ;;  %v18911_v32 = vsub.f32 %v234_v24, %v18863_v43  ;;  %v18928_v24 = vsub.f32 %v18826_v49, %v24276_v35  ;;  %v18950_v35 = vsub.f32 %v214_v11, %v18891_v61  ;;  %v18963_v41 = vand.u32 4294901760, %v171_v20  ;;  %v151_v11 = vld [vmem:[%s23845_s2 + $0x3b0] sm:$0xff] }
 0x2a3   :  { %5710 = vmatpush1.msra.mxu1 %v18441_v10  ;;  %5765 = vmatpush1.msra.mxu0 %v18732_v2  ;;  %v5895_v10 = vand.u32 4294901760, %v18873_v44  ;;  %v18944_v44 = vsub.f32 %v18838_v52, %v24277_v18  ;;  %v18961_v18 = vsub.f32 %v18844_v16, %v24278_v56  ;;  %v150_v56 = vld [vmem:[%s23845_s2 + $0x3a8] sm:$0xff]  ;;  %25459 = vst [vmem:[#allocation8_spill] sm:$0xff] %v18987_v31  ;;  %v18997_v48 = vand.u32 4294901760, %v151_v11 }
 0x2a4   :  { %5712 = vmatprep.subr.mxu1 %v18451_v40  ;;  %5767 = vmatprep.subr.mxu0 %v18751_v3  ;;  %25455 = vst [vmem:[#allocation27_spill] sm:$0xff] %v18950_v35  ;;  %v18956_v40 = vsub.f32 %v213_v37, %v18902_v38  ;;  %25457 = vst [vmem:[#allocation44_spill] sm:$0xff] %v18963_v41  ;;  %v18976_v37 = vsub.f32 %v18859_v14, %v24280_v58  ;;  %v25460_v58 = vand.u32 4294901760, %v18881_v28 }
 0x2a5   :  { %5714 = vmatpush1.msra.mxu1 %v18466_v22  ;;  %5769 = vmatpush1.msra.mxu0 %v18740_v1  ;;  %v5901_v22 = vand.u32 4294901760, %v18900_v53  ;;  %v5925_v36 = vand.u32 4294901760, %v18944_v44  ;;  %v5931_v44 = vand.u32 4294901760, %v18961_v18  ;;  %v19014_v6 = vsub.f32 %v171_v20, %v18963_v41 }
 0x2a6   :  { %5746 = vmatprep.subr.mxu1 %v18472_v50  ;;  %25456 = vst [vmem:[#allocation53_spill] sm:$0xff] %v18956_v40  ;;  %5771 = vmatprep.subr.mxu0 %v18772_v60  ;;  %v18971_v50 = vsub.f32 %v192_v8, %v18913_v19  ;;  %v5919_v8 = vand.u32 4294901760, %v18933_v34  ;;  %v18992_v53 = vsub.f32 %v18881_v28, %v25460_v58  ;;  %v25467_v18 = vand.u32 4294901760, %v18911_v32 }
 0x2a7   :  { %5748 = vmatpush2.msra.mxu1 %v18485_v15  ;;  %5750 = vmatprep.mubr.f32.mxu1 %v25447_v29  ;;  %v5913_v15 = vand.u32 4294901760, %v18928_v24  ;;  %v130_v24 = vld [vmem:[%s23845_s2 + $0x308] sm:$0xff]  ;;  %v19007_v58 = vsub.f32 %v193_v42, %v18939_v55  ;;  %25463 = vst [vmem:[#allocation55_spill] sm:$0xff] %v19014_v6  ;;  %v25465_v42 = vand.u32 4294901760, %v18834_v5  ;;  %v19029_v20 = vsub.f32 %v18920_v59, %v25466_v63 }
 0x2a8   :  { %25458 = vst [vmem:[#allocation16_spill] sm:$0xff] %v18971_v50  ;;  %5773 = vmatpush1.msra.mxu0 %v18774_v39  ;;  %5752 = vmatmul.mubr.f32.vlgmr.msra.gmra.mxu1 %v25450_v27  ;;  %v108_v39 = vld [vmem:[%s23845_s2 + $0x258] sm:$0xff]  ;;  %v19034_v34 = vsub.f32 %v18911_v32, %v25467_v18  ;;  %v5937_v63 = vand.u32 4294901760, %v18992_v53  ;;  %v19049_v18 = vand.u32 4294901760, %v129_v57  ;;  %v19052_v60 = vsub.f32 %v172_v17, %v18987_v31 }
 0x2a9   :  { %5775 = vmatprep.subr.mxu0 %v18785_v30  ;;  %25461 = vst [vmem:[#allocation57_spill] sm:$0xff] %v19007_v58  ;;  %5878 = vmatprep.subr.mxu1 %v25462_v13  ;;  %v19016_v30 = vand.u32 4294901760, %v150_v56  ;;  %v25468_v13 = vand.u32 4294901760, %v18849_v62  ;;  %v25472_v5 = vand.u32 4294901760, %v18950_v35  ;;  %v88_v53 = vld [vmem:[%s23845_s2 + $0x1b8] sm:$0xff] }
 0x2aa   :  { %5777 = vmatpush1.msra.mxu0 %v18794_v25  ;;  %5884 = vmatpush1.msra.mxu1 %v25465_v42  ;;  %v109_v25 = vld [vmem:[%s23845_s2 + $0x260] sm:$0xff]  ;;  %v87_v42 = vld [vmem:[%s23845_s2 + $0x1b0] sm:$0xff]  ;;  %25470 = vst [vmem:[#allocation54_spill] sm:$0xff] %v19049_v18  ;;  %25471 = vst [vmem:[#allocation47_spill] sm:$0xff] %v19052_v60 }
 0x2ab   :  { %25464 = vst [vmem:[#allocation60_spill] sm:$0xff] %v19016_v30  ;;  %5779 = vmatprep.subr.mxu0 %v18816_v7  ;;  %5890 = vmatprep.subr.mxu1 %v25468_v13  ;;  %v19047_v7 = vand.u32 4294901760, %v130_v24  ;;  %v19058_v1 = vsub.f32 %v18950_v35, %v25472_v5  ;;  %v19061_v13 = vand.u32 4294901760, %v108_v39  ;;  %v19071_v17 = vsub.f32 %v150_v56, %v19016_v30 }
 0x2ac   :  { %5781 = vmatpush1.msra.mxu0 %v18808_v47  ;;  %5896 = vmatpush1.msra.mxu1 %v5895_v10  ;;  %v19067_v47 = vsub.f32 %v151_v11, %v18997_v48  ;;  %v25473_v10 = vand.u32 4294901760, %v18956_v40  ;;  %v19078_v62 = vand.u32 4294901760, %v109_v25  ;;  %v25474_v35 = vand.u32 4294901760, %v18889_v23 }
 0x2ad   :  { %25469 = vst [vmem:[#allocation61_spill] sm:$0xff] %v19047_v7  ;;  %5783 = vmatprep.subr.mxu0 %v18861_v12  ;;  %5902 = vmatprep.subr.mxu1 %v5901_v22  ;;  %v19080_v12 = vand.u32 4294901760, %v87_v42  ;;  %v5949_v22 = vand.u32 4294901760, %v19029_v20  ;;  %v5955_v11 = vand.u32 4294901760, %v19034_v34  ;;  %v25475_v56 = vand.u32 4294901760, %v18971_v50  ;;  %v66_v20 = vld [vmem:[%s23845_s2 + $0x108] sm:$0xff]  ;;  %v19134_v34 = vpop.f32.mrf.mxu0 }
 0x2ae   :  { %5785 = vmatpush1.msra.mxu0 %v18863_v43  ;;  %v19076_v5 = vsub.f32 %v18956_v40, %v25473_v10  ;;  %5908 = vmatpush1.msra.mxu1 %v25474_v35  ;;  %v67_v40 = vld [vmem:[%s23845_s2 + $0x110] sm:$0xff]  ;;  %v19098_v35 = vsub.f32 %v129_v57, %v19049_v18  ;;  %v19100_v23 = vand.u32 4294901760, %v88_v53  ;;  %v25476_v10 = vand.u32 4294901760, %v19007_v58  ;;  %25479 = vst [vmem:[#allocation65_spill] sm:$0xff] %v19134_v34 }
 0x2af   :  { %5787 = vmatprep.subr.mxu0 %v18891_v61  ;;  %v19090_v43 = vsub.f32 %v18971_v50, %v25475_v56  ;;  %5914 = vmatprep.subr.mxu1 %v5913_v15  ;;  %v19107_v56 = vsub.f32 %v130_v24, %v19047_v7  ;;  %v5961_v15 = vand.u32 4294901760, %v19058_v1  ;;  %v46_v61 = vld [vmem:[%s23845_s2 + $0x68] sm:$0xff]  ;;  %v19124_v1 = vsub.f32 %v87_v42, %v19080_v12 }
 0x2b0   :  { %5789 = vmatpush1.msra.mxu0 %v18902_v38  ;;  %5920 = vmatpush1.msra.mxu1 %v5919_v8  ;;  %v5972_v57 = vsub.f32 %v19007_v58, %v25476_v10  ;;  %v19115_v38 = vsub.f32 %v108_v39, %v19061_v13  ;;  %v5967_v8 = vand.u32 4294901760, %v19076_v5  ;;  %v19126_v24 = vand.u32 4294901760, %v67_v40  ;;  %v45_v39 = vld [vmem:[%s23845_s2 + $0x60] sm:$0xff] }
 0x2b1   :  { %5791 = vmatprep.subr.mxu0 %v18939_v55  ;;  %5926 = vmatprep.subr.mxu1 %v5925_v36  ;;  %v19132_v10 = vsub.f32 %v109_v25, %v19078_v62  ;;  %v19136_v55 = vpop.f32.mrf.mxu1  ;;  %v5979_v36 = vand.u32 4294901760, %v19090_v43  ;;  %v25481_v42 = vand.u32 4294901760, %v19014_v6  ;;  %v382_v25 = vld [vmem:[%s23845_s2 + $0xae8] sm:$0xff]  ;;  %v19153_v43 = vand.u32 4294901760, %v46_v61 }
 0x2b2   :  { %25477 = vst [vmem:[#allocation62_spill] sm:$0xff] %v19115_v38  ;;  %5793 = vmatpush1.msra.mxu0 %v18913_v19  ;;  %25480 = vst [vmem:[#allocation66_spill] sm:$0xff] %v19136_v55  ;;  %5932 = vmatpush1.msra.mxu1 %v5931_v44  ;;  %v19143_v19 = vand.u32 4294901760, %v66_v20  ;;  %v25482_v44 = vand.u32 4294901760, %v19052_v60  ;;  %v19160_v50 = vsub.f32 %v88_v53, %v19100_v23  ;;  %v19168_v34 = vand.u32 4294901760, %v45_v39 }
 0x2b3   :  { %25478 = vst [vmem:[#allocation64_spill] sm:$0xff] %v19132_v10  ;;  %5795 = vmatprep.subr.mxu0 %v18987_v31  ;;  %v5990_v5 = vsub.f32 %v19014_v6, %v25481_v42  ;;  %5938 = vmatprep.subr.mxu1 %v5937_v63  ;;  %v381_v42 = vld [vmem:[%s23845_s2 + $0xae0] sm:$0xff]  ;;  %v25483_v31 = vand.u32 4294901760, %v18976_v37  ;;  %v5973_v63 = vand.u32 4294901760, %v5972_v57  ;;  %v19174_v37 = vand.u32 4294901760, %v382_v25 }
 0x2b4   :  { %5797 = vmatpush1.msra.mxu0 %v18963_v41  ;;  %v5984_v55 = vsub.f32 %v19052_v60, %v25482_v44  ;;  %v4080_v41 = vpop.f32.mrf.mxu0  ;;  %v25484_v44 = vand.u32 4294901760, %v19067_v47  ;;  %v4323_v60 = vpop.f32.mrf.mxu1  ;;  %v19178_v57 = vsub.f32 %v67_v40, %v19126_v24  ;;  %v25487_v58 = vand.u32 4294901760, %v19071_v17  ;;  %6108 = vmatprep.mubr.f32.mxu1 %v25447_v29  ;;  %v25519_v29 = vld [vmem:[#allocation10_spill] sm:$0xff] }
 0x2b5   :  { %5944 = vmatpush1.msra.mxu1 %v25483_v31  ;;  %5799 = vmatprep.subr.mxu0 %v18997_v48  ;;  %v19172_v53 = vadd.f32 %v4323_v60, %v4080_v41  ;;  %v25488_v40 = vand.u32 4294901760, %v19107_v56  ;;  %v25500_v60 = vld [vmem:[#allocation37_spill] sm:$0xff] }
 0x2b6   :  { %v5996_v6 = vsub.f32 %v19067_v47, %v25484_v44  ;;  %5950 = vmatprep.subr.mxu1 %v5949_v22  ;;  %5801 = vmatpush1.msra.mxu0 %v19016_v30  ;;  %25485 = vst [vmem:[#allocation67_spill] sm:$0xff] %v19178_v57  ;;  %v19182_v44 = vsub.f32 %v66_v20, %v19143_v19  ;;  %v19187_v30 = vand.u32 4294901760, %v381_v42  ;;  %v5985_v41 = vand.u32 4294901760, %v5984_v55 }
 0x2b7   :  { %5956 = vmatpush1.msra.mxu1 %v5955_v11  ;;  %5803 = vmatprep.subr.mxu0 %v19047_v7  ;;  %v6002_v22 = vsub.f32 %v19071_v17, %v25487_v58  ;;  %v6008_v11 = vsub.f32 %v19107_v56, %v25488_v40  ;;  %v19196_v20 = vsub.f32 %v46_v61, %v19153_v43  ;;  %v5991_v58 = vand.u32 4294901760, %v5990_v5 }
 0x2b8   :  { %25486 = vst [vmem:[#allocation68_spill] sm:$0xff] %v19182_v44  ;;  %5962 = vmatprep.subr.mxu1 %v5961_v15  ;;  %5805 = vmatpush1.msra.mxu0 %v19049_v18  ;;  %v19200_v7 = vsub.f32 %v45_v39, %v19168_v34  ;;  %v25489_v15 = vand.u32 4294901760, %v19098_v35  ;;  %v5997_v40 = vand.u32 4294901760, %v5996_v6  ;;  %v25490_v61 = vand.u32 4294901760, %v19132_v10 }
 0x2b9   :  { %5968 = vmatpush1.msra.mxu1 %v5967_v8  ;;  %5807 = vmatprep.subr.mxu0 %v19078_v62  ;;  %v19212_v5 = vsub.f32 %v382_v25, %v19174_v37  ;;  %v6003_v39 = vand.u32 4294901760, %v6002_v22  ;;  %v25493_v25 = vand.u32 4294901760, %v19160_v50  ;;  %v25494_v22 = vand.u32 4294901760, %v19124_v1 }
 0x2ba   :  { %v6014_v55 = vsub.f32 %v19098_v35, %v25489_v15  ;;  %5974 = vmatprep.subr.mxu1 %v5973_v63  ;;  %5809 = vmatpush1.msra.mxu0 %v19061_v13  ;;  %v6020_v8 = vsub.f32 %v19132_v10, %v25490_v61  ;;  %v19216_v15 = vsub.f32 %v381_v42, %v19187_v30  ;;  %v25492_v63 = vand.u32 4294901760, %v19115_v38 }
 0x2bb   :  { %5980 = vmatpush1.msra.mxu1 %v5979_v36  ;;  %5811 = vmatprep.subr.mxu0 %v19100_v23  ;;  %v6009_v61 = vand.u32 4294901760, %v6008_v11  ;;  %v6032_v36 = vsub.f32 %v19160_v50, %v25493_v25  ;;  %v25495_v11 = vand.u32 4294901760, %v19178_v57 }
 0x2bc   :  { %25491 = vst [vmem:[#allocation69_spill] sm:$0xff] %v19216_v15  ;;  %v6026_v6 = vsub.f32 %v19115_v38, %v25492_v63  ;;  %5986 = vmatprep.subr.mxu1 %v5985_v41  ;;  %5813 = vmatpush1.msra.mxu0 %v19080_v12  ;;  %v6015_v42 = vand.u32 4294901760, %v6014_v55  ;;  %v6038_v63 = vsub.f32 %v19124_v1, %v25494_v22  ;;  %v6021_v41 = vand.u32 4294901760, %v6020_v8 }
 0x2bd   :  { %5992 = vmatpush1.msra.mxu1 %v5991_v58  ;;  %5815 = vmatprep.subr.mxu0 %v19126_v24  ;;  %v6044_v25 = vsub.f32 %v19178_v57, %v25495_v11  ;;  %v25496_v55 = vand.u32 4294901760, %v19182_v44  ;;  %v25497_v8 = vand.u32 4294901760, %v19196_v20 }
 0x2be   :  { %5998 = vmatprep.subr.mxu1 %v5997_v40  ;;  %5817 = vmatpush1.msra.mxu0 %v19143_v19  ;;  %v6027_v58 = vand.u32 4294901760, %v6026_v6  ;;  %v6033_v40 = vand.u32 4294901760, %v6032_v36  ;;  %v25498_v6 = vand.u32 4294901760, %v19200_v7 }
 0x2bf   :  { %6004 = vmatpush1.msra.mxu1 %v6003_v39  ;;  %5819 = vmatprep.subr.mxu0 %v19153_v43  ;;  %v6050_v22 = vsub.f32 %v19182_v44, %v25496_v55  ;;  %v6056_v11 = vsub.f32 %v19196_v20, %v25497_v8  ;;  %v6039_v39 = vand.u32 4294901760, %v6038_v63  ;;  %v6045_v55 = vand.u32 4294901760, %v6044_v25 }
 0x2c0   :  { %6010 = vmatprep.subr.mxu1 %v6009_v61  ;;  %5821 = vmatpush1.msra.mxu0 %v19168_v34  ;;  %v6062_v31 = vsub.f32 %v19200_v7, %v25498_v6  ;;  %v25499_v61 = vand.u32 4294901760, %v19212_v5 }
 0x2c1   :  { %6016 = vmatpush1.msra.mxu1 %v6015_v42  ;;  %5853 = vmatprep.subr.mxu0 %v19174_v37  ;;  %v6051_v8 = vand.u32 4294901760, %v6050_v22  ;;  %v25501_v42 = vand.u32 4294901760, %v19216_v15  ;;  %v6057_v6 = vand.u32 4294901760, %v6056_v11  ;;  %v25504_v11 = vld [vmem:[#allocation7_spill] sm:$0xff] }
 0x2c2   :  { %6022 = vmatprep.subr.mxu1 %v6021_v41  ;;  %5855 = vmatpush2.msra.mxu0 %v19187_v30  ;;  %v6098_v36 = vsub.f32 %v19212_v5, %v25499_v61  ;;  %v25502_v41 = vld [vmem:[#allocation38_spill] sm:$0xff]  ;;  %v6063_v25 = vand.u32 4294901760, %v6062_v31  ;;  %v19270_v31 = vpop.f32.mrf.mxu0 }
 0x2c3   :  { %6028 = vmatpush1.msra.mxu1 %v6027_v58  ;;  %5861 = vmatprep.mubr.f32.mxu0 %v25500_v60  ;;  %v6104_v63 = vsub.f32 %v19216_v15, %v25501_v42  ;;  %25503 = vst [vmem:[#allocation70_spill] sm:$0xff] %v19270_v31  ;;  %v25509_v42 = vld [vmem:[#allocation57_spill] sm:$0xff]  ;;  %v25517_v31 = vld [vmem:[#allocation48_spill] sm:$0xff] }
 0x2c4   :  { %6034 = vmatprep.subr.mxu1 %v6033_v40  ;;  %6118 = vmatprep.subr.mxu0 %v18727_v33  ;;  %v6099_v61 = vand.u32 4294901760, %v6098_v36  ;;  %v25507_v36 = vld [vmem:[#allocation53_spill] sm:$0xff] }
 0x2c5   :  { %5867 = vmatmul.mubr.f32.vlgmr.msra.gmra.mxu0 %v25502_v41  ;;  %6040 = vmatpush1.msra.mxu1 %v6039_v39  ;;  %v6105_v58 = vand.u32 4294901760, %v6104_v63  ;;  %v25505_v39 = vld [vmem:[#allocation27_spill] sm:$0xff]  ;;  %v25510_v63 = vld [vmem:[#allocation18_spill] sm:$0xff]  ;;  %v25518_v60 = vld [vmem:[#allocation9_spill] sm:$0xff] }
 0x2c6   :  { %6121 = vmatpush1.msra.mxu0 %v18738_v26  ;;  %6046 = vmatprep.subr.mxu1 %v6045_v55  ;;  %v25506_v55 = vld [vmem:[#allocation49_spill] sm:$0xff] }
 0x2c7   :  { %6124 = vmatprep.subr.mxu0 %v18757_v45  ;;  %6052 = vmatpush1.msra.mxu1 %v6051_v8  ;;  %v25508_v8 = vld [vmem:[#allocation19_spill] sm:$0xff] }
 0x2c8   :  { %6127 = vmatpush1.msra.mxu0 %v18770_v51  ;;  %6058 = vmatprep.subr.mxu1 %v6057_v6  ;;  %v25511_v6 = vld [vmem:[#allocation16_spill] sm:$0xff] }
 0x2c9   :  { %6130 = vmatprep.subr.mxu0 %v18798_v9  ;;  %6064 = vmatpush1.msra.mxu1 %v6063_v25  ;;  %v25513_v25 = vld [vmem:[#allocation23_spill] sm:$0xff] }
 0x2ca   :  { %6133 = vmatpush1.msra.mxu0 %v18783_v21  ;;  %6100 = vmatprep.subr.mxu1 %v6099_v61  ;;  %v25514_v61 = vld [vmem:[#allocation47_spill] sm:$0xff] }
 0x2cb   :  { %6136 = vmatprep.subr.mxu0 %v18826_v49  ;;  %6106 = vmatpush2.msra.mxu1 %v6105_v58  ;;  %v25515_v58 = vld [vmem:[#allocation35_spill] sm:$0xff] }
 0x2cc   :  { %6139 = vmatpush1.msra.mxu0 %v18814_v0  ;;  %6110 = vmatmul.mubr.f32.vlgmr.msra.gmra.mxu1 %v25450_v27 }
 0x2cd   :  { %6142 = vmatprep.subr.mxu0 %v18838_v52  ;;  %6260 = vmatprep.subr.mxu1 %v18694_v4 }
 0x2ce   :  { %6145 = vmatpush1.msra.mxu0 %v18844_v16  ;;  %6262 = vmatpush1.msra.mxu1 %v18705_v54 }
 0x2cf   :  { %6148 = vmatprep.subr.mxu0 %v18881_v28  ;;  %6264 = vmatprep.subr.mxu1 %v18715_v46  ;;  %v4466_v22 = vpop.f32.mrf.mxu0 }
 0x2d0   :  { %6151 = vmatpush1.msra.mxu0 %v18859_v14  ;;  %6266 = vmatpush1.msra.mxu1 %v18732_v2  ;;  %v4467_v40 = vadd.f32 %v4466_v22, %v19172_v53  ;;  %v19291_v53 = vpop.f32.mrf.mxu1  ;;  %v25516_v22 = vld [vmem:[#allocation55_spill] sm:$0xff] }
 0x2d1   :  { %6154 = vmatprep.subr.mxu0 %v18920_v59  ;;  %6268 = vmatprep.subr.mxu1 %v18751_v3  ;;  %25512 = vst [vmem:[#allocation7_spill] sm:$0xff] %v19291_v53  ;;  %v25520_v53 = vld [vmem:[#allocation24_spill] sm:$0xff] }
 0x2d2   :  { %6157 = vmatpush1.msra.mxu0 %v18911_v32  ;;  %6270 = vmatpush1.msra.mxu1 %v25504_v11 }
 0x2d3   :  { %6160 = vmatprep.subr.mxu0 %v25505_v39  ;;  %6272 = vmatprep.subr.mxu1 %v25506_v55 }
 0x2d4   :  { %6163 = vmatpush1.msra.mxu0 %v25507_v36  ;;  %6274 = vmatpush1.msra.mxu1 %v25508_v8 }
 0x2d5   :  { %6166 = vmatprep.subr.mxu0 %v25509_v42  ;;  %6276 = vmatprep.subr.mxu1 %v25510_v63 }
 0x2d6   :  { %6169 = vmatpush1.msra.mxu0 %v25511_v6  ;;  %6278 = vmatpush1.msra.mxu1 %v25513_v25 }
 0x2d7   :  { %6172 = vmatprep.subr.mxu0 %v25514_v61  ;;  %6280 = vmatprep.subr.mxu1 %v25515_v58  ;;  %v25521_v58 = vld [vmem:[#allocation36_spill] sm:$0xff] }
 0x2d8   :  { %6175 = vmatpush1.msra.mxu0 %v25516_v22  ;;  %6282 = vmatpush1.msra.mxu1 %v25517_v31  ;;  %v4577_v41 = vpop.f32.mrf.mxu1  ;;  %v25522_v31 = vld [vmem:[#allocation25_spill] sm:$0xff] }
 0x2d9   :  { %6178 = vmatprep.subr.mxu0 %v19067_v47  ;;  %6284 = vmatprep.subr.mxu1 %v25518_v60  ;;  %v4578_v27 = vadd.f32 %v4577_v41, %v4467_v40  ;;  %v25523_v60 = vld [vmem:[#allocation21_spill] sm:$0xff]  ;;  %v25524_v41 = vld [vmem:[#allocation8_spill] sm:$0xff] }
 0x2da   :  { %6181 = vmatpush1.msra.mxu0 %v19071_v17  ;;  %6286 = vmatpush1.msra.mxu1 %v25519_v29  ;;  %v25525_v40 = vld [vmem:[#allocation44_spill] sm:$0xff] }
 0x2db   :  { %6184 = vmatprep.subr.mxu0 %v19107_v56  ;;  %6288 = vmatprep.subr.mxu1 %v25520_v53 }
 0x2dc   :  { %6187 = vmatpush1.msra.mxu0 %v19098_v35  ;;  %6290 = vmatpush1.msra.mxu1 %v25521_v58 }
 0x2dd   :  { %6190 = vmatprep.subr.mxu0 %v19132_v10  ;;  %6292 = vmatprep.subr.mxu1 %v25522_v31  ;;  %v25526_v10 = vld [vmem:[#allocation60_spill] sm:$0xff] }
 0x2de   :  { %6193 = vmatpush1.msra.mxu0 %v19115_v38  ;;  %6294 = vmatpush1.msra.mxu1 %v25523_v60  ;;  %v25527_v38 = vld [vmem:[#allocation61_spill] sm:$0xff] }
 0x2df   :  { %6196 = vmatprep.subr.mxu0 %v19160_v50  ;;  %6296 = vmatprep.subr.mxu1 %v25524_v41 }
 0x2e0   :  { %6199 = vmatpush1.msra.mxu0 %v19124_v1  ;;  %6298 = vmatpush1.msra.mxu1 %v25525_v40 }
 0x2e1   :  { %6202 = vmatprep.subr.mxu0 %v19178_v57  ;;  %6300 = vmatprep.subr.mxu1 %v18997_v48  ;;  %v25528_v57 = vld [vmem:[#allocation30_spill] sm:$0xff] }
 0x2e2   :  { %6205 = vmatpush1.msra.mxu0 %v19182_v44  ;;  %6302 = vmatpush1.msra.mxu1 %v25526_v10  ;;  %v25529_v44 = vld [vmem:[#allocation31_spill] sm:$0xff] }
 0x2e3   :  { %6208 = vmatprep.subr.mxu0 %v19196_v20  ;;  %6304 = vmatprep.subr.mxu1 %v25527_v38  ;;  %v25530_v38 = vand.u32 4294901760, %v18727_v33  ;;  %v25534_v33 = vand.u32 4294901760, %v18798_v9  ;;  %v25540_v9 = vand.u32 4294901760, %v18838_v52  ;;  %v25545_v52 = vand.u32 4294901760, %v18920_v59 }
 0x2e4   :  { %6211 = vmatpush1.msra.mxu0 %v19200_v7  ;;  %6306 = vmatpush1.msra.mxu1 %v19049_v18  ;;  %v25531_v18 = vand.u32 4294901760, %v18738_v26  ;;  %v25535_v26 = vand.u32 4294901760, %v18783_v21  ;;  %v25542_v21 = vand.u32 4294901760, %v18844_v16  ;;  %v25546_v16 = vand.u32 4294901760, %v18911_v32 }
 0x2e5   :  { %6244 = vmatprep.subr.mxu0 %v19212_v5  ;;  %6308 = vmatprep.subr.mxu1 %v19078_v62  ;;  %v25552_v59 = vand.u32 4294901760, %v25514_v61  ;;  %v25558_v61 = vand.u32 4294901760, %v19071_v17 }
 0x2e6   :  { %6247 = vmatpush2.msra.mxu0 %v19216_v15  ;;  %6250 = vmatprep.mubr.f32.mxu0 %v25528_v57  ;;  %v25532_v15 = vand.u32 4294901760, %v18757_v45  ;;  %v25533_v57 = vand.u32 4294901760, %v18770_v51  ;;  %v25536_v45 = vand.u32 4294901760, %v18826_v49  ;;  %v25538_v51 = vand.u32 4294901760, %v18814_v0 }
 0x2e7   :  { %6310 = vmatpush1.msra.mxu1 %v19061_v13  ;;  %6253 = vmatmul.mubr.f32.vlgmr.msra.gmra.mxu0 %v25529_v44  ;;  %v25543_v49 = vand.u32 4294901760, %v18881_v28  ;;  %v25544_v0 = vand.u32 4294901760, %v18859_v14  ;;  %v25550_v14 = vand.u32 4294901760, %v25511_v6  ;;  %v19391_v28 = vpop.f32.mrf.mxu1  ;;  %v341_v6 = vld [vmem:[%s23845_s2 + $0x9a0] sm:$0xff] }
 0x2e8   :  { %6312 = vmatprep.subr.mxu1 %v19100_v23  ;;  %6373 = vmatprep.subr.mxu0 %v25530_v38  ;;  %v25537_v38 = vld [vmem:[#allocation33_spill] sm:$0xff]  ;;  %25551 = vst [vmem:[#allocation49_spill] sm:$0xff] %v19391_v28 }
 0x2e9   :  { %6314 = vmatpush1.msra.mxu1 %v19080_v12  ;;  %6377 = vmatpush1.msra.mxu0 %v25531_v18  ;;  %v25539_v18 = vld [vmem:[#allocation34_spill] sm:$0xff] }
 0x2ea   :  { %6316 = vmatprep.subr.mxu1 %v19126_v24  ;;  %6381 = vmatprep.subr.mxu0 %v25532_v15 }
 0x2eb   :  { %6318 = vmatpush1.msra.mxu1 %v19143_v19  ;;  %6385 = vmatpush1.msra.mxu0 %v25533_v57  ;;  %v19356_v57 = vpop.f32.mrf.mxu0 }
 0x2ec   :  { %6320 = vmatprep.subr.mxu1 %v19153_v43  ;;  %6389 = vmatprep.subr.mxu0 %v25534_v33  ;;  %25541 = vst [vmem:[#allocation27_spill] sm:$0xff] %v19356_v57 }
 0x2ed   :  { %6322 = vmatpush1.msra.mxu1 %v19168_v34  ;;  %6393 = vmatpush1.msra.mxu0 %v25535_v26  ;;  %v25560_v26 = vand.u32 4294901760, %v19107_v56 }
 0x2ee   :  { %6354 = vmatprep.subr.mxu1 %v19174_v37  ;;  %6397 = vmatprep.subr.mxu0 %v25536_v45  ;;  %v321_v45 = vld [vmem:[%s23845_s2 + $0x900] sm:$0xff] }
 0x2ef   :  { %6356 = vmatpush2.msra.mxu1 %v19187_v30  ;;  %6360 = vmatprep.mubr.f32.mxu1 %v25537_v38 }
 0x2f0   :  { %6401 = vmatpush1.msra.mxu0 %v25538_v51  ;;  %6364 = vmatmul.mubr.f32.vlgmr.msra.gmra.mxu1 %v25539_v18  ;;  %v25561_v51 = vand.u32 4294901760, %v19098_v35  ;;  %v299_v35 = vld [vmem:[%s23845_s2 + $0x850] sm:$0xff] }
 0x2f1   :  { %6405 = vmatprep.subr.mxu0 %v25540_v9  ;;  %6546 = vmatprep.subr.mxu1 %v18694_v4  ;;  %v19434_v9 = vand.u32 4294901760, %v341_v6  ;;  %v131_v18 = vld [vmem:[%s23845_s2 + $0x310] sm:$0xff] }
 0x2f2   :  { %6409 = vmatpush1.msra.mxu0 %v25542_v21  ;;  %6548 = vmatpush1.msra.mxu1 %v18705_v54  ;;  %v25547_v54 = vand.u32 4294901760, %v25505_v39  ;;  %v25553_v39 = vld [vmem:[#allocation35_spill] sm:$0xff] }
 0x2f3   :  { %6413 = vmatprep.subr.mxu0 %v25543_v49  ;;  %6550 = vmatprep.subr.mxu1 %v18715_v46  ;;  %v4752_v15 = vpop.f32.mrf.mxu0  ;;  %v25548_v46 = vand.u32 4294901760, %v25507_v36  ;;  %v25555_v36 = vld [vmem:[#allocation48_spill] sm:$0xff] }
 0x2f4   :  { %6417 = vmatpush1.msra.mxu0 %v25544_v0  ;;  %6552 = vmatpush1.msra.mxu1 %v18732_v2  ;;  %v4753_v4 = vadd.f32 %v4752_v15, %v4578_v27  ;;  %v363_v2 = vld [vmem:[%s23845_s2 + $0xa50] sm:$0xff]  ;;  %v362_v27 = vld [vmem:[%s23845_s2 + $0xa48] sm:$0xff]  ;;  %v300_v0 = vld [vmem:[%s23845_s2 + $0x858] sm:$0xff]  ;;  %v19453_v15 = vand.u32 4294901760, %v321_v45 }
 0x2f5   :  { %6421 = vmatprep.subr.mxu0 %v25545_v52  ;;  %6554 = vmatprep.subr.mxu1 %v18751_v3  ;;  %v25549_v3 = vand.u32 4294901760, %v25509_v42  ;;  %v19396_v32 = vand.u32 4294901760, %v363_v2  ;;  %v279_v52 = vld [vmem:[%s23845_s2 + $0x7b0] sm:$0xff] }
 0x2f6   :  { %6425 = vmatpush1.msra.mxu0 %v25546_v16  ;;  %6556 = vmatpush1.msra.mxu1 %v25504_v11  ;;  %v342_v11 = vld [vmem:[%s23845_s2 + $0x9a8] sm:$0xff]  ;;  %v25567_v16 = vand.u32 4294901760, %v19160_v50  ;;  %v257_v50 = vld [vmem:[%s23845_s2 + $0x700] sm:$0xff] }
 0x2f7   :  { %6429 = vmatprep.subr.mxu0 %v25547_v54  ;;  %6558 = vmatprep.subr.mxu1 %v25506_v55  ;;  %v25554_v55 = vand.u32 4294901760, %v25516_v22  ;;  %v19417_v22 = vand.u32 4294901760, %v342_v11  ;;  %v19429_v17 = vsub.f32 %v363_v2, %v19396_v32  ;;  %v19472_v2 = vsub.f32 %v341_v6, %v19434_v9 }
 0x2f8   :  { %6433 = vmatpush1.msra.mxu0 %v25548_v46  ;;  %6560 = vmatpush1.msra.mxu1 %v25508_v8  ;;  %v25556_v8 = vand.u32 4294901760, %v19067_v47  ;;  %v320_v47 = vld [vmem:[%s23845_s2 + $0x8f8] sm:$0xff]  ;;  %v25568_v46 = vand.u32 4294901760, %v19124_v1  ;;  %v19487_v1 = vand.u32 4294901760, %v279_v52 }
 0x2f9   :  { %6437 = vmatprep.subr.mxu0 %v25549_v3  ;;  %6562 = vmatprep.subr.mxu1 %v25510_v63  ;;  %v19407_v63 = vand.u32 4294901760, %v362_v27  ;;  %v19442_v49 = vand.u32 4294901760, %v320_v47  ;;  %v24340_v54 = vand.u32 4294901760, %v19429_v17  ;;  %v19474_v3 = vand.u32 4294901760, %v300_v0 }
 0x2fa   :  { %6441 = vmatpush1.msra.mxu0 %v25550_v14  ;;  %6564 = vmatpush1.msra.mxu1 %v25513_v25  ;;  %v25557_v25 = vld [vmem:[#allocation9_spill] sm:$0xff]  ;;  %v25571_v14 = vld [vmem:[#allocation67_spill] sm:$0xff]  ;;  %25573 = vst [vmem:[#allocation16_spill] sm:$0xff] %v19487_v1 }
 0x2fb   :  { %6445 = vmatprep.subr.mxu0 %v25552_v59  ;;  %6566 = vmatprep.subr.mxu1 %v25553_v39  ;;  %v19440_v56 = vsub.f32 %v362_v27, %v19407_v63  ;;  %25564 = vst [vmem:[#allocation19_spill] sm:$0xff] %v19442_v49  ;;  %25569 = vst [vmem:[#allocation57_spill] sm:$0xff] %v19474_v3  ;;  %v25572_v27 = vand.u32 4294901760, %v25571_v14  ;;  %v25574_v39 = vld [vmem:[#allocation68_spill] sm:$0xff]  ;;  %v19508_v6 = vsub.f32 %v19429_v17, %v24340_v54  ;;  %v25586_v14 = vld [vmem:[#allocation26_spill] sm:$0xff] }
 0x2fc   :  { %6449 = vmatpush1.msra.mxu0 %v25554_v55  ;;  %6568 = vmatpush1.msra.mxu1 %v25555_v36  ;;  %v4859_v42 = vpop.f32.mrf.mxu1  ;;  %v25575_v55 = vand.u32 4294901760, %v25574_v39 }
 0x2fd   :  { %6453 = vmatprep.subr.mxu0 %v25556_v8  ;;  %6570 = vmatprep.subr.mxu1 %v25557_v25  ;;  %v19415_v33 = vadd.f32 %v4859_v42, %v4753_v4  ;;  %v19459_v4 = vsub.f32 %v342_v11, %v19417_v22  ;;  %v24338_v59 = vand.u32 4294901760, %v19440_v56  ;;  %v258_v11 = vld [vmem:[%s23845_s2 + $0x708] sm:$0xff]  ;;  %v19500_v8 = vsub.f32 %v321_v45, %v19453_v15  ;;  %v25579_v25 = vld [vmem:[#allocation61_spill] sm:$0xff]  ;;  %v236_v45 = vld [vmem:[%s23845_s2 + $0x658] sm:$0xff] }
 0x2fe   :  { %6457 = vmatpush1.msra.mxu0 %v25558_v61  ;;  %6572 = vmatpush1.msra.mxu1 %v25519_v29  ;;  %v25562_v29 = vld [vmem:[#allocation64_spill] sm:$0xff]  ;;  %v25577_v42 = vand.u32 4294901760, %v19196_v20  ;;  %v25580_v61 = vand.u32 4294901760, %v19200_v7  ;;  %v237_v20 = vld [vmem:[%s23845_s2 + $0x660] sm:$0xff]  ;;  %v25582_v7 = vld [vmem:[#allocation54_spill] sm:$0xff]  ;;  %v19565_v39 = vand.u32 4294901760, %v236_v45 }
 0x2ff   :  { %25559 = vst [vmem:[#allocation53_spill] sm:$0xff] %v19415_v33  ;;  %6461 = vmatprep.subr.mxu0 %v25560_v26  ;;  %6574 = vmatprep.subr.mxu1 %v25520_v53  ;;  %v25563_v21 = vand.u32 4294901760, %v25562_v29  ;;  %v25565_v53 = vld [vmem:[#allocation62_spill] sm:$0xff]  ;;  %v24337_v36 = vand.u32 4294901760, %v19459_v4  ;;  %v19518_v26 = vand.u32 4294901760, %v258_v11  ;;  %v25583_v29 = vand.u32 4294901760, %v19212_v5 }
 0x300   :  { %6465 = vmatpush1.msra.mxu0 %v25561_v51  ;;  %6576 = vmatpush1.msra.mxu1 %v25521_v58  ;;  %v25566_v58 = vand.u32 4294901760, %v25565_v53  ;;  %v19528_v51 = vsub.f32 %v300_v0, %v19474_v3  ;;  %v19540_v53 = vsub.f32 %v279_v52, %v19487_v1  ;;  %v216_v52 = vld [vmem:[%s23845_s2 + $0x5b8] sm:$0xff]  ;;  %25588 = vst [vmem:[#allocation24_spill] sm:$0xff] %v19565_v39  ;;  %v25601_v38 = vand.u32 4294901760, %v19508_v6 }
 0x301   :  { %6469 = vmatprep.subr.mxu0 %v25563_v21  ;;  %6578 = vmatprep.subr.mxu1 %v25522_v31  ;;  %v278_v31 = vld [vmem:[%s23845_s2 + $0x7a8] sm:$0xff]  ;;  %25581 = vst [vmem:[#allocation55_spill] sm:$0xff] %v19518_v26  ;;  %v19536_v21 = vsub.f32 %v19440_v56, %v24338_v59  ;;  %v19551_v5 = vsub.f32 %v19459_v4, %v24337_v36 }
 0x302   :  { %6473 = vmatpush1.msra.mxu0 %v25566_v58  ;;  %6580 = vmatpush1.msra.mxu1 %v25523_v60  ;;  %v19476_v60 = vand.u32 4294901760, %v299_v35  ;;  %v25584_v58 = vld [vmem:[#allocation69_spill] sm:$0xff] }
 0x303   :  { %6477 = vmatprep.subr.mxu0 %v25567_v16  ;;  %6582 = vmatprep.subr.mxu1 %v25524_v41  ;;  %v19485_v41 = vsub.f32 %v320_v47, %v19442_v49  ;;  %v25585_v0 = vand.u32 4294901760, %v25584_v58  ;;  %v19593_v58 = vand.u32 4294901760, %v216_v52 }
 0x304   :  { %6481 = vmatpush1.msra.mxu0 %v25568_v46  ;;  %25570 = vst [vmem:[#allocation18_spill] sm:$0xff] %v19476_v60  ;;  %6584 = vmatpush1.msra.mxu1 %v25525_v40  ;;  %v19496_v40 = vand.u32 4294901760, %v278_v31  ;;  %v19516_v47 = vsub.f32 %v299_v35, %v19476_v60  ;;  %v24339_v46 = vand.u32 4294901760, %v19500_v8 }
 0x305   :  { %6485 = vmatprep.subr.mxu0 %v25572_v27  ;;  %6586 = vmatprep.subr.mxu1 %v18997_v48  ;;  %v19510_v48 = vand.u32 4294901760, %v257_v50  ;;  %v24336_v35 = vand.u32 4294901760, %v19485_v41  ;;  %v19563_v27 = vand.u32 4294901760, %v237_v20  ;;  %25590 = vst [vmem:[#allocation36_spill] sm:$0xff] %v19593_v58 }
 0x306   :  { %6489 = vmatpush1.msra.mxu0 %v25575_v55  ;;  %25576 = vst [vmem:[#allocation23_spill] sm:$0xff] %v19496_v40  ;;  %6588 = vmatpush1.msra.mxu1 %v25526_v10  ;;  %v24335_v10 = vand.u32 4294901760, %v19472_v2  ;;  %v19546_v16 = vsub.f32 %v278_v31, %v19496_v40  ;;  %v215_v55 = vld [vmem:[%s23845_s2 + $0x5b0] sm:$0xff] }
 0x307   :  { %6493 = vmatprep.subr.mxu0 %v25577_v42  ;;  %25578 = vst [vmem:[#allocation47_spill] sm:$0xff] %v19510_v48  ;;  %6590 = vmatprep.subr.mxu1 %v25579_v25  ;;  %v19561_v31 = vsub.f32 %v257_v50, %v19510_v48  ;;  %25587 = vst [vmem:[#allocation10_spill] sm:$0xff] %v19563_v27  ;;  %v25589_v42 = vld [vmem:[#allocation28_spill] sm:$0xff]  ;;  %v24342_v50 = vand.u32 4294901760, %v19528_v51  ;;  %v24341_v25 = vand.u32 4294901760, %v19516_v47 }
 0x308   :  { %6497 = vmatpush1.msra.mxu0 %v25580_v61  ;;  %6592 = vmatpush1.msra.mxu1 %v25582_v7  ;;  %v194_v61 = vld [vmem:[%s23845_s2 + $0x508] sm:$0xff]  ;;  %v19583_v7 = vsub.f32 %v258_v11, %v19518_v26  ;;  %v24344_v36 = vand.u32 4294901760, %v19546_v16  ;;  %v19622_v11 = vsub.f32 %v237_v20, %v19563_v27 }
 0x309   :  { %6531 = vmatprep.subr.mxu0 %v25583_v29  ;;  %6594 = vmatprep.subr.mxu1 %v19078_v62  ;;  %v19591_v29 = vsub.f32 %v19485_v41, %v24336_v35  ;;  %v195_v35 = vld [vmem:[%s23845_s2 + $0x510] sm:$0xff]  ;;  %v19615_v59 = vand.u32 4294901760, %v194_v61  ;;  %v24345_v54 = vand.u32 4294901760, %v19561_v31 }
 0x30a   :  { %6535 = vmatpush2.msra.mxu0 %v25585_v0  ;;  %6537 = vmatprep.mubr.f32.mxu0 %v25586_v14  ;;  %v24343_v0 = vand.u32 4294901760, %v19540_v53  ;;  %v19641_v20 = vand.u32 4294901760, %v195_v35  ;;  %v25605_v6 = vand.u32 4294901760, %v19622_v11 }
 0x30b   :  { %6596 = vmatpush1.msra.mxu1 %v19061_v13  ;;  %6539 = vmatmul.mubr.f32.vlgmr.msra.gmra.mxu0 %v25589_v42  ;;  %v19575_v13 = vsub.f32 %v19472_v2, %v24335_v10  ;;  %v19604_v10 = vand.u32 4294901760, %v215_v55  ;;  %25592 = vst [vmem:[#allocation21_spill] sm:$0xff] %v19615_v59 }
 0x30c   :  { %6598 = vmatprep.subr.mxu1 %v19100_v23  ;;  %6653 = vmatprep.subr.mxu0 %v19396_v32  ;;  %v19635_v23 = vsub.f32 %v19516_v47, %v24341_v25  ;;  %25593 = vst [vmem:[#allocation8_spill] sm:$0xff] %v19641_v20  ;;  %v174_v25 = vld [vmem:[%s23845_s2 + $0x468] sm:$0xff] }
 0x30d   :  { %6600 = vmatpush1.msra.mxu1 %v19080_v12  ;;  %6655 = vmatpush1.msra.mxu0 %v19407_v63  ;;  %v19602_v12 = vsub.f32 %v19500_v8, %v24339_v46  ;;  %25591 = vst [vmem:[#allocation25_spill] sm:$0xff] %v19604_v10  ;;  %v173_v46 = vld [vmem:[%s23845_s2 + $0x460] sm:$0xff]  ;;  %v19689_v57 = vand.u32 4294901760, %v174_v25 }
 0x30e   :  { %6602 = vmatprep.subr.mxu1 %v19126_v24  ;;  %6657 = vmatprep.subr.mxu0 %v19417_v22  ;;  %v19613_v24 = vsub.f32 %v236_v45, %v19565_v39  ;;  %v19630_v45 = vsub.f32 %v19528_v51, %v24342_v50  ;;  %v19652_v50 = vsub.f32 %v216_v52, %v19593_v58  ;;  %v19665_v62 = vand.u32 4294901760, %v173_v46  ;;  %v153_v52 = vld [vmem:[%s23845_s2 + $0x3c0] sm:$0xff] }
 0x30f   :  { %6604 = vmatpush1.msra.mxu1 %v19143_v19  ;;  %6659 = vmatpush1.msra.mxu0 %v19434_v9  ;;  %v6789_v19 = vand.u32 4294901760, %v19575_v13  ;;  %v19646_v13 = vsub.f32 %v19540_v53, %v24343_v0  ;;  %v19663_v0 = vsub.f32 %v19546_v16, %v24344_v36  ;;  %v152_v36 = vld [vmem:[%s23845_s2 + $0x3b8] sm:$0xff]  ;;  %25598 = vst [vmem:[#allocation9_spill] sm:$0xff] %v19689_v57  ;;  %v19699_v33 = vand.u32 4294901760, %v153_v52 }
 0x310   :  { %6606 = vmatprep.subr.mxu1 %v19153_v43  ;;  %6661 = vmatprep.subr.mxu0 %v19453_v15  ;;  %25594 = vst [vmem:[#allocation44_spill] sm:$0xff] %v19652_v50  ;;  %v19658_v43 = vsub.f32 %v215_v55, %v19604_v10  ;;  %25596 = vst [vmem:[#allocation35_spill] sm:$0xff] %v19665_v62  ;;  %v19678_v55 = vsub.f32 %v19561_v31, %v24345_v54  ;;  %v25599_v54 = vand.u32 4294901760, %v19583_v7 }
 0x311   :  { %6608 = vmatpush1.msra.mxu1 %v19168_v34  ;;  %6663 = vmatpush1.msra.mxu0 %v19442_v49  ;;  %v6795_v34 = vand.u32 4294901760, %v19602_v12  ;;  %v6819_v28 = vand.u32 4294901760, %v19646_v13  ;;  %v6825_v13 = vand.u32 4294901760, %v19663_v0  ;;  %v19716_v44 = vsub.f32 %v173_v46, %v19665_v62 }
 0x312   :  { %6640 = vmatprep.subr.mxu1 %v19174_v37  ;;  %25595 = vst [vmem:[#allocation60_spill] sm:$0xff] %v19658_v43  ;;  %6665 = vmatprep.subr.mxu0 %v19474_v3  ;;  %v19673_v37 = vsub.f32 %v194_v61, %v19615_v59  ;;  %v6813_v61 = vand.u32 4294901760, %v19635_v23  ;;  %v19694_v12 = vsub.f32 %v19583_v7, %v25599_v54  ;;  %v25606_v0 = vand.u32 4294901760, %v19613_v24 }
 0x313   :  { %6642 = vmatpush2.msra.mxu1 %v19187_v30  ;;  %6644 = vmatprep.mubr.f32.mxu1 %v25586_v14  ;;  %v6807_v30 = vand.u32 4294901760, %v19630_v45  ;;  %v132_v45 = vld [vmem:[%s23845_s2 + $0x318] sm:$0xff]  ;;  %v19709_v54 = vsub.f32 %v195_v35, %v19641_v20  ;;  %25602 = vst [vmem:[#allocation62_spill] sm:$0xff] %v19716_v44  ;;  %v25604_v35 = vand.u32 4294901760, %v19536_v21  ;;  %v19731_v46 = vsub.f32 %v19622_v11, %v25605_v6 }
 0x314   :  { %25597 = vst [vmem:[#allocation48_spill] sm:$0xff] %v19673_v37  ;;  %6667 = vmatpush1.msra.mxu0 %v19476_v60  ;;  %6646 = vmatmul.mubr.f32.vlgmr.msra.gmra.mxu1 %v25589_v42  ;;  %v110_v60 = vld [vmem:[%s23845_s2 + $0x268] sm:$0xff]  ;;  %v19736_v23 = vsub.f32 %v19613_v24, %v25606_v0  ;;  %v6831_v6 = vand.u32 4294901760, %v19694_v12  ;;  %v19751_v0 = vand.u32 4294901760, %v131_v18  ;;  %v19754_v3 = vsub.f32 %v174_v25, %v19689_v57 }
 0x315   :  { %6669 = vmatprep.subr.mxu0 %v19487_v1  ;;  %25600 = vst [vmem:[#allocation64_spill] sm:$0xff] %v19709_v54  ;;  %6772 = vmatprep.subr.mxu1 %v25601_v38  ;;  %v19718_v1 = vand.u32 4294901760, %v152_v36  ;;  %v25607_v38 = vand.u32 4294901760, %v19551_v5  ;;  %v25611_v21 = vand.u32 4294901760, %v19652_v50  ;;  %v90_v12 = vld [vmem:[%s23845_s2 + $0x1c8] sm:$0xff] }
 0x316   :  { %6671 = vmatpush1.msra.mxu0 %v19496_v40  ;;  %6778 = vmatpush1.msra.mxu1 %v25604_v35  ;;  %v111_v40 = vld [vmem:[%s23845_s2 + $0x270] sm:$0xff]  ;;  %v89_v35 = vld [vmem:[%s23845_s2 + $0x1c0] sm:$0xff]  ;;  %25609 = vst [vmem:[#allocation61_spill] sm:$0xff] %v19751_v0  ;;  %25610 = vst [vmem:[#allocation54_spill] sm:$0xff] %v19754_v3 }
 0x317   :  { %25603 = vst [vmem:[#allocation67_spill] sm:$0xff] %v19718_v1  ;;  %6673 = vmatprep.subr.mxu0 %v19518_v26  ;;  %6784 = vmatprep.subr.mxu1 %v25607_v38  ;;  %v19749_v26 = vand.u32 4294901760, %v132_v45  ;;  %v19760_v49 = vsub.f32 %v19652_v50, %v25611_v21  ;;  %v19763_v38 = vand.u32 4294901760, %v110_v60  ;;  %v19773_v25 = vsub.f32 %v152_v36, %v19718_v1 }
 0x318   :  { %6675 = vmatpush1.msra.mxu0 %v19510_v48  ;;  %6790 = vmatpush1.msra.mxu1 %v6789_v19  ;;  %v19769_v48 = vsub.f32 %v153_v52, %v19699_v33  ;;  %v25612_v19 = vand.u32 4294901760, %v19658_v43  ;;  %v19780_v5 = vand.u32 4294901760, %v111_v40  ;;  %v25613_v50 = vand.u32 4294901760, %v19591_v29 }
 0x319   :  { %25608 = vst [vmem:[#allocation68_spill] sm:$0xff] %v19749_v26  ;;  %6677 = vmatprep.subr.mxu0 %v19563_v27  ;;  %6796 = vmatprep.subr.mxu1 %v6795_v34  ;;  %v19782_v27 = vand.u32 4294901760, %v89_v35  ;;  %v6843_v34 = vand.u32 4294901760, %v19731_v46  ;;  %v6849_v52 = vand.u32 4294901760, %v19736_v23  ;;  %v25614_v36 = vand.u32 4294901760, %v19673_v37  ;;  %v68_v46 = vld [vmem:[%s23845_s2 + $0x118] sm:$0xff]  ;;  %v19836_v23 = vpop.f32.mrf.mxu0 }
 0x31a   :  { %6679 = vmatpush1.msra.mxu0 %v19565_v39  ;;  %v19778_v21 = vsub.f32 %v19658_v43, %v25612_v19  ;;  %6802 = vmatpush1.msra.mxu1 %v25613_v50  ;;  %v69_v43 = vld [vmem:[%s23845_s2 + $0x120] sm:$0xff]  ;;  %v19800_v50 = vsub.f32 %v131_v18, %v19751_v0  ;;  %v19802_v29 = vand.u32 4294901760, %v90_v12  ;;  %v25615_v19 = vand.u32 4294901760, %v19709_v54  ;;  %25618 = vst [vmem:[#allocation72_spill] sm:$0xff] %v19836_v23 }
 0x31b   :  { %6681 = vmatprep.subr.mxu0 %v19593_v58  ;;  %v19792_v39 = vsub.f32 %v19673_v37, %v25614_v36  ;;  %6808 = vmatprep.subr.mxu1 %v6807_v30  ;;  %v19809_v36 = vsub.f32 %v132_v45, %v19749_v26  ;;  %v6855_v30 = vand.u32 4294901760, %v19760_v49  ;;  %v48_v58 = vld [vmem:[%s23845_s2 + $0x78] sm:$0xff]  ;;  %v19826_v49 = vsub.f32 %v89_v35, %v19782_v27 }
 0x31c   :  { %6683 = vmatpush1.msra.mxu0 %v19604_v10  ;;  %6814 = vmatpush1.msra.mxu1 %v6813_v61  ;;  %v6866_v18 = vsub.f32 %v19709_v54, %v25615_v19  ;;  %v19817_v10 = vsub.f32 %v110_v60, %v19763_v38  ;;  %v6861_v61 = vand.u32 4294901760, %v19778_v21  ;;  %v19828_v45 = vand.u32 4294901760, %v69_v43  ;;  %v47_v60 = vld [vmem:[%s23845_s2 + $0x70] sm:$0xff] }
 0x31d   :  { %6685 = vmatprep.subr.mxu0 %v19641_v20  ;;  %6820 = vmatprep.subr.mxu1 %v6819_v28  ;;  %v19834_v19 = vsub.f32 %v111_v40, %v19780_v5  ;;  %v19838_v20 = vpop.f32.mrf.mxu1  ;;  %v6873_v28 = vand.u32 4294901760, %v19792_v39  ;;  %v25620_v35 = vand.u32 4294901760, %v19716_v44  ;;  %v384_v40 = vld [vmem:[%s23845_s2 + $0xaf8] sm:$0xff]  ;;  %v19855_v39 = vand.u32 4294901760, %v48_v58 }
 0x31e   :  { %25616 = vst [vmem:[#allocation69_spill] sm:$0xff] %v19817_v10  ;;  %6687 = vmatpush1.msra.mxu0 %v19615_v59  ;;  %25619 = vst [vmem:[#allocation73_spill] sm:$0xff] %v19838_v20  ;;  %6826 = vmatpush1.msra.mxu1 %v6825_v13  ;;  %v19845_v59 = vand.u32 4294901760, %v68_v46  ;;  %v25621_v13 = vand.u32 4294901760, %v19754_v3  ;;  %v19862_v37 = vsub.f32 %v90_v12, %v19802_v29  ;;  %v19870_v23 = vand.u32 4294901760, %v47_v60 }
 0x31f   :  { %25617 = vst [vmem:[#allocation71_spill] sm:$0xff] %v19834_v19  ;;  %6689 = vmatprep.subr.mxu0 %v19689_v57  ;;  %v6884_v21 = vsub.f32 %v19716_v44, %v25620_v35  ;;  %6832 = vmatprep.subr.mxu1 %v6831_v6  ;;  %v383_v35 = vld [vmem:[%s23845_s2 + $0xaf0] sm:$0xff]  ;;  %v25622_v57 = vand.u32 4294901760, %v19678_v55  ;;  %v6867_v6 = vand.u32 4294901760, %v6866_v18  ;;  %v19876_v55 = vand.u32 4294901760, %v384_v40 }
 0x320   :  { %6691 = vmatpush1.msra.mxu0 %v19665_v62  ;;  %v6878_v20 = vsub.f32 %v19754_v3, %v25621_v13  ;;  %v4974_v62 = vpop.f32.mrf.mxu0  ;;  %v25623_v13 = vand.u32 4294901760, %v19769_v48  ;;  %v5217_v3 = vpop.f32.mrf.mxu1  ;;  %v19880_v18 = vsub.f32 %v69_v43, %v19828_v45  ;;  %v25626_v54 = vand.u32 4294901760, %v19773_v25  ;;  %7002 = vmatprep.mubr.f32.mxu1 %v25586_v14  ;;  %v25658_v14 = vld [vmem:[#allocation24_spill] sm:$0xff] }
 0x321   :  { %6838 = vmatpush1.msra.mxu1 %v25622_v57  ;;  %6693 = vmatprep.subr.mxu0 %v19699_v33  ;;  %v19874_v12 = vadd.f32 %v5217_v3, %v4974_v62  ;;  %v25627_v43 = vand.u32 4294901760, %v19809_v36  ;;  %v25639_v3 = vld [vmem:[#allocation37_spill] sm:$0xff] }
 0x322   :  { %v6890_v44 = vsub.f32 %v19769_v48, %v25623_v13  ;;  %6844 = vmatprep.subr.mxu1 %v6843_v34  ;;  %6695 = vmatpush1.msra.mxu0 %v19718_v1  ;;  %25624 = vst [vmem:[#allocation74_spill] sm:$0xff] %v19880_v18  ;;  %v19884_v13 = vsub.f32 %v68_v46, %v19845_v59  ;;  %v19889_v1 = vand.u32 4294901760, %v383_v35  ;;  %v6879_v62 = vand.u32 4294901760, %v6878_v20 }
 0x323   :  { %6850 = vmatpush1.msra.mxu1 %v6849_v52  ;;  %6697 = vmatprep.subr.mxu0 %v19749_v26  ;;  %v6896_v34 = vsub.f32 %v19773_v25, %v25626_v54  ;;  %v6902_v52 = vsub.f32 %v19809_v36, %v25627_v43  ;;  %v19898_v46 = vsub.f32 %v48_v58, %v19855_v39  ;;  %v6885_v54 = vand.u32 4294901760, %v6884_v21 }
 0x324   :  { %25625 = vst [vmem:[#allocation75_spill] sm:$0xff] %v19884_v13  ;;  %6856 = vmatprep.subr.mxu1 %v6855_v30  ;;  %6699 = vmatpush1.msra.mxu0 %v19751_v0  ;;  %v19902_v26 = vsub.f32 %v47_v60, %v19870_v23  ;;  %v25628_v30 = vand.u32 4294901760, %v19800_v50  ;;  %v6891_v43 = vand.u32 4294901760, %v6890_v44  ;;  %v25629_v58 = vand.u32 4294901760, %v19834_v19 }
 0x325   :  { %6862 = vmatpush1.msra.mxu1 %v6861_v61  ;;  %6701 = vmatprep.subr.mxu0 %v19780_v5  ;;  %v19914_v21 = vsub.f32 %v384_v40, %v19876_v55  ;;  %v6897_v60 = vand.u32 4294901760, %v6896_v34  ;;  %v25632_v40 = vand.u32 4294901760, %v19862_v37  ;;  %v25633_v34 = vand.u32 4294901760, %v19826_v49 }
 0x326   :  { %v6908_v20 = vsub.f32 %v19800_v50, %v25628_v30  ;;  %6868 = vmatprep.subr.mxu1 %v6867_v6  ;;  %6703 = vmatpush1.msra.mxu0 %v19763_v38  ;;  %v6914_v61 = vsub.f32 %v19834_v19, %v25629_v58  ;;  %v19918_v30 = vsub.f32 %v383_v35, %v19889_v1  ;;  %v25631_v6 = vand.u32 4294901760, %v19817_v10 }
 0x327   :  { %6874 = vmatpush1.msra.mxu1 %v6873_v28  ;;  %6705 = vmatprep.subr.mxu0 %v19802_v29  ;;  %v6903_v58 = vand.u32 4294901760, %v6902_v52  ;;  %v6926_v28 = vsub.f32 %v19862_v37, %v25632_v40  ;;  %v25634_v52 = vand.u32 4294901760, %v19880_v18 }
 0x328   :  { %25630 = vst [vmem:[#allocation76_spill] sm:$0xff] %v19918_v30  ;;  %v6920_v44 = vsub.f32 %v19817_v10, %v25631_v6  ;;  %6880 = vmatprep.subr.mxu1 %v6879_v62  ;;  %6707 = vmatpush1.msra.mxu0 %v19782_v27  ;;  %v6909_v35 = vand.u32 4294901760, %v6908_v20  ;;  %v6932_v6 = vsub.f32 %v19826_v49, %v25633_v34  ;;  %v6915_v62 = vand.u32 4294901760, %v6914_v61 }
 0x329   :  { %6886 = vmatpush1.msra.mxu1 %v6885_v54  ;;  %6709 = vmatprep.subr.mxu0 %v19828_v45  ;;  %v6938_v40 = vsub.f32 %v19880_v18, %v25634_v52  ;;  %v25635_v20 = vand.u32 4294901760, %v19884_v13  ;;  %v25636_v61 = vand.u32 4294901760, %v19898_v46 }
 0x32a   :  { %6892 = vmatprep.subr.mxu1 %v6891_v43  ;;  %6711 = vmatpush1.msra.mxu0 %v19845_v59  ;;  %v6921_v54 = vand.u32 4294901760, %v6920_v44  ;;  %v6927_v43 = vand.u32 4294901760, %v6926_v28  ;;  %v25637_v44 = vand.u32 4294901760, %v19902_v26 }
 0x32b   :  { %6898 = vmatpush1.msra.mxu1 %v6897_v60  ;;  %6713 = vmatprep.subr.mxu0 %v19855_v39  ;;  %v6944_v34 = vsub.f32 %v19884_v13, %v25635_v20  ;;  %v6950_v52 = vsub.f32 %v19898_v46, %v25636_v61  ;;  %v6933_v60 = vand.u32 4294901760, %v6932_v6  ;;  %v6939_v20 = vand.u32 4294901760, %v6938_v40 }
 0x32c   :  { %6904 = vmatprep.subr.mxu1 %v6903_v58  ;;  %6715 = vmatpush1.msra.mxu0 %v19870_v23  ;;  %v6956_v57 = vsub.f32 %v19902_v26, %v25637_v44  ;;  %v25638_v58 = vand.u32 4294901760, %v19914_v21 }
 0x32d   :  { %6910 = vmatpush1.msra.mxu1 %v6909_v35  ;;  %6747 = vmatprep.subr.mxu0 %v19876_v55  ;;  %v6945_v61 = vand.u32 4294901760, %v6944_v34  ;;  %v25640_v35 = vand.u32 4294901760, %v19918_v30  ;;  %v6951_v44 = vand.u32 4294901760, %v6950_v52  ;;  %v25643_v52 = vld [vmem:[#allocation19_spill] sm:$0xff] }
 0x32e   :  { %6916 = vmatprep.subr.mxu1 %v6915_v62  ;;  %6749 = vmatpush2.msra.mxu0 %v19889_v1  ;;  %v6992_v28 = vsub.f32 %v19914_v21, %v25638_v58  ;;  %v25641_v62 = vld [vmem:[#allocation38_spill] sm:$0xff]  ;;  %v6957_v40 = vand.u32 4294901760, %v6956_v57  ;;  %v19972_v57 = vpop.f32.mrf.mxu0 }
 0x32f   :  { %6922 = vmatpush1.msra.mxu1 %v6921_v54  ;;  %6755 = vmatprep.mubr.f32.mxu0 %v25639_v3  ;;  %v6998_v6 = vsub.f32 %v19918_v30, %v25640_v35  ;;  %25642 = vst [vmem:[#allocation77_spill] sm:$0xff] %v19972_v57  ;;  %v25648_v35 = vld [vmem:[#allocation64_spill] sm:$0xff]  ;;  %v25656_v57 = vld [vmem:[#allocation47_spill] sm:$0xff]  ;;  %v25657_v3 = vld [vmem:[#allocation10_spill] sm:$0xff] }
 0x330   :  { %6928 = vmatprep.subr.mxu1 %v6927_v43  ;;  %7012 = vmatprep.subr.mxu0 %v19429_v17  ;;  %v6993_v58 = vand.u32 4294901760, %v6992_v28  ;;  %v25646_v28 = vld [vmem:[#allocation60_spill] sm:$0xff] }
 0x331   :  { %6761 = vmatmul.mubr.f32.vlgmr.msra.gmra.mxu0 %v25641_v62  ;;  %6934 = vmatpush1.msra.mxu1 %v6933_v60  ;;  %v6999_v54 = vand.u32 4294901760, %v6998_v6  ;;  %v25644_v60 = vld [vmem:[#allocation44_spill] sm:$0xff] }
 0x332   :  { %7015 = vmatpush1.msra.mxu0 %v19440_v56  ;;  %6940 = vmatprep.subr.mxu1 %v6939_v20  ;;  %v25645_v20 = vld [vmem:[#allocation57_spill] sm:$0xff]  ;;  %v25649_v6 = vld [vmem:[#allocation16_spill] sm:$0xff] }
 0x333   :  { %7018 = vmatprep.subr.mxu0 %v19459_v4  ;;  %6946 = vmatpush1.msra.mxu1 %v6945_v61  ;;  %v25647_v61 = vld [vmem:[#allocation18_spill] sm:$0xff] }
 0x334   :  { %7021 = vmatpush1.msra.mxu0 %v19472_v2  ;;  %6952 = vmatprep.subr.mxu1 %v6951_v44  ;;  %v25650_v44 = vld [vmem:[#allocation48_spill] sm:$0xff] }
 0x335   :  { %7024 = vmatprep.subr.mxu0 %v19500_v8  ;;  %6958 = vmatpush1.msra.mxu1 %v6957_v40  ;;  %v25652_v40 = vld [vmem:[#allocation23_spill] sm:$0xff] }
 0x336   :  { %7027 = vmatpush1.msra.mxu0 %v19485_v41  ;;  %6994 = vmatprep.subr.mxu1 %v6993_v58  ;;  %v25653_v58 = vld [vmem:[#allocation54_spill] sm:$0xff] }
 0x337   :  { %7030 = vmatprep.subr.mxu0 %v19528_v51  ;;  %7000 = vmatpush2.msra.mxu1 %v6999_v54  ;;  %v25654_v54 = vld [vmem:[#allocation55_spill] sm:$0xff] }
 0x338   :  { %7033 = vmatpush1.msra.mxu0 %v19516_v47  ;;  %7004 = vmatmul.mubr.f32.vlgmr.msra.gmra.mxu1 %v25589_v42 }
 0x339   :  { %7036 = vmatprep.subr.mxu0 %v19540_v53  ;;  %7154 = vmatprep.subr.mxu1 %v19396_v32 }
 0x33a   :  { %7039 = vmatpush1.msra.mxu0 %v19546_v16  ;;  %7156 = vmatpush1.msra.mxu1 %v19407_v63 }
 0x33b   :  { %7042 = vmatprep.subr.mxu0 %v19583_v7  ;;  %7158 = vmatprep.subr.mxu1 %v19417_v22  ;;  %v5360_v34 = vpop.f32.mrf.mxu0 }
 0x33c   :  { %7045 = vmatpush1.msra.mxu0 %v19561_v31  ;;  %7160 = vmatpush1.msra.mxu1 %v19434_v9  ;;  %v5361_v43 = vadd.f32 %v5360_v34, %v19874_v12  ;;  %v19993_v12 = vpop.f32.mrf.mxu1  ;;  %v25655_v34 = vld [vmem:[#allocation62_spill] sm:$0xff] }
 0x33d   :  { %7048 = vmatprep.subr.mxu0 %v19622_v11  ;;  %7162 = vmatprep.subr.mxu1 %v19453_v15  ;;  %25651 = vst [vmem:[#allocation19_spill] sm:$0xff] %v19993_v12  ;;  %v25659_v12 = vld [vmem:[#allocation36_spill] sm:$0xff] }
 0x33e   :  { %7051 = vmatpush1.msra.mxu0 %v19613_v24  ;;  %7164 = vmatpush1.msra.mxu1 %v25643_v52 }
 0x33f   :  { %7054 = vmatprep.subr.mxu0 %v25644_v60  ;;  %7166 = vmatprep.subr.mxu1 %v25645_v20 }
 0x340   :  { %7057 = vmatpush1.msra.mxu0 %v25646_v28  ;;  %7168 = vmatpush1.msra.mxu1 %v25647_v61 }
 0x341   :  { %7060 = vmatprep.subr.mxu0 %v25648_v35  ;;  %7170 = vmatprep.subr.mxu1 %v25649_v6 }
 0x342   :  { %7063 = vmatpush1.msra.mxu0 %v25650_v44  ;;  %7172 = vmatpush1.msra.mxu1 %v25652_v40 }
 0x343   :  { %7066 = vmatprep.subr.mxu0 %v25653_v58  ;;  %7174 = vmatprep.subr.mxu1 %v25654_v54  ;;  %v25660_v54 = vld [vmem:[#allocation25_spill] sm:$0xff] }
 0x344   :  { %7069 = vmatpush1.msra.mxu0 %v25655_v34  ;;  %7176 = vmatpush1.msra.mxu1 %v25656_v57  ;;  %v5471_v62 = vpop.f32.mrf.mxu1  ;;  %v25661_v57 = vld [vmem:[#allocation8_spill] sm:$0xff] }
 0x345   :  { %7072 = vmatprep.subr.mxu0 %v19769_v48  ;;  %7178 = vmatprep.subr.mxu1 %v25657_v3  ;;  %v5472_v42 = vadd.f32 %v5471_v62, %v5361_v43  ;;  %v25662_v3 = vld [vmem:[#allocation21_spill] sm:$0xff]  ;;  %v25664_v43 = vld [vmem:[#allocation35_spill] sm:$0xff] }
 0x346   :  { %7075 = vmatpush1.msra.mxu0 %v19773_v25  ;;  %7180 = vmatpush1.msra.mxu1 %v25658_v14  ;;  %v25663_v62 = vld [vmem:[#allocation9_spill] sm:$0xff] }
 0x347   :  { %7078 = vmatprep.subr.mxu0 %v19809_v36  ;;  %7182 = vmatprep.subr.mxu1 %v25659_v12 }
 0x348   :  { %7081 = vmatpush1.msra.mxu0 %v19800_v50  ;;  %7184 = vmatpush1.msra.mxu1 %v25660_v54 }
 0x349   :  { %7084 = vmatprep.subr.mxu0 %v19834_v19  ;;  %7186 = vmatprep.subr.mxu1 %v25661_v57  ;;  %v25665_v19 = vld [vmem:[#allocation67_spill] sm:$0xff] }
 0x34a   :  { %7087 = vmatpush1.msra.mxu0 %v19817_v10  ;;  %7188 = vmatpush1.msra.mxu1 %v25662_v3  ;;  %v25666_v10 = vld [vmem:[#allocation68_spill] sm:$0xff] }
 0x34b   :  { %7090 = vmatprep.subr.mxu0 %v19862_v37  ;;  %7190 = vmatprep.subr.mxu1 %v25663_v62 }
 0x34c   :  { %7093 = vmatpush1.msra.mxu0 %v19826_v49  ;;  %7192 = vmatpush1.msra.mxu1 %v25664_v43 }
 0x34d   :  { %7096 = vmatprep.subr.mxu0 %v19880_v18  ;;  %7194 = vmatprep.subr.mxu1 %v19699_v33  ;;  %v25667_v18 = vld [vmem:[#allocation30_spill] sm:$0xff] }
 0x34e   :  { %7099 = vmatpush1.msra.mxu0 %v19884_v13  ;;  %7196 = vmatpush1.msra.mxu1 %v25665_v19  ;;  %v25668_v13 = vld [vmem:[#allocation31_spill] sm:$0xff] }
 0x34f   :  { %7102 = vmatprep.subr.mxu0 %v19898_v46  ;;  %7198 = vmatprep.subr.mxu1 %v25666_v10  ;;  %v25669_v10 = vand.u32 4294901760, %v19429_v17  ;;  %v25673_v17 = vand.u32 4294901760, %v19500_v8  ;;  %v25679_v8 = vand.u32 4294901760, %v19540_v53  ;;  %v25684_v53 = vand.u32 4294901760, %v19622_v11 }
 0x350   :  { %7105 = vmatpush1.msra.mxu0 %v19902_v26  ;;  %7200 = vmatpush1.msra.mxu1 %v19751_v0  ;;  %v25670_v0 = vand.u32 4294901760, %v19440_v56  ;;  %v25674_v56 = vand.u32 4294901760, %v19485_v41  ;;  %v25681_v41 = vand.u32 4294901760, %v19546_v16  ;;  %v25685_v16 = vand.u32 4294901760, %v19613_v24 }
 0x351   :  { %7138 = vmatprep.subr.mxu0 %v19914_v21  ;;  %7202 = vmatprep.subr.mxu1 %v19780_v5  ;;  %v25691_v11 = vand.u32 4294901760, %v25653_v58  ;;  %v25697_v58 = vand.u32 4294901760, %v19773_v25 }
 0x352   :  { %7141 = vmatpush2.msra.mxu0 %v19918_v30  ;;  %7144 = vmatprep.mubr.f32.mxu0 %v25667_v18  ;;  %v25671_v30 = vand.u32 4294901760, %v19459_v4  ;;  %v25672_v18 = vand.u32 4294901760, %v19472_v2  ;;  %v25675_v4 = vand.u32 4294901760, %v19528_v51  ;;  %v25677_v2 = vand.u32 4294901760, %v19516_v47 }
 0x353   :  { %7204 = vmatpush1.msra.mxu1 %v19763_v38  ;;  %7147 = vmatmul.mubr.f32.vlgmr.msra.gmra.mxu0 %v25668_v13  ;;  %v25682_v51 = vand.u32 4294901760, %v19583_v7  ;;  %v25683_v47 = vand.u32 4294901760, %v19561_v31  ;;  %v25689_v31 = vand.u32 4294901760, %v25650_v44  ;;  %v20093_v7 = vpop.f32.mrf.mxu1  ;;  %v343_v44 = vld [vmem:[%s23845_s2 + $0x9b0] sm:$0xff] }
 0x354   :  { %7206 = vmatprep.subr.mxu1 %v19802_v29  ;;  %7267 = vmatprep.subr.mxu0 %v25669_v10  ;;  %v25676_v10 = vld [vmem:[#allocation33_spill] sm:$0xff]  ;;  %25690 = vst [vmem:[#allocation57_spill] sm:$0xff] %v20093_v7 }
 0x355   :  { %7208 = vmatpush1.msra.mxu1 %v19782_v27  ;;  %7271 = vmatpush1.msra.mxu0 %v25670_v0  ;;  %v25678_v0 = vld [vmem:[#allocation34_spill] sm:$0xff] }
 0x356   :  { %7210 = vmatprep.subr.mxu1 %v19828_v45  ;;  %7275 = vmatprep.subr.mxu0 %v25671_v30 }
 0x357   :  { %7212 = vmatpush1.msra.mxu1 %v19845_v59  ;;  %7279 = vmatpush1.msra.mxu0 %v25672_v18  ;;  %v20058_v18 = vpop.f32.mrf.mxu0 }
 0x358   :  { %7214 = vmatprep.subr.mxu1 %v19855_v39  ;;  %7283 = vmatprep.subr.mxu0 %v25673_v17  ;;  %25680 = vst [vmem:[#allocation44_spill] sm:$0xff] %v20058_v18 }
 0x359   :  { %7216 = vmatpush1.msra.mxu1 %v19870_v23  ;;  %7287 = vmatpush1.msra.mxu0 %v25674_v56  ;;  %v25699_v56 = vand.u32 4294901760, %v19809_v36 }
 0x35a   :  { %7248 = vmatprep.subr.mxu1 %v19876_v55  ;;  %7291 = vmatprep.subr.mxu0 %v25675_v4  ;;  %v323_v4 = vld [vmem:[%s23845_s2 + $0x910] sm:$0xff] }
 0x35b   :  { %7250 = vmatpush2.msra.mxu1 %v19889_v1  ;;  %7254 = vmatprep.mubr.f32.mxu1 %v25676_v10 }
 0x35c   :  { %7295 = vmatpush1.msra.mxu0 %v25677_v2  ;;  %7258 = vmatmul.mubr.f32.vlgmr.msra.gmra.mxu1 %v25678_v0  ;;  %v25700_v2 = vand.u32 4294901760, %v19800_v50  ;;  %v301_v50 = vld [vmem:[%s23845_s2 + $0x860] sm:$0xff] }
 0x35d   :  { %7299 = vmatprep.subr.mxu0 %v25679_v8  ;;  %7440 = vmatprep.subr.mxu1 %v19396_v32  ;;  %v20136_v8 = vand.u32 4294901760, %v343_v44  ;;  %v133_v0 = vld [vmem:[%s23845_s2 + $0x320] sm:$0xff] }
 0x35e   :  { %7303 = vmatpush1.msra.mxu0 %v25681_v41  ;;  %7442 = vmatpush1.msra.mxu1 %v19407_v63  ;;  %v25686_v63 = vand.u32 4294901760, %v25644_v60  ;;  %v25692_v60 = vld [vmem:[#allocation55_spill] sm:$0xff] }
 0x35f   :  { %7307 = vmatprep.subr.mxu0 %v25682_v51  ;;  %7444 = vmatprep.subr.mxu1 %v19417_v22  ;;  %v5646_v30 = vpop.f32.mrf.mxu0  ;;  %v25687_v22 = vand.u32 4294901760, %v25646_v28  ;;  %v25694_v28 = vld [vmem:[#allocation47_spill] sm:$0xff] }
 0x360   :  { %7311 = vmatpush1.msra.mxu0 %v25683_v47  ;;  %7446 = vmatpush1.msra.mxu1 %v19434_v9  ;;  %v5647_v32 = vadd.f32 %v5646_v30, %v5472_v42  ;;  %v365_v9 = vld [vmem:[%s23845_s2 + $0xa60] sm:$0xff]  ;;  %v364_v42 = vld [vmem:[%s23845_s2 + $0xa58] sm:$0xff]  ;;  %v302_v47 = vld [vmem:[%s23845_s2 + $0x868] sm:$0xff]  ;;  %v20155_v30 = vand.u32 4294901760, %v323_v4 }
 0x361   :  { %7315 = vmatprep.subr.mxu0 %v25684_v53  ;;  %7448 = vmatprep.subr.mxu1 %v19453_v15  ;;  %v25688_v15 = vand.u32 4294901760, %v25648_v35  ;;  %v20098_v24 = vand.u32 4294901760, %v365_v9  ;;  %v281_v53 = vld [vmem:[%s23845_s2 + $0x7c0] sm:$0xff] }
 0x362   :  { %7319 = vmatpush1.msra.mxu0 %v25685_v16  ;;  %7450 = vmatpush1.msra.mxu1 %v25643_v52  ;;  %v344_v52 = vld [vmem:[%s23845_s2 + $0x9b8] sm:$0xff]  ;;  %v25706_v16 = vand.u32 4294901760, %v19862_v37  ;;  %v259_v37 = vld [vmem:[%s23845_s2 + $0x710] sm:$0xff] }
 0x363   :  { %7323 = vmatprep.subr.mxu0 %v25686_v63  ;;  %7452 = vmatprep.subr.mxu1 %v25645_v20  ;;  %v25693_v20 = vand.u32 4294901760, %v25655_v34  ;;  %v20119_v34 = vand.u32 4294901760, %v344_v52  ;;  %v20131_v25 = vsub.f32 %v365_v9, %v20098_v24  ;;  %v20174_v9 = vsub.f32 %v343_v44, %v20136_v8 }
 0x364   :  { %7327 = vmatpush1.msra.mxu0 %v25687_v22  ;;  %7454 = vmatpush1.msra.mxu1 %v25647_v61  ;;  %v25695_v61 = vand.u32 4294901760, %v19769_v48  ;;  %v322_v48 = vld [vmem:[%s23845_s2 + $0x908] sm:$0xff]  ;;  %v25707_v22 = vand.u32 4294901760, %v19826_v49  ;;  %v20189_v49 = vand.u32 4294901760, %v281_v53 }
 0x365   :  { %7331 = vmatprep.subr.mxu0 %v25688_v15  ;;  %7456 = vmatprep.subr.mxu1 %v25649_v6  ;;  %v20109_v6 = vand.u32 4294901760, %v364_v42  ;;  %v20144_v51 = vand.u32 4294901760, %v322_v48  ;;  %v24406_v63 = vand.u32 4294901760, %v20131_v25  ;;  %v20176_v15 = vand.u32 4294901760, %v302_v47 }
 0x366   :  { %7335 = vmatpush1.msra.mxu0 %v25689_v31  ;;  %7458 = vmatpush1.msra.mxu1 %v25652_v40  ;;  %v25696_v40 = vld [vmem:[#allocation10_spill] sm:$0xff]  ;;  %25712 = vst [vmem:[#allocation48_spill] sm:$0xff] %v20189_v49 }
 0x367   :  { %7339 = vmatprep.subr.mxu0 %v25691_v11  ;;  %7460 = vmatprep.subr.mxu1 %v25692_v60  ;;  %v20142_v36 = vsub.f32 %v364_v42, %v20109_v6  ;;  %25703 = vst [vmem:[#allocation18_spill] sm:$0xff] %v20144_v51  ;;  %25708 = vst [vmem:[#allocation64_spill] sm:$0xff] %v20176_v15  ;;  %v25710_v31 = vld [vmem:[#allocation74_spill] sm:$0xff]  ;;  %v25713_v60 = vld [vmem:[#allocation75_spill] sm:$0xff]  ;;  %v20210_v44 = vsub.f32 %v20131_v25, %v24406_v63 }
 0x368   :  { %7343 = vmatpush1.msra.mxu0 %v25693_v20  ;;  %7462 = vmatpush1.msra.mxu1 %v25694_v28  ;;  %v5753_v35 = vpop.f32.mrf.mxu1  ;;  %v25711_v42 = vand.u32 4294901760, %v25710_v31  ;;  %v25714_v20 = vand.u32 4294901760, %v25713_v60  ;;  %v25725_v31 = vld [vmem:[#allocation26_spill] sm:$0xff] }
 0x369   :  { %7347 = vmatprep.subr.mxu0 %v25695_v61  ;;  %7464 = vmatprep.subr.mxu1 %v25696_v40  ;;  %v20117_v17 = vadd.f32 %v5753_v35, %v5647_v32  ;;  %v20161_v32 = vsub.f32 %v344_v52, %v20119_v34  ;;  %v24404_v11 = vand.u32 4294901760, %v20142_v36  ;;  %v260_v52 = vld [vmem:[%s23845_s2 + $0x718] sm:$0xff]  ;;  %v20202_v61 = vsub.f32 %v323_v4, %v20155_v30  ;;  %v25718_v40 = vld [vmem:[#allocation68_spill] sm:$0xff] }
 0x36a   :  { %7351 = vmatpush1.msra.mxu0 %v25697_v58  ;;  %7466 = vmatpush1.msra.mxu1 %v25658_v14  ;;  %v25701_v14 = vld [vmem:[#allocation71_spill] sm:$0xff]  ;;  %v25716_v35 = vand.u32 4294901760, %v19898_v46  ;;  %v25719_v58 = vand.u32 4294901760, %v19902_v26  ;;  %v239_v46 = vld [vmem:[%s23845_s2 + $0x670] sm:$0xff]  ;;  %v238_v4 = vld [vmem:[%s23845_s2 + $0x668] sm:$0xff]  ;;  %v25740_v10 = vand.u32 4294901760, %v20210_v44 }
 0x36b   :  { %25698 = vst [vmem:[#allocation60_spill] sm:$0xff] %v20117_v17  ;;  %7355 = vmatprep.subr.mxu0 %v25699_v56  ;;  %7468 = vmatprep.subr.mxu1 %v25659_v12  ;;  %v25702_v41 = vand.u32 4294901760, %v25701_v14  ;;  %v25704_v12 = vld [vmem:[#allocation69_spill] sm:$0xff]  ;;  %v24403_v28 = vand.u32 4294901760, %v20161_v32  ;;  %v20220_v56 = vand.u32 4294901760, %v260_v52  ;;  %v25722_v14 = vand.u32 4294901760, %v19914_v21 }
 0x36c   :  { %7359 = vmatpush1.msra.mxu0 %v25700_v2  ;;  %7470 = vmatpush1.msra.mxu1 %v25660_v54  ;;  %v25705_v54 = vand.u32 4294901760, %v25704_v12  ;;  %v20230_v2 = vsub.f32 %v302_v47, %v20176_v15  ;;  %v25721_v26 = vld [vmem:[#allocation61_spill] sm:$0xff]  ;;  %v20242_v12 = vsub.f32 %v281_v53, %v20189_v49  ;;  %v218_v53 = vld [vmem:[%s23845_s2 + $0x5c8] sm:$0xff]  ;;  %v20267_v60 = vand.u32 4294901760, %v238_v4 }
 0x36d   :  { %7363 = vmatprep.subr.mxu0 %v25702_v41  ;;  %7472 = vmatprep.subr.mxu1 %v25661_v57  ;;  %v280_v57 = vld [vmem:[%s23845_s2 + $0x7b8] sm:$0xff]  ;;  %25720 = vst [vmem:[#allocation62_spill] sm:$0xff] %v20220_v56  ;;  %v20238_v41 = vsub.f32 %v20142_v36, %v24404_v11  ;;  %v20253_v21 = vsub.f32 %v20161_v32, %v24403_v28 }
 0x36e   :  { %7367 = vmatpush1.msra.mxu0 %v25705_v54  ;;  %7474 = vmatpush1.msra.mxu1 %v25662_v3  ;;  %v20178_v3 = vand.u32 4294901760, %v301_v50  ;;  %v25723_v54 = vld [vmem:[#allocation76_spill] sm:$0xff]  ;;  %25727 = vst [vmem:[#allocation36_spill] sm:$0xff] %v20267_v60 }
 0x36f   :  { %7371 = vmatprep.subr.mxu0 %v25706_v16  ;;  %7476 = vmatprep.subr.mxu1 %v25663_v62  ;;  %v20187_v62 = vsub.f32 %v322_v48, %v20144_v51  ;;  %v25724_v47 = vand.u32 4294901760, %v25723_v54  ;;  %v20295_v54 = vand.u32 4294901760, %v218_v53 }
 0x370   :  { %7375 = vmatpush1.msra.mxu0 %v25707_v22  ;;  %25709 = vst [vmem:[#allocation16_spill] sm:$0xff] %v20178_v3  ;;  %7478 = vmatpush1.msra.mxu1 %v25664_v43  ;;  %v20198_v43 = vand.u32 4294901760, %v280_v57  ;;  %v20218_v48 = vsub.f32 %v301_v50, %v20178_v3  ;;  %v24405_v22 = vand.u32 4294901760, %v20202_v61 }
 0x371   :  { %7379 = vmatprep.subr.mxu0 %v25711_v42  ;;  %7480 = vmatprep.subr.mxu1 %v19699_v33  ;;  %v20212_v33 = vand.u32 4294901760, %v259_v37  ;;  %v24402_v50 = vand.u32 4294901760, %v20187_v62  ;;  %v20265_v42 = vand.u32 4294901760, %v239_v46  ;;  %25729 = vst [vmem:[#allocation25_spill] sm:$0xff] %v20295_v54 }
 0x372   :  { %7383 = vmatpush1.msra.mxu0 %v25714_v20  ;;  %25715 = vst [vmem:[#allocation23_spill] sm:$0xff] %v20198_v43  ;;  %7482 = vmatpush1.msra.mxu1 %v25665_v19  ;;  %v24401_v19 = vand.u32 4294901760, %v20174_v9  ;;  %v20248_v16 = vsub.f32 %v280_v57, %v20198_v43  ;;  %v217_v20 = vld [vmem:[%s23845_s2 + $0x5c0] sm:$0xff] }
 0x373   :  { %7387 = vmatprep.subr.mxu0 %v25716_v35  ;;  %25717 = vst [vmem:[#allocation54_spill] sm:$0xff] %v20212_v33  ;;  %7484 = vmatprep.subr.mxu1 %v25718_v40  ;;  %v20263_v57 = vsub.f32 %v259_v37, %v20212_v33  ;;  %25726 = vst [vmem:[#allocation24_spill] sm:$0xff] %v20265_v42  ;;  %v25728_v35 = vld [vmem:[#allocation28_spill] sm:$0xff]  ;;  %v24408_v37 = vand.u32 4294901760, %v20230_v2  ;;  %v24407_v40 = vand.u32 4294901760, %v20218_v48 }
 0x374   :  { %7391 = vmatpush1.msra.mxu0 %v25719_v58  ;;  %7486 = vmatpush1.msra.mxu1 %v25721_v26  ;;  %v196_v58 = vld [vmem:[%s23845_s2 + $0x518] sm:$0xff]  ;;  %v20285_v26 = vsub.f32 %v260_v52, %v20220_v56  ;;  %v24410_v28 = vand.u32 4294901760, %v20248_v16  ;;  %v20324_v52 = vsub.f32 %v239_v46, %v20265_v42 }
 0x375   :  { %7425 = vmatprep.subr.mxu0 %v25722_v14  ;;  %7488 = vmatprep.subr.mxu1 %v19780_v5  ;;  %v20293_v14 = vsub.f32 %v20187_v62, %v24402_v50  ;;  %v197_v50 = vld [vmem:[%s23845_s2 + $0x520] sm:$0xff]  ;;  %v20317_v11 = vand.u32 4294901760, %v196_v58  ;;  %v24411_v63 = vand.u32 4294901760, %v20263_v57 }
 0x376   :  { %7429 = vmatpush2.msra.mxu0 %v25724_v47  ;;  %7431 = vmatprep.mubr.f32.mxu0 %v25725_v31  ;;  %v24409_v47 = vand.u32 4294901760, %v20242_v12  ;;  %v20343_v46 = vand.u32 4294901760, %v197_v50  ;;  %v25744_v44 = vand.u32 4294901760, %v20324_v52 }
 0x377   :  { %7490 = vmatpush1.msra.mxu1 %v19763_v38  ;;  %7433 = vmatmul.mubr.f32.vlgmr.msra.gmra.mxu0 %v25728_v35  ;;  %v20277_v38 = vsub.f32 %v20174_v9, %v24401_v19  ;;  %v20306_v19 = vand.u32 4294901760, %v217_v20  ;;  %25731 = vst [vmem:[#allocation21_spill] sm:$0xff] %v20317_v11 }
 0x378   :  { %7492 = vmatprep.subr.mxu1 %v19802_v29  ;;  %7547 = vmatprep.subr.mxu0 %v20098_v24  ;;  %v20337_v29 = vsub.f32 %v20218_v48, %v24407_v40  ;;  %25732 = vst [vmem:[#allocation9_spill] sm:$0xff] %v20343_v46  ;;  %v176_v40 = vld [vmem:[%s23845_s2 + $0x478] sm:$0xff] }
 0x379   :  { %7494 = vmatpush1.msra.mxu1 %v19782_v27  ;;  %7549 = vmatpush1.msra.mxu0 %v20109_v6  ;;  %v20304_v27 = vsub.f32 %v20202_v61, %v24405_v22  ;;  %25730 = vst [vmem:[#allocation8_spill] sm:$0xff] %v20306_v19  ;;  %v175_v22 = vld [vmem:[%s23845_s2 + $0x470] sm:$0xff]  ;;  %v20391_v18 = vand.u32 4294901760, %v176_v40 }
 0x37a   :  { %7496 = vmatprep.subr.mxu1 %v19828_v45  ;;  %7551 = vmatprep.subr.mxu0 %v20119_v34  ;;  %v20315_v45 = vsub.f32 %v238_v4, %v20267_v60  ;;  %v20332_v4 = vsub.f32 %v20230_v2, %v24408_v37  ;;  %v20354_v37 = vsub.f32 %v218_v53, %v20295_v54  ;;  %v20367_v5 = vand.u32 4294901760, %v175_v22  ;;  %v155_v53 = vld [vmem:[%s23845_s2 + $0x3d0] sm:$0xff] }
 0x37b   :  { %7498 = vmatpush1.msra.mxu1 %v19845_v59  ;;  %7553 = vmatpush1.msra.mxu0 %v20136_v8  ;;  %v7683_v59 = vand.u32 4294901760, %v20277_v38  ;;  %v20348_v38 = vsub.f32 %v20242_v12, %v24409_v47  ;;  %v20365_v47 = vsub.f32 %v20248_v16, %v24410_v28  ;;  %v154_v28 = vld [vmem:[%s23845_s2 + $0x3c8] sm:$0xff]  ;;  %25737 = vst [vmem:[#allocation10_spill] sm:$0xff] %v20391_v18  ;;  %v20401_v17 = vand.u32 4294901760, %v155_v53 }
 0x37c   :  { %7500 = vmatprep.subr.mxu1 %v19855_v39  ;;  %7555 = vmatprep.subr.mxu0 %v20155_v30  ;;  %25733 = vst [vmem:[#allocation35_spill] sm:$0xff] %v20354_v37  ;;  %v20360_v39 = vsub.f32 %v217_v20, %v20306_v19  ;;  %25735 = vst [vmem:[#allocation55_spill] sm:$0xff] %v20367_v5  ;;  %v20380_v20 = vsub.f32 %v20263_v57, %v24411_v63  ;;  %v25738_v63 = vand.u32 4294901760, %v20285_v26 }
 0x37d   :  { %7502 = vmatpush1.msra.mxu1 %v19870_v23  ;;  %7557 = vmatpush1.msra.mxu0 %v20144_v51  ;;  %v7689_v23 = vand.u32 4294901760, %v20304_v27  ;;  %v7713_v7 = vand.u32 4294901760, %v20348_v38  ;;  %v7719_v38 = vand.u32 4294901760, %v20365_v47  ;;  %v20418_v13 = vsub.f32 %v175_v22, %v20367_v5 }
 0x37e   :  { %7534 = vmatprep.subr.mxu1 %v19876_v55  ;;  %25734 = vst [vmem:[#allocation67_spill] sm:$0xff] %v20360_v39  ;;  %7559 = vmatprep.subr.mxu0 %v20176_v15  ;;  %v20375_v55 = vsub.f32 %v196_v58, %v20317_v11  ;;  %v7707_v58 = vand.u32 4294901760, %v20337_v29  ;;  %v20396_v27 = vsub.f32 %v20285_v26, %v25738_v63  ;;  %v25745_v47 = vand.u32 4294901760, %v20315_v45 }
 0x37f   :  { %7536 = vmatpush2.msra.mxu1 %v19889_v1  ;;  %7538 = vmatprep.mubr.f32.mxu1 %v25725_v31  ;;  %v7701_v1 = vand.u32 4294901760, %v20332_v4  ;;  %v134_v4 = vld [vmem:[%s23845_s2 + $0x328] sm:$0xff]  ;;  %v20411_v63 = vsub.f32 %v197_v50, %v20343_v46  ;;  %25741 = vst [vmem:[#allocation69_spill] sm:$0xff] %v20418_v13  ;;  %v25743_v50 = vand.u32 4294901760, %v20238_v41  ;;  %v20433_v22 = vsub.f32 %v20324_v52, %v25744_v44 }
 0x380   :  { %25736 = vst [vmem:[#allocation47_spill] sm:$0xff] %v20375_v55  ;;  %7561 = vmatpush1.msra.mxu0 %v20178_v3  ;;  %7540 = vmatmul.mubr.f32.vlgmr.msra.gmra.mxu1 %v25728_v35  ;;  %v112_v3 = vld [vmem:[%s23845_s2 + $0x278] sm:$0xff]  ;;  %v20438_v29 = vsub.f32 %v20315_v45, %v25745_v47  ;;  %v7725_v44 = vand.u32 4294901760, %v20396_v27  ;;  %v20453_v47 = vand.u32 4294901760, %v133_v0  ;;  %v20456_v15 = vsub.f32 %v176_v40, %v20391_v18 }
 0x381   :  { %7563 = vmatprep.subr.mxu0 %v20189_v49  ;;  %25739 = vst [vmem:[#allocation71_spill] sm:$0xff] %v20411_v63  ;;  %7666 = vmatprep.subr.mxu1 %v25740_v10  ;;  %v20420_v49 = vand.u32 4294901760, %v154_v28  ;;  %v25746_v10 = vand.u32 4294901760, %v20253_v21  ;;  %v25750_v41 = vand.u32 4294901760, %v20354_v37  ;;  %v92_v27 = vld [vmem:[%s23845_s2 + $0x1d8] sm:$0xff] }
 0x382   :  { %7565 = vmatpush1.msra.mxu0 %v20198_v43  ;;  %7672 = vmatpush1.msra.mxu1 %v25743_v50  ;;  %v113_v43 = vld [vmem:[%s23845_s2 + $0x280] sm:$0xff]  ;;  %v91_v50 = vld [vmem:[%s23845_s2 + $0x1d0] sm:$0xff]  ;;  %25748 = vst [vmem:[#allocation68_spill] sm:$0xff] %v20453_v47  ;;  %25749 = vst [vmem:[#allocation61_spill] sm:$0xff] %v20456_v15 }
 0x383   :  { %25742 = vst [vmem:[#allocation74_spill] sm:$0xff] %v20420_v49  ;;  %7567 = vmatprep.subr.mxu0 %v20220_v56  ;;  %7678 = vmatprep.subr.mxu1 %v25746_v10  ;;  %v20451_v56 = vand.u32 4294901760, %v134_v4  ;;  %v20462_v51 = vsub.f32 %v20354_v37, %v25750_v41  ;;  %v20465_v10 = vand.u32 4294901760, %v112_v3  ;;  %v20475_v40 = vsub.f32 %v154_v28, %v20420_v49 }
 0x384   :  { %7569 = vmatpush1.msra.mxu0 %v20212_v33  ;;  %7684 = vmatpush1.msra.mxu1 %v7683_v59  ;;  %v20471_v33 = vsub.f32 %v155_v53, %v20401_v17  ;;  %v25751_v59 = vand.u32 4294901760, %v20360_v39  ;;  %v20482_v21 = vand.u32 4294901760, %v113_v43  ;;  %v25752_v37 = vand.u32 4294901760, %v20293_v14 }
 0x385   :  { %25747 = vst [vmem:[#allocation75_spill] sm:$0xff] %v20451_v56  ;;  %7571 = vmatprep.subr.mxu0 %v20265_v42  ;;  %7690 = vmatprep.subr.mxu1 %v7689_v23  ;;  %v20484_v42 = vand.u32 4294901760, %v91_v50  ;;  %v7737_v23 = vand.u32 4294901760, %v20433_v22  ;;  %v7743_v53 = vand.u32 4294901760, %v20438_v29  ;;  %v25753_v28 = vand.u32 4294901760, %v20375_v55  ;;  %v70_v22 = vld [vmem:[%s23845_s2 + $0x128] sm:$0xff]  ;;  %v20538_v29 = vpop.f32.mrf.mxu0 }
 0x386   :  { %7573 = vmatpush1.msra.mxu0 %v20267_v60  ;;  %v20480_v41 = vsub.f32 %v20360_v39, %v25751_v59  ;;  %7696 = vmatpush1.msra.mxu1 %v25752_v37  ;;  %v71_v39 = vld [vmem:[%s23845_s2 + $0x130] sm:$0xff]  ;;  %v20502_v37 = vsub.f32 %v133_v0, %v20453_v47  ;;  %v20504_v14 = vand.u32 4294901760, %v92_v27  ;;  %v25754_v59 = vand.u32 4294901760, %v20411_v63  ;;  %25757 = vst [vmem:[#allocation79_spill] sm:$0xff] %v20538_v29 }
 0x387   :  { %7575 = vmatprep.subr.mxu0 %v20295_v54  ;;  %v20494_v60 = vsub.f32 %v20375_v55, %v25753_v28  ;;  %7702 = vmatprep.subr.mxu1 %v7701_v1  ;;  %v20511_v28 = vsub.f32 %v134_v4, %v20451_v56  ;;  %v7749_v1 = vand.u32 4294901760, %v20462_v51  ;;  %v50_v54 = vld [vmem:[%s23845_s2 + $0x88] sm:$0xff]  ;;  %v20528_v51 = vsub.f32 %v91_v50, %v20484_v42 }
 0x388   :  { %7577 = vmatpush1.msra.mxu0 %v20306_v19  ;;  %7708 = vmatpush1.msra.mxu1 %v7707_v58  ;;  %v7760_v0 = vsub.f32 %v20411_v63, %v25754_v59  ;;  %v20519_v19 = vsub.f32 %v112_v3, %v20465_v10  ;;  %v7755_v58 = vand.u32 4294901760, %v20480_v41  ;;  %v20530_v4 = vand.u32 4294901760, %v71_v39  ;;  %v49_v3 = vld [vmem:[%s23845_s2 + $0x80] sm:$0xff] }
 0x389   :  { %7579 = vmatprep.subr.mxu0 %v20343_v46  ;;  %7714 = vmatprep.subr.mxu1 %v7713_v7  ;;  %v20536_v59 = vsub.f32 %v113_v43, %v20482_v21  ;;  %v20540_v46 = vpop.f32.mrf.mxu1  ;;  %v7767_v7 = vand.u32 4294901760, %v20494_v60  ;;  %v25759_v50 = vand.u32 4294901760, %v20418_v13  ;;  %v386_v43 = vld [vmem:[%s23845_s2 + $0xb08] sm:$0xff]  ;;  %v20557_v60 = vand.u32 4294901760, %v50_v54 }
 0x38a   :  { %25755 = vst [vmem:[#allocation76_spill] sm:$0xff] %v20519_v19  ;;  %7581 = vmatpush1.msra.mxu0 %v20317_v11  ;;  %25758 = vst [vmem:[#allocation80_spill] sm:$0xff] %v20540_v46  ;;  %7720 = vmatpush1.msra.mxu1 %v7719_v38  ;;  %v20547_v11 = vand.u32 4294901760, %v70_v22  ;;  %v25760_v38 = vand.u32 4294901760, %v20456_v15  ;;  %v20564_v55 = vsub.f32 %v92_v27, %v20504_v14  ;;  %v20572_v29 = vand.u32 4294901760, %v49_v3 }
 0x38b   :  { %25756 = vst [vmem:[#allocation78_spill] sm:$0xff] %v20536_v59  ;;  %7583 = vmatprep.subr.mxu0 %v20391_v18  ;;  %v7778_v41 = vsub.f32 %v20418_v13, %v25759_v50  ;;  %7726 = vmatprep.subr.mxu1 %v7725_v44  ;;  %v385_v50 = vld [vmem:[%s23845_s2 + $0xb00] sm:$0xff]  ;;  %v25761_v18 = vand.u32 4294901760, %v20380_v20  ;;  %v7761_v44 = vand.u32 4294901760, %v7760_v0  ;;  %v20578_v20 = vand.u32 4294901760, %v386_v43 }
 0x38c   :  { %7585 = vmatpush1.msra.mxu0 %v20367_v5  ;;  %v7772_v46 = vsub.f32 %v20456_v15, %v25760_v38  ;;  %v5868_v5 = vpop.f32.mrf.mxu0  ;;  %v25762_v38 = vand.u32 4294901760, %v20471_v33  ;;  %v6111_v15 = vpop.f32.mrf.mxu1  ;;  %v20582_v0 = vsub.f32 %v71_v39, %v20530_v4  ;;  %v25765_v63 = vand.u32 4294901760, %v20475_v40  ;;  %7896 = vmatprep.mubr.f32.mxu1 %v25725_v31  ;;  %v25797_v31 = vld [vmem:[#allocation36_spill] sm:$0xff] }
 0x38d   :  { %7732 = vmatpush1.msra.mxu1 %v25761_v18  ;;  %7587 = vmatprep.subr.mxu0 %v20401_v17  ;;  %v20576_v27 = vadd.f32 %v6111_v15, %v5868_v5  ;;  %v25766_v39 = vand.u32 4294901760, %v20511_v28  ;;  %v25778_v15 = vld [vmem:[#allocation37_spill] sm:$0xff] }
 0x38e   :  { %v7784_v13 = vsub.f32 %v20471_v33, %v25762_v38  ;;  %7738 = vmatprep.subr.mxu1 %v7737_v23  ;;  %7589 = vmatpush1.msra.mxu0 %v20420_v49  ;;  %25763 = vst [vmem:[#allocation81_spill] sm:$0xff] %v20582_v0  ;;  %v20586_v38 = vsub.f32 %v70_v22, %v20547_v11  ;;  %v20591_v49 = vand.u32 4294901760, %v385_v50  ;;  %v7773_v5 = vand.u32 4294901760, %v7772_v46 }
 0x38f   :  { %7744 = vmatpush1.msra.mxu1 %v7743_v53  ;;  %7591 = vmatprep.subr.mxu0 %v20451_v56  ;;  %v7790_v23 = vsub.f32 %v20475_v40, %v25765_v63  ;;  %v7796_v53 = vsub.f32 %v20511_v28, %v25766_v39  ;;  %v20600_v22 = vsub.f32 %v50_v54, %v20557_v60  ;;  %v7779_v63 = vand.u32 4294901760, %v7778_v41 }
 0x390   :  { %25764 = vst [vmem:[#allocation82_spill] sm:$0xff] %v20586_v38  ;;  %7750 = vmatprep.subr.mxu1 %v7749_v1  ;;  %7593 = vmatpush1.msra.mxu0 %v20453_v47  ;;  %v20604_v56 = vsub.f32 %v49_v3, %v20572_v29  ;;  %v25767_v1 = vand.u32 4294901760, %v20502_v37  ;;  %v7785_v39 = vand.u32 4294901760, %v7784_v13  ;;  %v25768_v54 = vand.u32 4294901760, %v20536_v59 }
 0x391   :  { %7756 = vmatpush1.msra.mxu1 %v7755_v58  ;;  %7595 = vmatprep.subr.mxu0 %v20482_v21  ;;  %v20616_v41 = vsub.f32 %v386_v43, %v20578_v20  ;;  %v7791_v3 = vand.u32 4294901760, %v7790_v23  ;;  %v25771_v43 = vand.u32 4294901760, %v20564_v55  ;;  %v25772_v23 = vand.u32 4294901760, %v20528_v51 }
 0x392   :  { %v7802_v46 = vsub.f32 %v20502_v37, %v25767_v1  ;;  %7762 = vmatprep.subr.mxu1 %v7761_v44  ;;  %7597 = vmatpush1.msra.mxu0 %v20465_v10  ;;  %v7808_v58 = vsub.f32 %v20536_v59, %v25768_v54  ;;  %v20620_v1 = vsub.f32 %v385_v50, %v20591_v49  ;;  %v25770_v44 = vand.u32 4294901760, %v20519_v19 }
 0x393   :  { %7768 = vmatpush1.msra.mxu1 %v7767_v7  ;;  %7599 = vmatprep.subr.mxu0 %v20504_v14  ;;  %v7797_v54 = vand.u32 4294901760, %v7796_v53  ;;  %v7820_v7 = vsub.f32 %v20564_v55, %v25771_v43  ;;  %v25773_v53 = vand.u32 4294901760, %v20582_v0 }
 0x394   :  { %25769 = vst [vmem:[#allocation83_spill] sm:$0xff] %v20620_v1  ;;  %v7814_v13 = vsub.f32 %v20519_v19, %v25770_v44  ;;  %7774 = vmatprep.subr.mxu1 %v7773_v5  ;;  %7601 = vmatpush1.msra.mxu0 %v20484_v42  ;;  %v7803_v50 = vand.u32 4294901760, %v7802_v46  ;;  %v7826_v44 = vsub.f32 %v20528_v51, %v25772_v23  ;;  %v7809_v5 = vand.u32 4294901760, %v7808_v58 }
 0x395   :  { %7780 = vmatpush1.msra.mxu1 %v7779_v63  ;;  %7603 = vmatprep.subr.mxu0 %v20530_v4  ;;  %v7832_v43 = vsub.f32 %v20582_v0, %v25773_v53  ;;  %v25774_v46 = vand.u32 4294901760, %v20586_v38  ;;  %v25775_v58 = vand.u32 4294901760, %v20600_v22 }
 0x396   :  { %7786 = vmatprep.subr.mxu1 %v7785_v39  ;;  %7605 = vmatpush1.msra.mxu0 %v20547_v11  ;;  %v7815_v63 = vand.u32 4294901760, %v7814_v13  ;;  %v7821_v39 = vand.u32 4294901760, %v7820_v7  ;;  %v25776_v13 = vand.u32 4294901760, %v20604_v56 }
 0x397   :  { %7792 = vmatpush1.msra.mxu1 %v7791_v3  ;;  %7607 = vmatprep.subr.mxu0 %v20557_v60  ;;  %v7838_v23 = vsub.f32 %v20586_v38, %v25774_v46  ;;  %v7844_v53 = vsub.f32 %v20600_v22, %v25775_v58  ;;  %v7827_v3 = vand.u32 4294901760, %v7826_v44  ;;  %v7833_v46 = vand.u32 4294901760, %v7832_v43 }
 0x398   :  { %7798 = vmatprep.subr.mxu1 %v7797_v54  ;;  %7609 = vmatpush1.msra.mxu0 %v20572_v29  ;;  %v7850_v18 = vsub.f32 %v20604_v56, %v25776_v13  ;;  %v25777_v54 = vand.u32 4294901760, %v20616_v41 }
 0x399   :  { %7804 = vmatpush1.msra.mxu1 %v7803_v50  ;;  %7641 = vmatprep.subr.mxu0 %v20578_v20  ;;  %v7839_v58 = vand.u32 4294901760, %v7838_v23  ;;  %v25779_v50 = vand.u32 4294901760, %v20620_v1  ;;  %v7845_v13 = vand.u32 4294901760, %v7844_v53  ;;  %v25782_v53 = vld [vmem:[#allocation18_spill] sm:$0xff] }
 0x39a   :  { %7810 = vmatprep.subr.mxu1 %v7809_v5  ;;  %7643 = vmatpush2.msra.mxu0 %v20591_v49  ;;  %v7886_v7 = vsub.f32 %v20616_v41, %v25777_v54  ;;  %v25780_v5 = vld [vmem:[#allocation38_spill] sm:$0xff]  ;;  %v7851_v43 = vand.u32 4294901760, %v7850_v18  ;;  %v20674_v18 = vpop.f32.mrf.mxu0 }
 0x39b   :  { %7816 = vmatpush1.msra.mxu1 %v7815_v63  ;;  %7649 = vmatprep.mubr.f32.mxu0 %v25778_v15  ;;  %v7892_v44 = vsub.f32 %v20620_v1, %v25779_v50  ;;  %25781 = vst [vmem:[#allocation84_spill] sm:$0xff] %v20674_v18  ;;  %v25787_v50 = vld [vmem:[#allocation71_spill] sm:$0xff]  ;;  %v25795_v18 = vld [vmem:[#allocation54_spill] sm:$0xff]  ;;  %v25796_v15 = vld [vmem:[#allocation24_spill] sm:$0xff] }
 0x39c   :  { %7822 = vmatprep.subr.mxu1 %v7821_v39  ;;  %7906 = vmatprep.subr.mxu0 %v20131_v25  ;;  %v7887_v54 = vand.u32 4294901760, %v7886_v7  ;;  %v25785_v7 = vld [vmem:[#allocation67_spill] sm:$0xff] }
 0x39d   :  { %7655 = vmatmul.mubr.f32.vlgmr.msra.gmra.mxu0 %v25780_v5  ;;  %7828 = vmatpush1.msra.mxu1 %v7827_v3  ;;  %v7893_v63 = vand.u32 4294901760, %v7892_v44  ;;  %v25783_v3 = vld [vmem:[#allocation35_spill] sm:$0xff]  ;;  %v25788_v44 = vld [vmem:[#allocation48_spill] sm:$0xff] }
 0x39e   :  { %7909 = vmatpush1.msra.mxu0 %v20142_v36  ;;  %7834 = vmatprep.subr.mxu1 %v7833_v46  ;;  %v25784_v46 = vld [vmem:[#allocation64_spill] sm:$0xff] }
 0x39f   :  { %7912 = vmatprep.subr.mxu0 %v20161_v32  ;;  %7840 = vmatpush1.msra.mxu1 %v7839_v58  ;;  %v25786_v58 = vld [vmem:[#allocation16_spill] sm:$0xff] }
 0x3a0   :  { %7915 = vmatpush1.msra.mxu0 %v20174_v9  ;;  %7846 = vmatprep.subr.mxu1 %v7845_v13  ;;  %v25789_v13 = vld [vmem:[#allocation47_spill] sm:$0xff] }
 0x3a1   :  { %7918 = vmatprep.subr.mxu0 %v20202_v61  ;;  %7852 = vmatpush1.msra.mxu1 %v7851_v43  ;;  %v25791_v43 = vld [vmem:[#allocation23_spill] sm:$0xff] }
 0x3a2   :  { %7921 = vmatpush1.msra.mxu0 %v20187_v62  ;;  %7888 = vmatprep.subr.mxu1 %v7887_v54  ;;  %v25792_v54 = vld [vmem:[#allocation61_spill] sm:$0xff] }
 0x3a3   :  { %7924 = vmatprep.subr.mxu0 %v20230_v2  ;;  %7894 = vmatpush2.msra.mxu1 %v7893_v63  ;;  %v25793_v63 = vld [vmem:[#allocation62_spill] sm:$0xff] }
 0x3a4   :  { %7927 = vmatpush1.msra.mxu0 %v20218_v48  ;;  %7898 = vmatmul.mubr.f32.vlgmr.msra.gmra.mxu1 %v25728_v35 }
 0x3a5   :  { %7930 = vmatprep.subr.mxu0 %v20242_v12  ;;  %8048 = vmatprep.subr.mxu1 %v20098_v24 }
 0x3a6   :  { %7933 = vmatpush1.msra.mxu0 %v20248_v16  ;;  %8050 = vmatpush1.msra.mxu1 %v20109_v6 }
 0x3a7   :  { %7936 = vmatprep.subr.mxu0 %v20285_v26  ;;  %8052 = vmatprep.subr.mxu1 %v20119_v34  ;;  %v6254_v23 = vpop.f32.mrf.mxu0 }
 0x3a8   :  { %7939 = vmatpush1.msra.mxu0 %v20263_v57  ;;  %8054 = vmatpush1.msra.mxu1 %v20136_v8  ;;  %v6255_v39 = vadd.f32 %v6254_v23, %v20576_v27  ;;  %v20695_v27 = vpop.f32.mrf.mxu1  ;;  %v25794_v23 = vld [vmem:[#allocation69_spill] sm:$0xff] }
 0x3a9   :  { %7942 = vmatprep.subr.mxu0 %v20324_v52  ;;  %8056 = vmatprep.subr.mxu1 %v20155_v30  ;;  %25790 = vst [vmem:[#allocation18_spill] sm:$0xff] %v20695_v27  ;;  %v25798_v27 = vld [vmem:[#allocation25_spill] sm:$0xff] }
 0x3aa   :  { %7945 = vmatpush1.msra.mxu0 %v20315_v45  ;;  %8058 = vmatpush1.msra.mxu1 %v25782_v53 }
 0x3ab   :  { %7948 = vmatprep.subr.mxu0 %v25783_v3  ;;  %8060 = vmatprep.subr.mxu1 %v25784_v46 }
 0x3ac   :  { %7951 = vmatpush1.msra.mxu0 %v25785_v7  ;;  %8062 = vmatpush1.msra.mxu1 %v25786_v58 }
 0x3ad   :  { %7954 = vmatprep.subr.mxu0 %v25787_v50  ;;  %8064 = vmatprep.subr.mxu1 %v25788_v44 }
 0x3ae   :  { %7957 = vmatpush1.msra.mxu0 %v25789_v13  ;;  %8066 = vmatpush1.msra.mxu1 %v25791_v43 }
 0x3af   :  { %7960 = vmatprep.subr.mxu0 %v25792_v54  ;;  %8068 = vmatprep.subr.mxu1 %v25793_v63  ;;  %v25799_v63 = vld [vmem:[#allocation8_spill] sm:$0xff] }
 0x3b0   :  { %7963 = vmatpush1.msra.mxu0 %v25794_v23  ;;  %8070 = vmatpush1.msra.mxu1 %v25795_v18  ;;  %v6365_v5 = vpop.f32.mrf.mxu1  ;;  %v25800_v18 = vld [vmem:[#allocation9_spill] sm:$0xff] }
 0x3b1   :  { %7966 = vmatprep.subr.mxu0 %v20471_v33  ;;  %8072 = vmatprep.subr.mxu1 %v25796_v15  ;;  %v6366_v35 = vadd.f32 %v6365_v5, %v6255_v39  ;;  %v25801_v15 = vld [vmem:[#allocation21_spill] sm:$0xff]  ;;  %v25802_v5 = vld [vmem:[#allocation10_spill] sm:$0xff]  ;;  %v25803_v39 = vld [vmem:[#allocation55_spill] sm:$0xff] }
 0x3b2   :  { %7969 = vmatpush1.msra.mxu0 %v20475_v40  ;;  %8074 = vmatpush1.msra.mxu1 %v25797_v31 }
 0x3b3   :  { %7972 = vmatprep.subr.mxu0 %v20511_v28  ;;  %8076 = vmatprep.subr.mxu1 %v25798_v27 }
 0x3b4   :  { %7975 = vmatpush1.msra.mxu0 %v20502_v37  ;;  %8078 = vmatpush1.msra.mxu1 %v25799_v63 }
 0x3b5   :  { %7978 = vmatprep.subr.mxu0 %v20536_v59  ;;  %8080 = vmatprep.subr.mxu1 %v25800_v18  ;;  %v25804_v59 = vld [vmem:[#allocation74_spill] sm:$0xff] }
 0x3b6   :  { %7981 = vmatpush1.msra.mxu0 %v20519_v19  ;;  %8082 = vmatpush1.msra.mxu1 %v25801_v15  ;;  %v25805_v19 = vld [vmem:[#allocation75_spill] sm:$0xff] }
 0x3b7   :  { %7984 = vmatprep.subr.mxu0 %v20564_v55  ;;  %8084 = vmatprep.subr.mxu1 %v25802_v5 }
 0x3b8   :  { %7987 = vmatpush1.msra.mxu0 %v20528_v51  ;;  %8086 = vmatpush1.msra.mxu1 %v25803_v39 }
 0x3b9   :  { %7990 = vmatprep.subr.mxu0 %v20582_v0  ;;  %8088 = vmatprep.subr.mxu1 %v20401_v17  ;;  %v25806_v0 = vld [vmem:[#allocation30_spill] sm:$0xff] }
 0x3ba   :  { %7993 = vmatpush1.msra.mxu0 %v20586_v38  ;;  %8090 = vmatpush1.msra.mxu1 %v25804_v59  ;;  %v25807_v38 = vld [vmem:[#allocation31_spill] sm:$0xff] }
 0x3bb   :  { %7996 = vmatprep.subr.mxu0 %v20600_v22  ;;  %8092 = vmatprep.subr.mxu1 %v25805_v19  ;;  %v25808_v19 = vand.u32 4294901760, %v20131_v25  ;;  %v25812_v25 = vand.u32 4294901760, %v20202_v61  ;;  %v25818_v61 = vand.u32 4294901760, %v20242_v12  ;;  %v25823_v12 = vand.u32 4294901760, %v20324_v52 }
 0x3bc   :  { %7999 = vmatpush1.msra.mxu0 %v20604_v56  ;;  %8094 = vmatpush1.msra.mxu1 %v20453_v47  ;;  %v25809_v47 = vand.u32 4294901760, %v20142_v36  ;;  %v25813_v36 = vand.u32 4294901760, %v20187_v62  ;;  %v25820_v62 = vand.u32 4294901760, %v20248_v16  ;;  %v25824_v16 = vand.u32 4294901760, %v20315_v45 }
 0x3bd   :  { %8032 = vmatprep.subr.mxu0 %v20616_v41  ;;  %8096 = vmatprep.subr.mxu1 %v20482_v21  ;;  %v25830_v52 = vand.u32 4294901760, %v25792_v54  ;;  %v25836_v54 = vand.u32 4294901760, %v20475_v40 }
 0x3be   :  { %8035 = vmatpush2.msra.mxu0 %v20620_v1  ;;  %8038 = vmatprep.mubr.f32.mxu0 %v25806_v0  ;;  %v25810_v1 = vand.u32 4294901760, %v20161_v32  ;;  %v25811_v0 = vand.u32 4294901760, %v20174_v9  ;;  %v25814_v32 = vand.u32 4294901760, %v20230_v2  ;;  %v25816_v9 = vand.u32 4294901760, %v20218_v48 }
 0x3bf   :  { %8098 = vmatpush1.msra.mxu1 %v20465_v10  ;;  %8041 = vmatmul.mubr.f32.vlgmr.msra.gmra.mxu0 %v25807_v38  ;;  %v25821_v2 = vand.u32 4294901760, %v20285_v26  ;;  %v25822_v48 = vand.u32 4294901760, %v20263_v57  ;;  %v25828_v57 = vand.u32 4294901760, %v25789_v13  ;;  %v20795_v26 = vpop.f32.mrf.mxu1  ;;  %v345_v13 = vld [vmem:[%s23845_s2 + $0x9c0] sm:$0xff] }
 0x3c0   :  { %8100 = vmatprep.subr.mxu1 %v20504_v14  ;;  %8161 = vmatprep.subr.mxu0 %v25808_v19  ;;  %v25815_v19 = vld [vmem:[#allocation33_spill] sm:$0xff]  ;;  %25829 = vst [vmem:[#allocation64_spill] sm:$0xff] %v20795_v26 }
 0x3c1   :  { %8102 = vmatpush1.msra.mxu1 %v20484_v42  ;;  %8165 = vmatpush1.msra.mxu0 %v25809_v47  ;;  %v25817_v47 = vld [vmem:[#allocation34_spill] sm:$0xff] }
 0x3c2   :  { %8104 = vmatprep.subr.mxu1 %v20530_v4  ;;  %8169 = vmatprep.subr.mxu0 %v25810_v1 }
 0x3c3   :  { %8106 = vmatpush1.msra.mxu1 %v20547_v11  ;;  %8173 = vmatpush1.msra.mxu0 %v25811_v0  ;;  %v20760_v0 = vpop.f32.mrf.mxu0 }
 0x3c4   :  { %8108 = vmatprep.subr.mxu1 %v20557_v60  ;;  %8177 = vmatprep.subr.mxu0 %v25812_v25  ;;  %25819 = vst [vmem:[#allocation35_spill] sm:$0xff] %v20760_v0 }
 0x3c5   :  { %8110 = vmatpush1.msra.mxu1 %v20572_v29  ;;  %8181 = vmatpush1.msra.mxu0 %v25813_v36  ;;  %v25838_v36 = vand.u32 4294901760, %v20511_v28 }
 0x3c6   :  { %8142 = vmatprep.subr.mxu1 %v20578_v20  ;;  %8185 = vmatprep.subr.mxu0 %v25814_v32  ;;  %v325_v32 = vld [vmem:[%s23845_s2 + $0x920] sm:$0xff] }
 0x3c7   :  { %8144 = vmatpush2.msra.mxu1 %v20591_v49  ;;  %8148 = vmatprep.mubr.f32.mxu1 %v25815_v19 }
 0x3c8   :  { %8189 = vmatpush1.msra.mxu0 %v25816_v9  ;;  %8152 = vmatmul.mubr.f32.vlgmr.msra.gmra.mxu1 %v25817_v47  ;;  %v25839_v9 = vand.u32 4294901760, %v20502_v37  ;;  %v303_v37 = vld [vmem:[%s23845_s2 + $0x870] sm:$0xff] }
 0x3c9   :  { %8193 = vmatprep.subr.mxu0 %v25818_v61  ;;  %8334 = vmatprep.subr.mxu1 %v20098_v24  ;;  %v20838_v61 = vand.u32 4294901760, %v345_v13  ;;  %v135_v47 = vld [vmem:[%s23845_s2 + $0x330] sm:$0xff] }
 0x3ca   :  { %8197 = vmatpush1.msra.mxu0 %v25820_v62  ;;  %8336 = vmatpush1.msra.mxu1 %v20109_v6  ;;  %v25825_v6 = vand.u32 4294901760, %v25783_v3  ;;  %v25831_v3 = vld [vmem:[#allocation62_spill] sm:$0xff] }
 0x3cb   :  { %8201 = vmatprep.subr.mxu0 %v25821_v2  ;;  %8338 = vmatprep.subr.mxu1 %v20119_v34  ;;  %v6540_v1 = vpop.f32.mrf.mxu0  ;;  %v25826_v34 = vand.u32 4294901760, %v25785_v7  ;;  %v25833_v7 = vld [vmem:[#allocation54_spill] sm:$0xff] }
 0x3cc   :  { %8205 = vmatpush1.msra.mxu0 %v25822_v48  ;;  %8340 = vmatpush1.msra.mxu1 %v20136_v8  ;;  %v6541_v24 = vadd.f32 %v6540_v1, %v6366_v35  ;;  %v367_v8 = vld [vmem:[%s23845_s2 + $0xa70] sm:$0xff]  ;;  %v366_v35 = vld [vmem:[%s23845_s2 + $0xa68] sm:$0xff]  ;;  %v304_v48 = vld [vmem:[%s23845_s2 + $0x878] sm:$0xff]  ;;  %v20857_v1 = vand.u32 4294901760, %v325_v32 }
 0x3cd   :  { %8209 = vmatprep.subr.mxu0 %v25823_v12  ;;  %8342 = vmatprep.subr.mxu1 %v20155_v30  ;;  %v25827_v30 = vand.u32 4294901760, %v25787_v50  ;;  %v20800_v45 = vand.u32 4294901760, %v367_v8  ;;  %v283_v12 = vld [vmem:[%s23845_s2 + $0x7d0] sm:$0xff] }
 0x3ce   :  { %8213 = vmatpush1.msra.mxu0 %v25824_v16  ;;  %8344 = vmatpush1.msra.mxu1 %v25782_v53  ;;  %v346_v53 = vld [vmem:[%s23845_s2 + $0x9c8] sm:$0xff]  ;;  %v25845_v16 = vand.u32 4294901760, %v20564_v55  ;;  %v261_v55 = vld [vmem:[%s23845_s2 + $0x720] sm:$0xff] }
 0x3cf   :  { %8217 = vmatprep.subr.mxu0 %v25825_v6  ;;  %8346 = vmatprep.subr.mxu1 %v25784_v46  ;;  %v25832_v46 = vand.u32 4294901760, %v25794_v23  ;;  %v20821_v23 = vand.u32 4294901760, %v346_v53  ;;  %v20833_v40 = vsub.f32 %v367_v8, %v20800_v45  ;;  %v20876_v8 = vsub.f32 %v345_v13, %v20838_v61 }
 0x3d0   :  { %8221 = vmatpush1.msra.mxu0 %v25826_v34  ;;  %8348 = vmatpush1.msra.mxu1 %v25786_v58  ;;  %v25834_v58 = vand.u32 4294901760, %v20471_v33  ;;  %v324_v33 = vld [vmem:[%s23845_s2 + $0x918] sm:$0xff]  ;;  %v25846_v34 = vand.u32 4294901760, %v20528_v51  ;;  %v20891_v51 = vand.u32 4294901760, %v283_v12 }
 0x3d1   :  { %8225 = vmatprep.subr.mxu0 %v25827_v30  ;;  %8350 = vmatprep.subr.mxu1 %v25788_v44  ;;  %v20811_v44 = vand.u32 4294901760, %v366_v35  ;;  %v20846_v2 = vand.u32 4294901760, %v324_v33  ;;  %v24472_v6 = vand.u32 4294901760, %v20833_v40  ;;  %v20878_v30 = vand.u32 4294901760, %v304_v48 }
 0x3d2   :  { %8229 = vmatpush1.msra.mxu0 %v25828_v57  ;;  %8352 = vmatpush1.msra.mxu1 %v25791_v43  ;;  %v25835_v43 = vld [vmem:[#allocation24_spill] sm:$0xff]  ;;  %v25849_v57 = vld [vmem:[#allocation81_spill] sm:$0xff]  ;;  %25851 = vst [vmem:[#allocation47_spill] sm:$0xff] %v20891_v51 }
 0x3d3   :  { %8233 = vmatprep.subr.mxu0 %v25830_v52  ;;  %8354 = vmatprep.subr.mxu1 %v25831_v3  ;;  %v20844_v28 = vsub.f32 %v366_v35, %v20811_v44  ;;  %25842 = vst [vmem:[#allocation16_spill] sm:$0xff] %v20846_v2  ;;  %25847 = vst [vmem:[#allocation71_spill] sm:$0xff] %v20878_v30  ;;  %v25850_v35 = vand.u32 4294901760, %v25849_v57  ;;  %v25852_v3 = vld [vmem:[#allocation82_spill] sm:$0xff]  ;;  %v20912_v13 = vsub.f32 %v20833_v40, %v24472_v6 }
 0x3d4   :  { %8237 = vmatpush1.msra.mxu0 %v25832_v46  ;;  %8356 = vmatpush1.msra.mxu1 %v25833_v7  ;;  %v6647_v50 = vpop.f32.mrf.mxu1  ;;  %v25853_v46 = vand.u32 4294901760, %v25852_v3  ;;  %v25864_v57 = vld [vmem:[#allocation26_spill] sm:$0xff] }
 0x3d5   :  { %8241 = vmatprep.subr.mxu0 %v25834_v58  ;;  %8358 = vmatprep.subr.mxu1 %v25835_v43  ;;  %v20819_v25 = vadd.f32 %v6647_v50, %v6541_v24  ;;  %v20863_v24 = vsub.f32 %v346_v53, %v20821_v23  ;;  %v24470_v52 = vand.u32 4294901760, %v20844_v28  ;;  %v262_v53 = vld [vmem:[%s23845_s2 + $0x728] sm:$0xff]  ;;  %v20904_v58 = vsub.f32 %v325_v32, %v20857_v1  ;;  %v25857_v43 = vld [vmem:[#allocation75_spill] sm:$0xff]  ;;  %v240_v32 = vld [vmem:[%s23845_s2 + $0x678] sm:$0xff] }
 0x3d6   :  { %8245 = vmatpush1.msra.mxu0 %v25836_v54  ;;  %8360 = vmatpush1.msra.mxu1 %v25797_v31  ;;  %v25840_v31 = vld [vmem:[#allocation78_spill] sm:$0xff]  ;;  %v25855_v50 = vand.u32 4294901760, %v20600_v22  ;;  %v25858_v54 = vand.u32 4294901760, %v20604_v56  ;;  %v241_v22 = vld [vmem:[%s23845_s2 + $0x680] sm:$0xff]  ;;  %v25860_v56 = vld [vmem:[#allocation68_spill] sm:$0xff]  ;;  %v20969_v3 = vand.u32 4294901760, %v240_v32 }
 0x3d7   :  { %25837 = vst [vmem:[#allocation67_spill] sm:$0xff] %v20819_v25  ;;  %8249 = vmatprep.subr.mxu0 %v25838_v36  ;;  %8362 = vmatprep.subr.mxu1 %v25798_v27  ;;  %v25841_v62 = vand.u32 4294901760, %v25840_v31  ;;  %v25843_v27 = vld [vmem:[#allocation76_spill] sm:$0xff]  ;;  %v24469_v7 = vand.u32 4294901760, %v20863_v24  ;;  %v20922_v36 = vand.u32 4294901760, %v262_v53  ;;  %v25861_v31 = vand.u32 4294901760, %v20616_v41 }
 0x3d8   :  { %8253 = vmatpush1.msra.mxu0 %v25839_v9  ;;  %8364 = vmatpush1.msra.mxu1 %v25799_v63  ;;  %v25844_v63 = vand.u32 4294901760, %v25843_v27  ;;  %v20932_v9 = vsub.f32 %v304_v48, %v20878_v30  ;;  %v20944_v27 = vsub.f32 %v283_v12, %v20891_v51  ;;  %v220_v12 = vld [vmem:[%s23845_s2 + $0x5d8] sm:$0xff]  ;;  %25866 = vst [vmem:[#allocation25_spill] sm:$0xff] %v20969_v3  ;;  %v25879_v19 = vand.u32 4294901760, %v20912_v13 }
 0x3d9   :  { %8257 = vmatprep.subr.mxu0 %v25841_v62  ;;  %8366 = vmatprep.subr.mxu1 %v25800_v18  ;;  %v282_v18 = vld [vmem:[%s23845_s2 + $0x7c8] sm:$0xff]  ;;  %25859 = vst [vmem:[#allocation69_spill] sm:$0xff] %v20922_v36  ;;  %v20940_v62 = vsub.f32 %v20844_v28, %v24470_v52  ;;  %v20955_v41 = vsub.f32 %v20863_v24, %v24469_v7 }
 0x3da   :  { %8261 = vmatpush1.msra.mxu0 %v25844_v63  ;;  %8368 = vmatpush1.msra.mxu1 %v25801_v15  ;;  %v20880_v15 = vand.u32 4294901760, %v303_v37  ;;  %v25862_v63 = vld [vmem:[#allocation83_spill] sm:$0xff] }
 0x3db   :  { %8265 = vmatprep.subr.mxu0 %v25845_v16  ;;  %8370 = vmatprep.subr.mxu1 %v25802_v5  ;;  %v20889_v5 = vsub.f32 %v324_v33, %v20846_v2  ;;  %v25863_v48 = vand.u32 4294901760, %v25862_v63  ;;  %v20997_v63 = vand.u32 4294901760, %v220_v12 }
 0x3dc   :  { %8269 = vmatpush1.msra.mxu0 %v25846_v34  ;;  %25848 = vst [vmem:[#allocation48_spill] sm:$0xff] %v20880_v15  ;;  %8372 = vmatpush1.msra.mxu1 %v25803_v39  ;;  %v20900_v39 = vand.u32 4294901760, %v282_v18  ;;  %v20920_v33 = vsub.f32 %v303_v37, %v20880_v15  ;;  %v24471_v34 = vand.u32 4294901760, %v20904_v58 }
 0x3dd   :  { %8273 = vmatprep.subr.mxu0 %v25850_v35  ;;  %8374 = vmatprep.subr.mxu1 %v20401_v17  ;;  %v20914_v17 = vand.u32 4294901760, %v261_v55  ;;  %v24468_v37 = vand.u32 4294901760, %v20889_v5  ;;  %v20967_v35 = vand.u32 4294901760, %v241_v22  ;;  %25868 = vst [vmem:[#allocation8_spill] sm:$0xff] %v20997_v63 }
 0x3de   :  { %8277 = vmatpush1.msra.mxu0 %v25853_v46  ;;  %25854 = vst [vmem:[#allocation23_spill] sm:$0xff] %v20900_v39  ;;  %8376 = vmatpush1.msra.mxu1 %v25804_v59  ;;  %v24467_v59 = vand.u32 4294901760, %v20876_v8  ;;  %v20950_v16 = vsub.f32 %v282_v18, %v20900_v39  ;;  %v219_v46 = vld [vmem:[%s23845_s2 + $0x5d0] sm:$0xff] }
 0x3df   :  { %8281 = vmatprep.subr.mxu0 %v25855_v50  ;;  %25856 = vst [vmem:[#allocation61_spill] sm:$0xff] %v20914_v17  ;;  %8378 = vmatprep.subr.mxu1 %v25857_v43  ;;  %v20965_v18 = vsub.f32 %v261_v55, %v20914_v17  ;;  %25865 = vst [vmem:[#allocation36_spill] sm:$0xff] %v20967_v35  ;;  %v25867_v50 = vld [vmem:[#allocation28_spill] sm:$0xff]  ;;  %v24474_v55 = vand.u32 4294901760, %v20932_v9  ;;  %v24473_v43 = vand.u32 4294901760, %v20920_v33 }
 0x3e0   :  { %8285 = vmatpush1.msra.mxu0 %v25858_v54  ;;  %8380 = vmatpush1.msra.mxu1 %v25860_v56  ;;  %v198_v54 = vld [vmem:[%s23845_s2 + $0x528] sm:$0xff]  ;;  %v20987_v56 = vsub.f32 %v262_v53, %v20922_v36  ;;  %v24476_v7 = vand.u32 4294901760, %v20950_v16  ;;  %v21026_v53 = vsub.f32 %v241_v22, %v20967_v35 }
 0x3e1   :  { %8319 = vmatprep.subr.mxu0 %v25861_v31  ;;  %8382 = vmatprep.subr.mxu1 %v20482_v21  ;;  %v20995_v31 = vsub.f32 %v20889_v5, %v24468_v37  ;;  %v199_v37 = vld [vmem:[%s23845_s2 + $0x530] sm:$0xff]  ;;  %v21019_v52 = vand.u32 4294901760, %v198_v54  ;;  %v24477_v6 = vand.u32 4294901760, %v20965_v18 }
 0x3e2   :  { %8323 = vmatpush2.msra.mxu0 %v25863_v48  ;;  %8325 = vmatprep.mubr.f32.mxu0 %v25864_v57  ;;  %v24475_v48 = vand.u32 4294901760, %v20944_v27  ;;  %v21045_v22 = vand.u32 4294901760, %v199_v37  ;;  %v25883_v13 = vand.u32 4294901760, %v21026_v53 }
 0x3e3   :  { %8384 = vmatpush1.msra.mxu1 %v20465_v10  ;;  %8327 = vmatmul.mubr.f32.vlgmr.msra.gmra.mxu0 %v25867_v50  ;;  %v20979_v10 = vsub.f32 %v20876_v8, %v24467_v59  ;;  %v21008_v59 = vand.u32 4294901760, %v219_v46  ;;  %25870 = vst [vmem:[#allocation21_spill] sm:$0xff] %v21019_v52 }
 0x3e4   :  { %8386 = vmatprep.subr.mxu1 %v20504_v14  ;;  %8441 = vmatprep.subr.mxu0 %v20800_v45  ;;  %v21039_v14 = vsub.f32 %v20920_v33, %v24473_v43  ;;  %25871 = vst [vmem:[#allocation10_spill] sm:$0xff] %v21045_v22  ;;  %v178_v43 = vld [vmem:[%s23845_s2 + $0x488] sm:$0xff] }
 0x3e5   :  { %8388 = vmatpush1.msra.mxu1 %v20484_v42  ;;  %8443 = vmatpush1.msra.mxu0 %v20811_v44  ;;  %v21006_v42 = vsub.f32 %v20904_v58, %v24471_v34  ;;  %25869 = vst [vmem:[#allocation9_spill] sm:$0xff] %v21008_v59  ;;  %v177_v34 = vld [vmem:[%s23845_s2 + $0x480] sm:$0xff]  ;;  %v21093_v0 = vand.u32 4294901760, %v178_v43 }
 0x3e6   :  { %8390 = vmatprep.subr.mxu1 %v20530_v4  ;;  %8445 = vmatprep.subr.mxu0 %v20821_v23  ;;  %v21017_v4 = vsub.f32 %v240_v32, %v20969_v3  ;;  %v21034_v32 = vsub.f32 %v20932_v9, %v24474_v55  ;;  %v21056_v55 = vsub.f32 %v220_v12, %v20997_v63  ;;  %v21069_v21 = vand.u32 4294901760, %v177_v34  ;;  %v157_v12 = vld [vmem:[%s23845_s2 + $0x3e0] sm:$0xff] }
 0x3e7   :  { %8392 = vmatpush1.msra.mxu1 %v20547_v11  ;;  %8447 = vmatpush1.msra.mxu0 %v20838_v61  ;;  %v8577_v11 = vand.u32 4294901760, %v20979_v10  ;;  %v21050_v10 = vsub.f32 %v20944_v27, %v24475_v48  ;;  %v21067_v48 = vsub.f32 %v20950_v16, %v24476_v7  ;;  %v156_v7 = vld [vmem:[%s23845_s2 + $0x3d8] sm:$0xff]  ;;  %25876 = vst [vmem:[#allocation24_spill] sm:$0xff] %v21093_v0  ;;  %v21103_v25 = vand.u32 4294901760, %v157_v12 }
 0x3e8   :  { %8394 = vmatprep.subr.mxu1 %v20557_v60  ;;  %8449 = vmatprep.subr.mxu0 %v20857_v1  ;;  %25872 = vst [vmem:[#allocation55_spill] sm:$0xff] %v21056_v55  ;;  %v21062_v60 = vsub.f32 %v219_v46, %v21008_v59  ;;  %25874 = vst [vmem:[#allocation62_spill] sm:$0xff] %v21069_v21  ;;  %v21082_v46 = vsub.f32 %v20965_v18, %v24477_v6  ;;  %v25877_v6 = vand.u32 4294901760, %v20987_v56 }
 0x3e9   :  { %8396 = vmatpush1.msra.mxu1 %v20572_v29  ;;  %8451 = vmatpush1.msra.mxu0 %v20846_v2  ;;  %v8583_v29 = vand.u32 4294901760, %v21006_v42  ;;  %v8607_v26 = vand.u32 4294901760, %v21050_v10  ;;  %v8613_v10 = vand.u32 4294901760, %v21067_v48  ;;  %v21120_v38 = vsub.f32 %v177_v34, %v21069_v21 }
 0x3ea   :  { %8428 = vmatprep.subr.mxu1 %v20578_v20  ;;  %25873 = vst [vmem:[#allocation74_spill] sm:$0xff] %v21062_v60  ;;  %8453 = vmatprep.subr.mxu0 %v20878_v30  ;;  %v21077_v20 = vsub.f32 %v198_v54, %v21019_v52  ;;  %v8601_v54 = vand.u32 4294901760, %v21039_v14  ;;  %v21098_v42 = vsub.f32 %v20987_v56, %v25877_v6  ;;  %v25884_v48 = vand.u32 4294901760, %v21017_v4 }
 0x3eb   :  { %8430 = vmatpush2.msra.mxu1 %v20591_v49  ;;  %8432 = vmatprep.mubr.f32.mxu1 %v25864_v57  ;;  %v8595_v49 = vand.u32 4294901760, %v21034_v32  ;;  %v136_v32 = vld [vmem:[%s23845_s2 + $0x338] sm:$0xff]  ;;  %v21113_v6 = vsub.f32 %v199_v37, %v21045_v22  ;;  %25880 = vst [vmem:[#allocation76_spill] sm:$0xff] %v21120_v38  ;;  %v25882_v37 = vand.u32 4294901760, %v20940_v62  ;;  %v21135_v34 = vsub.f32 %v21026_v53, %v25883_v13 }
 0x3ec   :  { %25875 = vst [vmem:[#allocation54_spill] sm:$0xff] %v21077_v20  ;;  %8455 = vmatpush1.msra.mxu0 %v20880_v15  ;;  %8434 = vmatmul.mubr.f32.vlgmr.msra.gmra.mxu1 %v25867_v50  ;;  %v114_v15 = vld [vmem:[%s23845_s2 + $0x288] sm:$0xff]  ;;  %v21140_v14 = vsub.f32 %v21017_v4, %v25884_v48  ;;  %v8619_v13 = vand.u32 4294901760, %v21098_v42  ;;  %v21155_v48 = vand.u32 4294901760, %v135_v47  ;;  %v21158_v30 = vsub.f32 %v178_v43, %v21093_v0 }
 0x3ed   :  { %8457 = vmatprep.subr.mxu0 %v20891_v51  ;;  %25878 = vst [vmem:[#allocation78_spill] sm:$0xff] %v21113_v6  ;;  %8560 = vmatprep.subr.mxu1 %v25879_v19  ;;  %v21122_v51 = vand.u32 4294901760, %v156_v7  ;;  %v25885_v19 = vand.u32 4294901760, %v20955_v41  ;;  %v25889_v62 = vand.u32 4294901760, %v21056_v55  ;;  %v94_v42 = vld [vmem:[%s23845_s2 + $0x1e8] sm:$0xff] }
 0x3ee   :  { %8459 = vmatpush1.msra.mxu0 %v20900_v39  ;;  %8566 = vmatpush1.msra.mxu1 %v25882_v37  ;;  %v115_v39 = vld [vmem:[%s23845_s2 + $0x290] sm:$0xff]  ;;  %v93_v37 = vld [vmem:[%s23845_s2 + $0x1e0] sm:$0xff]  ;;  %25887 = vst [vmem:[#allocation75_spill] sm:$0xff] %v21155_v48  ;;  %25888 = vst [vmem:[#allocation68_spill] sm:$0xff] %v21158_v30 }
 0x3ef   :  { %25881 = vst [vmem:[#allocation81_spill] sm:$0xff] %v21122_v51  ;;  %8461 = vmatprep.subr.mxu0 %v20922_v36  ;;  %8572 = vmatprep.subr.mxu1 %v25885_v19  ;;  %v21153_v36 = vand.u32 4294901760, %v136_v32  ;;  %v21164_v2 = vsub.f32 %v21056_v55, %v25889_v62  ;;  %v21167_v19 = vand.u32 4294901760, %v114_v15  ;;  %v21177_v43 = vsub.f32 %v156_v7, %v21122_v51 }
 0x3f0   :  { %8463 = vmatpush1.msra.mxu0 %v20914_v17  ;;  %8578 = vmatpush1.msra.mxu1 %v8577_v11  ;;  %v21173_v17 = vsub.f32 %v157_v12, %v21103_v25  ;;  %v25890_v11 = vand.u32 4294901760, %v21062_v60  ;;  %v21184_v41 = vand.u32 4294901760, %v115_v39  ;;  %v25891_v55 = vand.u32 4294901760, %v20995_v31 }
 0x3f1   :  { %25886 = vst [vmem:[#allocation82_spill] sm:$0xff] %v21153_v36  ;;  %8465 = vmatprep.subr.mxu0 %v20967_v35  ;;  %8584 = vmatprep.subr.mxu1 %v8583_v29  ;;  %v21186_v35 = vand.u32 4294901760, %v93_v37  ;;  %v8631_v29 = vand.u32 4294901760, %v21135_v34  ;;  %v8637_v12 = vand.u32 4294901760, %v21140_v14  ;;  %v25892_v7 = vand.u32 4294901760, %v21077_v20  ;;  %v72_v34 = vld [vmem:[%s23845_s2 + $0x138] sm:$0xff]  ;;  %v21240_v14 = vpop.f32.mrf.mxu0 }
 0x3f2   :  { %8467 = vmatpush1.msra.mxu0 %v20969_v3  ;;  %v21182_v62 = vsub.f32 %v21062_v60, %v25890_v11  ;;  %8590 = vmatpush1.msra.mxu1 %v25891_v55  ;;  %v73_v60 = vld [vmem:[%s23845_s2 + $0x140] sm:$0xff]  ;;  %v21204_v55 = vsub.f32 %v135_v47, %v21155_v48  ;;  %v21206_v31 = vand.u32 4294901760, %v94_v42  ;;  %v25893_v11 = vand.u32 4294901760, %v21113_v6  ;;  %25896 = vst [vmem:[#allocation86_spill] sm:$0xff] %v21240_v14 }
 0x3f3   :  { %8469 = vmatprep.subr.mxu0 %v20997_v63  ;;  %v21196_v3 = vsub.f32 %v21077_v20, %v25892_v7  ;;  %8596 = vmatprep.subr.mxu1 %v8595_v49  ;;  %v21213_v7 = vsub.f32 %v136_v32, %v21153_v36  ;;  %v8643_v49 = vand.u32 4294901760, %v21164_v2  ;;  %v52_v63 = vld [vmem:[%s23845_s2 + $0x98] sm:$0xff]  ;;  %v21230_v2 = vsub.f32 %v93_v37, %v21186_v35 }
 0x3f4   :  { %8471 = vmatpush1.msra.mxu0 %v21008_v59  ;;  %8602 = vmatpush1.msra.mxu1 %v8601_v54  ;;  %v8654_v47 = vsub.f32 %v21113_v6, %v25893_v11  ;;  %v21221_v59 = vsub.f32 %v114_v15, %v21167_v19  ;;  %v8649_v54 = vand.u32 4294901760, %v21182_v62  ;;  %v21232_v32 = vand.u32 4294901760, %v73_v60  ;;  %v51_v15 = vld [vmem:[%s23845_s2 + $0x90] sm:$0xff] }
 0x3f5   :  { %8473 = vmatprep.subr.mxu0 %v21045_v22  ;;  %8608 = vmatprep.subr.mxu1 %v8607_v26  ;;  %v21238_v11 = vsub.f32 %v115_v39, %v21184_v41  ;;  %v21242_v22 = vpop.f32.mrf.mxu1  ;;  %v8661_v26 = vand.u32 4294901760, %v21196_v3  ;;  %v25898_v37 = vand.u32 4294901760, %v21120_v38  ;;  %v388_v39 = vld [vmem:[%s23845_s2 + $0xb18] sm:$0xff]  ;;  %v21259_v3 = vand.u32 4294901760, %v52_v63 }
 0x3f6   :  { %25894 = vst [vmem:[#allocation83_spill] sm:$0xff] %v21221_v59  ;;  %8475 = vmatpush1.msra.mxu0 %v21019_v52  ;;  %25897 = vst [vmem:[#allocation87_spill] sm:$0xff] %v21242_v22  ;;  %8614 = vmatpush1.msra.mxu1 %v8613_v10  ;;  %v21249_v52 = vand.u32 4294901760, %v72_v34  ;;  %v25899_v10 = vand.u32 4294901760, %v21158_v30  ;;  %v21266_v20 = vsub.f32 %v94_v42, %v21206_v31  ;;  %v21274_v14 = vand.u32 4294901760, %v51_v15 }
 0x3f7   :  { %25895 = vst [vmem:[#allocation85_spill] sm:$0xff] %v21238_v11  ;;  %8477 = vmatprep.subr.mxu0 %v21093_v0  ;;  %v8672_v62 = vsub.f32 %v21120_v38, %v25898_v37  ;;  %8620 = vmatprep.subr.mxu1 %v8619_v13  ;;  %v387_v37 = vld [vmem:[%s23845_s2 + $0xb10] sm:$0xff]  ;;  %v25900_v0 = vand.u32 4294901760, %v21082_v46  ;;  %v8655_v13 = vand.u32 4294901760, %v8654_v47  ;;  %v21280_v46 = vand.u32 4294901760, %v388_v39 }
 0x3f8   :  { %8479 = vmatpush1.msra.mxu0 %v21069_v21  ;;  %v8666_v22 = vsub.f32 %v21158_v30, %v25899_v10  ;;  %v6762_v21 = vpop.f32.mrf.mxu0  ;;  %v25901_v10 = vand.u32 4294901760, %v21173_v17  ;;  %v7005_v30 = vpop.f32.mrf.mxu1  ;;  %v21284_v47 = vsub.f32 %v73_v60, %v21232_v32  ;;  %v25904_v6 = vand.u32 4294901760, %v21177_v43  ;;  %8790 = vmatprep.mubr.f32.mxu1 %v25864_v57  ;;  %v25936_v57 = vld [vmem:[#allocation25_spill] sm:$0xff] }
 0x3f9   :  { %8626 = vmatpush1.msra.mxu1 %v25900_v0  ;;  %8481 = vmatprep.subr.mxu0 %v21103_v25  ;;  %v21278_v42 = vadd.f32 %v7005_v30, %v6762_v21  ;;  %v25905_v60 = vand.u32 4294901760, %v21213_v7  ;;  %v25917_v30 = vld [vmem:[#allocation37_spill] sm:$0xff] }
 0x3fa   :  { %v8678_v38 = vsub.f32 %v21173_v17, %v25901_v10  ;;  %8632 = vmatprep.subr.mxu1 %v8631_v29  ;;  %8483 = vmatpush1.msra.mxu0 %v21122_v51  ;;  %25902 = vst [vmem:[#allocation88_spill] sm:$0xff] %v21284_v47  ;;  %v21288_v10 = vsub.f32 %v72_v34, %v21249_v52  ;;  %v21293_v51 = vand.u32 4294901760, %v387_v37  ;;  %v8667_v21 = vand.u32 4294901760, %v8666_v22 }
 0x3fb   :  { %8638 = vmatpush1.msra.mxu1 %v8637_v12  ;;  %8485 = vmatprep.subr.mxu0 %v21153_v36  ;;  %v8684_v29 = vsub.f32 %v21177_v43, %v25904_v6  ;;  %v8690_v12 = vsub.f32 %v21213_v7, %v25905_v60  ;;  %v21302_v34 = vsub.f32 %v52_v63, %v21259_v3  ;;  %v8673_v6 = vand.u32 4294901760, %v8672_v62 }
 0x3fc   :  { %25903 = vst [vmem:[#allocation89_spill] sm:$0xff] %v21288_v10  ;;  %8644 = vmatprep.subr.mxu1 %v8643_v49  ;;  %8487 = vmatpush1.msra.mxu0 %v21155_v48  ;;  %v21306_v36 = vsub.f32 %v51_v15, %v21274_v14  ;;  %v25906_v49 = vand.u32 4294901760, %v21204_v55  ;;  %v8679_v60 = vand.u32 4294901760, %v8678_v38  ;;  %v25907_v63 = vand.u32 4294901760, %v21238_v11 }
 0x3fd   :  { %8650 = vmatpush1.msra.mxu1 %v8649_v54  ;;  %8489 = vmatprep.subr.mxu0 %v21184_v41  ;;  %v21318_v62 = vsub.f32 %v388_v39, %v21280_v46  ;;  %v8685_v15 = vand.u32 4294901760, %v8684_v29  ;;  %v25910_v39 = vand.u32 4294901760, %v21266_v20  ;;  %v25911_v29 = vand.u32 4294901760, %v21230_v2 }
 0x3fe   :  { %v8696_v22 = vsub.f32 %v21204_v55, %v25906_v49  ;;  %8656 = vmatprep.subr.mxu1 %v8655_v13  ;;  %8491 = vmatpush1.msra.mxu0 %v21167_v19  ;;  %v8702_v54 = vsub.f32 %v21238_v11, %v25907_v63  ;;  %v21322_v49 = vsub.f32 %v387_v37, %v21293_v51  ;;  %v25909_v13 = vand.u32 4294901760, %v21221_v59 }
 0x3ff   :  { %8662 = vmatpush1.msra.mxu1 %v8661_v26  ;;  %8493 = vmatprep.subr.mxu0 %v21206_v31  ;;  %v8691_v63 = vand.u32 4294901760, %v8690_v12  ;;  %v8714_v26 = vsub.f32 %v21266_v20, %v25910_v39  ;;  %v25912_v12 = vand.u32 4294901760, %v21284_v47 }
 0x400   :  { %25908 = vst [vmem:[#allocation90_spill] sm:$0xff] %v21322_v49  ;;  %v8708_v38 = vsub.f32 %v21221_v59, %v25909_v13  ;;  %8668 = vmatprep.subr.mxu1 %v8667_v21  ;;  %8495 = vmatpush1.msra.mxu0 %v21186_v35  ;;  %v8697_v37 = vand.u32 4294901760, %v8696_v22  ;;  %v8720_v13 = vsub.f32 %v21230_v2, %v25911_v29  ;;  %v8703_v21 = vand.u32 4294901760, %v8702_v54 }
 0x401   :  { %8674 = vmatpush1.msra.mxu1 %v8673_v6  ;;  %8497 = vmatprep.subr.mxu0 %v21232_v32  ;;  %v8726_v39 = vsub.f32 %v21284_v47, %v25912_v12  ;;  %v25913_v22 = vand.u32 4294901760, %v21288_v10  ;;  %v25914_v54 = vand.u32 4294901760, %v21302_v34 }
 0x402   :  { %8680 = vmatprep.subr.mxu1 %v8679_v60  ;;  %8499 = vmatpush1.msra.mxu0 %v21249_v52  ;;  %v8709_v6 = vand.u32 4294901760, %v8708_v38  ;;  %v8715_v60 = vand.u32 4294901760, %v8714_v26  ;;  %v25915_v38 = vand.u32 4294901760, %v21306_v36 }
 0x403   :  { %8686 = vmatpush1.msra.mxu1 %v8685_v15  ;;  %8501 = vmatprep.subr.mxu0 %v21259_v3  ;;  %v8732_v29 = vsub.f32 %v21288_v10, %v25913_v22  ;;  %v8738_v12 = vsub.f32 %v21302_v34, %v25914_v54  ;;  %v8721_v15 = vand.u32 4294901760, %v8720_v13  ;;  %v8727_v22 = vand.u32 4294901760, %v8726_v39 }
 0x404   :  { %8692 = vmatprep.subr.mxu1 %v8691_v63  ;;  %8503 = vmatpush1.msra.mxu0 %v21274_v14  ;;  %v8744_v0 = vsub.f32 %v21306_v36, %v25915_v38  ;;  %v25916_v63 = vand.u32 4294901760, %v21318_v62 }
 0x405   :  { %8698 = vmatpush1.msra.mxu1 %v8697_v37  ;;  %8535 = vmatprep.subr.mxu0 %v21280_v46  ;;  %v8733_v54 = vand.u32 4294901760, %v8732_v29  ;;  %v25918_v37 = vand.u32 4294901760, %v21322_v49  ;;  %v8739_v38 = vand.u32 4294901760, %v8738_v12  ;;  %v25921_v12 = vld [vmem:[#allocation16_spill] sm:$0xff] }
 0x406   :  { %8704 = vmatprep.subr.mxu1 %v8703_v21  ;;  %8537 = vmatpush2.msra.mxu0 %v21293_v51  ;;  %v8780_v26 = vsub.f32 %v21318_v62, %v25916_v63  ;;  %v25919_v21 = vld [vmem:[#allocation38_spill] sm:$0xff]  ;;  %v8745_v39 = vand.u32 4294901760, %v8744_v0  ;;  %v21376_v0 = vpop.f32.mrf.mxu0 }
 0x407   :  { %8710 = vmatpush1.msra.mxu1 %v8709_v6  ;;  %8543 = vmatprep.mubr.f32.mxu0 %v25917_v30  ;;  %v8786_v13 = vsub.f32 %v21322_v49, %v25918_v37  ;;  %25920 = vst [vmem:[#allocation91_spill] sm:$0xff] %v21376_v0  ;;  %v25926_v37 = vld [vmem:[#allocation78_spill] sm:$0xff]  ;;  %v25934_v0 = vld [vmem:[#allocation61_spill] sm:$0xff]  ;;  %v25935_v30 = vld [vmem:[#allocation36_spill] sm:$0xff] }
 0x408   :  { %8716 = vmatprep.subr.mxu1 %v8715_v60  ;;  %8800 = vmatprep.subr.mxu0 %v20833_v40  ;;  %v8781_v63 = vand.u32 4294901760, %v8780_v26  ;;  %v25924_v26 = vld [vmem:[#allocation74_spill] sm:$0xff] }
 0x409   :  { %8549 = vmatmul.mubr.f32.vlgmr.msra.gmra.mxu0 %v25919_v21  ;;  %8722 = vmatpush1.msra.mxu1 %v8721_v15  ;;  %v8787_v6 = vand.u32 4294901760, %v8786_v13  ;;  %v25922_v15 = vld [vmem:[#allocation55_spill] sm:$0xff] }
 0x40a   :  { %8803 = vmatpush1.msra.mxu0 %v20844_v28  ;;  %8728 = vmatprep.subr.mxu1 %v8727_v22  ;;  %v25923_v22 = vld [vmem:[#allocation71_spill] sm:$0xff] }
 0x40b   :  { %8806 = vmatprep.subr.mxu0 %v20863_v24  ;;  %8734 = vmatpush1.msra.mxu1 %v8733_v54  ;;  %v25925_v54 = vld [vmem:[#allocation48_spill] sm:$0xff]  ;;  %v25927_v13 = vld [vmem:[#allocation47_spill] sm:$0xff] }
 0x40c   :  { %8809 = vmatpush1.msra.mxu0 %v20876_v8  ;;  %8740 = vmatprep.subr.mxu1 %v8739_v38  ;;  %v25928_v38 = vld [vmem:[#allocation54_spill] sm:$0xff] }
 0x40d   :  { %8812 = vmatprep.subr.mxu0 %v20904_v58  ;;  %8746 = vmatpush1.msra.mxu1 %v8745_v39  ;;  %v25930_v39 = vld [vmem:[#allocation23_spill] sm:$0xff] }
 0x40e   :  { %8815 = vmatpush1.msra.mxu0 %v20889_v5  ;;  %8782 = vmatprep.subr.mxu1 %v8781_v63  ;;  %v25931_v63 = vld [vmem:[#allocation68_spill] sm:$0xff] }
 0x40f   :  { %8818 = vmatprep.subr.mxu0 %v20932_v9  ;;  %8788 = vmatpush2.msra.mxu1 %v8787_v6  ;;  %v25932_v6 = vld [vmem:[#allocation69_spill] sm:$0xff] }
 0x410   :  { %8821 = vmatpush1.msra.mxu0 %v20920_v33  ;;  %8792 = vmatmul.mubr.f32.vlgmr.msra.gmra.mxu1 %v25867_v50 }
 0x411   :  { %8824 = vmatprep.subr.mxu0 %v20944_v27  ;;  %8942 = vmatprep.subr.mxu1 %v20800_v45 }
 0x412   :  { %8827 = vmatpush1.msra.mxu0 %v20950_v16  ;;  %8944 = vmatpush1.msra.mxu1 %v20811_v44 }
 0x413   :  { %8830 = vmatprep.subr.mxu0 %v20987_v56  ;;  %8946 = vmatprep.subr.mxu1 %v20821_v23  ;;  %v7148_v29 = vpop.f32.mrf.mxu0 }
 0x414   :  { %8833 = vmatpush1.msra.mxu0 %v20965_v18  ;;  %8948 = vmatpush1.msra.mxu1 %v20838_v61  ;;  %v7149_v60 = vadd.f32 %v7148_v29, %v21278_v42  ;;  %v21397_v42 = vpop.f32.mrf.mxu1  ;;  %v25933_v29 = vld [vmem:[#allocation76_spill] sm:$0xff] }
 0x415   :  { %8836 = vmatprep.subr.mxu0 %v21026_v53  ;;  %8950 = vmatprep.subr.mxu1 %v20857_v1  ;;  %25929 = vst [vmem:[#allocation16_spill] sm:$0xff] %v21397_v42  ;;  %v25937_v42 = vld [vmem:[#allocation8_spill] sm:$0xff] }
 0x416   :  { %8839 = vmatpush1.msra.mxu0 %v21017_v4  ;;  %8952 = vmatpush1.msra.mxu1 %v25921_v12 }
 0x417   :  { %8842 = vmatprep.subr.mxu0 %v25922_v15  ;;  %8954 = vmatprep.subr.mxu1 %v25923_v22 }
 0x418   :  { %8845 = vmatpush1.msra.mxu0 %v25924_v26  ;;  %8956 = vmatpush1.msra.mxu1 %v25925_v54 }
 0x419   :  { %8848 = vmatprep.subr.mxu0 %v25926_v37  ;;  %8958 = vmatprep.subr.mxu1 %v25927_v13 }
 0x41a   :  { %8851 = vmatpush1.msra.mxu0 %v25928_v38  ;;  %8960 = vmatpush1.msra.mxu1 %v25930_v39 }
 0x41b   :  { %8854 = vmatprep.subr.mxu0 %v25931_v63  ;;  %8962 = vmatprep.subr.mxu1 %v25932_v6  ;;  %v25938_v6 = vld [vmem:[#allocation9_spill] sm:$0xff] }
 0x41c   :  { %8857 = vmatpush1.msra.mxu0 %v25933_v29  ;;  %8964 = vmatpush1.msra.mxu1 %v25934_v0  ;;  %v7259_v21 = vpop.f32.mrf.mxu1  ;;  %v25939_v0 = vld [vmem:[#allocation10_spill] sm:$0xff] }
 0x41d   :  { %8860 = vmatprep.subr.mxu0 %v21173_v17  ;;  %8966 = vmatprep.subr.mxu1 %v25935_v30  ;;  %v7260_v50 = vadd.f32 %v7259_v21, %v7149_v60  ;;  %v25940_v30 = vld [vmem:[#allocation21_spill] sm:$0xff]  ;;  %v25941_v21 = vld [vmem:[#allocation24_spill] sm:$0xff]  ;;  %v25942_v60 = vld [vmem:[#allocation62_spill] sm:$0xff] }
 0x41e   :  { %8863 = vmatpush1.msra.mxu0 %v21177_v43  ;;  %8968 = vmatpush1.msra.mxu1 %v25936_v57 }
 0x41f   :  { %8866 = vmatprep.subr.mxu0 %v21213_v7  ;;  %8970 = vmatprep.subr.mxu1 %v25937_v42 }
 0x420   :  { %8869 = vmatpush1.msra.mxu0 %v21204_v55  ;;  %8972 = vmatpush1.msra.mxu1 %v25938_v6 }
 0x421   :  { %8872 = vmatprep.subr.mxu0 %v21238_v11  ;;  %8974 = vmatprep.subr.mxu1 %v25939_v0  ;;  %v25943_v11 = vld [vmem:[#allocation81_spill] sm:$0xff] }
 0x422   :  { %8875 = vmatpush1.msra.mxu0 %v21221_v59  ;;  %8976 = vmatpush1.msra.mxu1 %v25940_v30  ;;  %v25944_v59 = vld [vmem:[#allocation82_spill] sm:$0xff] }
 0x423   :  { %8878 = vmatprep.subr.mxu0 %v21266_v20  ;;  %8978 = vmatprep.subr.mxu1 %v25941_v21 }
 0x424   :  { %8881 = vmatpush1.msra.mxu0 %v21230_v2  ;;  %8980 = vmatpush1.msra.mxu1 %v25942_v60 }
 0x425   :  { %8884 = vmatprep.subr.mxu0 %v21284_v47  ;;  %8982 = vmatprep.subr.mxu1 %v21103_v25  ;;  %v25945_v47 = vld [vmem:[#allocation30_spill] sm:$0xff] }
 0x426   :  { %8887 = vmatpush1.msra.mxu0 %v21288_v10  ;;  %8984 = vmatpush1.msra.mxu1 %v25943_v11  ;;  %v25946_v10 = vld [vmem:[#allocation31_spill] sm:$0xff] }
 0x427   :  { %8890 = vmatprep.subr.mxu0 %v21302_v34  ;;  %8986 = vmatprep.subr.mxu1 %v25944_v59  ;;  %v25947_v59 = vand.u32 4294901760, %v20833_v40  ;;  %v25951_v40 = vand.u32 4294901760, %v20904_v58  ;;  %v25957_v58 = vand.u32 4294901760, %v20944_v27  ;;  %v25962_v27 = vand.u32 4294901760, %v21026_v53 }
 0x428   :  { %8893 = vmatpush1.msra.mxu0 %v21306_v36  ;;  %8988 = vmatpush1.msra.mxu1 %v21155_v48  ;;  %v25948_v48 = vand.u32 4294901760, %v20844_v28  ;;  %v25952_v28 = vand.u32 4294901760, %v20889_v5  ;;  %v25959_v5 = vand.u32 4294901760, %v20950_v16  ;;  %v25963_v16 = vand.u32 4294901760, %v21017_v4  ;;  %v25972_v4 = vld [vmem:[#allocation61_spill] sm:$0xff] }
 0x429   :  { %8926 = vmatprep.subr.mxu0 %v21318_v62  ;;  %8990 = vmatprep.subr.mxu1 %v21184_v41  ;;  %v25971_v53 = vand.u32 4294901760, %v25933_v29 }
 0x42a   :  { %8929 = vmatpush2.msra.mxu0 %v21322_v49  ;;  %8932 = vmatprep.mubr.f32.mxu0 %v25945_v47  ;;  %v25949_v49 = vand.u32 4294901760, %v20863_v24  ;;  %v25950_v47 = vand.u32 4294901760, %v20876_v8  ;;  %v25953_v24 = vand.u32 4294901760, %v20932_v9  ;;  %v25955_v8 = vand.u32 4294901760, %v20920_v33 }
 0x42b   :  { %8992 = vmatpush1.msra.mxu1 %v21167_v19  ;;  %8935 = vmatmul.mubr.f32.vlgmr.msra.gmra.mxu0 %v25946_v10  ;;  %v25960_v9 = vand.u32 4294901760, %v20987_v56  ;;  %v25961_v33 = vand.u32 4294901760, %v20965_v18  ;;  %v21491_v18 = vpop.f32.mrf.mxu1  ;;  %v25970_v56 = vld [vmem:[#allocation69_spill] sm:$0xff] }
 0x42c   :  { %8994 = vmatprep.subr.mxu1 %v21206_v31  ;;  %9055 = vmatprep.subr.mxu0 %v25947_v59  ;;  %v25954_v59 = vld [vmem:[#allocation33_spill] sm:$0xff]  ;;  %25968 = vst [vmem:[#allocation71_spill] sm:$0xff] %v21491_v18 }
 0x42d   :  { %8996 = vmatpush1.msra.mxu1 %v21186_v35  ;;  %9059 = vmatpush1.msra.mxu0 %v25948_v48  ;;  %v25956_v48 = vld [vmem:[#allocation34_spill] sm:$0xff] }
 0x42e   :  { %8998 = vmatprep.subr.mxu1 %v21232_v32  ;;  %9063 = vmatprep.subr.mxu0 %v25949_v49 }
 0x42f   :  { %9000 = vmatpush1.msra.mxu1 %v21249_v52  ;;  %9067 = vmatpush1.msra.mxu0 %v25950_v47  ;;  %v21462_v47 = vpop.f32.mrf.mxu0 }
 0x430   :  { %9002 = vmatprep.subr.mxu1 %v21259_v3  ;;  %9071 = vmatprep.subr.mxu0 %v25951_v40  ;;  %25958 = vst [vmem:[#allocation55_spill] sm:$0xff] %v21462_v47 }
 0x431   :  { %9004 = vmatpush1.msra.mxu1 %v21274_v14  ;;  %9075 = vmatpush1.msra.mxu0 %v25952_v28 }
 0x432   :  { %9036 = vmatprep.subr.mxu1 %v21280_v46  ;;  %9079 = vmatprep.subr.mxu0 %v25953_v24  ;;  %v25990_v24 = vld [vmem:[#allocation82_spill] sm:$0xff] }
 0x433   :  { %9038 = vmatpush2.msra.mxu1 %v21293_v51  ;;  %9042 = vmatprep.mubr.f32.mxu1 %v25954_v59 }
 0x434   :  { %9083 = vmatpush1.msra.mxu0 %v25955_v8  ;;  %9046 = vmatmul.mubr.f32.vlgmr.msra.gmra.mxu1 %v25956_v48  ;;  %v284_v8 = vld [vmem:[%s23845_s2 + $0x7d8] sm:$0xff] }
 0x435   :  { %9087 = vmatprep.subr.mxu0 %v25957_v58  ;;  %9228 = vmatprep.subr.mxu1 %v20800_v45  ;;  %v25992_v58 = vld [vmem:[#allocation75_spill] sm:$0xff] }
 0x436   :  { %9091 = vmatpush1.msra.mxu0 %v25959_v5  ;;  %9230 = vmatpush1.msra.mxu1 %v20811_v44  ;;  %v25964_v44 = vand.u32 4294901760, %v25922_v15 }
 0x437   :  { %9095 = vmatprep.subr.mxu0 %v25960_v9  ;;  %9232 = vmatprep.subr.mxu1 %v20821_v23  ;;  %v7434_v49 = vpop.f32.mrf.mxu0  ;;  %v25965_v23 = vand.u32 4294901760, %v25924_v26  ;;  %v25975_v26 = vand.u32 4294901760, %v21177_v43  ;;  %v25979_v43 = vld [vmem:[#allocation85_spill] sm:$0xff]  ;;  %v25994_v9 = vld [vmem:[#allocation90_spill] sm:$0xff] }
 0x438   :  { %9099 = vmatpush1.msra.mxu0 %v25961_v33  ;;  %9234 = vmatpush1.msra.mxu1 %v20838_v61  ;;  %v7435_v45 = vadd.f32 %v7434_v49, %v7260_v50  ;;  %v25966_v61 = vand.u32 4294901760, %v25926_v37  ;;  %v25969_v50 = vand.u32 4294901760, %v25931_v63  ;;  %v25977_v37 = vand.u32 4294901760, %v21213_v7  ;;  %v347_v7 = vld [vmem:[%s23845_s2 + $0x9d0] sm:$0xff]  ;;  %v25996_v49 = vld [vmem:[#allocation26_spill] sm:$0xff] }
 0x439   :  { %9103 = vmatprep.subr.mxu0 %v25962_v27  ;;  %9236 = vmatprep.subr.mxu1 %v20857_v1  ;;  %v25967_v1 = vand.u32 4294901760, %v25928_v38  ;;  %v25980_v38 = vand.u32 4294901760, %v25979_v43  ;;  %v25984_v63 = vand.u32 4294901760, %v21230_v2  ;;  %v305_v2 = vld [vmem:[%s23845_s2 + $0x880] sm:$0xff]  ;;  %v25995_v33 = vand.u32 4294901760, %v25994_v9 }
 0x43a   :  { %9107 = vmatpush1.msra.mxu0 %v25963_v16  ;;  %9238 = vmatpush1.msra.mxu1 %v25921_v12  ;;  %v25973_v12 = vand.u32 4294901760, %v21173_v17  ;;  %v368_v17 = vld [vmem:[%s23845_s2 + $0xa78] sm:$0xff]  ;;  %v21567_v5 = vand.u32 4294901760, %v305_v2  ;;  %v21580_v27 = vand.u32 4294901760, %v284_v8  ;;  %v25997_v16 = vld [vmem:[#allocation28_spill] sm:$0xff] }
 0x43b   :  { %9111 = vmatprep.subr.mxu0 %v25964_v44  ;;  %9240 = vmatprep.subr.mxu1 %v25923_v22  ;;  %v25974_v22 = vld [vmem:[#allocation36_spill] sm:$0xff]  ;;  %v24603_v44 = vmov 0.0  }
 0x43c   :  { %9115 = vmatpush1.msra.mxu0 %v25965_v23  ;;  %9242 = vmatpush1.msra.mxu1 %v25925_v54 }
 0x43d   :  { %9119 = vmatprep.subr.mxu0 %v25966_v61  ;;  %9244 = vmatprep.subr.mxu1 %v25927_v13  ;;  %v25978_v13 = vand.u32 4294901760, %v21204_v55  ;;  %v25983_v55 = vand.u32 4294901760, %v21266_v20  ;;  %v25987_v20 = vld [vmem:[#allocation89_spill] sm:$0xff] }
 0x43e   :  { %9123 = vmatpush1.msra.mxu0 %v25967_v1  ;;  %9246 = vmatpush1.msra.mxu1 %v25930_v39  ;;  %v25988_v40 = vand.u32 4294901760, %v25987_v20 }
 0x43f   :  { %9127 = vmatprep.subr.mxu0 %v25969_v50  ;;  %9248 = vmatprep.subr.mxu1 %v25970_v56 }
 0x440   :  { %9131 = vmatpush1.msra.mxu0 %v25971_v53  ;;  %9250 = vmatpush1.msra.mxu1 %v25972_v4  ;;  %v7541_v15 = vpop.f32.mrf.mxu1  ;;  %v200_v53 = vld [vmem:[%s23845_s2 + $0x538] sm:$0xff] }
 0x441   :  { %9135 = vmatprep.subr.mxu0 %v25973_v12  ;;  %9252 = vmatprep.subr.mxu1 %v25974_v22  ;;  %v21505_v54 = vadd.f32 %v7541_v15, %v7435_v45  ;;  %v179_v15 = vld [vmem:[%s23845_s2 + $0x490] sm:$0xff] }
 0x442   :  { %9139 = vmatpush1.msra.mxu0 %v25975_v26  ;;  %9254 = vmatpush1.msra.mxu1 %v25936_v57  ;;  %v25981_v57 = vld [vmem:[#allocation83_spill] sm:$0xff]  ;;  %v21657_v43 = vand.u32 4294901760, %v179_v15 }
 0x443   :  { %25976 = vst [vmem:[#allocation74_spill] sm:$0xff] %v21505_v54  ;;  %9143 = vmatprep.subr.mxu0 %v25977_v37  ;;  %9256 = vmatprep.subr.mxu1 %v25937_v42  ;;  %v25982_v39 = vand.u32 4294901760, %v25981_v57  ;;  %v21528_v42 = vand.u32 4294901760, %v368_v17 }
 0x444   :  { %9147 = vmatpush1.msra.mxu0 %v25978_v13  ;;  %9258 = vmatpush1.msra.mxu1 %v25938_v6  ;;  %v25985_v6 = vld [vmem:[#allocation88_spill] sm:$0xff] }
 0x445   :  { %9151 = vmatprep.subr.mxu0 %v25980_v38  ;;  %9260 = vmatprep.subr.mxu1 %v25939_v0  ;;  %v326_v0 = vld [vmem:[%s23845_s2 + $0x928] sm:$0xff]  ;;  %v25986_v29 = vand.u32 4294901760, %v25985_v6 }
 0x446   :  { %9155 = vmatpush1.msra.mxu0 %v25982_v39  ;;  %9262 = vmatpush1.msra.mxu1 %v25940_v30  ;;  %v21539_v30 = vand.u32 4294901760, %v347_v7  ;;  %v21553_v28 = vand.u32 4294901760, %v326_v0  ;;  %v137_v39 = vld [vmem:[%s23845_s2 + $0x340] sm:$0xff] }
 0x447   :  { %9159 = vmatprep.subr.mxu0 %v25983_v55  ;;  %9264 = vmatprep.subr.mxu1 %v25941_v21  ;;  %v25989_v21 = vand.u32 4294901760, %v21302_v34 }
 0x448   :  { %9163 = vmatpush1.msra.mxu0 %v25984_v63  ;;  %9266 = vmatpush1.msra.mxu1 %v25942_v60  ;;  %v21551_v60 = vsub.f32 %v368_v17, %v21528_v42  ;;  %v21565_v34 = vsub.f32 %v347_v7, %v21539_v30 }
 0x449   :  { %9167 = vmatprep.subr.mxu0 %v25986_v29  ;;  %9268 = vmatprep.subr.mxu1 %v21103_v25  ;;  %v25991_v25 = vand.u32 4294901760, %v21306_v36  ;;  %v263_v36 = vld [vmem:[%s23845_s2 + $0x730] sm:$0xff]  ;;  %v116_v29 = vld [vmem:[%s23845_s2 + $0x298] sm:$0xff] }
 0x44a   :  { %9171 = vmatpush1.msra.mxu0 %v25988_v40  ;;  %9270 = vmatpush1.msra.mxu1 %v25943_v11  ;;  %v25993_v11 = vand.u32 4294901760, %v21318_v62  ;;  %v21578_v62 = vsub.f32 %v326_v0, %v21553_v28  ;;  %v9434_v45 = vand.u32 4294901760, %v21551_v60  ;;  %v21593_v23 = vand.u32 4294901760, %v263_v36 }
 0x44b   :  { %9175 = vmatprep.subr.mxu0 %v25989_v21  ;;  %9272 = vmatprep.subr.mxu1 %v25990_v24  ;;  %v9441_v61 = vand.u32 4294901760, %v21565_v34  ;;  %v21683_v40 = vsub.f32 %v179_v15, %v21657_v43  ;;  %v21688_v21 = vand.u32 4294901760, %v137_v39  ;;  %v21703_v9 = vand.u32 4294901760, %v116_v29  ;;  %v53_v15 = vld [vmem:[%s23845_s2 + $0xa0] sm:$0xff] }
 0x44c   :  { %9179 = vmatpush1.msra.mxu0 %v25991_v25  ;;  %9274 = vmatpush1.msra.mxu1 %v25992_v58  ;;  %v9435_v1 = vsub.f32 %v21551_v60, %v9434_v45  ;;  %v9448_v56 = vand.u32 4294901760, %v21578_v62  ;;  %v95_v25 = vld [vmem:[%s23845_s2 + $0x1f0] sm:$0xff] }
 0x44d   :  { %9213 = vmatprep.subr.mxu0 %v25993_v11  ;;  %9276 = vmatprep.subr.mxu1 %v21184_v41  ;;  %v242_v41 = vld [vmem:[%s23845_s2 + $0x688] sm:$0xff]  ;;  %v9442_v4 = vsub.f32 %v21565_v34, %v9441_v61 }
 0x44e   :  { %9217 = vmatpush2.msra.mxu0 %v25995_v33  ;;  %9219 = vmatprep.mubr.f32.mxu0 %v25996_v49  ;;  %v21609_v50 = vand.u32 4294901760, %v242_v41  ;;  %v9449_v26 = vsub.f32 %v21578_v62, %v9448_v56 }
 0x44f   :  { %9278 = vmatpush1.msra.mxu1 %v21167_v19  ;;  %9221 = vmatmul.mubr.f32.vlgmr.msra.gmra.mxu0 %v25997_v16  ;;  %v21591_v19 = vsub.f32 %v305_v2, %v21567_v5  ;;  %v9443_v13 = vand.u32 4294901760, %v9442_v4 }
 0x450   :  { %9280 = vmatprep.subr.mxu1 %v21206_v31  ;;  %9334 = vmatprep.subr.mxu0 %v24603_v44  ;;  %v221_v31 = vld [vmem:[%s23845_s2 + $0x5e0] sm:$0xff]  ;;  %v21638_v22 = vsub.f32 %v242_v41, %v21609_v50  ;;  %v9450_v7 = vand.u32 4294901760, %v9449_v26  ;;  %v21730_v26 = vpop.f32.mrf.mxu1 }
 0x451   :  { %9282 = vmatpush1.msra.mxu1 %v21186_v35  ;;  %9336 = vmatpush1.msra.mxu0 %v21528_v42  ;;  %v21604_v35 = vsub.f32 %v284_v8, %v21580_v27  ;;  %v9455_v12 = vand.u32 4294901760, %v21591_v19  ;;  %25999 = vst [vmem:[#allocation78_spill] sm:$0xff] %v21730_v26 }
 0x452   :  { %9284 = vmatprep.subr.mxu1 %v21232_v32  ;;  %9337 = vmatprep.subr.mxu0 %v24603_v44  ;;  %v21622_v32 = vsub.f32 %v263_v36, %v21593_v23  ;;  %v24536_v0 = vand.u32 4294901760, %v21638_v22  ;;  %v74_v36 = vld [vmem:[%s23845_s2 + $0x148] sm:$0xff] }
 0x453   :  { %9286 = vmatpush1.msra.mxu1 %v21249_v52  ;;  %9339 = vmatpush1.msra.mxu0 %v21539_v30  ;;  %v21617_v52 = vand.u32 4294901760, %v221_v31  ;;  %v9456_v17 = vsub.f32 %v21591_v19, %v9455_v12 }
 0x454   :  { %9288 = vmatprep.subr.mxu1 %v21259_v3  ;;  %9340 = vmatprep.subr.mxu0 %v24603_v44  ;;  %v21630_v3 = vand.u32 4294901760, %v200_v53  ;;  %v9469_v38 = vand.u32 4294901760, %v21622_v32  ;;  %v9477_v11 = vsub.f32 %v21638_v22, %v24536_v0 }
 0x455   :  { %9290 = vmatpush1.msra.mxu1 %v21274_v14  ;;  %9342 = vmatpush1.msra.mxu0 %v21553_v28  ;;  %v9436_v14 = vand.u32 4294901760, %v9435_v1  ;;  %v21647_v37 = vsub.f32 %v221_v31, %v21617_v52  ;;  %v9457_v20 = vand.u32 4294901760, %v9456_v17  ;;  %v21715_v31 = vsub.f32 %v137_v39, %v21688_v21 }
 0x456   :  { %9322 = vmatprep.subr.mxu1 %v21280_v46  ;;  %9343 = vmatprep.subr.mxu0 %v24603_v44  ;;  %v9462_v46 = vand.u32 4294901760, %v21604_v35  ;;  %v21663_v57 = vsub.f32 %v200_v53, %v21630_v3  ;;  %v9470_v2 = vsub.f32 %v21622_v32, %v9469_v38  ;;  %v21717_v1 = vand.u32 4294901760, %v95_v25 }
 0x457   :  { %9324 = vmatpush2.msra.mxu1 %v21293_v51  ;;  %9326 = vmatprep.mubr.f32.mxu1 %v25996_v49  ;;  %v158_v51 = vld [vmem:[%s23845_s2 + $0x3e8] sm:$0xff]  ;;  %v24535_v6 = vand.u32 4294901760, %v21647_v37  ;;  %v24534_v53 = vand.u32 4294901760, %v21683_v40  ;;  %v21736_v17 = vand.u32 4294901760, %v74_v36 }
 0x458   :  { %9345 = vmatpush1.msra.mxu0 %v21567_v5  ;;  %9328 = vmatmul.mubr.f32.vlgmr.msra.gmra.mxu1 %v25997_v16  ;;  %v9463_v55 = vsub.f32 %v21604_v35, %v9462_v46  ;;  %v21672_v63 = vand.u32 4294901760, %v158_v51  ;;  %v24533_v24 = vand.u32 4294901760, %v21663_v57  ;;  %v9471_v41 = vand.u32 4294901760, %v9470_v2 }
 0x459   :  { %9346 = vmatprep.subr.mxu0 %v24603_v44  ;;  %9431 = vmatprep.subr.mxu1 %v24603_v44  ;;  %v9484_v33 = vsub.f32 %v21647_v37, %v24535_v6  ;;  %v9498_v2 = vsub.f32 %v21683_v40, %v24534_v53 }
 0x45a   :  { %9348 = vmatpush1.msra.mxu0 %v21580_v27  ;;  %9437 = vmatpush1.msra.mxu1 %v9436_v14  ;;  %v9464_v8 = vand.u32 4294901760, %v9463_v55  ;;  %v21698_v58 = vsub.f32 %v158_v51, %v21672_v63  ;;  %v9491_v4 = vsub.f32 %v21663_v57, %v24533_v24  ;;  %v21728_v14 = vpop.f32.mrf.mxu0  ;;  %v9478_v51 = vand.u32 4294901760, %v9477_v11  ;;  %v389_v55 = vld [vmem:[%s23845_s2 + $0xb20] sm:$0xff] }
 0x45b   :  { %9349 = vmatprep.subr.mxu0 %v24603_v44  ;;  %9438 = vmatprep.subr.mxu1 %v24603_v44  ;;  %25998 = vst [vmem:[#allocation48_spill] sm:$0xff] %v21728_v14  ;;  %v21751_v11 = vand.u32 4294901760, %v53_v15  ;;  %v21765_v6 = vand.u32 4294901760, %v389_v55 }
 0x45c   :  { %9351 = vmatpush1.msra.mxu0 %v21593_v23  ;;  %9444 = vmatpush1.msra.mxu1 %v9443_v13  ;;  %v21734_v13 = vsub.f32 %v116_v29, %v21703_v9  ;;  %v9504_v39 = vand.u32 4294901760, %v21698_v58  ;;  %v21746_v29 = vsub.f32 %v95_v25, %v21717_v1  ;;  %v21760_v25 = vsub.f32 %v74_v36, %v21736_v17 }
 0x45d   :  { %9352 = vmatprep.subr.mxu0 %v24603_v44  ;;  %9445 = vmatprep.subr.mxu1 %v24603_v44 }
 0x45e   :  { %9354 = vmatpush1.msra.mxu0 %v21609_v50  ;;  %9451 = vmatpush1.msra.mxu1 %v9450_v7  ;;  %v9485_v7 = vand.u32 4294901760, %v9484_v33  ;;  %v24540_v33 = vand.u32 4294901760, %v21715_v31  ;;  %v9505_v53 = vsub.f32 %v21698_v58, %v9504_v39  ;;  %v24537_v0 = vand.u32 4294901760, %v21734_v13 }
 0x45f   :  { %9355 = vmatprep.subr.mxu0 %v24603_v44  ;;  %9452 = vmatprep.subr.mxu1 %v24603_v44 }
 0x460   :  { %9357 = vmatpush1.msra.mxu0 %v21617_v52  ;;  %9458 = vmatpush1.msra.mxu1 %v9457_v20  ;;  %v7656_v20 = vpop.f32.mrf.mxu0  ;;  %v9512_v36 = vsub.f32 %v21715_v31, %v24540_v33 }
 0x461   :  { %9358 = vmatprep.subr.mxu0 %v24603_v44  ;;  %9459 = vmatprep.subr.mxu1 %v24603_v44 }
 0x462   :  { %9360 = vmatpush1.msra.mxu0 %v21630_v3  ;;  %9465 = vmatpush1.msra.mxu1 %v9464_v8 }
 0x463   :  { %9361 = vmatprep.subr.mxu0 %v24603_v44  ;;  %9466 = vmatprep.subr.mxu1 %v24603_v44 }
 0x464   :  { %9363 = vmatpush1.msra.mxu0 %v21657_v43  ;;  %9472 = vmatpush1.msra.mxu1 %v9471_v41  ;;  %v7899_v8 = vpop.f32.mrf.mxu1  ;;  %v9492_v41 = vand.u32 4294901760, %v9491_v4  ;;  %v9499_v4 = vand.u32 4294901760, %v9498_v2  ;;  %v24539_v2 = vand.u32 4294901760, %v21760_v25 }
 0x465   :  { %9364 = vmatprep.subr.mxu0 %v24603_v44  ;;  %9473 = vmatprep.subr.mxu1 %v24603_v44  ;;  %v21756_v24 = vadd.f32 %v7899_v8, %v7656_v20  ;;  %v24538_v20 = vand.u32 4294901760, %v21746_v29  ;;  %v21782_v8 = vsub.f32 %v389_v55, %v21765_v6 }
 0x466   :  { %9366 = vmatpush1.msra.mxu0 %v21672_v63  ;;  %9479 = vmatpush1.msra.mxu1 %v9478_v51  ;;  %v21772_v51 = vsub.f32 %v53_v15, %v21751_v11  ;;  %v9519_v15 = vsub.f32 %v21734_v13, %v24537_v0 }
 0x467   :  { %9367 = vmatprep.subr.mxu0 %v24603_v44  ;;  %9480 = vmatprep.subr.mxu1 %v24603_v44 }
 0x468   :  { %9369 = vmatpush1.msra.mxu0 %v21688_v21  ;;  %9486 = vmatpush1.msra.mxu1 %v9485_v7  ;;  %v9506_v7 = vand.u32 4294901760, %v9505_v53  ;;  %v9526_v53 = vsub.f32 %v21746_v29, %v24538_v20  ;;  %v9539_v55 = vand.u32 4294901760, %v21772_v51  ;;  %v9520_v0 = vand.u32 4294901760, %v9519_v15  ;;  %v26000_v15 = vld [vmem:[#allocation37_spill] sm:$0xff] }
 0x469   :  { %9370 = vmatprep.subr.mxu0 %v24603_v44  ;;  %9487 = vmatprep.subr.mxu1 %v24603_v44 }
 0x46a   :  { %9372 = vmatpush1.msra.mxu0 %v21703_v9  ;;  %9493 = vmatpush1.msra.mxu1 %v9492_v41  ;;  %v9513_v41 = vand.u32 4294901760, %v9512_v36  ;;  %v9576_v36 = vand.u32 4294901760, %v21782_v8  ;;  %v9527_v20 = vand.u32 4294901760, %v9526_v53 }
 0x46b   :  { %9373 = vmatprep.subr.mxu0 %v24603_v44  ;;  %9494 = vmatprep.subr.mxu1 %v24603_v44 }
 0x46c   :  { %9375 = vmatpush1.msra.mxu0 %v21717_v1  ;;  %9500 = vmatpush1.msra.mxu1 %v9499_v4  ;;  %v9533_v4 = vsub.f32 %v21760_v25, %v24539_v2  ;;  %v9577_v33 = vsub.f32 %v21782_v8, %v9576_v36 }
 0x46d   :  { %9376 = vmatprep.subr.mxu0 %v24603_v44  ;;  %9501 = vmatprep.subr.mxu1 %v24603_v44 }
 0x46e   :  { %9378 = vmatpush1.msra.mxu0 %v21736_v17  ;;  %9507 = vmatpush1.msra.mxu1 %v9506_v7  ;;  %v9540_v7 = vsub.f32 %v21772_v51, %v9539_v55  ;;  %v9534_v2 = vand.u32 4294901760, %v9533_v4 }
 0x46f   :  { %9379 = vmatprep.subr.mxu0 %v24603_v44  ;;  %9508 = vmatprep.subr.mxu1 %v24603_v44 }
 0x470   :  { %9381 = vmatpush1.msra.mxu0 %v21751_v11  ;;  %9514 = vmatpush1.msra.mxu1 %v9513_v41  ;;  %v26001_v41 = vld [vmem:[#allocation38_spill] sm:$0xff]  ;;  %v9541_v53 = vand.u32 4294901760, %v9540_v7 }
 0x471   :  { %9412 = vmatprep.subr.mxu0 %v24603_v44  ;;  %9515 = vmatprep.subr.mxu1 %v24603_v44 }
 0x472   :  { %9414 = vmatpush2.msra.mxu0 %v21765_v6  ;;  %9521 = vmatpush1.msra.mxu1 %v9520_v0  ;;  %v9578_v0 = vand.u32 4294901760, %v9577_v33  ;;  %v21830_v33 = vpop.f32.mrf.mxu0 }
 0x473   :  { %9420 = vmatprep.mubr.f32.mxu0 %v26000_v15  ;;  %9522 = vmatprep.subr.mxu1 %v24603_v44  ;;  %26002 = vst [vmem:[#allocation47_spill] sm:$0xff] %v21830_v33  ;;  %v26004_v15 = vld [vmem:[#allocation30_spill] sm:$0xff] }
 0x474   :  { %9588 = vmatprep.subr.mxu0 %v24603_v44  ;;  %9426 = vmatmul.mubr.f32.vlgmr.msra.gmra.mxu0 %v26001_v41 }
 0x475   :  { %9528 = vmatpush1.msra.mxu1 %v9527_v20  ;;  %9591 = vmatpush1.msra.mxu0 %v21551_v60  ;;  %v26006_v60 = vand.u32 4294901760, %v21638_v22 }
 0x476   :  { %9529 = vmatprep.subr.mxu1 %v24603_v44  ;;  %9592 = vmatprep.subr.mxu0 %v24603_v44 }
 0x477   :  { %9535 = vmatpush1.msra.mxu1 %v9534_v2  ;;  %9595 = vmatpush1.msra.mxu0 %v21565_v34 }
 0x478   :  { %9536 = vmatprep.subr.mxu1 %v24603_v44  ;;  %9596 = vmatprep.subr.mxu0 %v24603_v44 }
 0x479   :  { %9542 = vmatpush1.msra.mxu1 %v9541_v53  ;;  %9599 = vmatpush1.msra.mxu0 %v21578_v62 }
 0x47a   :  { %9573 = vmatprep.subr.mxu1 %v24603_v44  ;;  %9600 = vmatprep.subr.mxu0 %v24603_v44 }
 0x47b   :  { %9579 = vmatpush2.msra.mxu1 %v9578_v0  ;;  %9581 = vmatprep.mubr.f32.mxu1 %v25996_v49 }
 0x47c   :  { %9603 = vmatpush1.msra.mxu0 %v21591_v19  ;;  %9583 = vmatmul.mubr.f32.vlgmr.msra.gmra.mxu1 %v25997_v16 }
 0x47d   :  { %9604 = vmatprep.subr.mxu0 %v24603_v44  ;;  %9696 = vmatprep.subr.mxu1 %v24603_v44 }
 0x47e   :  { %9607 = vmatpush1.msra.mxu0 %v21604_v35  ;;  %9698 = vmatpush1.msra.mxu1 %v21528_v42 }
 0x47f   :  { %9608 = vmatprep.subr.mxu0 %v24603_v44  ;;  %9699 = vmatprep.subr.mxu1 %v24603_v44  ;;  %v8042_v20 = vpop.f32.mrf.mxu0 }
 0x480   :  { %9611 = vmatpush1.msra.mxu0 %v21622_v32  ;;  %9701 = vmatpush1.msra.mxu1 %v21539_v30  ;;  %v8043_v2 = vadd.f32 %v8042_v20, %v21756_v24  ;;  %v21851_v24 = vpop.f32.mrf.mxu1  ;;  %v26013_v32 = vand.u32 4294901760, %v21715_v31 }
 0x481   :  { %9612 = vmatprep.subr.mxu0 %v24603_v44  ;;  %9702 = vmatprep.subr.mxu1 %v24603_v44  ;;  %26003 = vst [vmem:[#allocation54_spill] sm:$0xff] %v21851_v24  ;;  %v10023_v24 = vld [vmem:[#allocation2 + $0x50] sm:$0xff] }
 0x482   :  { %9615 = vmatpush1.msra.mxu0 %v21638_v22  ;;  %9704 = vmatpush1.msra.mxu1 %v21553_v28  ;;  %v10014_v22 = vld [vmem:[#allocation2 + $0x8] sm:$0xff] }
 0x483   :  { %9616 = vmatprep.subr.mxu0 %v24603_v44  ;;  %9705 = vmatprep.subr.mxu1 %v24603_v44 }
 0x484   :  { %9619 = vmatpush1.msra.mxu0 %v21647_v37  ;;  %9707 = vmatpush1.msra.mxu1 %v21567_v5 }
 0x485   :  { %9620 = vmatprep.subr.mxu0 %v24603_v44  ;;  %9708 = vmatprep.subr.mxu1 %v24603_v44 }
 0x486   :  { %9623 = vmatpush1.msra.mxu0 %v21663_v57  ;;  %9710 = vmatpush1.msra.mxu1 %v21580_v27 }
 0x487   :  { %9624 = vmatprep.subr.mxu0 %v24603_v44  ;;  %9711 = vmatprep.subr.mxu1 %v24603_v44 }
 0x488   :  { %9627 = vmatpush1.msra.mxu0 %v21683_v40  ;;  %9713 = vmatpush1.msra.mxu1 %v21593_v23  ;;  %v8153_v4 = vpop.f32.mrf.mxu1 }
 0x489   :  { %9628 = vmatprep.subr.mxu0 %v24603_v44  ;;  %9714 = vmatprep.subr.mxu1 %v24603_v44  ;;  %v8154_v7 = vadd.f32 %v8153_v4, %v8043_v2  ;;  %v10005_v2 = vld [vmem:[%s23844_s1 + $0x20] sm:$0xff] }
 0x48a   :  { %9631 = vmatpush1.msra.mxu0 %v21698_v58  ;;  %9716 = vmatpush1.msra.mxu1 %v21609_v50  ;;  %v21940_v62 = vpop.f32.mrf.mxu1 }
 0x48b   :  { %9632 = vmatprep.subr.mxu0 %v24603_v44  ;;  %9717 = vmatprep.subr.mxu1 %v24603_v44  ;;  %26009 = vst [vmem:[#allocation68_spill] sm:$0xff] %v21940_v62 }
 0x48c   :  { %9635 = vmatpush1.msra.mxu0 %v21715_v31  ;;  %9719 = vmatpush1.msra.mxu1 %v21617_v52  ;;  %v26017_v31 = vand.u32 4294901760, %v21746_v29 }
 0x48d   :  { %9636 = vmatprep.subr.mxu0 %v24603_v44  ;;  %9720 = vmatprep.subr.mxu1 %v24603_v44 }
 0x48e   :  { %9639 = vmatpush1.msra.mxu0 %v21734_v13  ;;  %9722 = vmatpush1.msra.mxu1 %v21630_v3 }
 0x48f   :  { %9640 = vmatprep.subr.mxu0 %v24603_v44  ;;  %9723 = vmatprep.subr.mxu1 %v24603_v44 }
 0x490   :  { %9643 = vmatpush1.msra.mxu0 %v21746_v29  ;;  %9725 = vmatpush1.msra.mxu1 %v21657_v43  ;;  %v26021_v29 = vand.u32 4294901760, %v21760_v25 }
 0x491   :  { %9644 = vmatprep.subr.mxu0 %v24603_v44  ;;  %9726 = vmatprep.subr.mxu1 %v24603_v44 }
 0x492   :  { %9647 = vmatpush1.msra.mxu0 %v21760_v25  ;;  %9728 = vmatpush1.msra.mxu1 %v21672_v63 }
 0x493   :  { %9648 = vmatprep.subr.mxu0 %v24603_v44  ;;  %9729 = vmatprep.subr.mxu1 %v24603_v44 }
 0x494   :  { %9651 = vmatpush1.msra.mxu0 %v21772_v51  ;;  %9731 = vmatpush1.msra.mxu1 %v21688_v21 }
 0x495   :  { %9682 = vmatprep.subr.mxu0 %v24603_v44  ;;  %9732 = vmatprep.subr.mxu1 %v24603_v44 }
 0x496   :  { %9685 = vmatpush2.msra.mxu0 %v21782_v8  ;;  %9688 = vmatprep.mubr.f32.mxu0 %v26004_v15 }
 0x497   :  { %9734 = vmatpush1.msra.mxu1 %v21703_v9  ;;  %9691 = vmatmul.mubr.f32.vlgmr.msra.gmra.mxu0 %v25946_v10  ;;  %v21911_v10 = vpop.f32.mrf.mxu0 }
 0x498   :  { %9735 = vmatprep.subr.mxu1 %v24603_v44  ;;  %9789 = vmatprep.subr.mxu0 %v24603_v44  ;;  %26005 = vst [vmem:[#allocation23_spill] sm:$0xff] %v21911_v10 }
 0x499   :  { %9737 = vmatpush1.msra.mxu1 %v21717_v1  ;;  %9793 = vmatpush1.msra.mxu0 %v9434_v45  ;;  %v10002_v45 = vld [vmem:[%s23844_s1 + $0x8] sm:$0xff] }
 0x49a   :  { %9738 = vmatprep.subr.mxu1 %v24603_v44  ;;  %9794 = vmatprep.subr.mxu0 %v24603_v44  ;;  %v10032_v35 = vsel %vm10027_vm1, %v10002_v45, 0 }
 0x49b   :  { %9740 = vmatpush1.msra.mxu1 %v21736_v17  ;;  %9798 = vmatpush1.msra.mxu0 %v9441_v61 }
 0x49c   :  { %9741 = vmatprep.subr.mxu1 %v24603_v44  ;;  %9799 = vmatprep.subr.mxu0 %v24603_v44 }
 0x49d   :  { %9743 = vmatpush1.msra.mxu1 %v21751_v11  ;;  %9803 = vmatpush1.msra.mxu0 %v9448_v56  ;;  %v10003_v56 = vld [vmem:[%s23844_s1 + $0x10] sm:$0xff] }
 0x49e   :  { %9774 = vmatprep.subr.mxu1 %v24603_v44  ;;  %9804 = vmatprep.subr.mxu0 %v24603_v44 }
 0x49f   :  { %9776 = vmatpush2.msra.mxu1 %v21765_v6  ;;  %9780 = vmatprep.mubr.f32.mxu1 %v25954_v59 }
 0x4a0   :  { %9808 = vmatpush1.msra.mxu0 %v9455_v12  ;;  %9784 = vmatmul.mubr.f32.vlgmr.msra.gmra.mxu1 %v25956_v48  ;;  %v10020_v12 = vld [vmem:[#allocation2 + $0x38] sm:$0xff] }
 0x4a1   :  { %9809 = vmatprep.subr.mxu0 %v24603_v44  ;;  %9912 = vmatprep.subr.mxu1 %v24603_v44  ;;  %v21986_v58 = vand.u32 4294901760, %v10020_v12 }
 0x4a2   :  { %9813 = vmatpush1.msra.mxu0 %v9462_v46  ;;  %9914 = vmatpush1.msra.mxu1 %v21528_v42  ;;  %v10001_v42 = vld [vmem:[%s23844_s1] sm:$0xff] }
 0x4a3   :  { %9814 = vmatprep.subr.mxu0 %v24603_v44  ;;  %9915 = vmatprep.subr.mxu1 %v24603_v44  ;;  %v8328_v59 = vpop.f32.mrf.mxu0  ;;  %v10029_v34 = vsel %vm10027_vm1, %v10001_v42, 0  ;;  %v10013_v46 = vld [vmem:[#allocation2] sm:$0xff] }
 0x4a4   :  { %9818 = vmatpush1.msra.mxu0 %v9469_v38  ;;  %9917 = vmatpush1.msra.mxu1 %v21539_v30  ;;  %v8329_v48 = vadd.f32 %v8328_v59, %v8154_v7  ;;  %v26007_v30 = vand.u32 4294901760, %v21647_v37  ;;  %v21952_v61 = vand.u32 4294901760, %v10029_v34  ;;  %v21973_v38 = vand.u32 4294901760, %v10032_v35 }
 0x4a5   :  { %9819 = vmatprep.subr.mxu0 %v24603_v44  ;;  %9918 = vmatprep.subr.mxu1 %v24603_v44  ;;  %v10041_v59 = vsel %vm10027_vm1, %v10005_v2, 0 }
 0x4a6   :  { %9823 = vmatpush1.msra.mxu0 %v26006_v60  ;;  %9920 = vmatpush1.msra.mxu1 %v21553_v28  ;;  %v26008_v28 = vand.u32 4294901760, %v21663_v57  ;;  %26011 = vst [vmem:[#allocation76_spill] sm:$0xff] %v21952_v61  ;;  %v21971_v37 = vsub.f32 %v10029_v34, %v21952_v61  ;;  %26015 = vst [vmem:[#allocation9_spill] sm:$0xff] %v21973_v38  ;;  %v26016_v57 = vand.u32 4294901760, %v21734_v13  ;;  %v21993_v13 = vand.u32 4294901760, %v10013_v46 }
 0x4a7   :  { %9824 = vmatprep.subr.mxu0 %v24603_v44  ;;  %9921 = vmatprep.subr.mxu1 %v24603_v44  ;;  %v22003_v53 = vsub.f32 %v10032_v35, %v21973_v38 }
 0x4a8   :  { %9828 = vmatpush1.msra.mxu0 %v26007_v30  ;;  %9923 = vmatpush1.msra.mxu1 %v21567_v5  ;;  %v26010_v5 = vand.u32 4294901760, %v21683_v40  ;;  %26014 = vst [vmem:[#allocation8_spill] sm:$0xff] %v21971_v37  ;;  %v22024_v25 = vsub.f32 %v10013_v46, %v21993_v13 }
 0x4a9   :  { %9829 = vmatprep.subr.mxu0 %v24603_v44  ;;  %9924 = vmatprep.subr.mxu1 %v24603_v44  ;;  %26020 = vst [vmem:[#allocation24_spill] sm:$0xff] %v22003_v53  ;;  %v22039_v51 = vand.u32 4294901760, %v22003_v53 }
 0x4aa   :  { %9833 = vmatpush1.msra.mxu0 %v26008_v28  ;;  %9926 = vmatpush1.msra.mxu1 %v21580_v27  ;;  %v22068_v28 = vand.u32 4294901760, %v10041_v59 }
 0x4ab   :  { %9834 = vmatprep.subr.mxu0 %v24603_v44  ;;  %9927 = vmatprep.subr.mxu1 %v24603_v44  ;;  %26024 = vst [vmem:[#allocation31_spill] sm:$0xff] %v22039_v51  ;;  %v10147_v30 = vsub.f32 %v22003_v53, %v22039_v51 }
 0x4ac   :  { %9838 = vmatpush1.msra.mxu0 %v26010_v5  ;;  %9929 = vmatpush1.msra.mxu1 %v21593_v23  ;;  %v8435_v19 = vpop.f32.mrf.mxu1  ;;  %v10021_v23 = vld [vmem:[#allocation2 + $0x40] sm:$0xff]  ;;  %26028 = vst [vmem:[#allocation61_spill] sm:$0xff] %v22068_v28  ;;  %v10007_v5 = vld [vmem:[%s23844_s1 + $0x30] sm:$0xff] }
 0x4ad   :  { %9839 = vmatprep.subr.mxu0 %v24603_v44  ;;  %9930 = vmatprep.subr.mxu1 %v24603_v44  ;;  %v21957_v27 = vadd.f32 %v8435_v19, %v8329_v48  ;;  %v21979_v40 = vand.u32 4294901760, %v10021_v23  ;;  %v10006_v48 = vld [vmem:[%s23844_s1 + $0x28] sm:$0xff]  ;;  %v10047_v46 = vsel %vm10027_vm1, %v10007_v5, 0 }
 0x4ae   :  { %9843 = vmatpush1.msra.mxu0 %v9504_v39  ;;  %9932 = vmatpush1.msra.mxu1 %v21609_v50  ;;  %v10035_v50 = vsel %vm10027_vm1, %v10003_v56, 0  ;;  %v21991_v39 = vand.u32 4294901760, %v10014_v22  ;;  %v10044_v45 = vsel %vm10027_vm1, %v10006_v48, 0 }
 0x4af   :  { %26012 = vst [vmem:[#allocation25_spill] sm:$0xff] %v21957_v27  ;;  %9844 = vmatprep.subr.mxu0 %v24603_v44  ;;  %9933 = vmatprep.subr.mxu1 %v24603_v44  ;;  %v21995_v41 = vand.u32 4294901760, %v10035_v50  ;;  %v22010_v20 = vsub.f32 %v10021_v23, %v21979_v40  ;;  %v22099_v23 = vand.u32 4294901760, %v10147_v30 }
 0x4b0   :  { %9848 = vmatpush1.msra.mxu0 %v26013_v32  ;;  %9935 = vmatpush1.msra.mxu1 %v21617_v52  ;;  %v10004_v52 = vld [vmem:[%s23844_s1 + $0x18] sm:$0xff]  ;;  %v22027_v4 = vsub.f32 %v10014_v22, %v21991_v39  ;;  %v22102_v32 = vsub.f32 %v10041_v59, %v22068_v28 }
 0x4b1   :  { %9849 = vmatprep.subr.mxu0 %v24603_v44  ;;  %9936 = vmatprep.subr.mxu1 %v24603_v44  ;;  %26018 = vst [vmem:[#allocation10_spill] sm:$0xff] %v21995_v41  ;;  %v10038_v0 = vsel %vm10027_vm1, %v10004_v52, 0  ;;  %26030 = vst [vmem:[#allocation85_spill] sm:$0xff] %v22099_v23 }
 0x4b2   :  { %9853 = vmatpush1.msra.mxu0 %v26016_v57  ;;  %9938 = vmatpush1.msra.mxu1 %v21630_v3  ;;  %v22000_v3 = vand.u32 4294901760, %v21971_v37  ;;  %v22032_v7 = vand.u32 4294901760, %v10038_v0  ;;  %v24542_v8 = vand.u32 4294901760, %v22027_v4  ;;  %26031 = vst [vmem:[#allocation83_spill] sm:$0xff] %v22102_v32  ;;  %v26064_v18 = vand.u32 4294901760, %v22027_v4 }
 0x4b3   :  { %9854 = vmatprep.subr.mxu0 %v24603_v44  ;;  %9939 = vmatprep.subr.mxu1 %v24603_v44 }
 0x4b4   :  { %9858 = vmatpush1.msra.mxu0 %v26017_v31  ;;  %9941 = vmatpush1.msra.mxu1 %v21657_v43  ;;  %26019 = vst [vmem:[#allocation21_spill] sm:$0xff] %v22000_v3  ;;  %v22015_v43 = vsub.f32 %v10020_v12, %v21986_v58  ;;  %26023 = vst [vmem:[#allocation81_spill] sm:$0xff] %v22032_v7  ;;  %v10136_v15 = vsub.f32 %v21971_v37, %v22000_v3  ;;  %v22104_v12 = vand.u32 4294901760, %v10044_v45 }
 0x4b5   :  { %9859 = vmatprep.subr.mxu0 %v24603_v44  ;;  %9942 = vmatprep.subr.mxu1 %v24603_v44  ;;  %v22060_v42 = vsub.f32 %v10038_v0, %v22032_v7  ;;  %v10308_v19 = vsub.f32 %v22027_v4, %v24542_v8  ;;  %v22123_v0 = vand.u32 4294901760, %v22102_v32 }
 0x4b6   :  { %9863 = vmatpush1.msra.mxu0 %v26021_v29  ;;  %9944 = vmatpush1.msra.mxu1 %v21672_v63  ;;  %v22030_v63 = vsub.f32 %v10035_v50, %v21995_v41  ;;  %v10008_v50 = vld [vmem:[%s23844_s1 + $0x38] sm:$0xff]  ;;  %v22126_v29 = vsub.f32 %v10044_v45, %v22104_v12 }
 0x4b7   :  { %9864 = vmatprep.subr.mxu0 %v24603_v44  ;;  %9945 = vmatprep.subr.mxu1 %v24603_v44  ;;  %26026 = vst [vmem:[#allocation34_spill] sm:$0xff] %v22060_v42  ;;  %v22095_v56 = vand.u32 4294901760, %v22060_v42  ;;  %v10309_v52 = vand.u32 4294901760, %v10308_v19  ;;  %26033 = vst [vmem:[#allocation89_spill] sm:$0xff] %v22123_v0  ;;  %v10050_v2 = vsel %vm10027_vm1, %v10008_v50, 0  ;;  %v10180_v48 = vsub.f32 %v22102_v32, %v22123_v0  ;;  %v22177_v50 = vpop.f32.mrf.mxu0 }
 0x4b8   :  { %9868 = vmatpush1.msra.mxu0 %v9539_v55  ;;  %26022 = vst [vmem:[#allocation62_spill] sm:$0xff] %v22030_v63  ;;  %9947 = vmatpush1.msra.mxu1 %v21688_v21  ;;  %v10295_v55 = vand.u32 4294901760, %v22010_v20  ;;  %v24543_v21 = vand.u32 4294901760, %v22015_v43  ;;  %v22057_v60 = vand.u32 4294901760, %v22030_v63  ;;  %26034 = vst [vmem:[#allocation82_spill] sm:$0xff] %v22126_v29  ;;  %v22145_v30 = vand.u32 4294901760, %v22126_v29 }
 0x4b9   :  { %9899 = vmatprep.subr.mxu0 %v24603_v44  ;;  %9948 = vmatprep.subr.mxu1 %v24603_v44  ;;  %26029 = vst [vmem:[#allocation36_spill] sm:$0xff] %v22095_v56  ;;  %v22164_v19 = vand.u32 4294901760, %v10180_v48  ;;  %26043 = vst [vmem:[#allocation93_spill] sm:$0xff] %v22177_v50 }
 0x4ba   :  { %9903 = vmatpush2.msra.mxu0 %v9576_v36  ;;  %9905 = vmatprep.mubr.f32.mxu0 %v25996_v49  ;;  %v24541_v36 = vand.u32 4294901760, %v22024_v25  ;;  %26025 = vst [vmem:[#allocation33_spill] sm:$0xff] %v22057_v60  ;;  %v10296_v34 = vsub.f32 %v22010_v20, %v10295_v55  ;;  %v10158_v35 = vsub.f32 %v22030_v63, %v22057_v60  ;;  %26038 = vst [vmem:[#allocation28_spill] sm:$0xff] %v22145_v30 }
 0x4bb   :  { %9950 = vmatpush1.msra.mxu1 %v21703_v9  ;;  %9907 = vmatmul.mubr.f32.vlgmr.msra.gmra.mxu0 %v25997_v16  ;;  %v22064_v9 = vand.u32 4294901760, %v10136_v15  ;;  %v22137_v15 = vand.u32 4294901760, %v10050_v2 }
 0x4bc   :  { %9951 = vmatprep.subr.mxu1 %v24603_v44  ;;  %10093 = vmatprep.subr.mxu0 %v21979_v40  ;;  %v10297_v22 = vand.u32 4294901760, %v10296_v34  ;;  %v22116_v31 = vand.u32 4294901760, %v10158_v35 }
 0x4bd   :  { %9953 = vmatpush1.msra.mxu1 %v21717_v1  ;;  %26027 = vst [vmem:[#allocation69_spill] sm:$0xff] %v22064_v9  ;;  %10095 = vmatpush1.msra.mxu0 %v21986_v58  ;;  %v10302_v1 = vsub.f32 %v22015_v43, %v24543_v21  ;;  %26036 = vst [vmem:[#allocation90_spill] sm:$0xff] %v22137_v15  ;;  %v22160_v5 = vsub.f32 %v10050_v2, %v22137_v15 }
 0x4be   :  { %9954 = vmatprep.subr.mxu1 %v24603_v44  ;;  %10097 = vmatprep.subr.mxu0 %v21991_v39  ;;  %26032 = vst [vmem:[#allocation88_spill] sm:$0xff] %v22116_v31 }
 0x4bf   :  { %9956 = vmatpush1.msra.mxu1 %v21736_v17  ;;  %10099 = vmatpush1.msra.mxu0 %v21993_v13  ;;  %v10314_v17 = vsub.f32 %v22024_v25, %v24541_v36  ;;  %v10303_v57 = vand.u32 4294901760, %v10302_v1  ;;  %v10010_v1 = vld [vmem:[%s23844_s1 + $0x48] sm:$0xff]  ;;  %26040 = vst [vmem:[#allocation38_spill] sm:$0xff] %v22160_v5 }
 0x4c0   :  { %10132 = vmatprep.mubr.f32.mxu0 %v24603_v44  ;;  %9957 = vmatprep.subr.mxu1 %v24603_v44 }
 0x4c1   :  { %10138 = vmatmul.mubr.f32.vlgmr.msra.gmra.mxu0 %v22064_v9  ;;  %9959 = vmatpush1.msra.mxu1 %v21751_v11  ;;  %v10315_v11 = vand.u32 4294901760, %v10314_v17  ;;  %v10191_v17 = vsub.f32 %v22126_v29, %v22145_v30 }
 0x4c2   :  { %9994 = vmatprep.mubr.f32.mxu1 %v25996_v49  ;;  %9990 = vmatprep.subr.mxu1 %v24603_v44  ;;  %v10169_v49 = vsub.f32 %v22060_v42, %v22095_v56 }
 0x4c3   :  { %10143 = vmatprep.mubr.f32.mxu0 %v24603_v44  ;;  %9992 = vmatpush2.msra.mxu1 %v21765_v6  ;;  %v22128_v6 = vand.u32 4294901760, %v10047_v46 }
 0x4c4   :  { %10464 = vmatprep.subr.mxu0 %v22010_v20  ;;  %9996 = vmatmul.mubr.f32.vlgmr.msra.gmra.mxu1 %v25997_v16  ;;  %v10009_v16 = vld [vmem:[%s23844_s1 + $0x40] sm:$0xff]  ;;  %v22140_v59 = vand.u32 4294901760, %v10169_v49  ;;  %v22193_v49 = vand.u32 4294901760, %v10191_v17  ;;  %v10012_v17 = vld [vmem:[%s23844_s1 + $0x58] sm:$0xff] }
 0x4c5   :  { %10149 = vmatmul.mubr.f32.gmra.mxu0 %v22099_v23  ;;  %26035 = vst [vmem:[#allocation75_spill] sm:$0xff] %v22128_v6  ;;  %10298 = vmatprep.subr.mxu1 %v10297_v22  ;;  %v22148_v34 = vsub.f32 %v10047_v46, %v22128_v6  ;;  %v10053_v45 = vsel %vm10027_vm1, %v10009_v16, 0  ;;  %v10056_v46 = vsel %vm10027_vm1, %v10010_v1, 0 }
 0x4c6   :  { %10154 = vmatprep.mubr.f32.mxu0 %v24603_v44  ;;  %10304 = vmatpush1.msra.mxu1 %v10303_v57  ;;  %26037 = vst [vmem:[#allocation26_spill] sm:$0xff] %v22140_v59  ;;  %v22171_v22 = vand.u32 4294901760, %v10053_v45  ;;  %v22179_v57 = vpop.f32.mrf.mxu1  ;;  %v22200_v36 = vand.u32 4294901760, %v10056_v46 }
 0x4c7   :  { %10349 = vmatprep.mubr.f32.mxu1 %v24603_v44  ;;  %10310 = vmatprep.subr.mxu1 %v10309_v52  ;;  %26039 = vst [vmem:[#allocation37_spill] sm:$0xff] %v22148_v34  ;;  %v22169_v35 = vand.u32 4294901760, %v22148_v34  ;;  %26044 = vst [vmem:[#allocation94_spill] sm:$0xff] %v22179_v57  ;;  %v10011_v52 = vld [vmem:[%s23844_s1 + $0x50] sm:$0xff] }
 0x4c8   :  { %10467 = vmatpush1.msra.mxu0 %v22015_v43  ;;  %10316 = vmatpush1.msra.mxu1 %v10315_v11  ;;  %26042 = vst [vmem:[#allocation92_spill] sm:$0xff] %v22171_v22  ;;  %v22187_v11 = vand.u32 4294901760, %v22160_v5  ;;  %v22198_v1 = vsub.f32 %v10053_v45, %v22171_v22  ;;  %26047 = vst [vmem:[#allocation97_spill] sm:$0xff] %v22200_v36 }
 0x4c9   :  { %10160 = vmatmul.mubr.f32.gmra.mxu0 %v22116_v31  ;;  %10351 = vmatmul.mubr.f32.vlgmr.msra.gmra.mxu1 %v21952_v61  ;;  %26041 = vst [vmem:[#allocation30_spill] sm:$0xff] %v22169_v35  ;;  %v8550_v2 = vpop.f32.mrf.mxu0  ;;  %v10202_v16 = vsub.f32 %v22148_v34, %v22169_v35 }
 0x4ca   :  { %10632 = vmatprep.subr.mxu1 %v21979_v40  ;;  %10165 = vmatprep.mubr.f32.mxu0 %v24603_v44  ;;  %26045 = vst [vmem:[#allocation95_spill] sm:$0xff] %v22187_v11  ;;  %26046 = vst [vmem:[#allocation96_spill] sm:$0xff] %v22198_v1  ;;  %v10213_v45 = vsub.f32 %v22160_v5, %v22187_v11 }
 0x4cb   :  { %10634 = vmatpush1.msra.mxu1 %v21986_v58  ;;  %10356 = vmatprep.mubr.f32.mxu1 %v24603_v44  ;;  %v22213_v8 = vand.u32 4294901760, %v10202_v16  ;;  %v22279_v54 = vpop.f32.mrf.mxu0 }
 0x4cc   :  { %10470 = vmatprep.subr.mxu0 %v22027_v4  ;;  %10636 = vmatprep.subr.mxu1 %v21991_v39  ;;  %v22227_v21 = vand.u32 4294901760, %v10213_v45  ;;  %26061 = vst [vmem:[#allocation111_spill] sm:$0xff] %v22279_v54 }
 0x4cd   :  { %10171 = vmatmul.mubr.f32.gmra.mxu0 %v22140_v59  ;;  %10358 = vmatmul.mubr.f32.gmra.mxu1 %v21973_v38 }
 0x4ce   :  { %10176 = vmatprep.mubr.f32.mxu0 %v24603_v44  ;;  %10363 = vmatprep.mubr.f32.mxu1 %v24603_v44 }
 0x4cf   :  { %10473 = vmatpush1.msra.mxu0 %v22024_v25  ;;  %10638 = vmatpush1.msra.mxu1 %v21993_v13 }
 0x4d0   :  { %10811 = vmatprep.subr.mxu0 %v10295_v55  ;;  %v8793_v48 = vpop.f32.mrf.mxu1  ;;  %10970 = vmatprep.subr.mxu1 %v21979_v40  ;;  %v10059_v55 = vsel %vm10027_vm1, %v10011_v52, 0  ;;  %v22216_v40 = vand.u32 4294901760, %v22198_v1 }
 0x4d1   :  { %10182 = vmatmul.mubr.f32.gmra.mxu0 %v22164_v19  ;;  %10365 = vmatmul.mubr.f32.gmra.mxu1 %v21995_v41  ;;  %v8794_v20 = vadd.f32 %v8793_v48, %v8550_v2  ;;  %v22219_v2 = vsub.f32 %v10056_v46, %v22200_v36  ;;  %v22221_v52 = vand.u32 4294901760, %v10059_v55  ;;  %v10062_v48 = vsel %vm10027_vm1, %v10012_v17, 0 }
 0x4d2   :  { %10187 = vmatprep.mubr.f32.mxu0 %v24603_v44  ;;  %10370 = vmatprep.mubr.f32.mxu1 %v24603_v44  ;;  %26048 = vst [vmem:[#allocation98_spill] sm:$0xff] %v22216_v40  ;;  %v10224_v16 = vsub.f32 %v22198_v1, %v22216_v40  ;;  %v22238_v57 = vand.u32 4294901760, %v10062_v48  ;;  %v22296_v54 = vpop.f32.mrf.mxu1 }
 0x4d3   :  { %26049 = vst [vmem:[#allocation99_spill] sm:$0xff] %v22219_v2  ;;  %26050 = vst [vmem:[#allocation100_spill] sm:$0xff] %v22221_v52  ;;  %v22233_v46 = vand.u32 4294901760, %v22219_v2  ;;  %v22236_v27 = vsub.f32 %v10059_v55, %v22221_v52 }
 0x4d4   :  { %26053 = vst [vmem:[#allocation103_spill] sm:$0xff] %v22238_v57  ;;  %v22244_v17 = vand.u32 4294901760, %v10224_v16  ;;  %v22252_v55 = vsub.f32 %v10062_v48, %v22238_v57  ;;  %26062 = vst [vmem:[#allocation112_spill] sm:$0xff] %v22296_v54  ;;  %v26065_v54 = vand.u32 4294901760, %v22024_v25  ;;  %v10015_v25 = vld [vmem:[#allocation2 + $0x10] sm:$0xff] }
 0x4d5   :  { %10193 = vmatmul.mubr.f32.gmra.mxu0 %v22193_v49  ;;  %10372 = vmatmul.mubr.f32.gmra.mxu1 %v22032_v7  ;;  %26051 = vst [vmem:[#allocation101_spill] sm:$0xff] %v22233_v46  ;;  %26052 = vst [vmem:[#allocation102_spill] sm:$0xff] %v22236_v27  ;;  %v10235_v45 = vsub.f32 %v22219_v2, %v22233_v46  ;;  %v22249_v50 = vand.u32 4294901760, %v22236_v27 }
 0x4d6   :  { %10198 = vmatprep.mubr.f32.mxu0 %v24603_v44  ;;  %10377 = vmatprep.mubr.f32.mxu1 %v24603_v44  ;;  %26054 = vst [vmem:[#allocation104_spill] sm:$0xff] %v22244_v17  ;;  %26056 = vst [vmem:[#allocation106_spill] sm:$0xff] %v22252_v55  ;;  %v22263_v10 = vand.u32 4294901760, %v22252_v55 }
 0x4d7   :  { %26055 = vst [vmem:[#allocation105_spill] sm:$0xff] %v22249_v50  ;;  %v22258_v62 = vand.u32 4294901760, %v10235_v45  ;;  %v10246_v16 = vsub.f32 %v22236_v27, %v22249_v50 }
 0x4d8   :  { %26058 = vst [vmem:[#allocation108_spill] sm:$0xff] %v22263_v10  ;;  %v10257_v45 = vsub.f32 %v22252_v55, %v22263_v10 }
 0x4d9   :  { %10204 = vmatmul.mubr.f32.gmra.mxu0 %v22213_v8  ;;  %10379 = vmatmul.mubr.f32.gmra.mxu1 %v22068_v28  ;;  %26057 = vst [vmem:[#allocation107_spill] sm:$0xff] %v22258_v62  ;;  %v22269_v48 = vand.u32 4294901760, %v10246_v16  ;;  %v22284_v16 = vand.u32 4294901760, %v10023_v24 }
 0x4da   :  { %10209 = vmatprep.mubr.f32.mxu0 %v24603_v44  ;;  %10384 = vmatprep.mubr.f32.mxu1 %v24603_v44  ;;  %v22277_v33 = vand.u32 4294901760, %v10257_v45 }
 0x4db   :  { %26059 = vst [vmem:[#allocation109_spill] sm:$0xff] %v22269_v48  ;;  %v22291_v45 = vsub.f32 %v10023_v24, %v22284_v16 }
 0x4dc   :  { %26060 = vst [vmem:[#allocation110_spill] sm:$0xff] %v22277_v33 }
 0x4dd   :  { %10215 = vmatmul.mubr.f32.gmra.mxu0 %v22227_v21  ;;  %10386 = vmatmul.mubr.f32.gmra.mxu1 %v22104_v12 }
 0x4de   :  { %10220 = vmatprep.mubr.f32.mxu0 %v24603_v44  ;;  %10391 = vmatprep.mubr.f32.mxu1 %v24603_v44 }
 0x4e1   :  { %10226 = vmatmul.mubr.f32.gmra.mxu0 %v22244_v17  ;;  %10393 = vmatmul.mubr.f32.gmra.mxu1 %v22128_v6 }
 0x4e2   :  { %10231 = vmatprep.mubr.f32.mxu0 %v24603_v44  ;;  %10398 = vmatprep.mubr.f32.mxu1 %v24603_v44 }
 0x4e5   :  { %10237 = vmatmul.mubr.f32.gmra.mxu0 %v22258_v62  ;;  %10400 = vmatmul.mubr.f32.gmra.mxu1 %v22137_v15 }
 0x4e6   :  { %10242 = vmatprep.mubr.f32.mxu0 %v24603_v44  ;;  %10405 = vmatprep.mubr.f32.mxu1 %v24603_v44 }
 0x4e9   :  { %10248 = vmatmul.mubr.f32.gmra.mxu0 %v22269_v48  ;;  %10407 = vmatmul.mubr.f32.gmra.mxu1 %v22171_v22 }
 0x4ea   :  { %10253 = vmatprep.mubr.f32.mxu0 %v24603_v44  ;;  %10412 = vmatprep.mubr.f32.mxu1 %v24603_v44 }
 0x4eb   :  { %v8936_v26 = vpop.f32.mrf.mxu0 }
 0x4ec   :  { %v8937_v14 = vadd.f32 %v8936_v26, %v8794_v20  ;;  %v26063_v26 = vand.u32 4294901760, %v22015_v43  ;;  %v24546_v20 = vand.u32 4294901760, %v22291_v45 }
 0x4ed   :  { %10259 = vmatmul.mubr.f32.gmra.mxu0 %v22277_v33  ;;  %10414 = vmatmul.mubr.f32.gmra.mxu1 %v22200_v36 }
 0x4ee   :  { %10506 = vmatprep.mubr.f32.mxu0 %v24603_v44  ;;  %10419 = vmatprep.mubr.f32.mxu1 %v24603_v44  ;;  %v11326_v43 = vsub.f32 %v22291_v45, %v24546_v20 }
 0x4f1   :  { %10509 = vmatmul.mubr.f32.vlgmr.msra.gmra.mxu0 %v21971_v37  ;;  %10421 = vmatmul.mubr.f32.gmra.mxu1 %v22221_v52 }
 0x4f2   :  { %10514 = vmatprep.mubr.f32.mxu0 %v24603_v44  ;;  %10426 = vmatprep.mubr.f32.mxu1 %v24603_v44 }
 0x4f3   :  { %10815 = vmatpush1.msra.mxu0 %v26063_v26 }
 0x4f4   :  { %10819 = vmatprep.subr.mxu0 %v26064_v18  ;;  %v9047_v24 = vpop.f32.mrf.mxu1  ;;  %v11327_v18 = vand.u32 4294901760, %v11326_v43  ;;  %v22358_v43 = vand.u32 4294901760, %v10015_v25 }
 0x4f5   :  { %10517 = vmatmul.mubr.f32.gmra.mxu0 %v22003_v53  ;;  %10428 = vmatmul.mubr.f32.gmra.mxu1 %v22238_v57  ;;  %v9048_v47 = vadd.f32 %v9047_v24, %v8937_v14 }
 0x4f6   :  { %10522 = vmatprep.mubr.f32.mxu0 %v24603_v44  ;;  %10671 = vmatprep.mubr.f32.mxu1 %v24603_v44  ;;  %v22350_v4 = vpop.f32.mrf.mxu1 }
 0x4f7   :  { %10823 = vmatpush1.msra.mxu0 %v26065_v54  ;;  %v22338_v54 = vpop.f32.mrf.mxu0  ;;  %26067 = vst [vmem:[#allocation114_spill] sm:$0xff] %v22350_v4  ;;  %v22373_v4 = vsub.f32 %v10015_v25, %v22358_v43 }
 0x4f8   :  { %11123 = vmatprep.subr.mxu0 %v22284_v16  ;;  %26066 = vst [vmem:[#allocation113_spill] sm:$0xff] %v22338_v54 }
 0x4f9   :  { %10525 = vmatmul.mubr.f32.gmra.mxu0 %v22030_v63  ;;  %10675 = vmatmul.mubr.f32.vlgmr.msra.gmra.mxu1 %v22000_v3 }
 0x4fa   :  { %10530 = vmatprep.mubr.f32.mxu0 %v24603_v44  ;;  %10972 = vmatpush1.msra.mxu1 %v21986_v58 }
 0x4fb   :  { %10680 = vmatprep.mubr.f32.mxu1 %v24603_v44  ;;  %10974 = vmatprep.subr.mxu1 %v21991_v39  ;;  %v10022_v39 = vld [vmem:[#allocation2 + $0x48] sm:$0xff] }
 0x4fc   :  { %10976 = vmatpush1.msra.mxu1 %v21993_v13  ;;  %v10016_v13 = vld [vmem:[#allocation2 + $0x18] sm:$0xff] }
 0x4fd   :  { %10533 = vmatmul.mubr.f32.gmra.mxu0 %v22060_v42  ;;  %10684 = vmatmul.mubr.f32.gmra.mxu1 %v22039_v51  ;;  %v22355_v26 = vand.u32 4294901760, %v10016_v13 }
 0x4fe   :  { %10538 = vmatprep.mubr.f32.mxu0 %v24603_v44  ;;  %10689 = vmatprep.mubr.f32.mxu1 %v24603_v44 }
 0x4ff   :  { %11328 = vmatprep.subr.mxu1 %v11327_v18  ;;  %v22369_v20 = vsub.f32 %v10016_v13, %v22355_v26 }
 0x501   :  { %10541 = vmatmul.mubr.f32.gmra.mxu0 %v22102_v32  ;;  %10693 = vmatmul.mubr.f32.gmra.mxu1 %v22057_v60 }
 0x502   :  { %10546 = vmatprep.mubr.f32.mxu0 %v24603_v44  ;;  %10698 = vmatprep.mubr.f32.mxu1 %v24603_v44 }
 0x505   :  { %10549 = vmatmul.mubr.f32.gmra.mxu0 %v22126_v29  ;;  %10702 = vmatmul.mubr.f32.gmra.mxu1 %v22095_v56 }
 0x506   :  { %10554 = vmatprep.mubr.f32.mxu0 %v24603_v44  ;;  %10707 = vmatprep.mubr.f32.mxu1 %v24603_v44 }
 0x509   :  { %10557 = vmatmul.mubr.f32.gmra.mxu0 %v22148_v34  ;;  %10711 = vmatmul.mubr.f32.gmra.mxu1 %v22123_v0 }
 0x50a   :  { %10562 = vmatprep.mubr.f32.mxu0 %v24603_v44  ;;  %10716 = vmatprep.mubr.f32.mxu1 %v24603_v44 }
 0x50d   :  { %10565 = vmatmul.mubr.f32.gmra.mxu0 %v22160_v5  ;;  %10720 = vmatmul.mubr.f32.gmra.mxu1 %v22145_v30 }
 0x50e   :  { %10570 = vmatprep.mubr.f32.mxu0 %v24603_v44  ;;  %10725 = vmatprep.mubr.f32.mxu1 %v24603_v44 }
 0x50f   :  { %v9222_v14 = vpop.f32.mrf.mxu0 }
 0x510   :  { %v9223_v58 = vadd.f32 %v9222_v14, %v9048_v47  ;;  %v22353_v47 = vand.u32 4294901760, %v10022_v39 }
 0x511   :  { %10573 = vmatmul.mubr.f32.gmra.mxu0 %v22198_v1  ;;  %10729 = vmatmul.mubr.f32.gmra.mxu1 %v22169_v35 }
 0x512   :  { %10578 = vmatprep.mubr.f32.mxu0 %v24603_v44  ;;  %10734 = vmatprep.mubr.f32.mxu1 %v24603_v44  ;;  %v22366_v14 = vsub.f32 %v10022_v39, %v22353_v47  ;;  %v24550_v39 = vand.u32 4294901760, %v22373_v4 }
 0x515   :  { %10581 = vmatmul.mubr.f32.gmra.mxu0 %v22219_v2  ;;  %10738 = vmatmul.mubr.f32.gmra.mxu1 %v22187_v11 }
 0x516   :  { %10586 = vmatprep.mubr.f32.mxu0 %v24603_v44  ;;  %10743 = vmatprep.mubr.f32.mxu1 %v24603_v44 }
 0x518   :  { %v9329_v24 = vpop.f32.mrf.mxu1 }
 0x519   :  { %10589 = vmatmul.mubr.f32.gmra.mxu0 %v22236_v27  ;;  %10747 = vmatmul.mubr.f32.gmra.mxu1 %v22216_v40  ;;  %v22362_v18 = vadd.f32 %v9329_v24, %v9223_v58  ;;  %v24548_v58 = vand.u32 4294901760, %v22366_v14  ;;  %v24549_v24 = vand.u32 4294901760, %v22369_v20 }
 0x51a   :  { %10594 = vmatprep.mubr.f32.mxu0 %v24603_v44  ;;  %10752 = vmatprep.mubr.f32.mxu1 %v24603_v44 }
 0x51b   :  { %26068 = vst [vmem:[#allocation115_spill] sm:$0xff] %v22362_v18  ;;  %v11332_v13 = vsub.f32 %v22366_v14, %v24548_v58  ;;  %v11338_v25 = vsub.f32 %v22369_v20, %v24549_v24  ;;  %v11344_v18 = vsub.f32 %v22373_v4, %v24550_v39 }
 0x51d   :  { %10597 = vmatmul.mubr.f32.gmra.mxu0 %v22252_v55  ;;  %10756 = vmatmul.mubr.f32.gmra.mxu1 %v22233_v46  ;;  %v11333_v54 = vand.u32 4294901760, %v11332_v13  ;;  %v11339_v58 = vand.u32 4294901760, %v11338_v25  ;;  %v11345_v24 = vand.u32 4294901760, %v11344_v18 }
 0x51e   :  { %10856 = vmatprep.mubr.f32.mxu0 %v24603_v44  ;;  %10761 = vmatprep.mubr.f32.mxu1 %v24603_v44 }
 0x521   :  { %10858 = vmatmul.mubr.f32.vlgmr.msra.gmra.mxu0 %v21952_v61  ;;  %10765 = vmatmul.mubr.f32.gmra.mxu1 %v22249_v50 }
 0x522   :  { %10863 = vmatprep.mubr.f32.mxu0 %v24603_v44  ;;  %10770 = vmatprep.mubr.f32.mxu1 %v24603_v44 }
 0x523   :  { %11125 = vmatpush1.msra.mxu0 %v22353_v47 }
 0x524   :  { %11127 = vmatprep.subr.mxu0 %v22355_v26 }
 0x525   :  { %10865 = vmatmul.mubr.f32.gmra.mxu0 %v21973_v38  ;;  %10774 = vmatmul.mubr.f32.gmra.mxu1 %v22263_v10 }
 0x526   :  { %10870 = vmatprep.mubr.f32.mxu0 %v24603_v44  ;;  %11009 = vmatprep.mubr.f32.mxu1 %v24603_v44 }
 0x527   :  { %11129 = vmatpush1.msra.mxu0 %v22358_v43 }
 0x528   :  { %11494 = vmatprep.subr.mxu0 %v22291_v45 }
 0x529   :  { %10872 = vmatmul.mubr.f32.gmra.mxu0 %v21995_v41  ;;  %11011 = vmatmul.mubr.f32.vlgmr.msra.gmra.mxu1 %v21952_v61 }
 0x52a   :  { %10877 = vmatprep.mubr.f32.mxu0 %v24603_v44  ;;  %11334 = vmatpush1.msra.mxu1 %v11333_v54  ;;  %v22414_v54 = vpop.f32.mrf.mxu0 }
 0x52b   :  { %11016 = vmatprep.mubr.f32.mxu1 %v24603_v44  ;;  %11340 = vmatprep.subr.mxu1 %v11339_v58  ;;  %26069 = vst [vmem:[#allocation116_spill] sm:$0xff] %v22414_v54  ;;  %v26073_v54 = vand.u32 4294901760, %v22369_v20 }
 0x52c   :  { %11346 = vmatpush1.msra.mxu1 %v11345_v24  ;;  %v22424_v24 = vpop.f32.mrf.mxu1 }
 0x52d   :  { %10879 = vmatmul.mubr.f32.gmra.mxu0 %v22032_v7  ;;  %11018 = vmatmul.mubr.f32.gmra.mxu1 %v21973_v38  ;;  %26070 = vst [vmem:[#allocation117_spill] sm:$0xff] %v22424_v24 }
 0x52e   :  { %10884 = vmatprep.mubr.f32.mxu0 %v24603_v44  ;;  %11023 = vmatprep.mubr.f32.mxu1 %v24603_v44 }
 0x52f   :  { %11662 = vmatprep.subr.mxu1 %v22284_v16 }
 0x531   :  { %10886 = vmatmul.mubr.f32.gmra.mxu0 %v22068_v28  ;;  %11025 = vmatmul.mubr.f32.gmra.mxu1 %v21995_v41 }
 0x532   :  { %10891 = vmatprep.mubr.f32.mxu0 %v24603_v44  ;;  %11030 = vmatprep.mubr.f32.mxu1 %v24603_v44 }
 0x534   :  { %v9427_v18 = vpop.f32.mrf.mxu0 }
 0x535   :  { %10893 = vmatmul.mubr.f32.gmra.mxu0 %v22104_v12  ;;  %11032 = vmatmul.mubr.f32.gmra.mxu1 %v22032_v7 }
 0x536   :  { %10898 = vmatprep.mubr.f32.mxu0 %v24603_v44  ;;  %11037 = vmatprep.mubr.f32.mxu1 %v24603_v44  ;;  %v9429_v58 = vpop.f32.mrf.mxu0 }
 0x539   :  { %10900 = vmatmul.mubr.f32.gmra.mxu0 %v22128_v6  ;;  %11039 = vmatmul.mubr.f32.gmra.mxu1 %v22068_v28 }
 0x53a   :  { %10905 = vmatprep.mubr.f32.mxu0 %v24603_v44  ;;  %11044 = vmatprep.mubr.f32.mxu1 %v24603_v44 }
 0x53c   :  { %v9584_v13 = vpop.f32.mrf.mxu1 }
 0x53d   :  { %10907 = vmatmul.mubr.f32.gmra.mxu0 %v22137_v15  ;;  %11046 = vmatmul.mubr.f32.gmra.mxu1 %v22104_v12  ;;  %v9585_v25 = vadd.f32 %v9584_v13, %v9427_v18  ;;  %v26071_v13 = vand.u32 4294901760, %v22291_v45 }
 0x53e   :  { %10912 = vmatprep.mubr.f32.mxu0 %v24603_v44  ;;  %11051 = vmatprep.mubr.f32.mxu1 %v24603_v44  ;;  %v9586_v58 = vpop.f32.mrf.mxu1 }
 0x541   :  { %10914 = vmatmul.mubr.f32.gmra.mxu0 %v22171_v22  ;;  %11053 = vmatmul.mubr.f32.gmra.mxu1 %v22128_v6 }
 0x542   :  { %10919 = vmatprep.mubr.f32.mxu0 %v24603_v44  ;;  %11058 = vmatprep.mubr.f32.mxu1 %v24603_v44 }
 0x545   :  { %10921 = vmatmul.mubr.f32.gmra.mxu0 %v22200_v36  ;;  %11060 = vmatmul.mubr.f32.gmra.mxu1 %v22137_v15 }
 0x546   :  { %10926 = vmatprep.mubr.f32.mxu0 %v24603_v44  ;;  %11065 = vmatprep.mubr.f32.mxu1 %v24603_v44 }
 0x549   :  { %10928 = vmatmul.mubr.f32.gmra.mxu0 %v22221_v52  ;;  %11067 = vmatmul.mubr.f32.gmra.mxu1 %v22171_v22 }
 0x54a   :  { %10933 = vmatprep.mubr.f32.mxu0 %v24603_v44  ;;  %11072 = vmatprep.mubr.f32.mxu1 %v24603_v44 }
 0x54d   :  { %10935 = vmatmul.mubr.f32.gmra.mxu0 %v22238_v57  ;;  %11074 = vmatmul.mubr.f32.gmra.mxu1 %v22200_v36 }
 0x54e   :  { %11162 = vmatprep.mubr.f32.mxu0 %v24603_v44  ;;  %11079 = vmatprep.mubr.f32.mxu1 %v24603_v44 }
 0x551   :  { %11168 = vmatmul.mubr.f32.vlgmr.msra.gmra.mxu0 %v22064_v9  ;;  %11081 = vmatmul.mubr.f32.gmra.mxu1 %v22221_v52 }
 0x552   :  { %11173 = vmatprep.mubr.f32.mxu0 %v24603_v44  ;;  %11086 = vmatprep.mubr.f32.mxu1 %v24603_v44 }
 0x553   :  { %11497 = vmatpush1.msra.mxu0 %v22366_v14 }
 0x554   :  { %11500 = vmatprep.subr.mxu0 %v22369_v20 }
 0x555   :  { %11179 = vmatmul.mubr.f32.gmra.mxu0 %v22099_v23  ;;  %11088 = vmatmul.mubr.f32.gmra.mxu1 %v22238_v57 }
 0x556   :  { %11184 = vmatprep.mubr.f32.mxu0 %v24603_v44  ;;  %11379 = vmatprep.mubr.f32.mxu1 %v24603_v44 }
 0x557   :  { %11503 = vmatpush1.msra.mxu0 %v22373_v4  ;;  %v9692_v18 = vpop.f32.mrf.mxu0 }
 0x558   :  { %11841 = vmatprep.subr.mxu0 %v26071_v13  ;;  %v9693_v58 = vadd.f32 %v9692_v18, %v9585_v25 }
 0x559   :  { %11190 = vmatmul.mubr.f32.gmra.mxu0 %v22116_v31  ;;  %11381 = vmatmul.mubr.f32.vlgmr.msra.gmra.mxu1 %v21952_v61  ;;  %v9694_v39 = vpop.f32.mrf.mxu0 }
 0x55a   :  { %11195 = vmatprep.mubr.f32.mxu0 %v24603_v44  ;;  %11664 = vmatpush1.msra.mxu1 %v22353_v47 }
 0x55b   :  { %11386 = vmatprep.mubr.f32.mxu1 %v24603_v44  ;;  %11666 = vmatprep.subr.mxu1 %v22355_v26 }
 0x55c   :  { %11668 = vmatpush1.msra.mxu1 %v22358_v43 }
 0x55d   :  { %11201 = vmatmul.mubr.f32.gmra.mxu0 %v22140_v59  ;;  %11388 = vmatmul.mubr.f32.gmra.mxu1 %v21973_v38 }
 0x55e   :  { %11206 = vmatprep.mubr.f32.mxu0 %v24603_v44  ;;  %11393 = vmatprep.mubr.f32.mxu1 %v24603_v44 }
 0x55f   :  { %12000 = vmatprep.subr.mxu1 %v22284_v16  ;;  %v10025_v16 = vld [vmem:[#allocation2 + $0x60] sm:$0xff] }
 0x560   :  { %v9785_v45 = vpop.f32.mrf.mxu1  ;;  %v22500_v18 = vand.u32 4294901760, %v10025_v16 }
 0x561   :  { %11212 = vmatmul.mubr.f32.gmra.mxu0 %v22164_v19  ;;  %11395 = vmatmul.mubr.f32.gmra.mxu1 %v21995_v41  ;;  %v9786_v39 = vadd.f32 %v9785_v45, %v9693_v58 }
 0x562   :  { %11217 = vmatprep.mubr.f32.mxu0 %v24603_v44  ;;  %11400 = vmatprep.mubr.f32.mxu1 %v24603_v44  ;;  %v9787_v25 = vpop.f32.mrf.mxu1 }
 0x563   :  { %v22507_v25 = vsub.f32 %v10025_v16, %v22500_v18 }
 0x565   :  { %11223 = vmatmul.mubr.f32.gmra.mxu0 %v22193_v49  ;;  %11402 = vmatmul.mubr.f32.gmra.mxu1 %v22032_v7 }
 0x566   :  { %11228 = vmatprep.mubr.f32.mxu0 %v24603_v44  ;;  %11407 = vmatprep.mubr.f32.mxu1 %v24603_v44 }
 0x569   :  { %11234 = vmatmul.mubr.f32.gmra.mxu0 %v22213_v8  ;;  %11409 = vmatmul.mubr.f32.gmra.mxu1 %v22068_v28 }
 0x56a   :  { %11239 = vmatprep.mubr.f32.mxu0 %v24603_v44  ;;  %11414 = vmatprep.mubr.f32.mxu1 %v24603_v44 }
 0x56d   :  { %11245 = vmatmul.mubr.f32.gmra.mxu0 %v22227_v21  ;;  %11416 = vmatmul.mubr.f32.gmra.mxu1 %v22104_v12 }
 0x56e   :  { %11250 = vmatprep.mubr.f32.mxu0 %v24603_v44  ;;  %11421 = vmatprep.mubr.f32.mxu1 %v24603_v44 }
 0x571   :  { %11256 = vmatmul.mubr.f32.gmra.mxu0 %v22244_v17  ;;  %11423 = vmatmul.mubr.f32.gmra.mxu1 %v22128_v6 }
 0x572   :  { %11261 = vmatprep.mubr.f32.mxu0 %v24603_v44  ;;  %11428 = vmatprep.mubr.f32.mxu1 %v24603_v44 }
 0x575   :  { %11267 = vmatmul.mubr.f32.gmra.mxu0 %v22258_v62  ;;  %11430 = vmatmul.mubr.f32.gmra.mxu1 %v22137_v15 }
 0x576   :  { %11272 = vmatprep.mubr.f32.mxu0 %v24603_v44  ;;  %11435 = vmatprep.mubr.f32.mxu1 %v24603_v44 }
 0x579   :  { %11278 = vmatmul.mubr.f32.gmra.mxu0 %v22269_v48  ;;  %11437 = vmatmul.mubr.f32.gmra.mxu1 %v22171_v22 }
 0x57a   :  { %11283 = vmatprep.mubr.f32.mxu0 %v24603_v44  ;;  %11442 = vmatprep.mubr.f32.mxu1 %v24603_v44 }
 0x57b   :  { %v9908_v13 = vpop.f32.mrf.mxu0 }
 0x57c   :  { %v9909_v58 = vadd.f32 %v9908_v13, %v9786_v39  ;;  %v26072_v13 = vand.u32 4294901760, %v22366_v14  ;;  %v26075_v14 = vand.u32 4294901760, %v22373_v4 }
 0x57d   :  { %11289 = vmatmul.mubr.f32.gmra.mxu0 %v22277_v33  ;;  %11444 = vmatmul.mubr.f32.gmra.mxu1 %v22200_v36  ;;  %v9910_v45 = vpop.f32.mrf.mxu0 }
 0x57e   :  { %11536 = vmatprep.mubr.f32.mxu0 %v24603_v44  ;;  %11449 = vmatprep.mubr.f32.mxu1 %v24603_v44  ;;  %v24559_v45 = vand.u32 4294901760, %v22507_v25 }
 0x580   :  { %v12356_v20 = vsub.f32 %v22507_v25, %v24559_v45 }
 0x581   :  { %v10139_v24 = vpop.f32.mrf.mxu0  ;;  %11539 = vmatmul.mubr.f32.vlgmr.msra.gmra.mxu0 %v21971_v37  ;;  %11451 = vmatmul.mubr.f32.gmra.mxu1 %v22221_v52 }
 0x582   :  { %11544 = vmatprep.mubr.f32.mxu0 %v24603_v44  ;;  %11456 = vmatprep.mubr.f32.mxu1 %v24603_v44 }
 0x583   :  { %v10141_v39 = vpop.f32.mrf.mxu0  ;;  %11845 = vmatpush1.msra.mxu0 %v26072_v13  ;;  %v12357_v13 = vand.u32 4294901760, %v12356_v20 }
 0x584   :  { %11849 = vmatprep.subr.mxu0 %v26073_v54  ;;  %v9997_v16 = vpop.f32.mrf.mxu1 }
 0x585   :  { %v10150_v33 = vpop.f32.mrf.mxu0  ;;  %11547 = vmatmul.mubr.f32.gmra.mxu0 %v22003_v53  ;;  %v22519_v37 = vadd.f32 %v9997_v16, %v9909_v58  ;;  %11458 = vmatmul.mubr.f32.gmra.mxu1 %v22238_v57 }
 0x586   :  { %11552 = vmatprep.mubr.f32.mxu0 %v24603_v44  ;;  %v9999_v48 = vpop.f32.mrf.mxu1  ;;  %11701 = vmatprep.mubr.f32.mxu1 %v24603_v44 }
 0x587   :  { %26074 = vst [vmem:[#allocation118_spill] sm:$0xff] %v22519_v37  ;;  %v10152_v62 = vpop.f32.mrf.mxu0  ;;  %11853 = vmatpush1.msra.mxu0 %v26075_v14 }
 0x588   :  { %12153 = vmatprep.subr.mxu0 %v22500_v18 }
 0x589   :  { %v10161_v54 = vpop.f32.mrf.mxu0  ;;  %11555 = vmatmul.mubr.f32.gmra.mxu0 %v22030_v63  ;;  %v10352_v58 = vpop.f32.mrf.mxu1  ;;  %11705 = vmatmul.mubr.f32.vlgmr.msra.gmra.mxu1 %v22000_v3 }
 0x58a   :  { %11560 = vmatprep.mubr.f32.mxu0 %v24603_v44  ;;  %v22533_v48 = vadd.f32 %v10352_v58, %v10139_v24  ;;  %12002 = vmatpush1.msra.mxu1 %v22353_v47 }
 0x58b   :  { %v10163_v4 = vpop.f32.mrf.mxu0  ;;  %11710 = vmatprep.mubr.f32.mxu1 %v24603_v44  ;;  %v10354_v16 = vpop.f32.mrf.mxu1  ;;  %12004 = vmatprep.subr.mxu1 %v22355_v26 }
 0x58c   :  { %v22538_v14 = vadd.f32 %v10354_v16, %v10141_v39  ;;  %12006 = vmatpush1.msra.mxu1 %v22358_v43 }
 0x58d   :  { %v10172_v45 = vpop.f32.mrf.mxu0  ;;  %11563 = vmatmul.mubr.f32.gmra.mxu0 %v22060_v42  ;;  %v10359_v37 = vpop.f32.mrf.mxu1  ;;  %11714 = vmatmul.mubr.f32.gmra.mxu1 %v22039_v51 }
 0x58e   :  { %11568 = vmatprep.mubr.f32.mxu0 %v24603_v44  ;;  %v22544_v47 = vadd.f32 %v10359_v37, %v10150_v33  ;;  %11719 = vmatprep.mubr.f32.mxu1 %v24603_v44 }
 0x58f   :  { %v10174_v24 = vpop.f32.mrf.mxu0  ;;  %12358 = vmatprep.subr.mxu1 %v12357_v13  ;;  %v10361_v20 = vpop.f32.mrf.mxu1 }
 0x590   :  { %v22547_v26 = vadd.f32 %v10361_v20, %v10152_v62 }
 0x591   :  { %v10183_v39 = vpop.f32.mrf.mxu0  ;;  %11571 = vmatmul.mubr.f32.gmra.mxu0 %v22102_v32  ;;  %v10366_v58 = vpop.f32.mrf.mxu1  ;;  %11723 = vmatmul.mubr.f32.gmra.mxu1 %v22057_v60 }
 0x592   :  { %11576 = vmatprep.mubr.f32.mxu0 %v24603_v44  ;;  %v22552_v43 = vadd.f32 %v10366_v58, %v10161_v54  ;;  %11728 = vmatprep.mubr.f32.mxu1 %v24603_v44 }
 0x593   :  { %v10185_v16 = vpop.f32.mrf.mxu0  ;;  %v10368_v33 = vpop.f32.mrf.mxu1 }
 0x594   :  { %v22555_v37 = vadd.f32 %v10368_v33, %v10163_v4 }
 0x595   :  { %v10194_v13 = vpop.f32.mrf.mxu0  ;;  %11579 = vmatmul.mubr.f32.gmra.mxu0 %v22126_v29  ;;  %v10373_v62 = vpop.f32.mrf.mxu1  ;;  %11732 = vmatmul.mubr.f32.gmra.mxu1 %v22095_v56 }
 0x596   :  { %11584 = vmatprep.mubr.f32.mxu0 %v24603_v44  ;;  %v22560_v20 = vadd.f32 %v10373_v62, %v10172_v45  ;;  %11737 = vmatprep.mubr.f32.mxu1 %v24603_v44 }
 0x597   :  { %v10196_v60 = vpop.f32.mrf.mxu0  ;;  %v10375_v54 = vpop.f32.mrf.mxu1 }
 0x598   :  { %v22563_v58 = vadd.f32 %v10375_v54, %v10174_v24 }
 0x599   :  { %v10205_v32 = vpop.f32.mrf.mxu0  ;;  %11587 = vmatmul.mubr.f32.gmra.mxu0 %v22148_v34  ;;  %v10380_v4 = vpop.f32.mrf.mxu1  ;;  %11741 = vmatmul.mubr.f32.gmra.mxu1 %v22123_v0 }
 0x59a   :  { %11592 = vmatprep.mubr.f32.mxu0 %v24603_v44  ;;  %v22568_v33 = vadd.f32 %v10380_v4, %v10183_v39  ;;  %11746 = vmatprep.mubr.f32.mxu1 %v24603_v44 }
 0x59b   :  { %v10207_v56 = vpop.f32.mrf.mxu0  ;;  %v10382_v45 = vpop.f32.mrf.mxu1 }
 0x59c   :  { %v22571_v62 = vadd.f32 %v10382_v45, %v10185_v16 }
 0x59d   :  { %v10216_v29 = vpop.f32.mrf.mxu0  ;;  %11595 = vmatmul.mubr.f32.gmra.mxu0 %v22160_v5  ;;  %v10387_v24 = vpop.f32.mrf.mxu1  ;;  %11750 = vmatmul.mubr.f32.gmra.mxu1 %v22145_v30 }
 0x59e   :  { %11600 = vmatprep.mubr.f32.mxu0 %v24603_v44  ;;  %v22576_v54 = vadd.f32 %v10387_v24, %v10194_v13  ;;  %11755 = vmatprep.mubr.f32.mxu1 %v24603_v44  ;;  %v10024_v24 = vld [vmem:[#allocation2 + $0x58] sm:$0xff] }
 0x59f   :  { %v10218_v0 = vpop.f32.mrf.mxu0  ;;  %v10389_v39 = vpop.f32.mrf.mxu1 }
 0x5a0   :  { %v22579_v4 = vadd.f32 %v10389_v39, %v10196_v60  ;;  %v10018_v60 = vld [vmem:[#allocation2 + $0x28] sm:$0xff] }
 0x5a1   :  { %v10227_v34 = vpop.f32.mrf.mxu0  ;;  %11603 = vmatmul.mubr.f32.gmra.mxu0 %v22198_v1  ;;  %v10394_v16 = vpop.f32.mrf.mxu1  ;;  %11759 = vmatmul.mubr.f32.gmra.mxu1 %v22169_v35  ;;  %v10017_v35 = vld [vmem:[#allocation2 + $0x20] sm:$0xff] }
 0x5a2   :  { %11608 = vmatprep.mubr.f32.mxu0 %v24603_v44  ;;  %v22584_v45 = vadd.f32 %v10394_v16, %v10205_v32  ;;  %11764 = vmatprep.mubr.f32.mxu1 %v24603_v44  ;;  %v22595_v16 = vand.u32 4294901760, %v10024_v24  ;;  %v22602_v3 = vand.u32 4294901760, %v10017_v35 }
 0x5a3   :  { %v10229_v30 = vpop.f32.mrf.mxu0  ;;  %v10396_v13 = vpop.f32.mrf.mxu1 }
 0x5a4   :  { %v22587_v5 = vadd.f32 %v10396_v13, %v10207_v56  ;;  %26076 = vst [vmem:[#allocation119_spill] sm:$0xff] %v22595_v16  ;;  %v22597_v56 = vand.u32 4294901760, %v10018_v60  ;;  %26079 = vst [vmem:[#allocation122_spill] sm:$0xff] %v22602_v3  ;;  %v22610_v63 = vsub.f32 %v10024_v24, %v22595_v16 }
 0x5a5   :  { %v10238_v51 = vpop.f32.mrf.mxu0  ;;  %11611 = vmatmul.mubr.f32.gmra.mxu0 %v22219_v2  ;;  %v10401_v39 = vpop.f32.mrf.mxu1  ;;  %11768 = vmatmul.mubr.f32.gmra.mxu1 %v22187_v11 }
 0x5a6   :  { %11616 = vmatprep.mubr.f32.mxu0 %v24603_v44  ;;  %v22592_v1 = vadd.f32 %v10401_v39, %v10216_v29  ;;  %11773 = vmatprep.mubr.f32.mxu1 %v24603_v44  ;;  %26077 = vst [vmem:[#allocation120_spill] sm:$0xff] %v22597_v56  ;;  %26081 = vst [vmem:[#allocation124_spill] sm:$0xff] %v22610_v63 }
 0x5a7   :  { %v10240_v32 = vpop.f32.mrf.mxu0  ;;  %v10403_v42 = vpop.f32.mrf.mxu1 }
 0x5a8   :  { %v22599_v13 = vadd.f32 %v10403_v42, %v10218_v0  ;;  %v22613_v0 = vsub.f32 %v10018_v60, %v22597_v56  ;;  %v24607_v60 = vand.u32 4294901760, %v22610_v63 }
 0x5a9   :  { %v10249_v2 = vpop.f32.mrf.mxu0  ;;  %11619 = vmatmul.mubr.f32.gmra.mxu0 %v22236_v27  ;;  %v10408_v11 = vpop.f32.mrf.mxu1  ;;  %11777 = vmatmul.mubr.f32.gmra.mxu1 %v22216_v40  ;;  %v22619_v40 = vsub.f32 %v10017_v35, %v22602_v3 }
 0x5aa   :  { %26078 = vst [vmem:[#allocation121_spill] sm:$0xff] %v22599_v13  ;;  %11624 = vmatprep.mubr.f32.mxu0 %v24603_v44  ;;  %v22606_v29 = vadd.f32 %v10408_v11, %v10227_v34  ;;  %11782 = vmatprep.mubr.f32.mxu1 %v24603_v44  ;;  %26082 = vst [vmem:[#allocation125_spill] sm:$0xff] %v22613_v0 }
 0x5ab   :  { %v10251_v39 = vpop.f32.mrf.mxu0  ;;  %v10410_v42 = vpop.f32.mrf.mxu1  ;;  %26084 = vst [vmem:[#allocation127_spill] sm:$0xff] %v22619_v40 }
 0x5ac   :  { %26080 = vst [vmem:[#allocation123_spill] sm:$0xff] %v22606_v29  ;;  %v22615_v27 = vadd.f32 %v10410_v42, %v10229_v30  ;;  %v24608_v42 = vand.u32 4294901760, %v22613_v0 }
 0x5ad   :  { %v10260_v53 = vpop.f32.mrf.mxu0  ;;  %11627 = vmatmul.mubr.f32.gmra.mxu0 %v22252_v55  ;;  %v10415_v34 = vpop.f32.mrf.mxu1  ;;  %11786 = vmatmul.mubr.f32.gmra.mxu1 %v22233_v46 }
 0x5ae   :  { %26083 = vst [vmem:[#allocation126_spill] sm:$0xff] %v22615_v27  ;;  %11886 = vmatprep.mubr.f32.mxu0 %v24603_v44  ;;  %v22623_v11 = vadd.f32 %v10415_v34, %v10238_v51  ;;  %11791 = vmatprep.mubr.f32.mxu1 %v24603_v44 }
 0x5af   :  { %v10262_v24 = vpop.f32.mrf.mxu0  ;;  %v10417_v30 = vpop.f32.mrf.mxu1 }
 0x5b0   :  { %26085 = vst [vmem:[#allocation128_spill] sm:$0xff] %v22623_v11  ;;  %v22628_v27 = vadd.f32 %v10417_v30, %v10240_v32  ;;  %v12362_v32 = vsub.f32 %v22610_v63, %v24607_v60 }
 0x5b1   :  { %v10510_v55 = vpop.f32.mrf.mxu0  ;;  %11888 = vmatmul.mubr.f32.vlgmr.msra.gmra.mxu0 %v21952_v61  ;;  %v10422_v46 = vpop.f32.mrf.mxu1  ;;  %11795 = vmatmul.mubr.f32.gmra.mxu1 %v22249_v50 }
 0x5b2   :  { %26086 = vst [vmem:[#allocation129_spill] sm:$0xff] %v22628_v27  ;;  %v10511_v29 = vadd.f32 %v10510_v55, %v22533_v48  ;;  %11893 = vmatprep.mubr.f32.mxu0 %v24603_v44  ;;  %v22635_v51 = vadd.f32 %v10422_v46, %v10249_v2  ;;  %11800 = vmatprep.mubr.f32.mxu1 %v24603_v44  ;;  %v26089_v48 = vand.u32 4294901760, %v22619_v40 }
 0x5b3   :  { %v10512_v34 = vpop.f32.mrf.mxu0  ;;  %12155 = vmatpush1.msra.mxu0 %v22595_v16  ;;  %v10424_v30 = vpop.f32.mrf.mxu1  ;;  %v12368_v55 = vsub.f32 %v22613_v0, %v24608_v42 }
 0x5b4   :  { %26087 = vst [vmem:[#allocation130_spill] sm:$0xff] %v22635_v51  ;;  %v10513_v35 = vadd.f32 %v10512_v34, %v22538_v14  ;;  %12157 = vmatprep.subr.mxu0 %v22597_v56  ;;  %v22647_v2 = vadd.f32 %v10424_v30, %v10251_v39  ;;  %v12374_v44 = vsub.f32 %v22619_v40, %v26089_v48  ;;  %v26090_v14 = vmov 0.0  }
 0x5b5   :  { %v10518_v46 = vpop.f32.mrf.mxu0  ;;  %11895 = vmatmul.mubr.f32.gmra.mxu0 %v21973_v38  ;;  %v10429_v50 = vpop.f32.mrf.mxu1  ;;  %11804 = vmatmul.mubr.f32.gmra.mxu1 %v22263_v10  ;;  %v12363_v39 = vand.u32 4294901760, %v12362_v32 }
 0x5b6   :  { %26088 = vst [vmem:[#allocation131_spill] sm:$0xff] %v22647_v2  ;;  %v10519_v60 = vadd.f32 %v10518_v46, %v22544_v47  ;;  %11900 = vmatprep.mubr.f32.mxu0 %v26090_v14  ;;  %v22656_v34 = vadd.f32 %v10429_v50, %v10260_v53  ;;  %12039 = vmatprep.mubr.f32.mxu1 %v26090_v14  ;;  %v12369_v2 = vand.u32 4294901760, %v12368_v55  ;;  %v12375_v46 = vand.u32 4294901760, %v12374_v44 }
 0x5b7   :  { %v10520_v51 = vpop.f32.mrf.mxu0  ;;  %12159 = vmatpush1.msra.mxu0 %v22602_v3  ;;  %v10431_v30 = vpop.f32.mrf.mxu1 }
 0x5b8   :  { %26091 = vst [vmem:[#allocation132_spill] sm:$0xff] %v22656_v34  ;;  %v10521_v42 = vadd.f32 %v10520_v51, %v22547_v26  ;;  %12524 = vmatprep.subr.mxu0 %v22507_v25  ;;  %v22662_v48 = vadd.f32 %v10431_v30, %v10262_v24 }
 0x5b9   :  { %v10526_v47 = vpop.f32.mrf.mxu0  ;;  %11902 = vmatmul.mubr.f32.gmra.mxu0 %v21995_v41  ;;  %v10676_v50 = vpop.f32.mrf.mxu1  ;;  %12041 = vmatmul.mubr.f32.vlgmr.msra.gmra.mxu1 %v21952_v61 }
 0x5ba   :  { %26092 = vst [vmem:[#allocation133_spill] sm:$0xff] %v22662_v48  ;;  %v10527_v53 = vadd.f32 %v10526_v47, %v22552_v43  ;;  %11907 = vmatprep.mubr.f32.mxu0 %v26090_v14  ;;  %v22668_v32 = vadd.f32 %v10676_v50, %v10511_v29  ;;  %12364 = vmatpush1.msra.mxu1 %v12363_v39 }
 0x5bb   :  { %v10528_v26 = vpop.f32.mrf.mxu0  ;;  %12046 = vmatprep.mubr.f32.mxu1 %v26090_v14  ;;  %v10678_v51 = vpop.f32.mrf.mxu1  ;;  %12370 = vmatprep.subr.mxu1 %v12369_v2 }
 0x5bc   :  { %v10529_v24 = vadd.f32 %v10528_v26, %v22555_v37  ;;  %v22672_v55 = vadd.f32 %v10678_v51, %v10513_v35  ;;  %12376 = vmatpush1.msra.mxu1 %v12375_v46 }
 0x5bd   :  { %v22674_v44 = vpop.f32.mrf.mxu0  ;;  %11909 = vmatmul.mubr.f32.gmra.mxu0 %v22032_v7  ;;  %v10685_v43 = vpop.f32.mrf.mxu1  ;;  %12048 = vmatmul.mubr.f32.gmra.mxu1 %v21973_v38 }
 0x5be   :  { %11914 = vmatprep.mubr.f32.mxu0 %v26090_v14  ;;  %v22679_v29 = vadd.f32 %v10685_v43, %v10519_v60  ;;  %12053 = vmatprep.mubr.f32.mxu1 %v26090_v14 }
 0x5bf   :  { %v22681_v39 = vpop.f32.mrf.mxu0  ;;  %12692 = vmatprep.subr.mxu1 %v22500_v18  ;;  %v10687_v37 = vpop.f32.mrf.mxu1 }
 0x5c0   :  { %v22685_v35 = vadd.f32 %v10687_v37, %v10521_v42 }
 0x5c1   :  { %v22687_v2 = vpop.f32.mrf.mxu0  ;;  %11916 = vmatmul.mubr.f32.gmra.mxu0 %v22068_v28  ;;  %v10694_v30 = vpop.f32.mrf.mxu1  ;;  %12055 = vmatmul.mubr.f32.gmra.mxu1 %v21995_v41 }
 0x5c2   :  { %11921 = vmatprep.mubr.f32.mxu0 %v26090_v14  ;;  %v22692_v60 = vadd.f32 %v10694_v30, %v10527_v53  ;;  %12060 = vmatprep.mubr.f32.mxu1 %v26090_v14 }
 0x5c3   :  { %v22694_v47 = vpop.f32.mrf.mxu0  ;;  %v10696_v46 = vpop.f32.mrf.mxu1 }
 0x5c4   :  { %v22697_v50 = vadd.f32 %v10696_v46, %v10529_v24 }
 0x5c5   :  { %v22699_v42 = vpop.f32.mrf.mxu0  ;;  %11923 = vmatmul.mubr.f32.gmra.mxu0 %v22104_v12  ;;  %v22702_v26 = vpop.f32.mrf.mxu1  ;;  %12062 = vmatmul.mubr.f32.gmra.mxu1 %v22032_v7 }
 0x5c6   :  { %11928 = vmatprep.mubr.f32.mxu0 %v26090_v14  ;;  %12067 = vmatprep.mubr.f32.mxu1 %v26090_v14 }
 0x5c7   :  { %v22706_v51 = vpop.f32.mrf.mxu0  ;;  %v22709_v53 = vpop.f32.mrf.mxu1 }
 0x5c9   :  { %v22711_v43 = vpop.f32.mrf.mxu0  ;;  %11930 = vmatmul.mubr.f32.gmra.mxu0 %v22128_v6  ;;  %v22714_v24 = vpop.f32.mrf.mxu1  ;;  %12069 = vmatmul.mubr.f32.gmra.mxu1 %v22068_v28 }
 0x5ca   :  { %11935 = vmatprep.mubr.f32.mxu0 %v26090_v14  ;;  %12074 = vmatprep.mubr.f32.mxu1 %v26090_v14 }
 0x5cb   :  { %v22718_v37 = vpop.f32.mrf.mxu0  ;;  %v22721_v30 = vpop.f32.mrf.mxu1 }
 0x5cd   :  { %v22723_v46 = vpop.f32.mrf.mxu0  ;;  %11937 = vmatmul.mubr.f32.gmra.mxu0 %v22137_v15  ;;  %v22726_v10 = vpop.f32.mrf.mxu1  ;;  %12076 = vmatmul.mubr.f32.gmra.mxu1 %v22104_v12 }
 0x5ce   :  { %26093 = vst [vmem:[#allocation134_spill] sm:$0xff] %v22723_v46  ;;  %11942 = vmatprep.mubr.f32.mxu0 %v26090_v14  ;;  %12081 = vmatprep.mubr.f32.mxu1 %v26090_v14 }
 0x5cf   :  { %v22730_v48 = vpop.f32.mrf.mxu0  ;;  %v22733_v34 = vpop.f32.mrf.mxu1 }
 0x5d0   :  { %26094 = vst [vmem:[#allocation135_spill] sm:$0xff] %v22730_v48 }
 0x5d1   :  { %v22735_v27 = vpop.f32.mrf.mxu0  ;;  %11944 = vmatmul.mubr.f32.gmra.mxu0 %v22171_v22  ;;  %v22738_v11 = vpop.f32.mrf.mxu1  ;;  %12083 = vmatmul.mubr.f32.gmra.mxu1 %v22128_v6 }
 0x5d2   :  { %26095 = vst [vmem:[#allocation136_spill] sm:$0xff] %v22735_v27  ;;  %11949 = vmatprep.mubr.f32.mxu0 %v26090_v14  ;;  %12088 = vmatprep.mubr.f32.mxu1 %v26090_v14 }
 0x5d3   :  { %v22742_v13 = vpop.f32.mrf.mxu0  ;;  %v22745_v17 = vpop.f32.mrf.mxu1 }
 0x5d4   :  { %26096 = vst [vmem:[#allocation137_spill] sm:$0xff] %v22742_v13  ;;  %26097 = vst [vmem:[#allocation138_spill] sm:$0xff] %v22745_v17 }
 0x5d5   :  { %v22747_v48 = vpop.f32.mrf.mxu0  ;;  %11951 = vmatmul.mubr.f32.gmra.mxu0 %v22200_v36  ;;  %v22750_v46 = vpop.f32.mrf.mxu1  ;;  %12090 = vmatmul.mubr.f32.gmra.mxu1 %v22137_v15 }
 0x5d6   :  { %26098 = vst [vmem:[#allocation139_spill] sm:$0xff] %v22747_v48  ;;  %11956 = vmatprep.mubr.f32.mxu0 %v26090_v14  ;;  %12095 = vmatprep.mubr.f32.mxu1 %v26090_v14 }
 0x5d7   :  { %v22754_v27 = vpop.f32.mrf.mxu0  ;;  %v22757_v6 = vpop.f32.mrf.mxu1 }
 0x5d8   :  { %26099 = vst [vmem:[#allocation140_spill] sm:$0xff] %v22754_v27  ;;  %26100 = vst [vmem:[#allocation141_spill] sm:$0xff] %v22757_v6 }
 0x5d9   :  { %v22759_v13 = vpop.f32.mrf.mxu0  ;;  %11958 = vmatmul.mubr.f32.gmra.mxu0 %v22221_v52  ;;  %v22762_v17 = vpop.f32.mrf.mxu1  ;;  %12097 = vmatmul.mubr.f32.gmra.mxu1 %v22171_v22 }
 0x5da   :  { %26101 = vst [vmem:[#allocation142_spill] sm:$0xff] %v22759_v13  ;;  %26102 = vst [vmem:[#allocation143_spill] sm:$0xff] %v22762_v17  ;;  %11963 = vmatprep.mubr.f32.mxu0 %v26090_v14  ;;  %12102 = vmatprep.mubr.f32.mxu1 %v26090_v14 }
 0x5db   :  { %v22766_v48 = vpop.f32.mrf.mxu0  ;;  %v22769_v15 = vpop.f32.mrf.mxu1 }
 0x5dc   :  { %26103 = vst [vmem:[#allocation144_spill] sm:$0xff] %v22766_v48  ;;  %26104 = vst [vmem:[#allocation145_spill] sm:$0xff] %v22769_v15 }
 0x5dd   :  { %v22771_v27 = vpop.f32.mrf.mxu0  ;;  %11965 = vmatmul.mubr.f32.gmra.mxu0 %v22238_v57  ;;  %v22774_v6 = vpop.f32.mrf.mxu1  ;;  %12104 = vmatmul.mubr.f32.gmra.mxu1 %v22200_v36 }
 0x5de   :  { %26105 = vst [vmem:[#allocation146_spill] sm:$0xff] %v22771_v27  ;;  %26106 = vst [vmem:[#allocation147_spill] sm:$0xff] %v22774_v6  ;;  %12192 = vmatprep.mubr.f32.mxu0 %v26090_v14  ;;  %12109 = vmatprep.mubr.f32.mxu1 %v26090_v14 }
 0x5df   :  { %v22778_v13 = vpop.f32.mrf.mxu0  ;;  %v22781_v22 = vpop.f32.mrf.mxu1 }
 0x5e0   :  { %26107 = vst [vmem:[#allocation148_spill] sm:$0xff] %v22778_v13  ;;  %26108 = vst [vmem:[#allocation149_spill] sm:$0xff] %v22781_v22  ;;  %v26119_v22 = vld [vmem:[#allocation14_spill] sm:$0xff] }
 0x5e1   :  { %v10859_v48 = vpop.f32.mrf.mxu0  ;;  %12198 = vmatmul.mubr.f32.vlgmr.msra.gmra.mxu0 %v22064_v9  ;;  %v22784_v15 = vpop.f32.mrf.mxu1  ;;  %12111 = vmatmul.mubr.f32.gmra.mxu1 %v22221_v52 }
 0x5e2   :  { %26109 = vst [vmem:[#allocation150_spill] sm:$0xff] %v22784_v15  ;;  %12203 = vmatprep.mubr.f32.mxu0 %v26090_v14  ;;  %12116 = vmatprep.mubr.f32.mxu1 %v26090_v14 }
 0x5e3   :  { %v22788_v27 = vpop.f32.mrf.mxu0  ;;  %12527 = vmatpush1.msra.mxu0 %v22610_v63  ;;  %v22792_v13 = vpop.f32.mrf.mxu1 }
 0x5e4   :  { %26110 = vst [vmem:[#allocation151_spill] sm:$0xff] %v22792_v13  ;;  %12530 = vmatprep.subr.mxu0 %v22613_v0  ;;  %v26113_v13 = vand.u32 4294901760, %v22507_v25  ;;  %v10860_v0 = vadd.f32 %v10859_v48, %v22668_v32  ;;  %v26115_v25 = vld [vmem:[#allocation5_spill] sm:$0xff]  ;;  %v26116_v32 = vld [vmem:[#allocation11_spill] sm:$0xff] }
 0x5e5   :  { %v10866_v36 = vpop.f32.mrf.mxu0  ;;  %12209 = vmatmul.mubr.f32.gmra.mxu0 %v22099_v23  ;;  %v22796_v9 = vpop.f32.mrf.mxu1  ;;  %12118 = vmatmul.mubr.f32.gmra.mxu1 %v22238_v57 }
 0x5e6   :  { %26111 = vst [vmem:[#allocation152_spill] sm:$0xff] %v22796_v9  ;;  %12214 = vmatprep.mubr.f32.mxu0 %v26090_v14  ;;  %12409 = vmatprep.mubr.f32.mxu1 %v26090_v14  ;;  %v10867_v48 = vadd.f32 %v10866_v36, %v22679_v29 }
 0x5e7   :  { %v22800_v52 = vpop.f32.mrf.mxu0  ;;  %12533 = vmatpush1.msra.mxu0 %v22619_v40  ;;  %v22804_v63 = vpop.f32.mrf.mxu1  ;;  %v26114_v40 = vld [vmem:[#allocation43_spill] sm:$0xff] }
 0x5e8   :  { %26112 = vst [vmem:[#allocation153_spill] sm:$0xff] %v22804_v63  ;;  %12871 = vmatprep.subr.mxu0 %v26113_v13  ;;  %v750_v13 = vadd.f32 %v26115_v25, %v26114_v40  ;;  %v26121_v25 = vld [vmem:[#allocation40_spill] sm:$0xff] }
 0x5e9   :  { %v10873_v23 = vpop.f32.mrf.mxu0  ;;  %12220 = vmatmul.mubr.f32.gmra.mxu0 %v22116_v31  ;;  %v11012_v9 = vpop.f32.mrf.mxu1  ;;  %12411 = vmatmul.mubr.f32.vlgmr.msra.gmra.mxu1 %v21952_v61 }
 0x5ea   :  { %12225 = vmatprep.mubr.f32.mxu0 %v26090_v14  ;;  %v11013_v57 = vadd.f32 %v11012_v9, %v10860_v0  ;;  %12694 = vmatpush1.msra.mxu1 %v22595_v16  ;;  %v26117_v9 = vld [vmem:[#allocation12_spill] sm:$0xff]  ;;  %v26118_v16 = vld [vmem:[#allocation63_spill] sm:$0xff] }
 0x5eb   :  { %v22813_v15 = vpop.f32.mrf.mxu0  ;;  %12416 = vmatprep.mubr.f32.mxu1 %v26090_v14  ;;  %v11014_v63 = vpop.f32.mrf.mxu1  ;;  %12696 = vmatprep.subr.mxu1 %v22597_v56  ;;  %v893_v0 = vadd.f32 %v26117_v9, %v750_v13  ;;  %v3432_v6 = vadd.f32 %v26119_v22, %v26118_v16  ;;  %v10535_v13 = vadd.f32 %v22674_v44, %v22560_v20 }
 0x5ec   :  { %v22821_v31 = vmul.f32 %v11013_v57, %v26116_v32  ;;  %12698 = vmatpush1.msra.mxu1 %v22602_v3  ;;  %v26120_v57 = vld [vmem:[#allocation6_spill] sm:$0xff]  ;;  %v10874_v22 = vadd.f32 %v10873_v23, %v22692_v60 }
 0x5ed   :  { %v10880_v61 = vpop.f32.mrf.mxu0  ;;  %12231 = vmatmul.mubr.f32.gmra.mxu0 %v22140_v59  ;;  %v11019_v17 = vpop.f32.mrf.mxu1  ;;  %12418 = vmatmul.mubr.f32.gmra.mxu1 %v21973_v38  ;;  %v1004_v29 = vadd.f32 %v26120_v57, %v893_v0  ;;  %v3575_v59 = vadd.f32 %v26121_v25, %v3432_v6  ;;  %v26123_v38 = vld [vmem:[#allocation17_spill] sm:$0xff]  ;;  %v10537_v6 = vadd.f32 %v22681_v39, %v22563_v58  ;;  %v26124_v60 = vld [vmem:[#allocation46_spill] sm:$0xff] }
 0x5ee   :  { %12236 = vmatprep.mubr.f32.mxu0 %v26090_v14  ;;  %v11020_v40 = vadd.f32 %v11019_v17, %v10867_v48  ;;  %12423 = vmatprep.mubr.f32.mxu1 %v26090_v14  ;;  %v26122_v17 = vld [vmem:[#allocation45_spill] sm:$0xff]  ;;  %v10704_v23 = vadd.f32 %v22702_v26, %v10535_v13  ;;  %v10862_v25 = vadd.f32 %v22788_v27, %v22672_v55 }
 0x5ef   :  { %v10882_v36 = vpop.f32.mrf.mxu0  ;;  %13030 = vmatprep.subr.mxu1 %v22500_v18  ;;  %v11021_v3 = vpop.f32.mrf.mxu1  ;;  %v1179_v48 = vadd.f32 %v26122_v17, %v1004_v29  ;;  %v3686_v18 = vadd.f32 %v26123_v38, %v3575_v59  ;;  %v26126_v38 = vld [vmem:[#allocation91_spill] sm:$0xff]  ;;  %v26127_v59 = vld [vmem:[#allocation16_spill] sm:$0xff]  ;;  %v10543_v58 = vadd.f32 %v22687_v2, %v22568_v33 }
 0x5f0   :  { %v22838_v16 = vmul.f32 %v11020_v40, %v26116_v32  ;;  %v26125_v40 = vld [vmem:[#allocation65_spill] sm:$0xff]  ;;  %v7008_v29 = vadd.f32 %v26127_v59, %v26126_v38  ;;  %v10881_v39 = vadd.f32 %v10880_v61, %v10704_v23  ;;  %v10545_v61 = vadd.f32 %v22694_v47, %v22571_v62 }
 0x5f1   :  { %v10887_v9 = vpop.f32.mrf.mxu0  ;;  %12242 = vmatmul.mubr.f32.gmra.mxu0 %v22164_v19  ;;  %v11026_v56 = vpop.f32.mrf.mxu1  ;;  %12425 = vmatmul.mubr.f32.gmra.mxu1 %v21995_v41  ;;  %v22850_v0 = vadd.f32 %v26124_v60, %v1179_v48  ;;  %v3861_v57 = vadd.f32 %v26125_v40, %v3686_v18  ;;  %v26129_v18 = vld [vmem:[#allocation55_spill] sm:$0xff]  ;;  %v11015_v40 = vadd.f32 %v11014_v63, %v10862_v25 }
 0x5f2   :  { %12247 = vmatprep.mubr.f32.mxu0 %v26090_v14  ;;  %v11027_v20 = vadd.f32 %v11026_v56, %v10874_v22  ;;  %12430 = vmatprep.mubr.f32.mxu1 %v26090_v14  ;;  %v10706_v56 = vadd.f32 %v22709_v53, %v10537_v6  ;;  %v26128_v22 = vld [vmem:[#allocation66_spill] sm:$0xff]  ;;  %v7151_v60 = vadd.f32 %v26129_v18, %v7008_v29 }
 0x5f3   :  { %v10889_v44 = vpop.f32.mrf.mxu0  ;;  %v11028_v17 = vpop.f32.mrf.mxu1  ;;  %v22865_v48 = vadd.f32 %v26128_v22, %v3861_v57  ;;  %v10713_v33 = vadd.f32 %v22714_v24, %v10543_v58  ;;  %v10551_v63 = vadd.f32 %v22699_v42, %v22576_v54  ;;  %v10553_v23 = vadd.f32 %v22706_v51, %v22579_v4 }
 0x5f4   :  { %v22861_v26 = vmul.f32 %v11027_v20, %v26116_v32  ;;  %v10883_v55 = vadd.f32 %v10882_v36, %v10706_v56  ;;  %v26130_v32 = vld [vmem:[#allocation71_spill] sm:$0xff]  ;;  %v10869_v20 = vadd.f32 %v22800_v52, %v22685_v35  ;;  %v10715_v62 = vadd.f32 %v22721_v30, %v10545_v61  ;;  %v26131_v35 = vld [vmem:[#allocation53_spill] sm:$0xff]  ;;  %v26134_v61 = vld [vmem:[#allocation138_spill] sm:$0xff] }
 0x5f5   :  { %v10894_v13 = vpop.f32.mrf.mxu0  ;;  %12253 = vmatmul.mubr.f32.gmra.mxu0 %v22193_v49  ;;  %v11033_v27 = vpop.f32.mrf.mxu1  ;;  %12432 = vmatmul.mubr.f32.gmra.mxu1 %v22032_v7  ;;  %v7262_v6 = vadd.f32 %v26130_v32, %v7151_v60  ;;  %v10888_v47 = vadd.f32 %v10887_v9, %v10713_v33  ;;  %v10722_v59 = vadd.f32 %v22726_v10, %v10551_v63 }
 0x5f6   :  { %12258 = vmatprep.mubr.f32.mxu0 %v26090_v14  ;;  %v11034_v2 = vadd.f32 %v11033_v27, %v10881_v39  ;;  %12437 = vmatprep.mubr.f32.mxu1 %v26090_v14  ;;  %v14087_v54 = vmul.f32 %v11015_v40, %v22850_v0  ;;  %v11022_v42 = vadd.f32 %v11021_v3, %v10869_v20  ;;  %v26132_v40 = vld [vmem:[#allocation48_spill] sm:$0xff]  ;;  %v26133_v27 = vld [vmem:[#allocation134_spill] sm:$0xff]  ;;  %v26136_v20 = vld [vmem:[#allocation121_spill] sm:$0xff] }
 0x5f7   :  { %v10896_v53 = vpop.f32.mrf.mxu0  ;;  %v11035_v57 = vpop.f32.mrf.mxu1  ;;  %v10890_v52 = vadd.f32 %v10889_v44, %v10715_v62  ;;  %v10559_v10 = vadd.f32 %v22711_v43, %v22584_v45  ;;  %v10561_v3 = vadd.f32 %v22718_v37, %v22587_v5  ;;  %v10724_v25 = vadd.f32 %v22733_v34, %v10553_v23  ;;  %v26135_v23 = vld [vmem:[#allocation104_spill] sm:$0xff] }
 0x5f8   :  { %v14093_v24 = vmul.f32 %v11034_v2, %v22865_v48  ;;  %v11036_v36 = vadd.f32 %v11035_v57, %v10883_v55  ;;  %v10876_v44 = vadd.f32 %v22813_v15, %v22697_v50  ;;  %v14136_v43 = vmul.f32 %v11022_v42, %v22850_v0  ;;  %v26137_v57 = vld [vmem:[#allocation135_spill] sm:$0xff]  ;;  %v26139_v42 = vld [vmem:[#allocation78_spill] sm:$0xff] }
 0x5f9   :  { %v10901_v38 = vpop.f32.mrf.mxu0  ;;  %12264 = vmatmul.mubr.f32.gmra.mxu0 %v22213_v8  ;;  %v11040_v29 = vpop.f32.mrf.mxu1  ;;  %12439 = vmatmul.mubr.f32.gmra.mxu1 %v22068_v28  ;;  %v10731_v45 = vadd.f32 %v22738_v11, %v10559_v10  ;;  %v10897_v15 = vadd.f32 %v10896_v53, %v10724_v25  ;;  %v7437_v11 = vadd.f32 %v26132_v40, %v7262_v6 }
 0x5fa   :  { %12269 = vmatprep.mubr.f32.mxu0 %v26090_v14  ;;  %v22889_v4 = vadd.f32 %v14093_v24, %v22821_v31  ;;  %v14094_v51 = vmul.f32 %v11036_v36, %v26131_v35  ;;  %v11041_v30 = vadd.f32 %v11040_v29, %v10888_v47  ;;  %12444 = vmatprep.mubr.f32.mxu1 %v26090_v14  ;;  %v26138_v24 = vld [vmem:[#allocation75_spill] sm:$0xff] }
 0x5fb   :  { %v10903_v9 = vpop.f32.mrf.mxu0  ;;  %v11042_v58 = vpop.f32.mrf.mxu1  ;;  %v10895_v31 = vadd.f32 %v10894_v13, %v10722_v59  ;;  %v11029_v5 = vadd.f32 %v11028_v17, %v10876_v44  ;;  %v10567_v17 = vadd.f32 %v26133_v27, %v22592_v1  ;;  %v10733_v33 = vadd.f32 %v26134_v61, %v10561_v3  ;;  %v26149_v27 = vld [vmem:[#allocation128_spill] sm:$0xff] }
 0x5fc   :  { %v22900_v56 = vadd.f32 %v14094_v51, %v14087_v54  ;;  %v14142_v39 = vmul.f32 %v11041_v30, %v22865_v48  ;;  %v11043_v22 = vadd.f32 %v11042_v58, %v10890_v52  ;;  %v10902_v2 = vadd.f32 %v10901_v38, %v10731_v45  ;;  %v26141_v52 = vld [vmem:[#allocation136_spill] sm:$0xff]  ;;  %v26142_v51 = vld [vmem:[#allocation141_spill] sm:$0xff]  ;;  %v26147_v45 = vld [vmem:[#allocation143_spill] sm:$0xff] }
 0x5fd   :  { %v10908_v18 = vpop.f32.mrf.mxu0  ;;  %12275 = vmatmul.mubr.f32.gmra.mxu0 %v22227_v21  ;;  %v11047_v37 = vpop.f32.mrf.mxu1  ;;  %12446 = vmatmul.mubr.f32.gmra.mxu1 %v22104_v12  ;;  %v10569_v62 = vadd.f32 %v26137_v57, %v26136_v20  ;;  %v10740_v6 = vadd.f32 %v22750_v46, %v10567_v17  ;;  %v14185_v47 = vmul.f32 %v11029_v5, %v22850_v0  ;;  %v26140_v46 = vld [vmem:[#allocation123_spill] sm:$0xff] }
 0x5fe   :  { %12280 = vmatprep.mubr.f32.mxu0 %v26090_v14  ;;  %v22909_v34 = vadd.f32 %v14142_v39, %v22838_v16  ;;  %v14143_v50 = vmul.f32 %v11043_v22, %v26131_v35  ;;  %v11048_v13 = vadd.f32 %v11047_v37, %v10895_v31  ;;  %12451 = vmatprep.mubr.f32.mxu1 %v26090_v14  ;;  %v26145_v31 = vld [vmem:[#allocation126_spill] sm:$0xff]  ;;  %v26146_v39 = vld [vmem:[#allocation137_spill] sm:$0xff]  ;;  %v26150_v17 = vld [vmem:[#allocation139_spill] sm:$0xff] }
 0x5ff   :  { %v10910_v60 = vpop.f32.mrf.mxu0  ;;  %v11049_v55 = vpop.f32.mrf.mxu1  ;;  %v10904_v36 = vadd.f32 %v10903_v9, %v10733_v33  ;;  %v7544_v29 = vadd.f32 %v26139_v42, %v7437_v11  ;;  %v10575_v0 = vadd.f32 %v26141_v52, %v26140_v46  ;;  %v10742_v30 = vadd.f32 %v26142_v51, %v10569_v62  ;;  %v26143_v9 = vld [vmem:[#allocation74_spill] sm:$0xff]  ;;  %v10026_v11 = vld [vmem:[#allocation2 + $0x68] sm:$0xff]  ;;  %v26151_v33 = vld [vmem:[#allocation145_spill] sm:$0xff] }
 0x600   :  { %v22917_v32 = vadd.f32 %v14143_v50, %v14136_v43  ;;  %v14191_v16 = vmul.f32 %v11048_v13, %v22865_v48  ;;  %v11050_v53 = vadd.f32 %v11049_v55, %v10897_v15  ;;  %v10909_v3 = vadd.f32 %v10908_v18, %v10740_v6  ;;  %v26148_v37 = vld [vmem:[#allocation90_spill] sm:$0xff]  ;;  %v26153_v6 = vld [vmem:[#allocation129_spill] sm:$0xff] }
 0x601   :  { %v10915_v63 = vpop.f32.mrf.mxu0  ;;  %12286 = vmatmul.mubr.f32.gmra.mxu0 %v26135_v23  ;;  %v11054_v1 = vpop.f32.mrf.mxu1  ;;  %12453 = vmatmul.mubr.f32.gmra.mxu1 %v26138_v24  ;;  %v10577_v22 = vadd.f32 %v26146_v39, %v26145_v31  ;;  %v10749_v43 = vadd.f32 %v26147_v45, %v10575_v0  ;;  %v10911_v15 = vadd.f32 %v10910_v60, %v10742_v30  ;;  %v26152_v60 = vld [vmem:[#allocation109_spill] sm:$0xff]  ;;  %v22958_v42 = vand.u32 4294901760, %v10026_v11  ;;  %v26157_v51 = vld [vmem:[#allocation130_spill] sm:$0xff] }
 0x602   :  { %12291 = vmatprep.mubr.f32.mxu0 %v26090_v14  ;;  %v22928_v38 = vadd.f32 %v14191_v16, %v22861_v26  ;;  %v14192_v48 = vmul.f32 %v11050_v53, %v26131_v35  ;;  %v11055_v59 = vadd.f32 %v11054_v1, %v10902_v2  ;;  %12458 = vmatprep.mubr.f32.mxu1 %v26090_v14  ;;  %v26144_v35 = vld [vmem:[#allocation107_spill] sm:$0xff]  ;;  %v26158_v30 = vld [vmem:[#allocation142_spill] sm:$0xff] }
 0x603   :  { %v10917_v54 = vpop.f32.mrf.mxu0  ;;  %v11056_v10 = vpop.f32.mrf.mxu1  ;;  %v10583_v61 = vadd.f32 %v26150_v17, %v26149_v27  ;;  %v10751_v55 = vadd.f32 %v26151_v33, %v10577_v22  ;;  %v10916_v16 = vadd.f32 %v10915_v63, %v10749_v43  ;;  %v26160_v43 = vld [vmem:[#allocation110_spill] sm:$0xff]  ;;  %v26164_v17 = vld [vmem:[#allocation97_spill] sm:$0xff] }
 0x604   :  { %v22936_v25 = vadd.f32 %v14192_v48, %v14185_v47  ;;  %v14107_v26 = vmul.f32 %v11055_v59, %v26143_v9  ;;  %v11057_v44 = vadd.f32 %v11056_v10, %v10904_v36  ;;  %v26154_v47 = vld [vmem:[#allocation140_spill] sm:$0xff]  ;;  %v10591_v10 = vadd.f32 %v26158_v30, %v26157_v51 }
 0x605   :  { %v10922_v58 = vpop.f32.mrf.mxu0  ;;  %12297 = vmatmul.mubr.f32.gmra.mxu0 %v26144_v35  ;;  %v11061_v5 = vpop.f32.mrf.mxu1  ;;  %12460 = vmatmul.mubr.f32.gmra.mxu1 %v26148_v37  ;;  %v10585_v1 = vadd.f32 %v26154_v47, %v26153_v6  ;;  %v26156_v59 = vld [vmem:[#allocation92_spill] sm:$0xff]  ;;  %v10918_v63 = vadd.f32 %v10917_v54, %v10751_v55 }
 0x606   :  { %12302 = vmatprep.mubr.f32.mxu0 %v26090_v14  ;;  %v14108_v18 = vmul.f32 %v11057_v44, %v7544_v29  ;;  %v11062_v50 = vadd.f32 %v11061_v5, %v10909_v3  ;;  %12465 = vmatprep.mubr.f32.mxu1 %v26090_v14  ;;  %v14114_v40 = vadd.f32 %v14107_v26, %v22889_v4  ;;  %v26155_v4 = vld [vmem:[#allocation147_spill] sm:$0xff]  ;;  %v26159_v3 = vld [vmem:[#allocation149_spill] sm:$0xff]  ;;  %v26172_v30 = vld [vmem:[#allocation100_spill] sm:$0xff] }
 0x607   :  { %v10924_v13 = vpop.f32.mrf.mxu0  ;;  %v11063_v2 = vpop.f32.mrf.mxu1  ;;  %v10758_v36 = vadd.f32 %v26155_v4, %v10583_v61  ;;  %v10760_v26 = vadd.f32 %v26159_v3, %v10585_v1  ;;  %v26161_v5 = vld [vmem:[#allocation131_spill] sm:$0xff] }
 0x608   :  { %v14156_v53 = vmul.f32 %v11062_v50, %v26143_v9  ;;  %v11064_v20 = vadd.f32 %v11063_v2, %v10911_v15  ;;  %v14115_v62 = vadd.f32 %v14108_v18, %v22900_v56  ;;  %v26162_v15 = vld [vmem:[#allocation144_spill] sm:$0xff]  ;;  %v26163_v50 = vld [vmem:[#allocation150_spill] sm:$0xff] }
 0x609   :  { %v10929_v57 = vpop.f32.mrf.mxu0  ;;  %12308 = vmatmul.mubr.f32.gmra.mxu0 %v26152_v60  ;;  %v11068_v48 = vpop.f32.mrf.mxu1  ;;  %12467 = vmatmul.mubr.f32.gmra.mxu1 %v26156_v59  ;;  %v10923_v31 = vadd.f32 %v10922_v58, %v10758_v36  ;;  %v10593_v18 = vadd.f32 %v26162_v15, %v26161_v5  ;;  %v22974_v58 = vsub.f32 %v10026_v11, %v22958_v42  ;;  %v26165_v2 = vld [vmem:[#allocation132_spill] sm:$0xff]  ;;  %v26177_v5 = vld [vmem:[#allocation153_spill] sm:$0xff] }
 0x60a   :  { %12313 = vmatprep.mubr.f32.mxu0 %v26090_v14  ;;  %v14157_v46 = vmul.f32 %v11064_v20, %v7544_v29  ;;  %v11069_v52 = vadd.f32 %v11068_v48, %v10916_v16  ;;  %12472 = vmatprep.mubr.f32.mxu1 %v26090_v14  ;;  %v14163_v56 = vadd.f32 %v14156_v53, %v22909_v34  ;;  %v26166_v16 = vld [vmem:[#allocation146_spill] sm:$0xff]  ;;  %v26167_v20 = vld [vmem:[#allocation151_spill] sm:$0xff]  ;;  %v26168_v11 = vld [vmem:[#allocation8_spill] sm:$0xff] }
 0x60b   :  { %v10931_v0 = vpop.f32.mrf.mxu0  ;;  %v11070_v44 = vpop.f32.mrf.mxu1  ;;  %v10767_v34 = vadd.f32 %v26163_v50, %v10591_v10  ;;  %v10599_v53 = vadd.f32 %v26166_v16, %v26165_v2  ;;  %v10769_v6 = vadd.f32 %v26167_v20, %v10593_v18  ;;  %v22989_v10 = vand.u32 4294901760, %v22974_v58  ;;  %v26180_v16 = vld [vmem:[#allocation127_spill] sm:$0xff] }
 0x60c   :  { %v14205_v39 = vmul.f32 %v11069_v52, %v26143_v9  ;;  %v11071_v22 = vadd.f32 %v11070_v44, %v10918_v63  ;;  %v14164_v54 = vadd.f32 %v14157_v46, %v22917_v32  ;;  %v10925_v9 = vadd.f32 %v10924_v13, %v10760_v26  ;;  %v26169_v13 = vld [vmem:[#allocation133_spill] sm:$0xff]  ;;  %v26170_v63 = vld [vmem:[#allocation148_spill] sm:$0xff] }
 0x60d   :  { %v10936_v45 = vpop.f32.mrf.mxu0  ;;  %12319 = vmatmul.mubr.f32.gmra.mxu0 %v26160_v43  ;;  %v11075_v27 = vpop.f32.mrf.mxu1  ;;  %12474 = vmatmul.mubr.f32.gmra.mxu1 %v26164_v17  ;;  %v10930_v1 = vadd.f32 %v10929_v57, %v10767_v34  ;;  %v10601_v46 = vadd.f32 %v26170_v63, %v26169_v13  ;;  %v26171_v52 = vld [vmem:[#allocation152_spill] sm:$0xff]  ;;  %v26184_v63 = vld [vmem:[#allocation119_spill] sm:$0xff] }
 0x60e   :  { %12566 = vmatprep.mubr.f32.mxu0 %v26090_v14  ;;  %v14206_v61 = vmul.f32 %v11071_v22, %v7544_v29  ;;  %v11076_v33 = vadd.f32 %v11075_v27, %v10923_v31  ;;  %12479 = vmatprep.mubr.f32.mxu1 %v26090_v14  ;;  %v14212_v32 = vadd.f32 %v14205_v39, %v22928_v38  ;;  %v26173_v26 = vld [vmem:[#allocation124_spill] sm:$0xff]  ;;  %v26175_v39 = vld [vmem:[#allocation125_spill] sm:$0xff] }
 0x60f   :  { %v10938_v55 = vpop.f32.mrf.mxu0  ;;  %v11077_v47 = vpop.f32.mrf.mxu1  ;;  %v10776_v51 = vadd.f32 %v26171_v52, %v10599_v53  ;;  %v26174_v44 = vand.u32 4294901760, %v26173_v26  ;;  %v26176_v22 = vand.u32 4294901760, %v26175_v39  ;;  %v10778_v15 = vadd.f32 %v26177_v5, %v10601_v46  ;;  %v26178_v34 = vld [vmem:[#allocation24_spill] sm:$0xff] }
 0x610   :  { %v14121_v4 = vadd.f32 %v14114_v40, %v11076_v33  ;;  %v11078_v36 = vadd.f32 %v11077_v47, %v10925_v9  ;;  %v14213_v29 = vadd.f32 %v14206_v61, %v22936_v25  ;;  %v10932_v40 = vadd.f32 %v10931_v0, %v10769_v6  ;;  %v26179_v9 = vld [vmem:[#allocation103_spill] sm:$0xff] }
 0x611   :  { %v11169_v48 = vpop.f32.mrf.mxu0  ;;  %12569 = vmatmul.mubr.f32.vlgmr.msra.gmra.mxu0 %v26168_v11  ;;  %v11082_v38 = vpop.f32.mrf.mxu1  ;;  %12481 = vmatmul.mubr.f32.gmra.mxu1 %v26172_v30  ;;  %v10937_v18 = vadd.f32 %v10936_v45, %v10776_v51  ;;  %v13373_v61 = vsub.f32 %v22974_v58, %v22989_v10  ;;  %v10939_v33 = vadd.f32 %v10938_v55, %v10778_v15  ;;  %v26181_v53 = vand.u32 4294901760, %v26180_v16  ;;  %v26185_v51 = vld [vmem:[#allocation120_spill] sm:$0xff]  ;;  %v26190_v15 = vld [vmem:[#allocation33_spill] sm:$0xff] }
 0x612   :  { %12574 = vmatprep.mubr.f32.mxu0 %v26090_v14  ;;  %14128 = vst [vmem:[%s23847_s4] sm:$0xff] %v14121_v4  ;;  %v14122_v57 = vadd.f32 %v14115_v62, %v11078_v36  ;;  %v11083_v25 = vadd.f32 %v11082_v38, %v10930_v1  ;;  %12486 = vmatprep.mubr.f32.mxu1 %v26090_v14  ;;  %v26182_v1 = vld [vmem:[#allocation62_spill] sm:$0xff]  ;;  %v26183_v4 = vld [vmem:[#allocation21_spill] sm:$0xff] }
 0x613   :  { %v11171_v3 = vpop.f32.mrf.mxu0  ;;  %12875 = vmatpush1.msra.mxu0 %v26174_v44  ;;  %v11084_v31 = vpop.f32.mrf.mxu1 }
 0x614   :  { %12879 = vmatprep.subr.mxu0 %v26176_v22  ;;  %14129 = vst [vmem:[%s23847_s4 + $0x8] sm:$0xff] %v14122_v57  ;;  %v14170_v0 = vadd.f32 %v14163_v56, %v11083_v25  ;;  %v11085_v62 = vadd.f32 %v11084_v31, %v10932_v40  ;;  %v26188_v25 = vld [vmem:[#allocation31_spill] sm:$0xff] }
 0x615   :  { %v11180_v50 = vpop.f32.mrf.mxu0  ;;  %12577 = vmatmul.mubr.f32.gmra.mxu0 %v26178_v34  ;;  %v11089_v27 = vpop.f32.mrf.mxu1  ;;  %12488 = vmatmul.mubr.f32.gmra.mxu1 %v26179_v9  ;;  %v26189_v22 = vld [vmem:[#allocation83_spill] sm:$0xff] }
 0x616   :  { %12582 = vmatprep.mubr.f32.mxu0 %v26090_v14  ;;  %14177 = vst [vmem:[%s23847_s4 + $0x38] sm:$0xff] %v14170_v0  ;;  %v14171_v45 = vadd.f32 %v14164_v54, %v11085_v62  ;;  %v11090_v2 = vadd.f32 %v11089_v27, %v10937_v18  ;;  %12731 = vmatprep.mubr.f32.mxu1 %v26090_v14 }
 0x617   :  { %v11182_v56 = vpop.f32.mrf.mxu0  ;;  %12883 = vmatpush1.msra.mxu0 %v26181_v53  ;;  %v11091_v20 = vpop.f32.mrf.mxu1 }
 0x618   :  { %14322 = vmatprep.subr.mxu0 %v22958_v42  ;;  %14178 = vst [vmem:[%s23847_s4 + $0x40] sm:$0xff] %v14171_v45  ;;  %v14219_v55 = vadd.f32 %v14212_v32, %v11090_v2  ;;  %v11092_v6 = vadd.f32 %v11091_v20, %v10939_v33  ;;  %v23028_v32 = vand.u32 4294901760, %v13373_v61  ;;  %v26191_v61 = vld [vmem:[#allocation82_spill] sm:$0xff]  ;;  %v26192_v45 = vld [vmem:[#allocation36_spill] sm:$0xff] }
 0x619   :  { %v11191_v47 = vpop.f32.mrf.mxu0  ;;  %12585 = vmatmul.mubr.f32.gmra.mxu0 %v26182_v1  ;;  %v11382_v54 = vpop.f32.mrf.mxu1  ;;  %12735 = vmatmul.mubr.f32.vlgmr.msra.gmra.mxu1 %v26183_v4 }
 0x61a   :  { %12590 = vmatprep.mubr.f32.mxu0 %v26090_v14  ;;  %14226 = vst [vmem:[%s23847_s4 + $0x70] sm:$0xff] %v14219_v55  ;;  %v14220_v36 = vadd.f32 %v14213_v29, %v11092_v6  ;;  %v23024_v13 = vadd.f32 %v11382_v54, %v11169_v48  ;;  %13032 = vmatpush1.msra.mxu1 %v26184_v63  ;;  %v26186_v29 = vld [vmem:[#allocation34_spill] sm:$0xff]  ;;  %v26193_v55 = vld [vmem:[#allocation37_spill] sm:$0xff] }
 0x61b   :  { %v11193_v46 = vpop.f32.mrf.mxu0  ;;  %12740 = vmatprep.mubr.f32.mxu1 %v26090_v14  ;;  %v11384_v52 = vpop.f32.mrf.mxu1  ;;  %13034 = vmatprep.subr.mxu1 %v26185_v51  ;;  %v26187_v48 = vld [vmem:[#allocation122_spill] sm:$0xff] }
 0x61c   :  { %14227 = vst [vmem:[%s23847_s4 + $0x78] sm:$0xff] %v14220_v36  ;;  %v23034_v38 = vadd.f32 %v11384_v52, %v11171_v3  ;;  %13036 = vmatpush1.msra.mxu1 %v26187_v48  ;;  %v26195_v51 = vld [vmem:[#allocation38_spill] sm:$0xff]  ;;  %v26196_v48 = vld [vmem:[#allocation28_spill] sm:$0xff] }
 0x61d   :  { %v11202_v40 = vpop.f32.mrf.mxu0  ;;  %12593 = vmatmul.mubr.f32.gmra.mxu0 %v26186_v29  ;;  %v11389_v57 = vpop.f32.mrf.mxu1  ;;  %12744 = vmatmul.mubr.f32.gmra.mxu1 %v26188_v25  ;;  %v26209_v25 = vld [vmem:[#allocation101_spill] sm:$0xff] }
 0x61e   :  { %12598 = vmatprep.mubr.f32.mxu0 %v26090_v14  ;;  %v23040_v26 = vadd.f32 %v11389_v57, %v11180_v50  ;;  %12749 = vmatprep.mubr.f32.mxu1 %v26090_v14 }
 0x61f   :  { %v11204_v44 = vpop.f32.mrf.mxu0  ;;  %14344 = vmatprep.subr.mxu1 %v23028_v32  ;;  %v11391_v31 = vpop.f32.mrf.mxu1 }
 0x620   :  { %v23044_v3 = vadd.f32 %v11391_v31, %v11182_v56 }
 0x621   :  { %v11213_v39 = vpop.f32.mrf.mxu0  ;;  %12601 = vmatmul.mubr.f32.gmra.mxu0 %v26189_v22  ;;  %v11396_v5 = vpop.f32.mrf.mxu1  ;;  %12753 = vmatmul.mubr.f32.gmra.mxu1 %v26190_v15 }
 0x622   :  { %12606 = vmatprep.mubr.f32.mxu0 %v26090_v14  ;;  %v23049_v18 = vadd.f32 %v11396_v5, %v11191_v47  ;;  %12758 = vmatprep.mubr.f32.mxu1 %v26090_v14  ;;  %v26194_v47 = vld [vmem:[#allocation89_spill] sm:$0xff] }
 0x623   :  { %v11215_v0 = vpop.f32.mrf.mxu0  ;;  %v11398_v62 = vpop.f32.mrf.mxu1 }
 0x624   :  { %v23052_v50 = vadd.f32 %v11398_v62, %v11193_v46  ;;  %v26197_v62 = vld [vmem:[#allocation96_spill] sm:$0xff] }
 0x625   :  { %v11224_v27 = vpop.f32.mrf.mxu0  ;;  %12609 = vmatmul.mubr.f32.gmra.mxu0 %v26191_v61  ;;  %v11403_v33 = vpop.f32.mrf.mxu1  ;;  %12762 = vmatmul.mubr.f32.gmra.mxu1 %v26192_v45 }
 0x626   :  { %12614 = vmatprep.mubr.f32.mxu0 %v26090_v14  ;;  %v23057_v2 = vadd.f32 %v11403_v33, %v11202_v40  ;;  %12767 = vmatprep.mubr.f32.mxu1 %v26090_v14  ;;  %v26198_v33 = vld [vmem:[#allocation30_spill] sm:$0xff] }
 0x627   :  { %v11226_v56 = vpop.f32.mrf.mxu0  ;;  %v11405_v16 = vpop.f32.mrf.mxu1 }
 0x628   :  { %v23060_v53 = vadd.f32 %v11405_v16, %v11204_v44 }
 0x629   :  { %v11235_v20 = vpop.f32.mrf.mxu0  ;;  %12617 = vmatmul.mubr.f32.gmra.mxu0 %v26193_v55  ;;  %v11410_v6 = vpop.f32.mrf.mxu1  ;;  %12771 = vmatmul.mubr.f32.gmra.mxu1 %v26194_v47  ;;  %v26200_v47 = vld [vmem:[#allocation95_spill] sm:$0xff] }
 0x62a   :  { %12622 = vmatprep.mubr.f32.mxu0 %v26090_v14  ;;  %v23065_v54 = vadd.f32 %v11410_v6, %v11213_v39  ;;  %12776 = vmatprep.mubr.f32.mxu1 %v26090_v14 }
 0x62b   :  { %v11237_v36 = vpop.f32.mrf.mxu0  ;;  %v11412_v63 = vpop.f32.mrf.mxu1 }
 0x62c   :  { %v23068_v46 = vadd.f32 %v11412_v63, %v11215_v0 }
 0x62d   :  { %v11246_v52 = vpop.f32.mrf.mxu0  ;;  %12625 = vmatmul.mubr.f32.gmra.mxu0 %v26195_v51  ;;  %v11417_v40 = vpop.f32.mrf.mxu1  ;;  %12780 = vmatmul.mubr.f32.gmra.mxu1 %v26196_v48  ;;  %v26199_v48 = vld [vmem:[#allocation99_spill] sm:$0xff]  ;;  %v26205_v51 = vld [vmem:[#allocation98_spill] sm:$0xff] }
 0x62e   :  { %12630 = vmatprep.mubr.f32.mxu0 %v26090_v14  ;;  %v23073_v57 = vadd.f32 %v11417_v40, %v11224_v27  ;;  %12785 = vmatprep.mubr.f32.mxu1 %v26090_v14 }
 0x62f   :  { %v11248_v44 = vpop.f32.mrf.mxu0  ;;  %v11419_v31 = vpop.f32.mrf.mxu1 }
 0x630   :  { %v23076_v39 = vadd.f32 %v11419_v31, %v11226_v56  ;;  %v10019_v56 = vld [vmem:[#allocation2 + $0x30] sm:$0xff] }
 0x631   :  { %v11257_v5 = vpop.f32.mrf.mxu0  ;;  %12633 = vmatmul.mubr.f32.gmra.mxu0 %v26197_v62  ;;  %v11424_v0 = vpop.f32.mrf.mxu1  ;;  %12789 = vmatmul.mubr.f32.gmra.mxu1 %v26198_v33 }
 0x632   :  { %12638 = vmatprep.mubr.f32.mxu0 %v26090_v14  ;;  %v23081_v16 = vadd.f32 %v11424_v0, %v11235_v20  ;;  %12794 = vmatprep.mubr.f32.mxu1 %v26090_v14  ;;  %v23092_v0 = vand.u32 4294901760, %v10019_v56 }
 0x633   :  { %v11259_v6 = vpop.f32.mrf.mxu0  ;;  %v11426_v27 = vpop.f32.mrf.mxu1 }
 0x634   :  { %v23084_v63 = vadd.f32 %v11426_v27, %v11237_v36  ;;  %26202 = vst [vmem:[#allocation5_spill] sm:$0xff] %v23092_v0  ;;  %v26204_v27 = vld [vmem:[#allocation102_spill] sm:$0xff]  ;;  %v23103_v15 = vsub.f32 %v10019_v56, %v23092_v0 }
 0x635   :  { %v11268_v40 = vpop.f32.mrf.mxu0  ;;  %12641 = vmatmul.mubr.f32.gmra.mxu0 %v26199_v48  ;;  %v11431_v31 = vpop.f32.mrf.mxu1  ;;  %12798 = vmatmul.mubr.f32.gmra.mxu1 %v26200_v47 }
 0x636   :  { %12646 = vmatprep.mubr.f32.mxu0 %v26090_v14  ;;  %v23089_v33 = vadd.f32 %v11431_v31, %v11246_v52  ;;  %12803 = vmatprep.mubr.f32.mxu1 %v26090_v14 }
 0x637   :  { %v11270_v62 = vpop.f32.mrf.mxu0  ;;  %v11433_v20 = vpop.f32.mrf.mxu1 }
 0x638   :  { %26201 = vst [vmem:[#allocation43_spill] sm:$0xff] %v23089_v33  ;;  %v23094_v45 = vadd.f32 %v11433_v20, %v11248_v44  ;;  %v26208_v20 = vld [vmem:[#allocation106_spill] sm:$0xff] }
 0x639   :  { %v11279_v36 = vpop.f32.mrf.mxu0  ;;  %12649 = vmatmul.mubr.f32.gmra.mxu0 %v26204_v27  ;;  %v11438_v48 = vpop.f32.mrf.mxu1  ;;  %12807 = vmatmul.mubr.f32.gmra.mxu1 %v26205_v51 }
 0x63a   :  { %26203 = vst [vmem:[#allocation11_spill] sm:$0xff] %v23094_v45  ;;  %12654 = vmatprep.mubr.f32.mxu0 %v26090_v14  ;;  %v23099_v47 = vadd.f32 %v11438_v48, %v11257_v5  ;;  %12812 = vmatprep.mubr.f32.mxu1 %v26090_v14 }
 0x63b   :  { %v11281_v52 = vpop.f32.mrf.mxu0  ;;  %v11440_v31 = vpop.f32.mrf.mxu1 }
 0x63c   :  { %26206 = vst [vmem:[#allocation12_spill] sm:$0xff] %v23099_v47  ;;  %v23105_v55 = vadd.f32 %v11440_v31, %v11259_v6  ;;  %v23114_v47 = vand.u32 4294901760, %v23103_v15  ;;  %v26213_v31 = vld [vmem:[#allocation76_spill] sm:$0xff] }
 0x63d   :  { %v11290_v44 = vpop.f32.mrf.mxu0  ;;  %12657 = vmatmul.mubr.f32.gmra.mxu0 %v26208_v20  ;;  %v11445_v27 = vpop.f32.mrf.mxu1  ;;  %12816 = vmatmul.mubr.f32.gmra.mxu1 %v26209_v25  ;;  %v26214_v25 = vld [vmem:[#allocation105_spill] sm:$0xff] }
 0x63e   :  { %26207 = vst [vmem:[#allocation63_spill] sm:$0xff] %v23105_v55  ;;  %12916 = vmatprep.mubr.f32.mxu0 %v26090_v14  ;;  %v23110_v51 = vadd.f32 %v11445_v27, %v11268_v40  ;;  %12821 = vmatprep.mubr.f32.mxu1 %v26090_v14  ;;  %26211 = vst [vmem:[#allocation6_spill] sm:$0xff] %v23114_v47 }
 0x63f   :  { %v11292_v48 = vpop.f32.mrf.mxu0  ;;  %v11447_v5 = vpop.f32.mrf.mxu1 }
 0x640   :  { %26210 = vst [vmem:[#allocation14_spill] sm:$0xff] %v23110_v51  ;;  %v23116_v56 = vadd.f32 %v11447_v5, %v11270_v62  ;;  %v13380_v5 = vsub.f32 %v23103_v15, %v23114_v47 }
 0x641   :  { %v11540_v6 = vpop.f32.mrf.mxu0  ;;  %12918 = vmatmul.mubr.f32.vlgmr.msra.gmra.mxu0 %v26213_v31  ;;  %v11452_v20 = vpop.f32.mrf.mxu1  ;;  %12825 = vmatmul.mubr.f32.gmra.mxu1 %v26214_v25  ;;  %v26217_v25 = vld [vmem:[#allocation9_spill] sm:$0xff] }
 0x642   :  { %26212 = vst [vmem:[#allocation40_spill] sm:$0xff] %v23116_v56  ;;  %v11541_v55 = vadd.f32 %v11540_v6, %v23024_v13  ;;  %12923 = vmatprep.mubr.f32.mxu0 %v26090_v14  ;;  %v23122_v40 = vadd.f32 %v11452_v20, %v11279_v36  ;;  %12830 = vmatprep.mubr.f32.mxu1 %v26090_v14 }
 0x643   :  { %v11542_v27 = vpop.f32.mrf.mxu0  ;;  %14323 = vmatpush3.msra.mxu0 %v22958_v42  ;;  %v11454_v51 = vpop.f32.mrf.mxu1 }
 0x644   :  { %26215 = vst [vmem:[#allocation45_spill] sm:$0xff] %v23122_v40  ;;  %v11543_v62 = vadd.f32 %v11542_v27, %v23034_v38  ;;  %14324 = vmatprep.subr.mxu0 %v23092_v0  ;;  %v23130_v13 = vadd.f32 %v11454_v51, %v11281_v52  ;;  %v26218_v40 = vld [vmem:[#allocation108_spill] sm:$0xff]  ;;  %v13381_v52 = vand.u32 4294901760, %v13380_v5 }
 0x645   :  { %v11548_v6 = vpop.f32.mrf.mxu0  ;;  %12925 = vmatmul.mubr.f32.gmra.mxu0 %v26217_v25  ;;  %v11459_v36 = vpop.f32.mrf.mxu1  ;;  %12834 = vmatmul.mubr.f32.gmra.mxu1 %v26218_v40 }
 0x646   :  { %26216 = vst [vmem:[#allocation17_spill] sm:$0xff] %v23130_v13  ;;  %v11549_v20 = vadd.f32 %v11548_v6, %v23040_v26  ;;  %12930 = vmatprep.mubr.f32.mxu0 %v26090_v14  ;;  %v23136_v56 = vadd.f32 %v11459_v36, %v11290_v44  ;;  %13069 = vmatprep.mubr.f32.mxu1 %v26090_v14 }
 0x647   :  { %v11550_v38 = vpop.f32.mrf.mxu0  ;;  %14325 = vmatpush3.msra.mxu0 %v23092_v0  ;;  %v11461_v27 = vpop.f32.mrf.mxu1 }
 0x648   :  { %26219 = vst [vmem:[#allocation46_spill] sm:$0xff] %v23136_v56  ;;  %v11551_v51 = vadd.f32 %v11550_v38, %v23044_v3  ;;  %14366 = vmatprep.subr.mxu0 %v22974_v58  ;;  %v23142_v13 = vadd.f32 %v11461_v27, %v11292_v48 }
 0x649   :  { %v11556_v26 = vpop.f32.mrf.mxu0  ;;  %12932 = vmatmul.mubr.f32.gmra.mxu0 %v21995_v41  ;;  %v11706_v44 = vpop.f32.mrf.mxu1  ;;  %13071 = vmatmul.mubr.f32.vlgmr.msra.gmra.mxu1 %v26213_v31 }
 0x64a   :  { %26220 = vst [vmem:[#allocation65_spill] sm:$0xff] %v23142_v13  ;;  %v11557_v6 = vadd.f32 %v11556_v26, %v23049_v18  ;;  %12937 = vmatprep.mubr.f32.mxu0 %v26090_v14  ;;  %v23148_v36 = vadd.f32 %v11706_v44, %v11541_v55  ;;  %14345 = vmatpush3.msra.mxu1 %v23028_v32 }
 0x64b   :  { %v11558_v3 = vpop.f32.mrf.mxu0  ;;  %13076 = vmatprep.mubr.f32.mxu1 %v26090_v14  ;;  %v11708_v5 = vpop.f32.mrf.mxu1  ;;  %14346 = vmatprep.subr.mxu1 %v13381_v52 }
 0x64c   :  { %v11559_v48 = vadd.f32 %v11558_v3, %v23052_v50  ;;  %v23153_v38 = vadd.f32 %v11708_v5, %v11543_v62  ;;  %14347 = vmatpush3.msra.mxu1 %v13381_v52 }
 0x64d   :  { %v23155_v27 = vpop.f32.mrf.mxu0  ;;  %12939 = vmatmul.mubr.f32.gmra.mxu0 %v22032_v7  ;;  %v11715_v18 = vpop.f32.mrf.mxu1  ;;  %13078 = vmatmul.mubr.f32.gmra.mxu1 %v26217_v25 }
 0x64e   :  { %12944 = vmatprep.mubr.f32.mxu0 %v26090_v14  ;;  %v23160_v32 = vadd.f32 %v11715_v18, %v11549_v20  ;;  %13083 = vmatprep.mubr.f32.mxu1 %v26090_v14 }
 0x64f   :  { %v23162_v55 = vpop.f32.mrf.mxu0  ;;  %14388 = vmatprep.subr.mxu1 %v22958_v42  ;;  %v11717_v50 = vpop.f32.mrf.mxu1 }
 0x650   :  { %v23166_v62 = vadd.f32 %v11717_v50, %v11551_v51 }
 0x651   :  { %v23168_v26 = vpop.f32.mrf.mxu0  ;;  %12946 = vmatmul.mubr.f32.gmra.mxu0 %v22068_v28  ;;  %v11724_v52 = vpop.f32.mrf.mxu1  ;;  %13085 = vmatmul.mubr.f32.gmra.mxu1 %v21995_v41 }
 0x652   :  { %12951 = vmatprep.mubr.f32.mxu0 %v26090_v14  ;;  %v23173_v20 = vadd.f32 %v11724_v52, %v11557_v6  ;;  %13090 = vmatprep.mubr.f32.mxu1 %v26090_v14 }
 0x653   :  { %v23175_v44 = vpop.f32.mrf.mxu0  ;;  %v11726_v3 = vpop.f32.mrf.mxu1 }
 0x654   :  { %v23178_v5 = vadd.f32 %v11726_v3, %v11559_v48 }
 0x655   :  { %v23180_v51 = vpop.f32.mrf.mxu0  ;;  %12953 = vmatmul.mubr.f32.gmra.mxu0 %v22104_v12  ;;  %v23183_v18 = vpop.f32.mrf.mxu1  ;;  %13092 = vmatmul.mubr.f32.gmra.mxu1 %v22032_v7 }
 0x656   :  { %26221 = vst [vmem:[#allocation91_spill] sm:$0xff] %v23178_v5  ;;  %12958 = vmatprep.mubr.f32.mxu0 %v26090_v14  ;;  %13097 = vmatprep.mubr.f32.mxu1 %v26090_v14 }
 0x657   :  { %v23187_v50 = vpop.f32.mrf.mxu0  ;;  %v23190_v6 = vpop.f32.mrf.mxu1 }
 0x659   :  { %v23192_v52 = vpop.f32.mrf.mxu0  ;;  %12960 = vmatmul.mubr.f32.gmra.mxu0 %v26138_v24  ;;  %v23195_v48 = vpop.f32.mrf.mxu1  ;;  %13099 = vmatmul.mubr.f32.gmra.mxu1 %v22068_v28 }
 0x65a   :  { %12965 = vmatprep.mubr.f32.mxu0 %v26090_v14  ;;  %13104 = vmatprep.mubr.f32.mxu1 %v26090_v14 }
 0x65b   :  { %v23199_v3 = vpop.f32.mrf.mxu0  ;;  %v23202_v40 = vpop.f32.mrf.mxu1 }
 0x65d   :  { %v23204_v13 = vpop.f32.mrf.mxu0  ;;  %12967 = vmatmul.mubr.f32.gmra.mxu0 %v26148_v37  ;;  %v23207_v56 = vpop.f32.mrf.mxu1  ;;  %13106 = vmatmul.mubr.f32.gmra.mxu1 %v22104_v12 }
 0x65e   :  { %26222 = vst [vmem:[#allocation16_spill] sm:$0xff] %v23204_v13  ;;  %12972 = vmatprep.mubr.f32.mxu0 %v26090_v14  ;;  %13111 = vmatprep.mubr.f32.mxu1 %v26090_v14 }
 0x65f   :  { %v23211_v61 = vpop.f32.mrf.mxu0  ;;  %v23214_v45 = vpop.f32.mrf.mxu1 }
 0x660   :  { %26223 = vst [vmem:[#allocation66_spill] sm:$0xff] %v23211_v61 }
 0x661   :  { %v23216_v33 = vpop.f32.mrf.mxu0  ;;  %12974 = vmatmul.mubr.f32.gmra.mxu0 %v26156_v59  ;;  %v23219_v4 = vpop.f32.mrf.mxu1  ;;  %13113 = vmatmul.mubr.f32.gmra.mxu1 %v26138_v24 }
 0x662   :  { %26224 = vst [vmem:[#allocation55_spill] sm:$0xff] %v23216_v33  ;;  %26225 = vst [vmem:[#allocation71_spill] sm:$0xff] %v23219_v4  ;;  %12979 = vmatprep.mubr.f32.mxu0 %v26090_v14  ;;  %13118 = vmatprep.mubr.f32.mxu1 %v26090_v14  ;;  %v26241_v4 = vld [vmem:[#allocation85_spill] sm:$0xff] }
 0x663   :  { %v23223_v13 = vpop.f32.mrf.mxu0  ;;  %v23226_v22 = vpop.f32.mrf.mxu1 }
 0x664   :  { %26226 = vst [vmem:[#allocation53_spill] sm:$0xff] %v23223_v13  ;;  %26227 = vst [vmem:[#allocation48_spill] sm:$0xff] %v23226_v22 }
 0x665   :  { %v23228_v61 = vpop.f32.mrf.mxu0  ;;  %12981 = vmatmul.mubr.f32.gmra.mxu0 %v26164_v17  ;;  %v23231_v29 = vpop.f32.mrf.mxu1  ;;  %13120 = vmatmul.mubr.f32.gmra.mxu1 %v26148_v37 }
 0x666   :  { %26228 = vst [vmem:[#allocation134_spill] sm:$0xff] %v23228_v61  ;;  %26229 = vst [vmem:[#allocation138_spill] sm:$0xff] %v23231_v29  ;;  %12986 = vmatprep.mubr.f32.mxu0 %v26090_v14  ;;  %13125 = vmatprep.mubr.f32.mxu1 %v26090_v14 }
 0x667   :  { %v23235_v33 = vpop.f32.mrf.mxu0  ;;  %v23238_v47 = vpop.f32.mrf.mxu1 }
 0x668   :  { %26230 = vst [vmem:[#allocation104_spill] sm:$0xff] %v23235_v33  ;;  %26231 = vst [vmem:[#allocation121_spill] sm:$0xff] %v23238_v47 }
 0x669   :  { %v23240_v13 = vpop.f32.mrf.mxu0  ;;  %12988 = vmatmul.mubr.f32.gmra.mxu0 %v26172_v30  ;;  %v23243_v22 = vpop.f32.mrf.mxu1  ;;  %13127 = vmatmul.mubr.f32.gmra.mxu1 %v26156_v59 }
 0x66a   :  { %26232 = vst [vmem:[#allocation135_spill] sm:$0xff] %v23240_v13  ;;  %26233 = vst [vmem:[#allocation75_spill] sm:$0xff] %v23243_v22  ;;  %12993 = vmatprep.mubr.f32.mxu0 %v26090_v14  ;;  %13132 = vmatprep.mubr.f32.mxu1 %v26090_v14  ;;  %v26238_v13 = vld [vmem:[#allocation69_spill] sm:$0xff] }
 0x66b   :  { %v23247_v61 = vpop.f32.mrf.mxu0  ;;  %v23250_v29 = vpop.f32.mrf.mxu1 }
 0x66c   :  { %26234 = vst [vmem:[#allocation78_spill] sm:$0xff] %v23247_v61  ;;  %26235 = vst [vmem:[#allocation123_spill] sm:$0xff] %v23250_v29 }
 0x66d   :  { %v23252_v33 = vpop.f32.mrf.mxu0  ;;  %12995 = vmatmul.mubr.f32.gmra.mxu0 %v26179_v9  ;;  %v23255_v47 = vpop.f32.mrf.mxu1  ;;  %13134 = vmatmul.mubr.f32.gmra.mxu1 %v26164_v17 }
 0x66e   :  { %26236 = vst [vmem:[#allocation136_spill] sm:$0xff] %v23252_v33  ;;  %26237 = vst [vmem:[#allocation141_spill] sm:$0xff] %v23255_v47  ;;  %14326 = vmatprep.mubr.f32.mxu0 %v26238_v13  ;;  %13139 = vmatprep.mubr.f32.mxu1 %v26090_v14  ;;  %v26243_v33 = vld [vmem:[#allocation88_spill] sm:$0xff] }
 0x66f   :  { %v23259_v22 = vpop.f32.mrf.mxu0  ;;  %v23262_v5 = vpop.f32.mrf.mxu1 }
 0x670   :  { %26239 = vst [vmem:[#allocation74_spill] sm:$0xff] %v23259_v22  ;;  %26240 = vst [vmem:[#allocation107_spill] sm:$0xff] %v23262_v5  ;;  %v26245_v5 = vld [vmem:[#allocation26_spill] sm:$0xff] }
 0x671   :  { %v11889_v61 = vpop.f32.mrf.mxu0  ;;  %14327 = vmatmul.mubr.f32.vlgmr.msra.gmra.mxu0 %v26241_v4  ;;  %v23265_v29 = vpop.f32.mrf.mxu1  ;;  %13141 = vmatmul.mubr.f32.gmra.mxu1 %v26172_v30 }
 0x672   :  { %26242 = vst [vmem:[#allocation126_spill] sm:$0xff] %v23265_v29  ;;  %14329 = vmatprep.mubr.f32.mxu0 %v26243_v33  ;;  %13146 = vmatprep.mubr.f32.mxu1 %v26090_v14  ;;  %v26251_v29 = vld [vmem:[#allocation70_spill] sm:$0xff] }
 0x673   :  { %v23269_v47 = vpop.f32.mrf.mxu0  ;;  %14367 = vmatpush3.msra.mxu0 %v22974_v58  ;;  %v23273_v13 = vpop.f32.mrf.mxu1  ;;  %v11890_v58 = vadd.f32 %v11889_v61, %v23148_v36  ;;  %v26252_v61 = vld [vmem:[#allocation7_spill] sm:$0xff] }
 0x674   :  { %26244 = vst [vmem:[#allocation137_spill] sm:$0xff] %v23273_v13  ;;  %14368 = vmatprep.subr.mxu0 %v23103_v15  ;;  %v4326_v36 = vadd.f32 %v26252_v61, %v26251_v29 }
 0x675   :  { %v11896_v22 = vpop.f32.mrf.mxu0  ;;  %14330 = vmatmul.mubr.f32.gmra.mxu0 %v26245_v5  ;;  %v23277_v4 = vpop.f32.mrf.mxu1  ;;  %13148 = vmatmul.mubr.f32.gmra.mxu1 %v26179_v9 }
 0x676   :  { %26246 = vst [vmem:[#allocation143_spill] sm:$0xff] %v23277_v4  ;;  %14332 = vmatprep.mubr.f32.mxu0 %v22164_v19  ;;  %14348 = vmatprep.mubr.f32.mxu1 %v26213_v31 }
 0x677   :  { %v23281_v33 = vpop.f32.mrf.mxu0  ;;  %14369 = vmatpush3.msra.mxu0 %v23103_v15  ;;  %v23285_v14 = vpop.f32.mrf.mxu1  ;;  %v26249_v15 = vld [vmem:[#allocation50_spill] sm:$0xff] }
 0x678   :  { %26247 = vst [vmem:[#allocation90_spill] sm:$0xff] %v23285_v14  ;;  %14410 = vmatprep.subr.mxu0 %v22989_v10  ;;  %v26250_v14 = vld [vmem:[#allocation20_spill] sm:$0xff] }
 0x679   :  { %v11903_v13 = vpop.f32.mrf.mxu0  ;;  %14333 = vmatmul.mubr.f32.gmra.mxu0 %v22193_v49  ;;  %v12042_v5 = vpop.f32.mrf.mxu1  ;;  %14349 = vmatmul.mubr.f32.vlgmr.msra.gmra.mxu1 %v26217_v25  ;;  %v1644_v31 = vadd.f32 %v26250_v14, %v26249_v15  ;;  %v11897_v49 = vadd.f32 %v11896_v22, %v23160_v32  ;;  %v26253_v25 = vld [vmem:[#allocation15_spill] sm:$0xff]  ;;  %v26256_v22 = vld [vmem:[#allocation13_spill] sm:$0xff] }
 0x67a   :  { %14335 = vmatprep.mubr.f32.mxu0 %v22213_v8  ;;  %v12043_v19 = vadd.f32 %v12042_v5, %v11890_v58  ;;  %14389 = vmatpush3.msra.mxu1 %v22958_v42  ;;  %v26254_v5 = vld [vmem:[#allocation29_spill] sm:$0xff] }
 0x67b   :  { %v23293_v4 = vpop.f32.mrf.mxu0  ;;  %14351 = vmatprep.mubr.f32.mxu1 %v21995_v41  ;;  %v12044_v9 = vpop.f32.mrf.mxu1  ;;  %14390 = vmatprep.subr.mxu1 %v23092_v0  ;;  %v1787_v41 = vadd.f32 %v26254_v5, %v1644_v31  ;;  %v11565_v31 = vadd.f32 %v23155_v27, %v23057_v2  ;;  %v11567_v2 = vadd.f32 %v23162_v55, %v23060_v53 }
 0x67c   :  { %26248 = vst [vmem:[#allocation128_spill] sm:$0xff] %v23293_v4  ;;  %v23303_v8 = vmul.f32 %v12043_v19, %v26253_v25  ;;  %14391 = vmatpush3.msra.mxu1 %v23092_v0  ;;  %v26255_v4 = vld [vmem:[#allocation27_spill] sm:$0xff]  ;;  %v11573_v53 = vadd.f32 %v23168_v26, %v23065_v54  ;;  %v11581_v54 = vadd.f32 %v23180_v51, %v23073_v57 }
 0x67d   :  { %v11910_v58 = vpop.f32.mrf.mxu0  ;;  %14336 = vmatmul.mubr.f32.gmra.mxu0 %v22227_v21  ;;  %v4469_v14 = vadd.f32 %v26255_v4, %v4326_v36  ;;  %v12049_v15 = vpop.f32.mrf.mxu1  ;;  %14352 = vmatmul.mubr.f32.gmra.mxu1 %v22032_v7  ;;  %v1898_v32 = vadd.f32 %v26256_v22, %v1787_v41  ;;  %v26257_v21 = vld [vmem:[#allocation49_spill] sm:$0xff]  ;;  %v11904_v4 = vadd.f32 %v11903_v13, %v23173_v20  ;;  %v26260_v7 = vld [vmem:[#allocation47_spill] sm:$0xff]  ;;  %v26261_v41 = vld [vmem:[#allocation54_spill] sm:$0xff] }
 0x67e   :  { %14338 = vmatprep.mubr.f32.mxu0 %v26135_v23  ;;  %v12050_v29 = vadd.f32 %v12049_v15, %v11897_v49  ;;  %14354 = vmatprep.mubr.f32.mxu1 %v22068_v28  ;;  %v26258_v49 = vld [vmem:[#allocation51_spill] sm:$0xff]  ;;  %v26259_v15 = vld [vmem:[#allocation72_spill] sm:$0xff]  ;;  %v7902_v22 = vadd.f32 %v26261_v41, %v26260_v7  ;;  %v11734_v27 = vadd.f32 %v23183_v18, %v11565_v31 }
 0x67f   :  { %v11912_v61 = vpop.f32.mrf.mxu0  ;;  %14432 = vmatprep.subr.mxu1 %v22958_v42  ;;  %v4580_v19 = vadd.f32 %v26257_v21, %v4469_v14  ;;  %v12051_v0 = vpop.f32.mrf.mxu1  ;;  %v2073_v5 = vadd.f32 %v26258_v49, %v1898_v32  ;;  %v26263_v32 = vld [vmem:[#allocation73_spill] sm:$0xff]  ;;  %v26264_v7 = vld [vmem:[#allocation23_spill] sm:$0xff]  ;;  %v11736_v55 = vadd.f32 %v23190_v6, %v11567_v2  ;;  %v11752_v57 = vadd.f32 %v23207_v56, %v11581_v54  ;;  %v26266_v56 = vld [vmem:[#allocation60_spill] sm:$0xff] }
 0x680   :  { %v23319_v36 = vmul.f32 %v12050_v29, %v26253_v25  ;;  %v11911_v18 = vadd.f32 %v11910_v58, %v11734_v27  ;;  %v26268_v2 = vld [vmem:[#allocation91_spill] sm:$0xff] }
 0x681   :  { %v11917_v23 = vpop.f32.mrf.mxu0  ;;  %14339 = vmatmul.mubr.f32.gmra.mxu0 %v26144_v35  ;;  %v4755_v28 = vadd.f32 %v26259_v15, %v4580_v19  ;;  %v12056_v14 = vpop.f32.mrf.mxu1  ;;  %14355 = vmatmul.mubr.f32.gmra.mxu1 %v22104_v12  ;;  %v26262_v35 = vld [vmem:[#allocation52_spill] sm:$0xff]  ;;  %v8045_v19 = vadd.f32 %v26264_v7, %v7902_v22  ;;  %v11575_v15 = vadd.f32 %v23175_v44, %v23068_v46 }
 0x682   :  { %14341 = vmatprep.mubr.f32.mxu0 %v26152_v60  ;;  %v12057_v20 = vadd.f32 %v12056_v14, %v11904_v4  ;;  %14357 = vmatprep.mubr.f32.mxu1 %v26138_v24  ;;  %v23333_v29 = vadd.f32 %v26262_v35, %v2073_v5  ;;  %v11892_v60 = vadd.f32 %v23269_v47, %v23153_v38 }
 0x683   :  { %v11919_v13 = vpop.f32.mrf.mxu0  ;;  %v23336_v21 = vadd.f32 %v26263_v32, %v4755_v28  ;;  %v12058_v49 = vpop.f32.mrf.mxu1  ;;  %v26265_v28 = vld [vmem:[#allocation68_spill] sm:$0xff]  ;;  %v11913_v38 = vadd.f32 %v11912_v61, %v11736_v55  ;;  %v11745_v46 = vadd.f32 %v23202_v40, %v11575_v15  ;;  %v26273_v55 = vld [vmem:[#allocation83_spill] sm:$0xff] }
 0x684   :  { %v23345_v31 = vmul.f32 %v12057_v20, %v26253_v25  ;;  %v8156_v5 = vadd.f32 %v26265_v28, %v8045_v19  ;;  %v12045_v41 = vadd.f32 %v12044_v9, %v11892_v60  ;;  %v11743_v25 = vadd.f32 %v23195_v48, %v11573_v53  ;;  %v26270_v20 = vld [vmem:[#allocation6_spill] sm:$0xff]  ;;  %v26272_v53 = vld [vmem:[#allocation103_spill] sm:$0xff] }
 0x685   :  { %v11924_v4 = vpop.f32.mrf.mxu0  ;;  %14342 = vmatmul.mubr.f32.gmra.mxu0 %v26160_v43  ;;  %v12063_v47 = vpop.f32.mrf.mxu1  ;;  %14358 = vmatmul.mubr.f32.gmra.mxu1 %v26148_v37  ;;  %v11583_v43 = vadd.f32 %v23187_v50, %v23076_v39  ;;  %v11589_v9 = vadd.f32 %v23192_v52, %v23081_v16  ;;  %v11920_v22 = vadd.f32 %v11919_v13, %v11745_v46  ;;  %v26271_v19 = vld [vmem:[#allocation34_spill] sm:$0xff] }
 0x686   :  { %14370 = vmatprep.mubr.f32.mxu0 %v26168_v11  ;;  %v12064_v26 = vadd.f32 %v12063_v47, %v11911_v18  ;;  %14360 = vmatprep.mubr.f32.mxu1 %v26156_v59  ;;  %v11899_v11 = vadd.f32 %v23281_v33, %v23166_v62  ;;  %v11918_v51 = vadd.f32 %v11917_v23, %v11743_v25  ;;  %v26267_v23 = vld [vmem:[#allocation71_spill] sm:$0xff]  ;;  %v26275_v47 = vld [vmem:[#allocation93_spill] sm:$0xff]  ;;  %v26277_v25 = vld [vmem:[#allocation16_spill] sm:$0xff] }
 0x687   :  { %v11926_v6 = vpop.f32.mrf.mxu0  ;;  %v12065_v44 = vpop.f32.mrf.mxu1  ;;  %v14089_v39 = vmul.f32 %v12045_v41, %v23333_v29  ;;  %v11761_v14 = vadd.f32 %v26267_v23, %v11589_v9  ;;  %v11925_v13 = vadd.f32 %v11924_v4, %v11752_v57  ;;  %v26274_v41 = vld [vmem:[#allocation21_spill] sm:$0xff]  ;;  %v8331_v54 = vadd.f32 %v26275_v47, %v8156_v5  ;;  %v26280_v9 = vld [vmem:[#allocation48_spill] sm:$0xff] }
 0x688   :  { %v14095_v48 = vmul.f32 %v12064_v26, %v23336_v21  ;;  %v12066_v58 = vadd.f32 %v12065_v44, %v11913_v38  ;;  %v12052_v50 = vadd.f32 %v12051_v0, %v11899_v11  ;;  %v11754_v0 = vadd.f32 %v23214_v45, %v11583_v43  ;;  %v26278_v26 = vld [vmem:[#allocation11_spill] sm:$0xff]  ;;  %v26285_v23 = vld [vmem:[#allocation33_spill] sm:$0xff] }
 0x689   :  { %v11931_v61 = vpop.f32.mrf.mxu0  ;;  %14371 = vmatmul.mubr.f32.vlgmr.msra.gmra.mxu0 %v26178_v34  ;;  %v12070_v16 = vpop.f32.mrf.mxu1  ;;  %14361 = vmatmul.mubr.f32.gmra.mxu1 %v26164_v17  ;;  %v11591_v34 = vadd.f32 %v23199_v3, %v23084_v63 }
 0x68a   :  { %14373 = vmatprep.mubr.f32.mxu0 %v26182_v1  ;;  %v23371_v40 = vadd.f32 %v14095_v48, %v23303_v8  ;;  %v14096_v62 = vmul.f32 %v12066_v58, %v26266_v56  ;;  %v12071_v52 = vadd.f32 %v12070_v16, %v11918_v51  ;;  %14363 = vmatprep.mubr.f32.mxu1 %v26172_v30  ;;  %v26269_v1 = vld [vmem:[#allocation128_spill] sm:$0xff]  ;;  %v26281_v58 = vld [vmem:[#allocation82_spill] sm:$0xff] }
 0x68b   :  { %v11933_v33 = vpop.f32.mrf.mxu0  ;;  %14411 = vmatpush3.msra.mxu0 %v22989_v10  ;;  %v11906_v27 = vadd.f32 %v26269_v1, %v26268_v2  ;;  %v12072_v8 = vpop.f32.mrf.mxu1  ;;  %v14138_v63 = vmul.f32 %v12052_v50, %v23333_v29  ;;  %v11927_v3 = vadd.f32 %v11926_v6, %v11754_v0  ;;  %v26279_v6 = vld [vmem:[#allocation66_spill] sm:$0xff]  ;;  %v11763_v46 = vadd.f32 %v26280_v9, %v11591_v34 }
 0x68c   :  { %14412 = vmatprep.subr.mxu0 %v26270_v20  ;;  %v23383_v35 = vadd.f32 %v14096_v62, %v14089_v39  ;;  %v14144_v32 = vmul.f32 %v12071_v52, %v23336_v21  ;;  %v12073_v7 = vadd.f32 %v12072_v8, %v11920_v22  ;;  %v11599_v43 = vadd.f32 %v26279_v6, %v26278_v26  ;;  %v26282_v39 = vld [vmem:[#allocation138_spill] sm:$0xff]  ;;  %v26283_v62 = vld [vmem:[#allocation31_spill] sm:$0xff]  ;;  %v26284_v52 = vld [vmem:[#allocation37_spill] sm:$0xff] }
 0x68d   :  { %v11938_v10 = vpop.f32.mrf.mxu0  ;;  %14374 = vmatmul.mubr.f32.gmra.mxu0 %v26271_v19  ;;  %v12059_v45 = vadd.f32 %v12058_v49, %v11906_v27  ;;  %v12077_v60 = vpop.f32.mrf.mxu1  ;;  %14364 = vmatmul.mubr.f32.gmra.mxu1 %v26272_v53  ;;  %v26276_v49 = vld [vmem:[#allocation43_spill] sm:$0xff]  ;;  %v11932_v11 = vadd.f32 %v11931_v61, %v11761_v14  ;;  %v11934_v22 = vadd.f32 %v11933_v33, %v11763_v46  ;;  %v26286_v14 = vld [vmem:[#allocation94_spill] sm:$0xff]  ;;  %v26289_v27 = vld [vmem:[#allocation121_spill] sm:$0xff] }
 0x68e   :  { %14376 = vmatprep.mubr.f32.mxu0 %v26273_v55  ;;  %v23391_v18 = vadd.f32 %v14144_v32, %v23319_v36  ;;  %v14145_v4 = vmul.f32 %v12073_v7, %v26266_v56  ;;  %v12078_v28 = vadd.f32 %v12077_v60, %v11925_v13  ;;  %14392 = vmatprep.mubr.f32.mxu1 %v26274_v41  ;;  %v26288_v33 = vld [vmem:[#allocation55_spill] sm:$0xff]  ;;  %v26290_v32 = vld [vmem:[#allocation5_spill] sm:$0xff]  ;;  %v26297_v41 = vld [vmem:[#allocation96_spill] sm:$0xff] }
 0x68f   :  { %v11940_v15 = vpop.f32.mrf.mxu0  ;;  %14413 = vmatpush3.msra.mxu0 %v26270_v20  ;;  %v11597_v38 = vadd.f32 %v26277_v25, %v26276_v49  ;;  %v12079_v36 = vpop.f32.mrf.mxu1  ;;  %v14187_v50 = vmul.f32 %v12059_v45, %v23333_v29  ;;  %v8438_v2 = vadd.f32 %v26286_v14, %v8331_v54  ;;  %v26287_v29 = vld [vmem:[#allocation12_spill] sm:$0xff]  ;;  %v11772_v8 = vadd.f32 %v26289_v27, %v11599_v43  ;;  %v26293_v45 = vld [vmem:[#allocation63_spill] sm:$0xff]  ;;  %v26299_v6 = vld [vmem:[#allocation14_spill] sm:$0xff] }
 0x690   :  { %v23402_v44 = vadd.f32 %v14145_v4, %v14138_v63  ;;  %v14193_v57 = vmul.f32 %v12078_v28, %v23336_v21  ;;  %v12080_v51 = vadd.f32 %v12079_v36, %v11927_v3  ;;  %v11605_v1 = vadd.f32 %v26288_v33, %v26287_v29  ;;  %v26292_v63 = vld [vmem:[#allocation38_spill] sm:$0xff]  ;;  %v26294_v3 = vld [vmem:[#allocation53_spill] sm:$0xff]  ;;  %v26295_v55 = vld [vmem:[#allocation75_spill] sm:$0xff] }
 0x691   :  { %v11945_v48 = vpop.f32.mrf.mxu0  ;;  %14377 = vmatmul.mubr.f32.gmra.mxu0 %v26281_v58  ;;  %v11770_v5 = vadd.f32 %v26282_v39, %v11597_v38  ;;  %v12084_v16 = vpop.f32.mrf.mxu1  ;;  %14393 = vmatmul.mubr.f32.vlgmr.msra.gmra.mxu1 %v26283_v62  ;;  %v11607_v60 = vadd.f32 %v26294_v3, %v26293_v45  ;;  %v11941_v47 = vadd.f32 %v11940_v15, %v11772_v8  ;;  %v26298_v38 = vld [vmem:[#allocation89_spill] sm:$0xff]  ;;  %v26300_v43 = vld [vmem:[#allocation134_spill] sm:$0xff]  ;;  %v26301_v46 = vld [vmem:[#allocation123_spill] sm:$0xff] }
 0x692   :  { %14379 = vmatprep.mubr.f32.mxu0 %v26284_v52  ;;  %v23411_v61 = vadd.f32 %v14193_v57, %v23345_v31  ;;  %v14194_v34 = vmul.f32 %v12080_v51, %v26266_v56  ;;  %v12085_v21 = vadd.f32 %v12084_v16, %v11932_v11  ;;  %14433 = vmatpush3.msra.mxu1 %v22958_v42  ;;  %v26291_v56 = vld [vmem:[#allocation25_spill] sm:$0xff]  ;;  %v26308_v33 = vld [vmem:[#allocation30_spill] sm:$0xff] }
 0x693   :  { %v11947_v0 = vpop.f32.mrf.mxu0  ;;  %14395 = vmatprep.mubr.f32.mxu1 %v26285_v23  ;;  %v11939_v20 = vadd.f32 %v11938_v10, %v11770_v5  ;;  %v12086_v13 = vpop.f32.mrf.mxu1  ;;  %14434 = vmatprep.subr.mxu1 %v26290_v32  ;;  %v11779_v4 = vadd.f32 %v26295_v55, %v11605_v1  ;;  %v26296_v10 = vld [vmem:[#allocation36_spill] sm:$0xff]  ;;  %v11613_v9 = vadd.f32 %v26300_v43, %v26299_v6  ;;  %v26302_v5 = vld [vmem:[#allocation99_spill] sm:$0xff]  ;;  %v26305_v62 = vld [vmem:[#allocation141_spill] sm:$0xff] }
 0x694   :  { %v23421_v31 = vadd.f32 %v14194_v34, %v14187_v50  ;;  %v14109_v7 = vmul.f32 %v12085_v21, %v26291_v56  ;;  %v12087_v19 = vadd.f32 %v12086_v13, %v11934_v22  ;;  %14435 = vmatpush3.msra.mxu1 %v26290_v32  ;;  %v11781_v36 = vadd.f32 %v26301_v46, %v11607_v60  ;;  %v26303_v50 = vld [vmem:[#allocation40_spill] sm:$0xff]  ;;  %v26307_v21 = vld [vmem:[#allocation102_spill] sm:$0xff]  ;;  %v26309_v27 = vld [vmem:[#allocation45_spill] sm:$0xff] }
 0x695   :  { %v11952_v42 = vpop.f32.mrf.mxu0  ;;  %14380 = vmatmul.mubr.f32.gmra.mxu0 %v26292_v63  ;;  %v12091_v28 = vpop.f32.mrf.mxu1  ;;  %14396 = vmatmul.mubr.f32.gmra.mxu1 %v26296_v10  ;;  %v11946_v57 = vadd.f32 %v11945_v48, %v11779_v4  ;;  %v26304_v22 = vld [vmem:[#allocation104_spill] sm:$0xff]  ;;  %v26312_v3 = vld [vmem:[#allocation106_spill] sm:$0xff]  ;;  %v26313_v60 = vld [vmem:[#allocation17_spill] sm:$0xff] }
 0x696   :  { %14382 = vmatprep.mubr.f32.mxu0 %v26297_v41  ;;  %v14110_v54 = vmul.f32 %v12087_v19, %v8438_v2  ;;  %v12092_v49 = vadd.f32 %v12091_v28, %v11939_v20  ;;  %14398 = vmatprep.mubr.f32.mxu1 %v26298_v38  ;;  %v14116_v26 = vadd.f32 %v14109_v7, %v23371_v40  ;;  %v26306_v34 = vld [vmem:[#allocation28_spill] sm:$0xff]  ;;  %v26311_v20 = vld [vmem:[#allocation107_spill] sm:$0xff]  ;;  %v26314_v55 = vld [vmem:[#allocation78_spill] sm:$0xff] }
 0x697   :  { %v11954_v25 = vpop.f32.mrf.mxu0  ;;  %v12093_v11 = vpop.f32.mrf.mxu1  ;;  %v11615_v16 = vadd.f32 %v26304_v22, %v26303_v50  ;;  %v11788_v40 = vadd.f32 %v26305_v62, %v11613_v9  ;;  %v11948_v23 = vadd.f32 %v11947_v0, %v11781_v36  ;;  %v11623_v4 = vadd.f32 %v26314_v55, %v26313_v60  ;;  %v26315_v28 = vld [vmem:[#allocation126_spill] sm:$0xff]  ;;  %v26316_v41 = vld [vmem:[#allocation95_spill] sm:$0xff]  ;;  %v26321_v46 = vld [vmem:[#allocation137_spill] sm:$0xff] }
 0x698   :  { %v14158_v51 = vmul.f32 %v12092_v49, %v26291_v56  ;;  %v12094_v58 = vadd.f32 %v12093_v11, %v11941_v47  ;;  %v14117_v15 = vadd.f32 %v14110_v54, %v23383_v35  ;;  %v26310_v35 = vld [vmem:[#allocation135_spill] sm:$0xff]  ;;  %v26317_v47 = vld [vmem:[#allocation76_spill] sm:$0xff]  ;;  %v26318_v38 = vld [vmem:[#allocation98_spill] sm:$0xff] }
 0x699   :  { %v11959_v39 = vpop.f32.mrf.mxu0  ;;  %14383 = vmatmul.mubr.f32.gmra.mxu0 %v26302_v5  ;;  %v12098_v52 = vpop.f32.mrf.mxu1  ;;  %14399 = vmatmul.mubr.f32.gmra.mxu1 %v26306_v34  ;;  %v11621_v8 = vadd.f32 %v26310_v35, %v26309_v27  ;;  %v11790_v13 = vadd.f32 %v26311_v20, %v11615_v16  ;;  %v11953_v7 = vadd.f32 %v11952_v42, %v11788_v40  ;;  %v26319_v43 = vld [vmem:[#allocation46_spill] sm:$0xff]  ;;  %v26322_v50 = vld [vmem:[#allocation9_spill] sm:$0xff] }
 0x69a   :  { %14385 = vmatprep.mubr.f32.mxu0 %v26307_v21  ;;  %v14159_v48 = vmul.f32 %v12094_v58, %v8438_v2  ;;  %v12099_v14 = vadd.f32 %v12098_v52, %v11946_v57  ;;  %14401 = vmatprep.mubr.f32.mxu1 %v26308_v33  ;;  %v14165_v1 = vadd.f32 %v14158_v51, %v23391_v18  ;;  %v26324_v22 = vld [vmem:[#allocation74_spill] sm:$0xff]  ;;  %v26325_v40 = vld [vmem:[#allocation101_spill] sm:$0xff]  ;;  %v26327_v52 = vld [vmem:[#allocation143_spill] sm:$0xff] }
 0x69b   :  { %v11961_v29 = vpop.f32.mrf.mxu0  ;;  %v12100_v32 = vpop.f32.mrf.mxu1  ;;  %v11797_v18 = vadd.f32 %v26315_v28, %v11621_v8  ;;  %v11955_v54 = vadd.f32 %v11954_v25, %v11790_v13  ;;  %v11799_v36 = vadd.f32 %v26321_v46, %v11623_v4  ;;  %v26323_v25 = vld [vmem:[#allocation65_spill] sm:$0xff] }
 0x69c   :  { %v14207_v19 = vmul.f32 %v12099_v14, %v26291_v56  ;;  %v12101_v63 = vadd.f32 %v12100_v32, %v11948_v23  ;;  %v14166_v0 = vadd.f32 %v14159_v48, %v23402_v44  ;;  %v26320_v44 = vld [vmem:[#allocation136_spill] sm:$0xff]  ;;  %v11631_v16 = vadd.f32 %v26324_v22, %v26323_v25  ;;  %v26328_v48 = vld [vmem:[#allocation105_spill] sm:$0xff]  ;;  %v26329_v14 = vld [vmem:[#allocation90_spill] sm:$0xff] }
 0x69d   :  { %v11966_v45 = vpop.f32.mrf.mxu0  ;;  %14386 = vmatmul.mubr.f32.gmra.mxu0 %v26312_v3  ;;  %v12105_v10 = vpop.f32.mrf.mxu1  ;;  %14402 = vmatmul.mubr.f32.gmra.mxu1 %v26316_v41  ;;  %v11629_v9 = vadd.f32 %v26320_v44, %v26319_v43  ;;  %v11960_v57 = vadd.f32 %v11959_v39, %v11797_v18  ;;  %v11962_v21 = vadd.f32 %v11961_v29, %v11799_v36  ;;  %v26330_v20 = vld [vmem:[#allocation81_spill] sm:$0xff]  ;;  %v26331_v32 = vld [vmem:[#allocation108_spill] sm:$0xff] }
 0x69e   :  { %14414 = vmatprep.mubr.f32.mxu0 %v26317_v47  ;;  %v14208_v42 = vmul.f32 %v12101_v63, %v8438_v2  ;;  %v12106_v49 = vadd.f32 %v12105_v10, %v11953_v7  ;;  %14404 = vmatprep.mubr.f32.mxu1 %v26318_v38  ;;  %v14214_v6 = vadd.f32 %v14207_v19, %v23411_v61  ;;  %v26326_v61 = vld [vmem:[#allocation10_spill] sm:$0xff] }
 0x69f   :  { %v11968_v56 = vpop.f32.mrf.mxu0  ;;  %v12107_v11 = vpop.f32.mrf.mxu1  ;;  %v11806_v34 = vadd.f32 %v26327_v52, %v11629_v9  ;;  %v11808_v33 = vadd.f32 %v26329_v14, %v11631_v16 }
 0x6a0   :  { %v14123_v51 = vadd.f32 %v14116_v26, %v12106_v49  ;;  %v12108_v58 = vadd.f32 %v12107_v11, %v11955_v54  ;;  %v14215_v2 = vadd.f32 %v14208_v42, %v23421_v31 }
 0x6a1   :  { %v12199_v5 = vpop.f32.mrf.mxu0  ;;  %14415 = vmatmul.mubr.f32.vlgmr.msra.gmra.mxu0 %v26322_v50  ;;  %v12112_v62 = vpop.f32.mrf.mxu1  ;;  %14405 = vmatmul.mubr.f32.gmra.mxu1 %v26325_v40  ;;  %v11967_v27 = vadd.f32 %v11966_v45, %v11806_v34  ;;  %v11969_v7 = vadd.f32 %v11968_v56, %v11808_v33 }
 0x6a2   :  { %14417 = vmatprep.mubr.f32.mxu0 %v26326_v61  ;;  %14130 = vst [vmem:[%s23847_s4 + $0x10] sm:$0xff] %v14123_v51  ;;  %v14124_v26 = vadd.f32 %v14117_v15, %v12108_v58  ;;  %v12113_v39 = vadd.f32 %v12112_v62, %v11960_v57  ;;  %14407 = vmatprep.mubr.f32.mxu1 %v26328_v48  ;;  %v26332_v15 = vld [vmem:[#allocation61_spill] sm:$0xff] }
 0x6a3   :  { %v12201_v23 = vpop.f32.mrf.mxu0  ;;  %v12114_v31 = vpop.f32.mrf.mxu1 }
 0x6a4   :  { %14131 = vst [vmem:[%s23847_s4 + $0x18] sm:$0xff] %v14124_v26  ;;  %v14172_v35 = vadd.f32 %v14165_v1, %v12113_v39  ;;  %v12115_v8 = vadd.f32 %v12114_v31, %v11962_v21 }
 0x6a5   :  { %v12210_v29 = vpop.f32.mrf.mxu0  ;;  %14418 = vmatmul.mubr.f32.gmra.mxu0 %v26330_v20  ;;  %v12119_v13 = vpop.f32.mrf.mxu1  ;;  %14408 = vmatmul.mubr.f32.gmra.mxu1 %v26331_v32 }
 0x6a6   :  { %14420 = vmatprep.mubr.f32.mxu0 %v26332_v15  ;;  %14179 = vst [vmem:[%s23847_s4 + $0x48] sm:$0xff] %v14172_v35  ;;  %v14173_v19 = vadd.f32 %v14166_v0, %v12115_v8  ;;  %v12120_v63 = vadd.f32 %v12119_v13, %v11967_v27  ;;  %14436 = vmatprep.mubr.f32.mxu1 %v26317_v47 }
 0x6a7   :  { %v12212_v45 = vpop.f32.mrf.mxu0  ;;  %v12121_v1 = vpop.f32.mrf.mxu1 }
 0x6a8   :  { %14180 = vst [vmem:[%s23847_s4 + $0x50] sm:$0xff] %v14173_v19  ;;  %v14221_v3 = vadd.f32 %v14214_v6, %v12120_v63  ;;  %v12122_v60 = vadd.f32 %v12121_v1, %v11969_v7 }
 0x6a9   :  { %v12221_v55 = vpop.f32.mrf.mxu0  ;;  %14421 = vmatmul.mubr.f32.gmra.mxu0 %v22104_v12  ;;  %v12412_v4 = vpop.f32.mrf.mxu1  ;;  %14437 = vmatmul.mubr.f32.vlgmr.msra.gmra.mxu1 %v26322_v50 }
 0x6aa   :  { %14423 = vmatprep.mubr.f32.mxu0 %v26138_v24  ;;  %14228 = vst [vmem:[%s23847_s4 + $0x80] sm:$0xff] %v14221_v3  ;;  %v14222_v0 = vadd.f32 %v14215_v2, %v12122_v60  ;;  %v23493_v28 = vadd.f32 %v12412_v4, %v12199_v5  ;;  %14439 = vmatprep.mubr.f32.mxu1 %v26326_v61 }
 0x6ab   :  { %v12223_v18 = vpop.f32.mrf.mxu0  ;;  %v12414_v10 = vpop.f32.mrf.mxu1 }
 0x6ac   :  { %14229 = vst [vmem:[%s23847_s4 + $0x88] sm:$0xff] %v14222_v0  ;;  %v23499_v41 = vadd.f32 %v12414_v10, %v12201_v23 }
 0x6ad   :  { %v12232_v47 = vpop.f32.mrf.mxu0  ;;  %14424 = vmatmul.mubr.f32.gmra.mxu0 %v26148_v37  ;;  %v12419_v54 = vpop.f32.mrf.mxu1  ;;  %14440 = vmatmul.mubr.f32.gmra.mxu1 %v26330_v20 }
 0x6ae   :  { %14426 = vmatprep.mubr.f32.mxu0 %v26156_v59  ;;  %v23504_v42 = vadd.f32 %v12419_v54, %v12210_v29  ;;  %14442 = vmatprep.mubr.f32.mxu1 %v26332_v15 }
 0x6af   :  { %v12234_v49 = vpop.f32.mrf.mxu0  ;;  %v12421_v56 = vpop.f32.mrf.mxu1 }
 0x6b0   :  { %v23507_v38 = vadd.f32 %v12421_v56, %v12212_v45 }
 0x6b1   :  { %v12243_v6 = vpop.f32.mrf.mxu0  ;;  %14427 = vmatmul.mubr.f32.gmra.mxu0 %v26164_v17  ;;  %v12426_v43 = vpop.f32.mrf.mxu1  ;;  %14443 = vmatmul.mubr.f32.gmra.mxu1 %v22104_v12 }
 0x6b2   :  { %14429 = vmatprep.mubr.f32.mxu0 %v26172_v30  ;;  %v23512_v44 = vadd.f32 %v12426_v43, %v12221_v55  ;;  %14445 = vmatprep.mubr.f32.mxu1 %v26138_v24 }
 0x6b3   :  { %v12245_v9 = vpop.f32.mrf.mxu0  ;;  %v12428_v46 = vpop.f32.mrf.mxu1 }
 0x6b4   :  { %v23515_v36 = vadd.f32 %v12428_v46, %v12223_v18 }
 0x6b5   :  { %v12254_v11 = vpop.f32.mrf.mxu0  ;;  %14430 = vmatmul.mubr.f32.gmra.mxu0 %v26272_v53  ;;  %v12433_v57 = vpop.f32.mrf.mxu1  ;;  %14446 = vmatmul.mubr.f32.gmra.mxu1 %v26148_v37 }
 0x6b6   :  { %v23519_v51 = vadd.f32 %v12433_v57, %v12232_v47  ;;  %14448 = vmatprep.mubr.f32.mxu1 %v26156_v59 }
 0x6b7   :  { %v12256_v58 = vpop.f32.mrf.mxu0  ;;  %v12435_v12 = vpop.f32.mrf.mxu1 }
 0x6b8   :  { %v23522_v5 = vadd.f32 %v12435_v12, %v12234_v49 }
 0x6b9   :  { %v12265_v50 = vpop.f32.mrf.mxu0  ;;  %v12440_v2 = vpop.f32.mrf.mxu1  ;;  %14449 = vmatmul.mubr.f32.gmra.mxu1 %v26164_v17 }
 0x6ba   :  { %v23525_v24 = vadd.f32 %v12440_v2, %v12243_v6  ;;  %14451 = vmatprep.mubr.f32.mxu1 %v26172_v30 }
 0x6bb   :  { %v12267_v25 = vpop.f32.mrf.mxu0  ;;  %v12442_v22 = vpop.f32.mrf.mxu1 }
 0x6bc   :  { %v23528_v16 = vadd.f32 %v12442_v22, %v12245_v9 }
 0x6bd   :  { %v12276_v37 = vpop.f32.mrf.mxu0  ;;  %v12447_v62 = vpop.f32.mrf.mxu1  ;;  %14452 = vmatmul.mubr.f32.gmra.mxu1 %v26272_v53 }
 0x6be   :  { %v23531_v59 = vadd.f32 %v12447_v62, %v12254_v11 }
 0x6bf   :  { %v12278_v40 = vpop.f32.mrf.mxu0  ;;  %v12449_v61 = vpop.f32.mrf.mxu1 }
 0x6c0   :  { %v23533_v52 = vadd.f32 %v12449_v61, %v12256_v58 }
 0x6c1   :  { %v12287_v34 = vpop.f32.mrf.mxu0  ;;  %v12454_v17 = vpop.f32.mrf.mxu1 }
 0x6c2   :  { %v23535_v21 = vadd.f32 %v12454_v17, %v12265_v50 }
 0x6c3   :  { %v12289_v26 = vpop.f32.mrf.mxu0  ;;  %v12456_v39 = vpop.f32.mrf.mxu1 }
 0x6c4   :  { %v23537_v30 = vadd.f32 %v12456_v39, %v12267_v25 }
 0x6c5   :  { %v12298_v23 = vpop.f32.mrf.mxu0  ;;  %v12461_v48 = vpop.f32.mrf.mxu1 }
 0x6c6   :  { %v23539_v31 = vadd.f32 %v12461_v48, %v12276_v37 }
 0x6c7   :  { %v12300_v14 = vpop.f32.mrf.mxu0  ;;  %v12463_v53 = vpop.f32.mrf.mxu1 }
 0x6c8   :  { %v23541_v33 = vadd.f32 %v12463_v53, %v12278_v40 }
 0x6c9   :  { %v12309_v27 = vpop.f32.mrf.mxu0  ;;  %v12468_v35 = vpop.f32.mrf.mxu1 }
 0x6ca   :  { %v23543_v8 = vadd.f32 %v12468_v35, %v12287_v34 }
 0x6cb   :  { %v12311_v29 = vpop.f32.mrf.mxu0  ;;  %v12470_v20 = vpop.f32.mrf.mxu1 }
 0x6cc   :  { %v23545_v13 = vadd.f32 %v12470_v20, %v12289_v26 }
 0x6cd   :  { %v12320_v32 = vpop.f32.mrf.mxu0  ;;  %v12475_v15 = vpop.f32.mrf.mxu1 }
 0x6ce   :  { %26333 = vst [vmem:[#allocation139_spill] sm:$0xff] %v23545_v13  ;;  %v23547_v7 = vadd.f32 %v12475_v15, %v12298_v23 }
 0x6cf   :  { %v12322_v19 = vpop.f32.mrf.mxu0  ;;  %v12477_v63 = vpop.f32.mrf.mxu1 }
 0x6d0   :  { %26334 = vst [vmem:[#allocation145_spill] sm:$0xff] %v23547_v7  ;;  %v23549_v45 = vadd.f32 %v12477_v63, %v12300_v14  ;;  %v26360_v7 = vld [vmem:[#allocation22_spill] sm:$0xff] }
 0x6d1   :  { %v12570_v1 = vpop.f32.mrf.mxu0  ;;  %v12482_v3 = vpop.f32.mrf.mxu1 }
 0x6d2   :  { %26335 = vst [vmem:[#allocation109_spill] sm:$0xff] %v23549_v45  ;;  %v12571_v60 = vadd.f32 %v12570_v1, %v23493_v28  ;;  %v23552_v55 = vadd.f32 %v12482_v3, %v12309_v27 }
 0x6d3   :  { %v12572_v4 = vpop.f32.mrf.mxu0  ;;  %v12484_v0 = vpop.f32.mrf.mxu1 }
 0x6d4   :  { %26336 = vst [vmem:[#allocation129_spill] sm:$0xff] %v23552_v55  ;;  %v12573_v18 = vadd.f32 %v12572_v4, %v23499_v41  ;;  %v23555_v10 = vadd.f32 %v12484_v0, %v12311_v29 }
 0x6d5   :  { %v12578_v47 = vpop.f32.mrf.mxu0  ;;  %v12489_v54 = vpop.f32.mrf.mxu1 }
 0x6d6   :  { %26337 = vst [vmem:[#allocation140_spill] sm:$0xff] %v23555_v10  ;;  %v12579_v49 = vadd.f32 %v12578_v47, %v23504_v42  ;;  %v23558_v56 = vadd.f32 %v12489_v54, %v12320_v32 }
 0x6d7   :  { %v12580_v6 = vpop.f32.mrf.mxu0  ;;  %v12491_v43 = vpop.f32.mrf.mxu1 }
 0x6d8   :  { %26338 = vst [vmem:[#allocation147_spill] sm:$0xff] %v23558_v56  ;;  %v12581_v9 = vadd.f32 %v12580_v6, %v23507_v38  ;;  %v23561_v46 = vadd.f32 %v12491_v43, %v12322_v19 }
 0x6d9   :  { %v12586_v28 = vpop.f32.mrf.mxu0  ;;  %v12736_v57 = vpop.f32.mrf.mxu1 }
 0x6da   :  { %26339 = vst [vmem:[#allocation92_spill] sm:$0xff] %v23561_v46  ;;  %v12587_v11 = vadd.f32 %v12586_v28, %v23512_v44  ;;  %v12737_v58 = vadd.f32 %v12736_v57, %v12571_v60 }
 0x6db   :  { %v12588_v41 = vpop.f32.mrf.mxu0  ;;  %v12738_v50 = vpop.f32.mrf.mxu1 }
 0x6dc   :  { %v12589_v12 = vadd.f32 %v12588_v41, %v23515_v36  ;;  %v23565_v2 = vadd.f32 %v12738_v50, %v12573_v18 }
 0x6dd   :  { %v23567_v42 = vpop.f32.mrf.mxu0  ;;  %v12745_v25 = vpop.f32.mrf.mxu1 }
 0x6de   :  { %v12746_v22 = vadd.f32 %v12745_v25, %v12579_v49 }
 0x6df   :  { %v23569_v37 = vpop.f32.mrf.mxu0  ;;  %v12747_v38 = vpop.f32.mrf.mxu1 }
 0x6e0   :  { %v23571_v62 = vadd.f32 %v12747_v38, %v12581_v9 }
 0x6e1   :  { %v23573_v40 = vpop.f32.mrf.mxu0  ;;  %v12754_v44 = vpop.f32.mrf.mxu1 }
 0x6e2   :  { %v12755_v61 = vadd.f32 %v12754_v44, %v12587_v11 }
 0x6e3   :  { %v23575_v34 = vpop.f32.mrf.mxu0  ;;  %v12756_v17 = vpop.f32.mrf.mxu1 }
 0x6e4   :  { %v23577_v36 = vadd.f32 %v12756_v17, %v12589_v12 }
 0x6e5   :  { %v23579_v26 = vpop.f32.mrf.mxu0  ;;  %v12763_v39 = vpop.f32.mrf.mxu1 }
 0x6e7   :  { %v23581_v23 = vpop.f32.mrf.mxu0  ;;  %v23583_v48 = vpop.f32.mrf.mxu1 }
 0x6e9   :  { %v23585_v14 = vpop.f32.mrf.mxu0  ;;  %v23587_v53 = vpop.f32.mrf.mxu1 }
 0x6eb   :  { %v23589_v27 = vpop.f32.mrf.mxu0  ;;  %v23591_v35 = vpop.f32.mrf.mxu1 }
 0x6ed   :  { %v23593_v29 = vpop.f32.mrf.mxu0  ;;  %v23595_v20 = vpop.f32.mrf.mxu1 }
 0x6ef   :  { %v23597_v32 = vpop.f32.mrf.mxu0  ;;  %v23599_v15 = vpop.f32.mrf.mxu1 }
 0x6f1   :  { %v23601_v19 = vpop.f32.mrf.mxu0  ;;  %v23603_v63 = vpop.f32.mrf.mxu1 }
 0x6f3   :  { %v23605_v1 = vpop.f32.mrf.mxu0  ;;  %v23607_v3 = vpop.f32.mrf.mxu1 }
 0x6f4   :  { %26340 = vst [vmem:[#allocation130_spill] sm:$0xff] %v23605_v1 }
 0x6f5   :  { %v23609_v60 = vpop.f32.mrf.mxu0  ;;  %v23611_v4 = vpop.f32.mrf.mxu1 }
 0x6f6   :  { %26341 = vst [vmem:[#allocation142_spill] sm:$0xff] %v23609_v60  ;;  %v26359_v60 = vld [vmem:[#allocation56_spill] sm:$0xff] }
 0x6f7   :  { %v23613_v0 = vpop.f32.mrf.mxu0  ;;  %v23615_v18 = vpop.f32.mrf.mxu1 }
 0x6f8   :  { %26342 = vst [vmem:[#allocation149_spill] sm:$0xff] %v23613_v0  ;;  %26343 = vst [vmem:[#allocation110_spill] sm:$0xff] %v23615_v18  ;;  %v26358_v0 = vld [vmem:[#allocation19_spill] sm:$0xff] }
 0x6f9   :  { %v23617_v47 = vpop.f32.mrf.mxu0  ;;  %v23619_v54 = vpop.f32.mrf.mxu1  ;;  %v26365_v18 = vld [vmem:[#allocation79_spill] sm:$0xff] }
 0x6fa   :  { %26344 = vst [vmem:[#allocation131_spill] sm:$0xff] %v23617_v47  ;;  %26345 = vst [vmem:[#allocation144_spill] sm:$0xff] %v23619_v54  ;;  %v26356_v47 = vld [vmem:[#allocation41_spill] sm:$0xff] }
 0x6fb   :  { %v23621_v49 = vpop.f32.mrf.mxu0  ;;  %v23623_v6 = vpop.f32.mrf.mxu1 }
 0x6fc   :  { %26346 = vst [vmem:[#allocation150_spill] sm:$0xff] %v23621_v49  ;;  %26347 = vst [vmem:[#allocation97_spill] sm:$0xff] %v23623_v6 }
 0x6fd   :  { %v23625_v43 = vpop.f32.mrf.mxu0  ;;  %v23627_v9 = vpop.f32.mrf.mxu1 }
 0x6fe   :  { %26348 = vst [vmem:[#allocation132_spill] sm:$0xff] %v23625_v43  ;;  %26349 = vst [vmem:[#allocation146_spill] sm:$0xff] %v23627_v9  ;;  %v26357_v9 = vld [vmem:[#allocation77_spill] sm:$0xff] }
 0x6ff   :  { %v23629_v28 = vpop.f32.mrf.mxu0  ;;  %v23631_v11 = vpop.f32.mrf.mxu1 }
 0x700   :  { %26350 = vst [vmem:[#allocation151_spill] sm:$0xff] %v23629_v28  ;;  %26351 = vst [vmem:[#allocation8_spill] sm:$0xff] %v23631_v11 }
 0x701   :  { %v12919_v57 = vpop.f32.mrf.mxu0  ;;  %v23633_v41 = vpop.f32.mrf.mxu1 }
 0x702   :  { %26352 = vst [vmem:[#allocation133_spill] sm:$0xff] %v23633_v41  ;;  %v12920_v46 = vadd.f32 %v12919_v57, %v12737_v58  ;;  %v26361_v58 = vld [vmem:[#allocation44_spill] sm:$0xff] }
 0x703   :  { %v12921_v12 = vpop.f32.mrf.mxu0  ;;  %v23635_v50 = vpop.f32.mrf.mxu1 }
 0x704   :  { %26353 = vst [vmem:[#allocation148_spill] sm:$0xff] %v23635_v50  ;;  %v5220_v50 = vadd.f32 %v26358_v0, %v26357_v9  ;;  %v26363_v0 = vld [vmem:[#allocation57_spill] sm:$0xff] }
 0x705   :  { %v12926_v25 = vpop.f32.mrf.mxu0  ;;  %v23637_v38 = vpop.f32.mrf.mxu1 }
 0x706   :  { %26354 = vst [vmem:[#allocation152_spill] sm:$0xff] %v23637_v38  ;;  %v12927_v11 = vadd.f32 %v12926_v25, %v12746_v22  ;;  %v5363_v57 = vadd.f32 %v26361_v58, %v5220_v50  ;;  %v26362_v25 = vld [vmem:[#allocation39_spill] sm:$0xff]  ;;  %v26364_v58 = vld [vmem:[#allocation32_spill] sm:$0xff] }
 0x707   :  { %v12928_v44 = vpop.f32.mrf.mxu0  ;;  %v23639_v17 = vpop.f32.mrf.mxu1 }
 0x708   :  { %26355 = vst [vmem:[#allocation100_spill] sm:$0xff] %v23639_v17  ;;  %v2538_v17 = vadd.f32 %v26360_v7, %v26359_v60  ;;  %v5474_v9 = vadd.f32 %v26363_v0, %v5363_v57  ;;  %v26369_v0 = vld [vmem:[#allocation111_spill] sm:$0xff] }
 0x709   :  { %v12933_v43 = vpop.f32.mrf.mxu0  ;;  %v13072_v56 = vpop.f32.mrf.mxu1 }
 0x70a   :  { %v13073_v49 = vadd.f32 %v13072_v56, %v12920_v46  ;;  %v12595_v56 = vadd.f32 %v23567_v42, %v23519_v51  ;;  %v12934_v46 = vadd.f32 %v12933_v43, %v12755_v61  ;;  %v2681_v1 = vadd.f32 %v26362_v25, %v2538_v17 }
 0x70b   :  { %v23641_v10 = vpop.f32.mrf.mxu0  ;;  %v13074_v28 = vpop.f32.mrf.mxu1  ;;  %v5649_v51 = vadd.f32 %v26365_v18, %v5474_v9  ;;  %v12922_v42 = vadd.f32 %v12921_v12, %v23565_v2  ;;  %v12605_v2 = vadd.f32 %v23575_v34, %v23528_v16 }
 0x70c   :  { %v14090_v55 = vmul.f32 %v13073_v49, %v26356_v47  ;;  %v12764_v7 = vadd.f32 %v12763_v39, %v12595_v56  ;;  %v2792_v13 = vadd.f32 %v26364_v58, %v2681_v1  ;;  %v26367_v56 = vld [vmem:[#allocation80_spill] sm:$0xff] }
 0x70d   :  { %v12940_v41 = vpop.f32.mrf.mxu0  ;;  %v13079_v45 = vpop.f32.mrf.mxu1  ;;  %v13075_v1 = vadd.f32 %v13074_v28, %v12922_v42 }
 0x70e   :  { %v13080_v6 = vadd.f32 %v13079_v45, %v12927_v11  ;;  %v12597_v11 = vadd.f32 %v23569_v37, %v23522_v5  ;;  %v12941_v17 = vadd.f32 %v12940_v41, %v12764_v7  ;;  %v26366_v37 = vld [vmem:[#allocation58_spill] sm:$0xff] }
 0x70f   :  { %v12942_v38 = vpop.f32.mrf.mxu0  ;;  %v13081_v54 = vpop.f32.mrf.mxu1  ;;  %v2967_v39 = vadd.f32 %v26366_v37, %v2792_v13  ;;  %v12611_v13 = vadd.f32 %v23579_v26, %v23531_v59  ;;  %v26371_v59 = vld [vmem:[#allocation67_spill] sm:$0xff] }
 0x710   :  { %v23652_v22 = vmul.f32 %v13080_v6, %v26356_v47  ;;  %v12603_v6 = vadd.f32 %v23573_v40, %v23525_v24  ;;  %v12766_v43 = vadd.f32 %v23583_v48, %v12597_v11  ;;  %v26368_v48 = vld [vmem:[#allocation59_spill] sm:$0xff]  ;;  %v12775_v11 = vadd.f32 %v23591_v35, %v12605_v2 }
 0x711   :  { %v12947_v49 = vpop.f32.mrf.mxu0  ;;  %v13086_v45 = vpop.f32.mrf.mxu1  ;;  %v3074_v41 = vadd.f32 %v26368_v48, %v2967_v39 }
 0x712   :  { %v13087_v60 = vadd.f32 %v13086_v45, %v12934_v46  ;;  %v5756_v46 = vadd.f32 %v26367_v56, %v5649_v51  ;;  %v12773_v18 = vadd.f32 %v23587_v53, %v12603_v6  ;;  %v12943_v12 = vadd.f32 %v12942_v38, %v12766_v43 }
 0x713   :  { %v12949_v50 = vpop.f32.mrf.mxu0  ;;  %v13088_v61 = vpop.f32.mrf.mxu1  ;;  %v12929_v45 = vadd.f32 %v12928_v44, %v23571_v62  ;;  %v12613_v38 = vadd.f32 %v23581_v23, %v23533_v52  ;;  %v14091_v58 = vmul.f32 %v13075_v1, %v3074_v41  ;;  %v12936_v52 = vadd.f32 %v23641_v10, %v23577_v36 }
 0x714   :  { %v23665_v57 = vmul.f32 %v13087_v60, %v26356_v47  ;;  %v26370_v47 = vld [vmem:[#allocation112_spill] sm:$0xff]  ;;  %v12948_v7 = vadd.f32 %v12947_v49, %v12773_v18  ;;  %v12782_v60 = vadd.f32 %v23595_v20, %v12611_v13  ;;  %v12950_v6 = vadd.f32 %v12949_v50, %v12775_v11 }
 0x715   :  { %v12954_v5 = vpop.f32.mrf.mxu0  ;;  %v13093_v25 = vpop.f32.mrf.mxu1  ;;  %v8796_v9 = vadd.f32 %v26370_v47, %v26369_v0  ;;  %v13082_v51 = vadd.f32 %v13081_v54, %v12929_v45  ;;  %v12619_v49 = vadd.f32 %v23585_v14, %v23535_v21  ;;  %v12784_v37 = vadd.f32 %v23599_v15, %v12613_v38 }
 0x716   :  { %v13094_v24 = vadd.f32 %v13093_v25, %v12941_v17  ;;  %v26372_v17 = vld [vmem:[#allocation113_spill] sm:$0xff]  ;;  %v12955_v20 = vadd.f32 %v12954_v5, %v12782_v60  ;;  %v12621_v56 = vadd.f32 %v23589_v27, %v23537_v30  ;;  %v13089_v2 = vadd.f32 %v13088_v61, %v12936_v52  ;;  %v26373_v5 = vld [vmem:[#allocation114_spill] sm:$0xff] }
 0x717   :  { %v12956_v40 = vpop.f32.mrf.mxu0  ;;  %v13095_v28 = vpop.f32.mrf.mxu1  ;;  %v8939_v35 = vadd.f32 %v26372_v17, %v8796_v9  ;;  %v12791_v1 = vadd.f32 %v23603_v63, %v12619_v49  ;;  %v14140_v25 = vmul.f32 %v13082_v51, %v3074_v41 }
 0x718   :  { %v14097_v16 = vmul.f32 %v13094_v24, %v5756_v46  ;;  %v13096_v34 = vadd.f32 %v13095_v28, %v12943_v12  ;;  %v12957_v21 = vadd.f32 %v12956_v40, %v12784_v37  ;;  %v12627_v24 = vadd.f32 %v23593_v29, %v23539_v31  ;;  %v26374_v40 = vld [vmem:[#allocation116_spill] sm:$0xff]  ;;  %v26382_v37 = vld [vmem:[#allocation142_spill] sm:$0xff] }
 0x719   :  { %v12961_v53 = vpop.f32.mrf.mxu0  ;;  %v13100_v42 = vpop.f32.mrf.mxu1  ;;  %v9050_v12 = vadd.f32 %v26373_v5, %v8939_v35  ;;  %v12793_v48 = vadd.f32 %v23607_v3, %v12621_v56  ;;  %v14189_v45 = vmul.f32 %v13089_v2, %v3074_v41  ;;  %v26384_v2 = vld [vmem:[#allocation109_spill] sm:$0xff] }
 0x71a   :  { %v14104_v43 = vadd.f32 %v14097_v16, %v14090_v55  ;;  %v14098_v26 = vmul.f32 %v13096_v34, %v26371_v59  ;;  %v13101_v62 = vadd.f32 %v13100_v42, %v12948_v7  ;;  %v12962_v27 = vadd.f32 %v12961_v53, %v12791_v1  ;;  %v26375_v16 = vld [vmem:[#allocation117_spill] sm:$0xff]  ;;  %v26376_v53 = vld [vmem:[#allocation110_spill] sm:$0xff]  ;;  %v26378_v42 = vld [vmem:[#allocation139_spill] sm:$0xff] }
 0x71b   :  { %v12963_v44 = vpop.f32.mrf.mxu0  ;;  %v13102_v23 = vpop.f32.mrf.mxu1  ;;  %v9225_v9 = vadd.f32 %v26374_v40, %v9050_v12  ;;  %v12800_v13 = vadd.f32 %v23611_v4, %v12627_v24  ;;  %v12635_v34 = vadd.f32 %v23601_v19, %v23543_v8  ;;  %v26377_v4 = vld [vmem:[#allocation115_spill] sm:$0xff]  ;;  %v26381_v19 = vld [vmem:[#allocation145_spill] sm:$0xff] }
 0x71c   :  { %v14105_v54 = vadd.f32 %v14098_v26, %v14091_v58  ;;  %v14146_v39 = vmul.f32 %v13101_v62, %v5756_v46  ;;  %v13103_v50 = vadd.f32 %v13102_v23, %v12950_v6  ;;  %v12964_v11 = vadd.f32 %v12963_v44, %v12793_v48  ;;  %v26383_v23 = vld [vmem:[#allocation97_spill] sm:$0xff] }
 0x71d   :  { %v12968_v55 = vpop.f32.mrf.mxu0  ;;  %v13107_v18 = vpop.f32.mrf.mxu1  ;;  %v12643_v52 = vadd.f32 %v26382_v37, %v26381_v19 }
 0x71e   :  { %v14153_v14 = vadd.f32 %v14146_v39, %v23652_v22  ;;  %v14147_v15 = vmul.f32 %v13103_v50, %v26371_v59  ;;  %v13108_v10 = vadd.f32 %v13107_v18, %v12955_v20  ;;  %v12629_v22 = vadd.f32 %v23597_v32, %v23541_v33  ;;  %v26385_v18 = vld [vmem:[#allocation149_spill] sm:$0xff] }
 0x71f   :  { %v12970_v36 = vpop.f32.mrf.mxu0  ;;  %v13109_v30 = vpop.f32.mrf.mxu1  ;;  %v12969_v33 = vadd.f32 %v12968_v55, %v12800_v13 }
 0x720   :  { %v14154_v63 = vadd.f32 %v14147_v15, %v14140_v25  ;;  %v14195_v0 = vmul.f32 %v13108_v10, %v5756_v46  ;;  %v13110_v61 = vadd.f32 %v13109_v30, %v12957_v21  ;;  %v9332_v46 = vadd.f32 %v26375_v16, %v9225_v9  ;;  %v26386_v15 = vld [vmem:[#allocation146_spill] sm:$0xff]  ;;  %v26387_v30 = vld [vmem:[#allocation129_spill] sm:$0xff] }
 0x721   :  { %v12975_v47 = vpop.f32.mrf.mxu0  ;;  %v13114_v28 = vpop.f32.mrf.mxu1  ;;  %v12802_v38 = vadd.f32 %v26376_v53, %v12629_v22  ;;  %v12645_v21 = vadd.f32 %v26385_v18, %v26384_v2  ;;  %v12818_v10 = vadd.f32 %v26386_v15, %v12643_v52 }
 0x722   :  { %v14202_v31 = vadd.f32 %v14195_v0, %v23665_v57  ;;  %v14196_v29 = vmul.f32 %v13110_v61, %v26371_v59  ;;  %v13115_v3 = vadd.f32 %v13114_v28, %v12962_v27  ;;  %v26379_v57 = vld [vmem:[#allocation130_spill] sm:$0xff]  ;;  %v26380_v59 = vld [vmem:[#allocation144_spill] sm:$0xff]  ;;  %v26388_v27 = vld [vmem:[#allocation131_spill] sm:$0xff] }
 0x723   :  { %v12977_v7 = vpop.f32.mrf.mxu0  ;;  %v13116_v60 = vpop.f32.mrf.mxu1  ;;  %v12637_v6 = vadd.f32 %v26379_v57, %v26378_v42  ;;  %v12809_v26 = vadd.f32 %v26380_v59, %v12635_v34  ;;  %v12971_v44 = vadd.f32 %v12970_v36, %v12802_v38  ;;  %v12651_v0 = vadd.f32 %v26388_v27, %v26387_v30  ;;  %v26389_v61 = vld [vmem:[#allocation8_spill] sm:$0xff] }
 0x724   :  { %v14203_v32 = vadd.f32 %v14196_v29, %v14189_v45  ;;  %v14111_v41 = vmul.f32 %v13115_v3, %v26377_v4  ;;  %v13117_v58 = vadd.f32 %v13116_v60, %v12964_v11  ;;  %v26390_v28 = vld [vmem:[#allocation140_spill] sm:$0xff]  ;;  %v26391_v11 = vld [vmem:[#allocation150_spill] sm:$0xff]  ;;  %v26392_v3 = vld [vmem:[#allocation133_spill] sm:$0xff] }
 0x725   :  { %v12982_v51 = vpop.f32.mrf.mxu0  ;;  %v13121_v62 = vpop.f32.mrf.mxu1  ;;  %v12811_v20 = vadd.f32 %v26383_v23, %v12637_v6  ;;  %v12976_v50 = vadd.f32 %v12975_v47, %v12809_v26  ;;  %v12820_v47 = vadd.f32 %v26389_v61, %v12645_v21  ;;  %v12653_v29 = vadd.f32 %v26391_v11, %v26390_v28  ;;  %v26399_v23 = vld [vmem:[#allocation100_spill] sm:$0xff] }
 0x726   :  { %v14112_v17 = vmul.f32 %v13117_v58, %v9332_v46  ;;  %v13122_v35 = vadd.f32 %v13121_v62, %v12969_v33  ;;  %v14118_v8 = vadd.f32 %v14111_v41, %v14104_v43  ;;  %v12983_v9 = vadd.f32 %v12982_v51, %v12818_v10  ;;  %v26393_v33 = vld [vmem:[#allocation147_spill] sm:$0xff]  ;;  %v26394_v41 = vld [vmem:[#allocation132_spill] sm:$0xff] }
 0x727   :  { %v12984_v49 = vpop.f32.mrf.mxu0  ;;  %v13123_v39 = vpop.f32.mrf.mxu1  ;;  %v12978_v5 = vadd.f32 %v12977_v7, %v12811_v20  ;;  %v12827_v7 = vadd.f32 %v26392_v3, %v12651_v0  ;;  %v12659_v58 = vadd.f32 %v26394_v41, %v26393_v33  ;;  %v26395_v51 = vld [vmem:[#allocation148_spill] sm:$0xff] }
 0x728   :  { %v14160_v55 = vmul.f32 %v13122_v35, %v26377_v4  ;;  %v13124_v56 = vadd.f32 %v13123_v39, %v12971_v44  ;;  %v14119_v25 = vadd.f32 %v14112_v17, %v14105_v54  ;;  %v12985_v34 = vadd.f32 %v12984_v49, %v12820_v47  ;;  %v26396_v62 = vld [vmem:[#allocation92_spill] sm:$0xff]  ;;  %v26397_v44 = vld [vmem:[#allocation151_spill] sm:$0xff] }
 0x729   :  { %v12989_v1 = vpop.f32.mrf.mxu0  ;;  %v13128_v36 = vpop.f32.mrf.mxu1  ;;  %v12829_v42 = vadd.f32 %v26395_v51, %v12653_v29  ;;  %v12661_v17 = vadd.f32 %v26397_v44, %v26396_v62 }
 0x72a   :  { %v14161_v43 = vmul.f32 %v13124_v56, %v9332_v46  ;;  %v13129_v12 = vadd.f32 %v13128_v36, %v12976_v50  ;;  %v14167_v48 = vadd.f32 %v14160_v55, %v14153_v14  ;;  %v12990_v57 = vadd.f32 %v12989_v1, %v12827_v7 }
 0x72b   :  { %v12991_v24 = vpop.f32.mrf.mxu0  ;;  %v13130_v40 = vpop.f32.mrf.mxu1  ;;  %v12838_v20 = vadd.f32 %v26399_v23, %v12661_v17 }
 0x72c   :  { %v14209_v54 = vmul.f32 %v13129_v12, %v26377_v4  ;;  %v13131_v22 = vadd.f32 %v13130_v40, %v12978_v5  ;;  %v14168_v45 = vadd.f32 %v14161_v43, %v14154_v63  ;;  %v12992_v19 = vadd.f32 %v12991_v24, %v12829_v42 }
 0x72d   :  { %v12996_v13 = vpop.f32.mrf.mxu0  ;;  %v13135_v16 = vpop.f32.mrf.mxu1 }
 0x72e   :  { %v14210_v14 = vmul.f32 %v13131_v22, %v9332_v46  ;;  %v13136_v53 = vadd.f32 %v13135_v16, %v12983_v9  ;;  %v14216_v60 = vadd.f32 %v14209_v54, %v14202_v31  ;;  %v26398_v46 = vld [vmem:[#allocation152_spill] sm:$0xff] }
 0x72f   :  { %v12998_v38 = vpop.f32.mrf.mxu0  ;;  %v13137_v4 = vpop.f32.mrf.mxu1  ;;  %v12836_v49 = vadd.f32 %v26398_v46, %v12659_v58 }
 0x730   :  { %v14125_v6 = vadd.f32 %v14118_v8, %v13136_v53  ;;  %v13138_v63 = vadd.f32 %v13137_v4, %v12985_v34  ;;  %v14217_v26 = vadd.f32 %v14210_v14, %v14203_v32  ;;  %v12999_v1 = vadd.f32 %v12998_v38, %v12838_v20 }
 0x731   :  { %v23729_v59 = vpop.f32.mrf.mxu0  ;;  %v13142_v35 = vpop.f32.mrf.mxu1  ;;  %v12997_v39 = vadd.f32 %v12996_v13, %v12836_v49 }
 0x732   :  { %14132 = vst [vmem:[%s23847_s4 + $0x20] sm:$0xff] %v14125_v6  ;;  %v14126_v31 = vadd.f32 %v14119_v25, %v13138_v63  ;;  %v13143_v37 = vadd.f32 %v13142_v35, %v12990_v57 }
 0x733   :  { %v23737_v52 = vpop.f32.mrf.mxu0  ;;  %v13144_v8 = vpop.f32.mrf.mxu1 }
 0x734   :  { %14133 = vst [vmem:[%s23847_s4 + $0x28] sm:$0xff] %v14126_v31  ;;  %v14174_v32 = vadd.f32 %v14167_v48, %v13143_v37  ;;  %v13145_v50 = vadd.f32 %v13144_v8, %v12992_v19  ;;  %v26404_v31 = vld [vmem:[#allocation84_spill] sm:$0xff]  ;;  %v26405_v37 = vld [vmem:[#allocation18_spill] sm:$0xff] }
 0x735   :  { %v23743_v55 = vpop.f32.mrf.mxu0  ;;  %v13149_v56 = vpop.f32.mrf.mxu1  ;;  %v6114_v8 = vadd.f32 %v26405_v37, %v26404_v31 }
 0x736   :  { %14181 = vst [vmem:[%s23847_s4 + $0x58] sm:$0xff] %v14174_v32  ;;  %v14175_v25 = vadd.f32 %v14168_v45, %v13145_v50  ;;  %v13150_v2 = vadd.f32 %v13149_v56, %v12997_v39  ;;  %v26407_v39 = vld [vmem:[#allocation35_spill] sm:$0xff] }
 0x737   :  { %v23748_v18 = vpop.f32.mrf.mxu0  ;;  %v13151_v21 = vpop.f32.mrf.mxu1  ;;  %v6257_v32 = vadd.f32 %v26407_v39, %v6114_v8  ;;  %v26411_v8 = vld [vmem:[#allocation87_spill] sm:$0xff] }
 0x738   :  { %14182 = vst [vmem:[%s23847_s4 + $0x60] sm:$0xff] %v14175_v25  ;;  %v14223_v15 = vadd.f32 %v14216_v60, %v13150_v2  ;;  %v13152_v10 = vadd.f32 %v13151_v21, %v12999_v1  ;;  %v26409_v1 = vld [vmem:[#allocation64_spill] sm:$0xff] }
 0x739   :  { %v23753_v36 = vpop.f32.mrf.mxu0  ;;  %v14350_v5 = vpop.f32.mrf.mxu1  ;;  %v6368_v25 = vadd.f32 %v26409_v1, %v6257_v32 }
 0x73a   :  { %14230 = vst [vmem:[%s23847_s4 + $0x90] sm:$0xff] %v14223_v15  ;;  %v14224_v43 = vadd.f32 %v14217_v26, %v13152_v10  ;;  %v13425_v21 = vadd.f32 %v14350_v5, %v23729_v59 }
 0x73b   :  { %v13267_v12 = vpop.f32.mrf.mxu0  ;;  %v13418_v24 = vpop.f32.mrf.mxu1 }
 0x73c   :  { %14231 = vst [vmem:[%s23847_s4 + $0x98] sm:$0xff] %v14224_v43  ;;  %v26410_v43 = vld [vmem:[#allocation86_spill] sm:$0xff]  ;;  %v13419_v31 = vadd.f32 %v13418_v24, %v23737_v52 }
 0x73d   :  { %v23761_v48 = vpop.f32.mrf.mxu0  ;;  %v14353_v30 = vpop.f32.mrf.mxu1 }
 0x73e   :  { %v13437_v15 = vadd.f32 %v14353_v30, %v23743_v55 }
 0x73f   :  { %v23763_v27 = vpop.f32.mrf.mxu0  ;;  %v13430_v0 = vpop.f32.mrf.mxu1 }
 0x740   :  { %v13431_v32 = vadd.f32 %v13430_v0, %v23748_v18 }
 0x741   :  { %v23765_v61 = vpop.f32.mrf.mxu0  ;;  %v14356_v47 = vpop.f32.mrf.mxu1 }
 0x742   :  { %v13449_v30 = vadd.f32 %v14356_v47, %v23753_v36 }
 0x743   :  { %v23767_v40 = vpop.f32.mrf.mxu0  ;;  %v13442_v9 = vpop.f32.mrf.mxu1 }
 0x745   :  { %v23769_v54 = vpop.f32.mrf.mxu0  ;;  %v14359_v22 = vpop.f32.mrf.mxu1 }
 0x747   :  { %v23771_v13 = vpop.f32.mrf.mxu0  ;;  %v13454_v45 = vpop.f32.mrf.mxu1 }
 0x748   :  { %v13455_v52 = vadd.f32 %v13454_v45, %v23763_v27 }
 0x749   :  { %v14372_v28 = vpop.f32.mrf.mxu0  ;;  %v14362_v11 = vpop.f32.mrf.mxu1 }
 0x74a   :  { %v13568_v37 = vadd.f32 %v14372_v28, %v13425_v21 }
 0x74b   :  { %v13560_v29 = vpop.f32.mrf.mxu0  ;;  %v13466_v3 = vpop.f32.mrf.mxu1 }
 0x74c   :  { %v13561_v1 = vadd.f32 %v13560_v29, %v13419_v31  ;;  %v13467_v18 = vadd.f32 %v13466_v3, %v23767_v40 }
 0x74d   :  { %v14375_v7 = vpop.f32.mrf.mxu0  ;;  %v23773_v16 = vpop.f32.mrf.mxu1 }
 0x74f   :  { %v13574_v34 = vpop.f32.mrf.mxu0  ;;  %v23775_v14 = vpop.f32.mrf.mxu1 }
 0x751   :  { %v14378_v53 = vpop.f32.mrf.mxu0  ;;  %v14394_v38 = vpop.f32.mrf.mxu1 }
 0x752   :  { %v13721_v59 = vadd.f32 %v14394_v38, %v13568_v37  ;;  %v13596_v0 = vadd.f32 %v14378_v53, %v13449_v30  ;;  %v26415_v37 = vld [vmem:[#allocation118_spill] sm:$0xff] }
 0x753   :  { %v13588_v60 = vpop.f32.mrf.mxu0  ;;  %v13712_v33 = vpop.f32.mrf.mxu1 }
 0x755   :  { %v14381_v41 = vpop.f32.mrf.mxu0  ;;  %v14397_v58 = vpop.f32.mrf.mxu1 }
 0x757   :  { %v13602_v51 = vpop.f32.mrf.mxu0  ;;  %v23777_v42 = vpop.f32.mrf.mxu1 }
 0x758   :  { %v13603_v27 = vadd.f32 %v13602_v51, %v13455_v52 }
 0x759   :  { %v23779_v4 = vpop.f32.mrf.mxu0  ;;  %v14400_v57 = vpop.f32.mrf.mxu1 }
 0x75a   :  { %v13753_v45 = vadd.f32 %v14400_v57, %v13596_v0  ;;  %v26412_v57 = vld [vmem:[#allocation42_spill] sm:$0xff] }
 0x75b   :  { %v23781_v6 = vpop.f32.mrf.mxu0  ;;  %v13744_v63 = vpop.f32.mrf.mxu1 }
 0x75d   :  { %v23783_v26 = vpop.f32.mrf.mxu0  ;;  %v14403_v62 = vpop.f32.mrf.mxu1 }
 0x75e   :  { %26400 = vst [vmem:[#allocation124_spill] sm:$0xff] %v23783_v26 }
 0x75f   :  { %v23785_v44 = vpop.f32.mrf.mxu0  ;;  %v13760_v17 = vpop.f32.mrf.mxu1 }
 0x760   :  { %26401 = vst [vmem:[#allocation125_spill] sm:$0xff] %v23785_v44  ;;  %v6543_v44 = vadd.f32 %v26410_v43, %v6368_v25  ;;  %v13461_v25 = vadd.f32 %v14359_v22, %v23761_v48 }
 0x761   :  { %v14416_v35 = vpop.f32.mrf.mxu0  ;;  %v23787_v46 = vpop.f32.mrf.mxu1 }
 0x762   :  { %26402 = vst [vmem:[#allocation153_spill] sm:$0xff] %v23787_v46  ;;  %v23804_v39 = vadd.f32 %v26411_v8, %v6543_v44  ;;  %v13713_v44 = vadd.f32 %v13712_v33, %v13561_v1  ;;  %v13884_v21 = vadd.f32 %v14416_v35, %v13721_v59  ;;  %v13610_v29 = vadd.f32 %v14381_v41, %v13461_v25 }
 0x763   :  { %v13877_v49 = vpop.f32.mrf.mxu0  ;;  %v23789_v19 = vpop.f32.mrf.mxu1  ;;  %v13761_v41 = vadd.f32 %v13760_v17, %v13603_v27 }
 0x764   :  { %26403 = vst [vmem:[#allocation24_spill] sm:$0xff] %v23789_v19  ;;  %v13878_v36 = vadd.f32 %v13877_v49, %v13713_v44  ;;  %v13617_v49 = vadd.f32 %v23781_v6, %v13467_v18 }
 0x765   :  { %v14419_v23 = vpop.f32.mrf.mxu0  ;;  %v23793_v20 = vpop.f32.mrf.mxu1  ;;  %v26416_v1 = vld [vmem:[#allocation124_spill] sm:$0xff] }
 0x766   :  { %26406 = vst [vmem:[#allocation127_spill] sm:$0xff] %v23793_v20  ;;  %v13582_v20 = vadd.f32 %v14375_v7, %v13437_v15  ;;  %v13473_v7 = vadd.f32 %v14362_v11, %v23765_v61  ;;  %v13485_v61 = vadd.f32 %v23773_v16, %v23769_v54 }
 0x767   :  { %v13889_v50 = vpop.f32.mrf.mxu0  ;;  %v23796_v56 = vpop.f32.mrf.mxu1 }
 0x768   :  { %26408 = vst [vmem:[#allocation62_spill] sm:$0xff] %v23796_v56  ;;  %v13443_v56 = vadd.f32 %v13442_v9, %v13267_v12  ;;  %v13737_v5 = vadd.f32 %v14397_v58, %v13582_v20  ;;  %v13575_v20 = vadd.f32 %v13574_v34, %v13431_v32  ;;  %v13624_v40 = vadd.f32 %v23779_v4, %v13473_v7 }
 0x769   :  { %v14422_v2 = vpop.f32.mrf.mxu0  ;;  %v14438_v10 = vpop.f32.mrf.mxu1  ;;  %v26413_v17 = vld [vmem:[#allocation153_spill] sm:$0xff]  ;;  %v13638_v59 = vadd.f32 %v26416_v1, %v13485_v61 }
 0x76a   :  { %v13589_v24 = vadd.f32 %v13588_v60, %v13443_v56  ;;  %v13896_v12 = vadd.f32 %v14419_v23, %v13737_v5  ;;  %v14023_v47 = vadd.f32 %v14438_v10, %v13884_v21  ;;  %v13769_v60 = vadd.f32 %v14403_v62, %v13610_v29  ;;  %v26417_v5 = vld [vmem:[#allocation125_spill] sm:$0xff] }
 0x76b   :  { %v13901_v26 = vpop.f32.mrf.mxu0  ;;  %v14016_v19 = vpop.f32.mrf.mxu1  ;;  %v13729_v11 = vadd.f32 %v23777_v42, %v13575_v20  ;;  %v13908_v34 = vadd.f32 %v14422_v2, %v13753_v45  ;;  %v13785_v2 = vadd.f32 %v26413_v17, %v13624_v40 }
 0x76c   :  { %v13745_v38 = vadd.f32 %v13744_v63, %v13589_v24  ;;  %v14017_v3 = vadd.f32 %v14016_v19, %v13878_v36  ;;  %v14141_v62 = vmul.f32 %v14023_v47, %v26412_v57  ;;  %v13479_v19 = vadd.f32 %v23775_v14, %v23771_v13 }
 0x76d   :  { %v14425_v46 = vpop.f32.mrf.mxu0  ;;  %v14441_v55 = vpop.f32.mrf.mxu1  ;;  %v13890_v51 = vadd.f32 %v13889_v50, %v13729_v11  ;;  %v26418_v7 = vld [vmem:[#allocation127_spill] sm:$0xff] }
 0x76e   :  { %v14035_v48 = vadd.f32 %v14441_v55, %v13896_v12  ;;  %v13902_v56 = vadd.f32 %v13901_v26, %v13745_v38  ;;  %v13920_v63 = vadd.f32 %v14425_v46, %v13769_v60  ;;  %v26414_v46 = vld [vmem:[#allocation24_spill] sm:$0xff]  ;;  %v14092_v6 = vmul.f32 %v14017_v3, %v26412_v57 }
 0x76f   :  { %v13913_v28 = vpop.f32.mrf.mxu0  ;;  %v14028_v9 = vpop.f32.mrf.mxu1  ;;  %v13777_v15 = vadd.f32 %v26414_v46, %v13617_v49  ;;  %v13631_v55 = vadd.f32 %v26417_v5, %v13479_v19  ;;  %v13801_v44 = vadd.f32 %v26418_v7, %v13638_v59  ;;  %v26419_v21 = vld [vmem:[#allocation62_spill] sm:$0xff] }
 0x770   :  { %v14099_v26 = vmul.f32 %v14035_v48, %v23804_v39  ;;  %v13914_v54 = vadd.f32 %v13913_v28, %v13761_v41  ;;  %v14029_v43 = vadd.f32 %v14028_v9, %v13890_v51 }
 0x771   :  { %v14428_v58 = vpop.f32.mrf.mxu0  ;;  %v14444_v22 = vpop.f32.mrf.mxu1  ;;  %v13793_v12 = vadd.f32 %v26419_v21, %v13631_v55 }
 0x772   :  { %v14047_v16 = vadd.f32 %v14444_v22, %v13908_v34  ;;  %v14106_v30 = vadd.f32 %v14099_v26, %v14092_v6  ;;  %v13932_v25 = vadd.f32 %v14428_v58, %v13785_v2  ;;  %v14190_v0 = vmul.f32 %v14029_v43, %v26412_v57 }
 0x773   :  { %v13925_v53 = vpop.f32.mrf.mxu0  ;;  %v14040_v33 = vpop.f32.mrf.mxu1 }
 0x774   :  { %v14041_v35 = vadd.f32 %v14040_v33, %v13902_v56  ;;  %v14197_v14 = vmul.f32 %v14047_v16, %v23804_v39  ;;  %v13926_v52 = vadd.f32 %v13925_v53, %v13777_v15 }
 0x775   :  { %v14447_v23 = vpop.f32.mrf.mxu1  ;;  %v14431_v50 = vpop.f32.mrf.mxu0 }
 0x776   :  { %v14148_v42 = vmul.f32 %v14041_v35, %v23804_v39  ;;  %v14059_v4 = vadd.f32 %v14447_v23, %v13920_v63  ;;  %v13944_v36 = vadd.f32 %v14431_v50, %v13801_v44  ;;  %v14204_v47 = vadd.f32 %v14197_v14, %v14190_v0 }
 0x777   :  { %v14052_v10 = vpop.f32.mrf.mxu1  ;;  %v13937_v9 = vpop.f32.mrf.mxu0 }
 0x778   :  { %v14155_v31 = vadd.f32 %v14148_v42, %v14141_v62  ;;  %v14162_v8 = vmul.f32 %v14059_v4, %v26415_v37  ;;  %v14053_v32 = vadd.f32 %v14052_v10, %v13914_v54  ;;  %v13938_v48 = vadd.f32 %v13937_v9, %v13793_v12 }
 0x779   :  { %v14450_v13 = vpop.f32.mrf.mxu1 }
 0x77a   :  { %v14113_v24 = vmul.f32 %v14053_v32, %v26415_v37  ;;  %v14169_v28 = vadd.f32 %v14162_v8, %v14155_v31  ;;  %v14071_v29 = vadd.f32 %v14450_v13, %v13932_v25 }
 0x77b   :  { %v14064_v18 = vpop.f32.mrf.mxu1 }
 0x77c   :  { %v14120_v38 = vadd.f32 %v14113_v24, %v14106_v30  ;;  %v14065_v20 = vadd.f32 %v14064_v18, %v13926_v52 }
 0x77d   :  { %v14453_v58 = vpop.f32.mrf.mxu1 }
 0x77e   :  { %v14127_v39 = vadd.f32 %v14120_v38, %v14071_v29  ;;  %v14211_v22 = vmul.f32 %v14065_v20, %v26415_v37  ;;  %v14083_v45 = vadd.f32 %v14453_v58, %v13944_v36 }
 0x77f   :  { %v14076_v27 = vpop.f32.mrf.mxu1 }
 0x780   :  { %14134 = vst [vmem:[%s23847_s4 + $0x30] sm:$0xff] %v14127_v39  ;;  %v14218_v60 = vadd.f32 %v14211_v22, %v14204_v47  ;;  %v14077_v56 = vadd.f32 %v14076_v27, %v13938_v48 }
 0x782   :  { %v14225_v61 = vadd.f32 %v14218_v60, %v14083_v45  ;;  %v14176_v11 = vadd.f32 %v14169_v28, %v14077_v56 }
 0x784   :  { %14232 = vst [vmem:[%s23847_s4 + $0xa0] sm:$0xff] %v14225_v61  ;;  %14183 = vst [vmem:[%s23847_s4 + $0x68] sm:$0xff] %v14176_v11 }
 0x785   :  { %14237 = vsyncpa [#allocation3], 1 }

</bundles_post_ra>
